<compile_context>
chip_gen: v7x
topology: tpu7x:2x2x1
jax: 0.10.0
libtpu: 0.0.40
codegen_flags: <defaults>
</compile_context>

<pallas_src>
import functools

import numpy as np
import jax
import jax.numpy as jnp
from jax.experimental import pallas as pl
from jax.experimental.pallas import tpu as pltpu


def _round8(x):
    return ((x + 7) // 8) * 8


_PHASES = ((0, 0), (0, 1), (1, 0), (1, 1))   # (py, px) / (a, b) ordering


# ----------------------------------------------------------------------------
# Pallas kernels
# ----------------------------------------------------------------------------

def _make_step_kernel(geo, nc_lstm):
    """Fused per-image step: ConvLSTM gate conv + gating + decoder.decode
    (5x5, ReLU) + decoder.convt (4x4 s2 p1 as 4 sub-pixel phases, ReLU)."""
    Wp1, M1, L1 = geo["Wp1"], geo["M1"], geo["L1"]
    off_h = 2 * Wp1 + 2      # flat offset of valid (0,0) in the pad-2 layout
    off_c = Wp1 + 1          # flat offset of valid (0,0) in the pad-1 layout

    def kernel(zq_ref, hprev_ref, cprev_ref, vmask_ref,
               w_zq_ref, w_h_ref, b_lstm_ref,
               w_dec_ref, b_dec_ref,
               w_ct1_ref, b_ct1_ref,
               hpad_ref, c_ref, p1_ref,
               padc_ref):
        vmask = vmask_ref[...]                                   # (M1, 1) 0/1

        # --- ConvLSTM gates: 5x5 pad-2 conv over [z | query | h_prev] ---------
        gates = None
        for dy in range(5):
            for dx in range(5):
                t = dy * 5 + dx
                s = dy * Wp1 + dx
                xz = zq_ref[s:s + M1, :].astype(jnp.bfloat16)
                xh = hprev_ref[s:s + M1, :].astype(jnp.bfloat16)
                d = jnp.dot(xz, w_zq_ref[t], preferred_element_type=jnp.float32)
                d = d + jnp.dot(xh, w_h_ref[t], preferred_element_type=jnp.float32)
                gates = d if gates is None else gates + d
        gates = gates + b_lstm_ref[...]                          # (M1, 4*nc_lstm)

        # --- fused ConvLSTM gating (f32 elementwise; EUP transcendentals) -----
        gi = jax.nn.sigmoid(gates[:, 0 * nc_lstm:1 * nc_lstm])
        gf = jax.nn.sigmoid(gates[:, 1 * nc_lstm:2 * nc_lstm])
        go = jax.nn.sigmoid(gates[:, 2 * nc_lstm:3 * nc_lstm])
        gg = jnp.tanh(gates[:, 3 * nc_lstm:4 * nc_lstm])
        c_new = gf * cprev_ref[...] + gi * gg
        h_new = go * jnp.tanh(c_new)                             # (M1, nc_lstm)
        c_ref[...] = c_new

        # h state is emitted directly in the pad-2 flat layout so it can be
        # consumed (a) by the decode conv right below and (b) by next step's
        # gate conv with no wrapper re-padding.
        h_masked = h_new * vmask
        hpad_ref[...] = jnp.zeros((L1, nc_lstm), jnp.float32)
        hpad_ref[off_h:off_h + M1, :] = h_masked

        # --- decoder.decode: 5x5 pad-2 conv + ReLU ----------------------------
        xx = None
        for dy in range(5):
            for dx in range(5):
                t = dy * 5 + dx
                s = dy * Wp1 + dx
                xs = hpad_ref[s:s + M1, :].astype(jnp.bfloat16)
                d = jnp.dot(xs, w_dec_ref[t], preferred_element_type=jnp.float32)
                xx = d if xx is None else xx + d
        xx = jnp.maximum(xx + b_dec_ref[...], 0.0) * vmask       # (M1, nc_enc)

        # --- decoder.convt (4x4 s2 p1): sub-pixel phase decomposition + ReLU --
        padc_ref[...] = jnp.zeros(padc_ref.shape, jnp.float32)
        padc_ref[off_c:off_c + M1, :] = xx
        outs = []
        for pi, (py, px) in enumerate(_PHASES):
            acc = None
            for ti, (a, b) in enumerate(_PHASES):
                s = (py + a) * Wp1 + (px + b)
                xs = padc_ref[s:s + M1, :].astype(jnp.bfloat16)
                d = jnp.dot(xs, w_ct1_ref[pi * 4 + ti],
                            preferred_element_type=jnp.float32)
                acc = d if acc is None else acc + d
            outs.append(acc)
        p1 = jnp.concatenate(outs, axis=-1) + b_ct1_ref[...]     # (M1, 4*2*nc_enc)
        p1_ref[...] = jnp.maximum(p1, 0.0)

    return kernel


def _make_convt2_kernel(geo):
    """decoder.convt2 (4x4 s2 p1) as sub-pixel phases; accumulates mean_recon
    in place (do_sum=True) through input_output_aliases."""
    Wp2, M3 = geo["Wp2"], geo["M3"]

    def kernel(yp_ref, mprev_ref, w_ref, b_ref, out_ref):
        outs = []
        for pi, (py, px) in enumerate(_PHASES):
            acc = None
            for ti, (a, b) in enumerate(_PHASES):
                s = (py + a) * Wp2 + (px + b)
                xs = yp_ref[s:s + M3, :].astype(jnp.bfloat16)
                d = jnp.dot(xs, w_ref[pi * 4 + ti],
                            preferred_element_type=jnp.float32)
                acc = d if acc is None else acc + d
            outs.append(acc)
        out_ref[...] = jnp.concatenate(outs, axis=-1) + b_ref[...] + mprev_ref[...]

    return kernel


# ----------------------------------------------------------------------------
# Parameters
# ----------------------------------------------------------------------------

def init_params(key, *, im_channels, nc_query, nc_enc, nc_lstm, nz):
    """PyTorch-layout parameters (as in the reference module)."""
    ks = jax.random.split(key, 8)
    scale = 0.05
    p = {}
    cin_lstm = nz + nc_query + nc_lstm
    p["lstm_w"] = scale * jax.random.normal(ks[0], (4 * nc_lstm, cin_lstm, 5, 5), jnp.float32)
    p["lstm_b"] = scale * jax.random.normal(ks[1], (4 * nc_lstm,), jnp.float32)
    p["dec_w"] = scale * jax.random.normal(ks[2], (nc_enc, nc_lstm, 5, 5), jnp.float32)
    p["dec_b"] = scale * jax.random.normal(ks[3], (nc_enc,), jnp.float32)
    p["convt_w"] = scale * jax.random.normal(ks[4], (nc_enc, 2 * nc_enc, 4, 4), jnp.float32)
    p["convt_b"] = scale * jax.random.normal(ks[5], (2 * nc_enc,), jnp.float32)
    p["convt2_w"] = scale * jax.random.normal(ks[6], (2 * nc_enc, im_channels, 4, 4), jnp.float32)
    p["convt2_b"] = scale * jax.random.normal(ks[7], (im_channels,), jnp.float32)
    return p


def _convt_phase_taps(w):
    """(Cin, Cout, 4, 4) ConvTranspose2d weight -> (16, Cin, Cout) phase/tap slabs."""
    taps = []
    for py, px in _PHASES:
        for a, b in _PHASES:
            taps.append(w[:, :, 3 - 2 * a - py, 3 - 2 * b - px])
    return jnp.stack(taps, axis=0)


def prepare_params(p):
    """One-time repack of PyTorch-layout weights into kernel layout (bf16 taps)."""
    nc_lstm = p["lstm_b"].shape[0] // 4
    w = jnp.transpose(p["lstm_w"], (2, 3, 1, 0))
    w = w.reshape(25, w.shape[2], w.shape[3])            # (25, cin, 4*nc_lstm)
    nzq = w.shape[1] - nc_lstm
    return {
        "w_zq": w[:, :nzq, :].astype(jnp.bfloat16),
        "w_h": w[:, nzq:, :].astype(jnp.bfloat16),
        "b_lstm": p["lstm_b"].reshape(1, -1).astype(jnp.float32),
        "w_dec": jnp.transpose(p["dec_w"], (2, 3, 1, 0)).reshape(
            25, p["dec_w"].shape[1], p["dec_w"].shape[0]).astype(jnp.bfloat16),
        "b_dec": p["dec_b"].reshape(1, -1).astype(jnp.float32),
        "w_ct1": _convt_phase_taps(p["convt_w"]).astype(jnp.bfloat16),
        "b_ct1": jnp.tile(p["convt_b"].reshape(1, -1), (1, 4)).astype(jnp.float32),
        "w_ct2": _convt_phase_taps(p["convt2_w"]).astype(jnp.bfloat16),
        "b_ct2": jnp.tile(p["convt2_b"].reshape(1, -1), (1, 4)).astype(jnp.float32),
    }


# ----------------------------------------------------------------------------
# Forward
# ----------------------------------------------------------------------------

@functools.partial(jax.jit, static_argnames=("num_steps",))
def image_renderer_forward(kparams, z, emb_query_cat, data_episode_idx, num_steps=4):
    N = emb_query_cat.shape[0]
    _, z_steps, nz_per_step, zh, zw = z.shape
    nz = z_steps * nz_per_step
    nc_query = emb_query_cat.shape[1]
    nc_lstm = kparams["b_lstm"].shape[1] // 4
    nc_enc = kparams["b_dec"].shape[1]
    nct1 = 2 * nc_enc
    im_ch = kparams["b_ct2"].shape[1] // 4

    # ---- flat-shift geometry -------------------------------------------------
    H1, W1 = zh, zw
    Wp1 = W1 + 4                      # pad-2 row width of the z-resolution grid
    M1 = H1 * Wp1                     # conv output rows (valid cols j < W1)
    L1 = _round8(M1 + 4 * Wp1 + 4)    # flat length covering the 5x5 taps
    Lc = _round8(M1 + 2 * Wp1 + 2)    # flat length covering the 2x2 phase taps
    H2, W2 = 2 * zh, 2 * zw
    Wp2 = W2 + 2                      # pad-1 row width of the 2x grid
    M3 = H2 * Wp2
    L3 = _round8(M3 + 2 * Wp2 + 2)
    geo = dict(Wp1=Wp1, M1=M1, L1=L1, Wp2=Wp2, M3=M3)

    # ---- loop-invariant prep (hoisted out of the step loop) -------------------
    zb = z[data_episode_idx].reshape(N, nz, zh, zw)      # broadcast_representation
    z_nhwc = jnp.transpose(zb, (0, 2, 3, 1)).astype(jnp.float32)
    q = jnp.broadcast_to(emb_query_cat.astype(jnp.float32), (N, nc_query, zh, zw))
    q_nhwc = jnp.transpose(q, (0, 2, 3, 1))
    zq = jnp.concatenate([z_nhwc, q_nhwc], axis=-1)      # (N, zh, zw, nz+ncq)
    zq_pad = jnp.pad(zq, ((0, 0), (2, 2), (2, 2), (0, 0)))
    zq_flat = zq_pad.reshape(N, (H1 + 4) * Wp1, nz + nc_query)
    zq_flat = jnp.pad(zq_flat, ((0, 0), (0, L1 - (H1 + 4) * Wp1), (0, 0)))

    # 0/1 mask of the valid (j < W1) columns of the garbage-column layout
    vmask = jnp.asarray((np.arange(M1) % Wp1 < W1).astype(np.float32)).reshape(M1, 1)

    h_pad = jnp.zeros((N, L1, nc_lstm), jnp.float32)     # h state, pad-2 flat layout
    c_state = jnp.zeros((N, M1, nc_lstm), jnp.float32)   # c state, garbage-col layout
    mean_p2 = jnp.zeros((N, M3, 4 * im_ch), jnp.float32)  # accumulated convt2 phases

    step_call = pl.pallas_call(
        _make_step_kernel(geo, nc_lstm),
        out_shape=(
            jax.ShapeDtypeStruct((N, L1, nc_lstm), jnp.float32),
            jax.ShapeDtypeStruct((N, M1, nc_lstm), jnp.float32),
            jax.ShapeDtypeStruct((N, M1, 4 * nct1), jnp.float32),
        ),
        grid=(N,),
        in_specs=[
            pl.BlockSpec((None, L1, nz + nc_query), lambda n: (n, 0, 0)),
            pl.BlockSpec((None, L1, nc_lstm), lambda n: (n, 0, 0)),
            pl.BlockSpec((None, M1, nc_lstm), lambda n: (n, 0, 0)),
            pl.BlockSpec((M1, 1), lambda n: (0, 0)),
            pl.BlockSpec((25, nz + nc_query, 4 * nc_lstm), lambda n: (0, 0, 0)),
            pl.BlockSpec((25, nc_lstm, 4 * nc_lstm), lambda n: (0, 0, 0)),
            pl.BlockSpec((1, 4 * nc_lstm), lambda n: (0, 0)),
            pl.BlockSpec((25, nc_lstm, nc_enc), lambda n: (0, 0, 0)),
            pl.BlockSpec((1, nc_enc), lambda n: (0, 0)),
            pl.BlockSpec((16, nc_enc, nct1), lambda n: (0, 0, 0)),
            pl.BlockSpec((1, 4 * nct1), lambda n: (0, 0)),
        ],
        out_specs=(
            pl.BlockSpec((None, L1, nc_lstm), lambda n: (n, 0, 0)),
            pl.BlockSpec((None, M1, nc_lstm), lambda n: (n, 0, 0)),
            pl.BlockSpec((None, M1, 4 * nct1), lambda n: (n, 0, 0)),
        ),
        scratch_shapes=[pltpu.VMEM((Lc, nc_enc), jnp.float32)],
        compiler_params=pltpu.CompilerParams(dimension_semantics=("parallel",)),
    )

    convt2_call = pl.pallas_call(
        _make_convt2_kernel(geo),
        out_shape=jax.ShapeDtypeStruct((N, M3, 4 * im_ch), jnp.float32),
        grid=(N,),
        in_specs=[
            pl.BlockSpec((None, L3, nct1), lambda n: (n, 0, 0)),
            pl.BlockSpec((None, M3, 4 * im_ch), lambda n: (n, 0, 0)),
            pl.BlockSpec((16, nct1, im_ch), lambda n: (0, 0, 0)),
            pl.BlockSpec((1, 4 * im_ch), lambda n: (0, 0)),
        ],
        out_specs=pl.BlockSpec((None, M3, 4 * im_ch), lambda n: (n, 0, 0)),
        input_output_aliases={1: 0},     # accumulate mean_recon in place
        compiler_params=pltpu.CompilerParams(dimension_semantics=("parallel",)),
    )

    for _ in range(num_steps):
        h_pad, c_state, p1 = step_call(
            zq_flat, h_pad, c_state, vmask,
            kparams["w_zq"], kparams["w_h"], kparams["b_lstm"],
            kparams["w_dec"], kparams["b_dec"],
            kparams["w_ct1"], kparams["b_ct1"])

        # pixel-shuffle convt phases -> (N, H2, W2, nct1), then pad+flatten for convt2
        t = p1.reshape(N, H1, Wp1, 2, 2, nct1)[:, :, :W1]
        t = jnp.transpose(t, (0, 1, 3, 2, 4, 5))
        y = t.reshape(N, H2, W2, nct1)
        yp = jnp.pad(y, ((0, 0), (1, 1), (1, 1), (0, 0)))
        yp_flat = yp.reshape(N, (H2 + 2) * Wp2, nct1)
        yp_flat = jnp.pad(yp_flat, ((0, 0), (0, L3 - (H2 + 2) * Wp2), (0, 0)))

        mean_p2 = convt2_call(yp_flat, mean_p2, kparams["w_ct2"], kparams["b_ct2"])

    # drop garbage columns + pixel-shuffle the accumulated convt2 phases -> NCHW
    t = mean_p2.reshape(N, H2, Wp2, 2, 2, im_ch)[:, :, :W2]
    t = jnp.transpose(t, (0, 1, 3, 2, 4, 5))
    img = t.reshape(N, 2 * H2, 2 * W2, im_ch)
    return jnp.transpose(img, (0, 3, 1, 2))


# ----------------------------------------------------------------------------
# Pure-JAX reference (f32) for validation
# ----------------------------------------------------------------------------

def _ref_conv2d(x, w, b, pad):
    k = w.shape[-1]
    N, H, W, _ = x.shape
    Ho, Wo = H + 2 * pad - k + 1, W + 2 * pad - k + 1
    xp = jnp.pad(x, ((0, 0), (pad, pad), (pad, pad), (0, 0)))
    out = jnp.zeros((N, Ho, Wo, w.shape[0]), jnp.float32) + b
    for dy in range(k):
        for dx in range(k):
            out = out + jnp.einsum("nhwc,dc->nhwd",
                                   xp[:, dy:dy + Ho, dx:dx + Wo, :],
                                   w[:, :, dy, dx],
                                   precision=jax.lax.Precision.HIGHEST)
    return out


def _ref_convt2d(x, w, b, stride=2, padding=1):
    N, H, W, C = x.shape
    k = w.shape[-1]
    xd = jnp.zeros((N, (H - 1) * stride + 1, (W - 1) * stride + 1, C), x.dtype)
    xd = xd.at[:, ::stride, ::stride, :].set(x)
    wc = jnp.transpose(w[:, :, ::-1, ::-1], (1, 0, 2, 3))
    return _ref_conv2d(xd, wc, b, pad=k - 1 - padding)


@functools.partial(jax.jit, static_argnames=("num_steps",))
def reference_forward(params, z, emb_query_cat, data_episode_idx, num_steps=4):
    N = emb_query_cat.shape[0]
    _, z_steps, nz_per_step, zh, zw = z.shape
    nz = z_steps * nz_per_step
    nc_lstm = params["lstm_b"].shape[0] // 4
    im_ch = params["convt2_b"].shape[0]
    zb = z[data_episode_idx].reshape(N, nz, zh, zw)
    z_nhwc = jnp.transpose(zb, (0, 2, 3, 1)).astype(jnp.float32)
    q = jnp.broadcast_to(emb_query_cat, (N, emb_query_cat.shape[1], zh, zw))
    q_nhwc = jnp.transpose(q, (0, 2, 3, 1)).astype(jnp.float32)
    zq = jnp.concatenate([z_nhwc, q_nhwc], axis=-1)
    h = jnp.zeros((N, zh, zw, nc_lstm), jnp.float32)
    c = jnp.zeros_like(h)
    mean = jnp.zeros((N, 4 * zh, 4 * zw, im_ch), jnp.float32)
    for _ in range(num_steps):
        gates = _ref_conv2d(jnp.concatenate([zq, h], -1),
                            params["lstm_w"], params["lstm_b"], pad=2)
        gi, gf, go, gg = jnp.split(gates, 4, axis=-1)
        c = jax.nn.sigmoid(gf) * c + jax.nn.sigmoid(gi) * jnp.tanh(gg)
        h = jax.nn.sigmoid(go) * jnp.tanh(c)
        xx = jax.nn.relu(_ref_conv2d(h, params["dec_w"], params["dec_b"], pad=2))
        xx = jax.nn.relu(_ref_convt2d(xx, params["convt_w"], params["convt_b"]))
        mean = mean + _ref_convt2d(xx, params["convt2_w"], params["convt2_b"])
    return jnp.transpose(mean, (0, 3, 1, 2))


# ----------------------------------------------------------------------------
# Main
# ----------------------------------------------------------------------------

if __name__ == "__main__":
    # Small synthetic config consistent with the module:
    #   z_height = z_width = 4 -> decoder upsamples 4 -> 8 -> 16, so im = 16x16
    im_channels = 3
    nc_query = 7
    nc_enc = 8
    nc_lstm = 8
    nz_per_step = 3
    z_num_steps = 4
    num_steps = 4
    z_h = z_w = 4
    nz = nz_per_step * z_num_steps

    num_episodes = 2
    batch_sizes = (1, 2)
    indices = (0, 1)
    num_data = sum(batch_sizes)

    key = jax.random.PRNGKey(0)
    k_param, k_z, k_q0, k_q1 = jax.random.split(key, 4)

    params = init_params(k_param, im_channels=im_channels, nc_query=nc_query,
                         nc_enc=nc_enc, nc_lstm=nc_lstm, nz=nz)
    kparams = prepare_params(params)       # one-time bf16 repack (not per call)

    z = jax.random.normal(k_z, (num_episodes, z_num_steps, nz_per_step, z_h, z_w),
                          jnp.float32)
    emb_queries = [
        jax.random.normal(k_q0, (batch_sizes[0], nc_query, 1, 1), jnp.float32),
        jax.random.normal(k_q1, (batch_sizes[1], nc_query, 1, 1), jnp.float32),
    ]
    emb_query_cat = jnp.concatenate(emb_queries, axis=0)
    data_episode_idx = jnp.asarray(
        np.repeat(np.asarray(indices), np.asarray(batch_sizes)), jnp.int32)

    out = image_renderer_forward(kparams, z, emb_query_cat, data_episode_idx,
                                 num_steps=num_steps)
    out = jax.block_until_ready(out)

    expected = (num_data, im_channels, 4 * z_h, 4 * z_w)
    assert out.shape == expected, (out.shape, expected)
    assert out.dtype == jnp.float32
    assert bool(jnp.all(jnp.isfinite(out)))

    # Validate against the pure-JAX f32 reference (bf16 MXU inputs -> loose tol).
    ref = jax.block_until_ready(
        reference_forward(params, z, emb_query_cat, data_episode_idx,
                          num_steps=num_steps))
    max_err = float(jnp.max(jnp.abs(out - ref)))
    assert np.allclose(np.asarray(out), np.asarray(ref), rtol=5e-2, atol=1e-2), max_err

    print("KERNEL_OK")
</pallas_src>

<mosaic_0001>
module attributes {stable_mosaic.version = 11 : i64} {
  func.func @kernel(%arg0: i32, %arg1: memref<1x72x19xf32, #tpu.memory_space<vmem>>, %arg2: memref<1x72x8xf32, #tpu.memory_space<vmem>>, %arg3: memref<1x32x8xf32, #tpu.memory_space<vmem>>, %arg4: memref<32x1xf32, #tpu.memory_space<vmem>>, %arg5: memref<25x19x32xbf16, #tpu.memory_space<vmem>>, %arg6: memref<25x8x32xbf16, #tpu.memory_space<vmem>>, %arg7: memref<1x32xf32, #tpu.memory_space<vmem>>, %arg8: memref<25x8x8xbf16, #tpu.memory_space<vmem>>, %arg9: memref<1x8xf32, #tpu.memory_space<vmem>>, %arg10: memref<16x8x16xbf16, #tpu.memory_space<vmem>>, %arg11: memref<1x64xf32, #tpu.memory_space<vmem>>, %arg12: memref<1x72x8xf32, #tpu.memory_space<vmem>>, %arg13: memref<1x32x8xf32, #tpu.memory_space<vmem>>, %arg14: memref<1x32x64xf32, #tpu.memory_space<vmem>>, %arg15: memref<56x8xf32, #tpu.memory_space<vmem>>) attributes {dimension_semantics = [#tpu.dimension_semantics<parallel>], iteration_bounds = array<i64: 3>, scalar_prefetch = 0 : i64, scratch_operands = 1 : i64, tpu.core_type = #tpu.core_type<tc>, window_params = [{transform_indices = @transform_0, window_bounds = array<i64: 1, 72, 19>}, {transform_indices = @transform_1, window_bounds = array<i64: 1, 72, 8>}, {transform_indices = @transform_2, window_bounds = array<i64: 1, 32, 8>}, {pipeline_mode = #tpu.pipeline_mode<synchronous>, transform_indices = @transform_3, window_bounds = array<i64: 32, 1>}, {pipeline_mode = #tpu.pipeline_mode<synchronous>, transform_indices = @transform_4, window_bounds = array<i64: 25, 19, 32>}, {pipeline_mode = #tpu.pipeline_mode<synchronous>, transform_indices = @transform_5, window_bounds = array<i64: 25, 8, 32>}, {pipeline_mode = #tpu.pipeline_mode<synchronous>, transform_indices = @transform_6, window_bounds = array<i64: 1, 32>}, {pipeline_mode = #tpu.pipeline_mode<synchronous>, transform_indices = @transform_7, window_bounds = array<i64: 25, 8, 8>}, {pipeline_mode = #tpu.pipeline_mode<synchronous>, transform_indices = @transform_8, window_bounds = array<i64: 1, 8>}, {pipeline_mode = #tpu.pipeline_mode<synchronous>, transform_indices = @transform_9, window_bounds = array<i64: 16, 8, 16>}, {pipeline_mode = #tpu.pipeline_mode<synchronous>, transform_indices = @transform_10, window_bounds = array<i64: 1, 64>}, {transform_indices = @transform_11, window_bounds = array<i64: 1, 72, 8>}, {transform_indices = @transform_12, window_bounds = array<i64: 1, 32, 8>}, {transform_indices = @transform_13, window_bounds = array<i64: 1, 32, 64>}]} {
    %c0 = arith.constant 0 : index
    %c0_0 = arith.constant 0 : index
    %0 = vector.load %arg4[%c0, %c0_0] : memref<32x1xf32, #tpu.memory_space<vmem>>, vector<32x1xf32>
    %c0_1 = arith.constant 0 : index
    %c0_2 = arith.constant 0 : index
    %c0_3 = arith.constant 0 : index
    %1 = vector.load %arg1[%c0_1, %c0_2, %c0_3] : memref<1x72x19xf32, #tpu.memory_space<vmem>>, vector<1x32x19xf32>
    %2 = vector.shape_cast %1 : vector<1x32x19xf32> to vector<32x19xf32>
    %3 = arith.truncf %2 : vector<32x19xf32> to vector<32x19xbf16>
    %c0_4 = arith.constant 0 : index
    %c0_5 = arith.constant 0 : index
    %c0_6 = arith.constant 0 : index
    %4 = vector.load %arg2[%c0_4, %c0_5, %c0_6] : memref<1x72x8xf32, #tpu.memory_space<vmem>>, vector<1x32x8xf32>
    %5 = vector.shape_cast %4 : vector<1x32x8xf32> to vector<32x8xf32>
    %6 = arith.truncf %5 : vector<32x8xf32> to vector<32x8xbf16>
    %c0_7 = arith.constant 0 : index
    %c0_8 = arith.constant 0 : index
    %c0_9 = arith.constant 0 : index
    %7 = vector.load %arg5[%c0_7, %c0_8, %c0_9] : memref<25x19x32xbf16, #tpu.memory_space<vmem>>, vector<1x19x32xbf16>
    %8 = vector.shape_cast %7 : vector<1x19x32xbf16> to vector<19x32xbf16>
    %cst = arith.constant dense<0.000000e+00> : vector<32x32xf32>
    %9 = tpu.matmul %3, %8, %cst {dimension_numbers = #tpu.dot_dimension_numbers<[1], [0], [0], [1], [0, 0, 1, 1], [], []>} : vector<32x19xbf16>, vector<19x32xbf16>, vector<32x32xf32> -> vector<32x32xf32>
    %c0_10 = arith.constant 0 : index
    %c0_11 = arith.constant 0 : index
    %c0_12 = arith.constant 0 : index
    %10 = vector.load %arg6[%c0_10, %c0_11, %c0_12] : memref<25x8x32xbf16, #tpu.memory_space<vmem>>, vector<1x8x32xbf16>
    %11 = vector.shape_cast %10 : vector<1x8x32xbf16> to vector<8x32xbf16>
    %cst_13 = arith.constant dense<0.000000e+00> : vector<32x32xf32>
    %12 = tpu.matmul %6, %11, %cst_13 {dimension_numbers = #tpu.dot_dimension_numbers<[1], [0], [0], [1], [0, 0, 1, 1], [], []>} : vector<32x8xbf16>, vector<8x32xbf16>, vector<32x32xf32> -> vector<32x32xf32>
    %13 = arith.addf %9, %12 : vector<32x32xf32>
    %c0_14 = arith.constant 0 : index
    %c1 = arith.constant 1 : index
    %c0_15 = arith.constant 0 : index
    %14 = vector.load %arg1[%c0_14, %c1, %c0_15] : memref<1x72x19xf32, #tpu.memory_space<vmem>>, vector<1x32x19xf32>
    %15 = vector.shape_cast %14 : vector<1x32x19xf32> to vector<32x19xf32>
    %16 = arith.truncf %15 : vector<32x19xf32> to vector<32x19xbf16>
    %c0_16 = arith.constant 0 : index
    %c1_17 = arith.constant 1 : index
    %c0_18 = arith.constant 0 : index
    %17 = vector.load %arg2[%c0_16, %c1_17, %c0_18] : memref<1x72x8xf32, #tpu.memory_space<vmem>>, vector<1x32x8xf32>
    %18 = vector.shape_cast %17 : vector<1x32x8xf32> to vector<32x8xf32>
    %19 = arith.truncf %18 : vector<32x8xf32> to vector<32x8xbf16>
    %c1_19 = arith.constant 1 : index
    %c0_20 = arith.constant 0 : index
    %c0_21 = arith.constant 0 : index
    %20 = vector.load %arg5[%c1_19, %c0_20, %c0_21] : memref<25x19x32xbf16, #tpu.memory_space<vmem>>, vector<1x19x32xbf16>
    %21 = vector.shape_cast %20 : vector<1x19x32xbf16> to vector<19x32xbf16>
    %cst_22 = arith.constant dense<0.000000e+00> : vector<32x32xf32>
    %22 = tpu.matmul %16, %21, %cst_22 {dimension_numbers = #tpu.dot_dimension_numbers<[1], [0], [0], [1], [0, 0, 1, 1], [], []>} : vector<32x19xbf16>, vector<19x32xbf16>, vector<32x32xf32> -> vector<32x32xf32>
    %c1_23 = arith.constant 1 : index
    %c0_24 = arith.constant 0 : index
    %c0_25 = arith.constant 0 : index
    %23 = vector.load %arg6[%c1_23, %c0_24, %c0_25] : memref<25x8x32xbf16, #tpu.memory_space<vmem>>, vector<1x8x32xbf16>
    %24 = vector.shape_cast %23 : vector<1x8x32xbf16> to vector<8x32xbf16>
    %cst_26 = arith.constant dense<0.000000e+00> : vector<32x32xf32>
    %25 = tpu.matmul %19, %24, %cst_26 {dimension_numbers = #tpu.dot_dimension_numbers<[1], [0], [0], [1], [0, 0, 1, 1], [], []>} : vector<32x8xbf16>, vector<8x32xbf16>, vector<32x32xf32> -> vector<32x32xf32>
    %26 = arith.addf %22, %25 : vector<32x32xf32>
    %27 = arith.addf %13, %26 : vector<32x32xf32>
    %c0_27 = arith.constant 0 : index
    %c2 = arith.constant 2 : index
    %c0_28 = arith.constant 0 : index
    %28 = vector.load %arg1[%c0_27, %c2, %c0_28] : memref<1x72x19xf32, #tpu.memory_space<vmem>>, vector<1x32x19xf32>
    %29 = vector.shape_cast %28 : vector<1x32x19xf32> to vector<32x19xf32>
    %30 = arith.truncf %29 : vector<32x19xf32> to vector<32x19xbf16>
    %c0_29 = arith.constant 0 : index
    %c2_30 = arith.constant 2 : index
    %c0_31 = arith.constant 0 : index
    %31 = vector.load %arg2[%c0_29, %c2_30, %c0_31] : memref<1x72x8xf32, #tpu.memory_space<vmem>>, vector<1x32x8xf32>
    %32 = vector.shape_cast %31 : vector<1x32x8xf32> to vector<32x8xf32>
    %33 = arith.truncf %32 : vector<32x8xf32> to vector<32x8xbf16>
    %c2_32 = arith.constant 2 : index
    %c0_33 = arith.constant 0 : index
    %c0_34 = arith.constant 0 : index
    %34 = vector.load %arg5[%c2_32, %c0_33, %c0_34] : memref<25x19x32xbf16, #tpu.memory_space<vmem>>, vector<1x19x32xbf16>
    %35 = vector.shape_cast %34 : vector<1x19x32xbf16> to vector<19x32xbf16>
    %cst_35 = arith.constant dense<0.000000e+00> : vector<32x32xf32>
    %36 = tpu.matmul %30, %35, %cst_35 {dimension_numbers = #tpu.dot_dimension_numbers<[1], [0], [0], [1], [0, 0, 1, 1], [], []>} : vector<32x19xbf16>, vector<19x32xbf16>, vector<32x32xf32> -> vector<32x32xf32>
    %c2_36 = arith.constant 2 : index
    %c0_37 = arith.constant 0 : index
    %c0_38 = arith.constant 0 : index
    %37 = vector.load %arg6[%c2_36, %c0_37, %c0_38] : memref<25x8x32xbf16, #tpu.memory_space<vmem>>, vector<1x8x32xbf16>
    %38 = vector.shape_cast %37 : vector<1x8x32xbf16> to vector<8x32xbf16>
    %cst_39 = arith.constant dense<0.000000e+00> : vector<32x32xf32>
    %39 = tpu.matmul %33, %38, %cst_39 {dimension_numbers = #tpu.dot_dimension_numbers<[1], [0], [0], [1], [0, 0, 1, 1], [], []>} : vector<32x8xbf16>, vector<8x32xbf16>, vector<32x32xf32> -> vector<32x32xf32>
    %40 = arith.addf %36, %39 : vector<32x32xf32>
    %41 = arith.addf %27, %40 : vector<32x32xf32>
    %c0_40 = arith.constant 0 : index
    %c3 = arith.constant 3 : index
    %c0_41 = arith.constant 0 : index
    %42 = vector.load %arg1[%c0_40, %c3, %c0_41] : memref<1x72x19xf32, #tpu.memory_space<vmem>>, vector<1x32x19xf32>
    %43 = vector.shape_cast %42 : vector<1x32x19xf32> to vector<32x19xf32>
    %44 = arith.truncf %43 : vector<32x19xf32> to vector<32x19xbf16>
    %c0_42 = arith.constant 0 : index
    %c3_43 = arith.constant 3 : index
    %c0_44 = arith.constant 0 : index
    %45 = vector.load %arg2[%c0_42, %c3_43, %c0_44] : memref<1x72x8xf32, #tpu.memory_space<vmem>>, vector<1x32x8xf32>
    %46 = vector.shape_cast %45 : vector<1x32x8xf32> to vector<32x8xf32>
    %47 = arith.truncf %46 : vector<32x8xf32> to vector<32x8xbf16>
    %c3_45 = arith.constant 3 : index
    %c0_46 = arith.constant 0 : index
    %c0_47 = arith.constant 0 : index
    %48 = vector.load %arg5[%c3_45, %c0_46, %c0_47] : memref<25x19x32xbf16, #tpu.memory_space<vmem>>, vector<1x19x32xbf16>
    %49 = vector.shape_cast %48 : vector<1x19x32xbf16> to vector<19x32xbf16>
    %cst_48 = arith.constant dense<0.000000e+00> : vector<32x32xf32>
    %50 = tpu.matmul %44, %49, %cst_48 {dimension_numbers = #tpu.dot_dimension_numbers<[1], [0], [0], [1], [0, 0, 1, 1], [], []>} : vector<32x19xbf16>, vector<19x32xbf16>, vector<32x32xf32> -> vector<32x32xf32>
    %c3_49 = arith.constant 3 : index
    %c0_50 = arith.constant 0 : index
    %c0_51 = arith.constant 0 : index
    %51 = vector.load %arg6[%c3_49, %c0_50, %c0_51] : memref<25x8x32xbf16, #tpu.memory_space<vmem>>, vector<1x8x32xbf16>
    %52 = vector.shape_cast %51 : vector<1x8x32xbf16> to vector<8x32xbf16>
    %cst_52 = arith.constant dense<0.000000e+00> : vector<32x32xf32>
    %53 = tpu.matmul %47, %52, %cst_52 {dimension_numbers = #tpu.dot_dimension_numbers<[1], [0], [0], [1], [0, 0, 1, 1], [], []>} : vector<32x8xbf16>, vector<8x32xbf16>, vector<32x32xf32> -> vector<32x32xf32>
    %54 = arith.addf %50, %53 : vector<32x32xf32>
    %55 = arith.addf %41, %54 : vector<32x32xf32>
    %c0_53 = arith.constant 0 : index
    %c4 = arith.constant 4 : index
    %c0_54 = arith.constant 0 : index
    %56 = vector.load %arg1[%c0_53, %c4, %c0_54] : memref<1x72x19xf32, #tpu.memory_space<vmem>>, vector<1x32x19xf32>
    %57 = vector.shape_cast %56 : vector<1x32x19xf32> to vector<32x19xf32>
    %58 = arith.truncf %57 : vector<32x19xf32> to vector<32x19xbf16>
    %c0_55 = arith.constant 0 : index
    %c4_56 = arith.constant 4 : index
    %c0_57 = arith.constant 0 : index
    %59 = vector.load %arg2[%c0_55, %c4_56, %c0_57] : memref<1x72x8xf32, #tpu.memory_space<vmem>>, vector<1x32x8xf32>
    %60 = vector.shape_cast %59 : vector<1x32x8xf32> to vector<32x8xf32>
    %61 = arith.truncf %60 : vector<32x8xf32> to vector<32x8xbf16>
    %c4_58 = arith.constant 4 : index
    %c0_59 = arith.constant 0 : index
    %c0_60 = arith.constant 0 : index
    %62 = vector.load %arg5[%c4_58, %c0_59, %c0_60] : memref<25x19x32xbf16, #tpu.memory_space<vmem>>, vector<1x19x32xbf16>
    %63 = vector.shape_cast %62 : vector<1x19x32xbf16> to vector<19x32xbf16>
    %cst_61 = arith.constant dense<0.000000e+00> : vector<32x32xf32>
    %64 = tpu.matmul %58, %63, %cst_61 {dimension_numbers = #tpu.dot_dimension_numbers<[1], [0], [0], [1], [0, 0, 1, 1], [], []>} : vector<32x19xbf16>, vector<19x32xbf16>, vector<32x32xf32> -> vector<32x32xf32>
    %c4_62 = arith.constant 4 : index
    %c0_63 = arith.constant 0 : index
    %c0_64 = arith.constant 0 : index
    %65 = vector.load %arg6[%c4_62, %c0_63, %c0_64] : memref<25x8x32xbf16, #tpu.memory_space<vmem>>, vector<1x8x32xbf16>
    %66 = vector.shape_cast %65 : vector<1x8x32xbf16> to vector<8x32xbf16>
    %cst_65 = arith.constant dense<0.000000e+00> : vector<32x32xf32>
    %67 = tpu.matmul %61, %66, %cst_65 {dimension_numbers = #tpu.dot_dimension_numbers<[1], [0], [0], [1], [0, 0, 1, 1], [], []>} : vector<32x8xbf16>, vector<8x32xbf16>, vector<32x32xf32> -> vector<32x32xf32>
    %68 = arith.addf %64, %67 : vector<32x32xf32>
    %69 = arith.addf %55, %68 : vector<32x32xf32>
    %c0_66 = arith.constant 0 : index
    %c8 = arith.constant 8 : index
    %c0_67 = arith.constant 0 : index
    %70 = vector.load %arg1[%c0_66, %c8, %c0_67] : memref<1x72x19xf32, #tpu.memory_space<vmem>>, vector<1x32x19xf32>
    %71 = vector.shape_cast %70 : vector<1x32x19xf32> to vector<32x19xf32>
    %72 = arith.truncf %71 : vector<32x19xf32> to vector<32x19xbf16>
    %c0_68 = arith.constant 0 : index
    %c8_69 = arith.constant 8 : index
    %c0_70 = arith.constant 0 : index
    %73 = vector.load %arg2[%c0_68, %c8_69, %c0_70] : memref<1x72x8xf32, #tpu.memory_space<vmem>>, vector<1x32x8xf32>
    %74 = vector.shape_cast %73 : vector<1x32x8xf32> to vector<32x8xf32>
    %75 = arith.truncf %74 : vector<32x8xf32> to vector<32x8xbf16>
    %c5 = arith.constant 5 : index
    %c0_71 = arith.constant 0 : index
    %c0_72 = arith.constant 0 : index
    %76 = vector.load %arg5[%c5, %c0_71, %c0_72] : memref<25x19x32xbf16, #tpu.memory_space<vmem>>, vector<1x19x32xbf16>
    %77 = vector.shape_cast %76 : vector<1x19x32xbf16> to vector<19x32xbf16>
    %cst_73 = arith.constant dense<0.000000e+00> : vector<32x32xf32>
    %78 = tpu.matmul %72, %77, %cst_73 {dimension_numbers = #tpu.dot_dimension_numbers<[1], [0], [0], [1], [0, 0, 1, 1], [], []>} : vector<32x19xbf16>, vector<19x32xbf16>, vector<32x32xf32> -> vector<32x32xf32>
    %c5_74 = arith.constant 5 : index
    %c0_75 = arith.constant 0 : index
    %c0_76 = arith.constant 0 : index
    %79 = vector.load %arg6[%c5_74, %c0_75, %c0_76] : memref<25x8x32xbf16, #tpu.memory_space<vmem>>, vector<1x8x32xbf16>
    %80 = vector.shape_cast %79 : vector<1x8x32xbf16> to vector<8x32xbf16>
    %cst_77 = arith.constant dense<0.000000e+00> : vector<32x32xf32>
    %81 = tpu.matmul %75, %80, %cst_77 {dimension_numbers = #tpu.dot_dimension_numbers<[1], [0], [0], [1], [0, 0, 1, 1], [], []>} : vector<32x8xbf16>, vector<8x32xbf16>, vector<32x32xf32> -> vector<32x32xf32>
    %82 = arith.addf %78, %81 : vector<32x32xf32>
    %83 = arith.addf %69, %82 : vector<32x32xf32>
    %c0_78 = arith.constant 0 : index
    %c9 = arith.constant 9 : index
    %c0_79 = arith.constant 0 : index
    %84 = vector.load %arg1[%c0_78, %c9, %c0_79] : memref<1x72x19xf32, #tpu.memory_space<vmem>>, vector<1x32x19xf32>
    %85 = vector.shape_cast %84 : vector<1x32x19xf32> to vector<32x19xf32>
    %86 = arith.truncf %85 : vector<32x19xf32> to vector<32x19xbf16>
    %c0_80 = arith.constant 0 : index
    %c9_81 = arith.constant 9 : index
    %c0_82 = arith.constant 0 : index
    %87 = vector.load %arg2[%c0_80, %c9_81, %c0_82] : memref<1x72x8xf32, #tpu.memory_space<vmem>>, vector<1x32x8xf32>
    %88 = vector.shape_cast %87 : vector<1x32x8xf32> to vector<32x8xf32>
    %89 = arith.truncf %88 : vector<32x8xf32> to vector<32x8xbf16>
    %c6 = arith.constant 6 : index
    %c0_83 = arith.constant 0 : index
    %c0_84 = arith.constant 0 : index
    %90 = vector.load %arg5[%c6, %c0_83, %c0_84] : memref<25x19x32xbf16, #tpu.memory_space<vmem>>, vector<1x19x32xbf16>
    %91 = vector.shape_cast %90 : vector<1x19x32xbf16> to vector<19x32xbf16>
    %cst_85 = arith.constant dense<0.000000e+00> : vector<32x32xf32>
    %92 = tpu.matmul %86, %91, %cst_85 {dimension_numbers = #tpu.dot_dimension_numbers<[1], [0], [0], [1], [0, 0, 1, 1], [], []>} : vector<32x19xbf16>, vector<19x32xbf16>, vector<32x32xf32> -> vector<32x32xf32>
    %c6_86 = arith.constant 6 : index
    %c0_87 = arith.constant 0 : index
    %c0_88 = arith.constant 0 : index
    %93 = vector.load %arg6[%c6_86, %c0_87, %c0_88] : memref<25x8x32xbf16, #tpu.memory_space<vmem>>, vector<1x8x32xbf16>
    %94 = vector.shape_cast %93 : vector<1x8x32xbf16> to vector<8x32xbf16>
    %cst_89 = arith.constant dense<0.000000e+00> : vector<32x32xf32>
    %95 = tpu.matmul %89, %94, %cst_89 {dimension_numbers = #tpu.dot_dimension_numbers<[1], [0], [0], [1], [0, 0, 1, 1], [], []>} : vector<32x8xbf16>, vector<8x32xbf16>, vector<32x32xf32> -> vector<32x32xf32>
    %96 = arith.addf %92, %95 : vector<32x32xf32>
    %97 = arith.addf %83, %96 : vector<32x32xf32>
    %c0_90 = arith.constant 0 : index
    %c10 = arith.constant 10 : index
    %c0_91 = arith.constant 0 : index
    %98 = vector.load %arg1[%c0_90, %c10, %c0_91] : memref<1x72x19xf32, #tpu.memory_space<vmem>>, vector<1x32x19xf32>
    %99 = vector.shape_cast %98 : vector<1x32x19xf32> to vector<32x19xf32>
    %100 = arith.truncf %99 : vector<32x19xf32> to vector<32x19xbf16>
    %c0_92 = arith.constant 0 : index
    %c10_93 = arith.constant 10 : index
    %c0_94 = arith.constant 0 : index
    %101 = vector.load %arg2[%c0_92, %c10_93, %c0_94] : memref<1x72x8xf32, #tpu.memory_space<vmem>>, vector<1x32x8xf32>
    %102 = vector.shape_cast %101 : vector<1x32x8xf32> to vector<32x8xf32>
    %103 = arith.truncf %102 : vector<32x8xf32> to vector<32x8xbf16>
    %c7 = arith.constant 7 : index
    %c0_95 = arith.constant 0 : index
    %c0_96 = arith.constant 0 : index
    %104 = vector.load %arg5[%c7, %c0_95, %c0_96] : memref<25x19x32xbf16, #tpu.memory_space<vmem>>, vector<1x19x32xbf16>
    %105 = vector.shape_cast %104 : vector<1x19x32xbf16> to vector<19x32xbf16>
    %cst_97 = arith.constant dense<0.000000e+00> : vector<32x32xf32>
    %106 = tpu.matmul %100, %105, %cst_97 {dimension_numbers = #tpu.dot_dimension_numbers<[1], [0], [0], [1], [0, 0, 1, 1], [], []>} : vector<32x19xbf16>, vector<19x32xbf16>, vector<32x32xf32> -> vector<32x32xf32>
    %c7_98 = arith.constant 7 : index
    %c0_99 = arith.constant 0 : index
    %c0_100 = arith.constant 0 : index
    %107 = vector.load %arg6[%c7_98, %c0_99, %c0_100] : memref<25x8x32xbf16, #tpu.memory_space<vmem>>, vector<1x8x32xbf16>
    %108 = vector.shape_cast %107 : vector<1x8x32xbf16> to vector<8x32xbf16>
    %cst_101 = arith.constant dense<0.000000e+00> : vector<32x32xf32>
    %109 = tpu.matmul %103, %108, %cst_101 {dimension_numbers = #tpu.dot_dimension_numbers<[1], [0], [0], [1], [0, 0, 1, 1], [], []>} : vector<32x8xbf16>, vector<8x32xbf16>, vector<32x32xf32> -> vector<32x32xf32>
    %110 = arith.addf %106, %109 : vector<32x32xf32>
    %111 = arith.addf %97, %110 : vector<32x32xf32>
    %c0_102 = arith.constant 0 : index
    %c11 = arith.constant 11 : index
    %c0_103 = arith.constant 0 : index
    %112 = vector.load %arg1[%c0_102, %c11, %c0_103] : memref<1x72x19xf32, #tpu.memory_space<vmem>>, vector<1x32x19xf32>
    %113 = vector.shape_cast %112 : vector<1x32x19xf32> to vector<32x19xf32>
    %114 = arith.truncf %113 : vector<32x19xf32> to vector<32x19xbf16>
    %c0_104 = arith.constant 0 : index
    %c11_105 = arith.constant 11 : index
    %c0_106 = arith.constant 0 : index
    %115 = vector.load %arg2[%c0_104, %c11_105, %c0_106] : memref<1x72x8xf32, #tpu.memory_space<vmem>>, vector<1x32x8xf32>
    %116 = vector.shape_cast %115 : vector<1x32x8xf32> to vector<32x8xf32>
    %117 = arith.truncf %116 : vector<32x8xf32> to vector<32x8xbf16>
    %c8_107 = arith.constant 8 : index
    %c0_108 = arith.constant 0 : index
    %c0_109 = arith.constant 0 : index
    %118 = vector.load %arg5[%c8_107, %c0_108, %c0_109] : memref<25x19x32xbf16, #tpu.memory_space<vmem>>, vector<1x19x32xbf16>
    %119 = vector.shape_cast %118 : vector<1x19x32xbf16> to vector<19x32xbf16>
    %cst_110 = arith.constant dense<0.000000e+00> : vector<32x32xf32>
    %120 = tpu.matmul %114, %119, %cst_110 {dimension_numbers = #tpu.dot_dimension_numbers<[1], [0], [0], [1], [0, 0, 1, 1], [], []>} : vector<32x19xbf16>, vector<19x32xbf16>, vector<32x32xf32> -> vector<32x32xf32>
    %c8_111 = arith.constant 8 : index
    %c0_112 = arith.constant 0 : index
    %c0_113 = arith.constant 0 : index
    %121 = vector.load %arg6[%c8_111, %c0_112, %c0_113] : memref<25x8x32xbf16, #tpu.memory_space<vmem>>, vector<1x8x32xbf16>
    %122 = vector.shape_cast %121 : vector<1x8x32xbf16> to vector<8x32xbf16>
    %cst_114 = arith.constant dense<0.000000e+00> : vector<32x32xf32>
    %123 = tpu.matmul %117, %122, %cst_114 {dimension_numbers = #tpu.dot_dimension_numbers<[1], [0], [0], [1], [0, 0, 1, 1], [], []>} : vector<32x8xbf16>, vector<8x32xbf16>, vector<32x32xf32> -> vector<32x32xf32>
    %124 = arith.addf %120, %123 : vector<32x32xf32>
    %125 = arith.addf %111, %124 : vector<32x32xf32>
    %c0_115 = arith.constant 0 : index
    %c12 = arith.constant 12 : index
    %c0_116 = arith.constant 0 : index
    %126 = vector.load %arg1[%c0_115, %c12, %c0_116] : memref<1x72x19xf32, #tpu.memory_space<vmem>>, vector<1x32x19xf32>
    %127 = vector.shape_cast %126 : vector<1x32x19xf32> to vector<32x19xf32>
    %128 = arith.truncf %127 : vector<32x19xf32> to vector<32x19xbf16>
    %c0_117 = arith.constant 0 : index
    %c12_118 = arith.constant 12 : index
    %c0_119 = arith.constant 0 : index
    %129 = vector.load %arg2[%c0_117, %c12_118, %c0_119] : memref<1x72x8xf32, #tpu.memory_space<vmem>>, vector<1x32x8xf32>
    %130 = vector.shape_cast %129 : vector<1x32x8xf32> to vector<32x8xf32>
    %131 = arith.truncf %130 : vector<32x8xf32> to vector<32x8xbf16>
    %c9_120 = arith.constant 9 : index
    %c0_121 = arith.constant 0 : index
    %c0_122 = arith.constant 0 : index
    %132 = vector.load %arg5[%c9_120, %c0_121, %c0_122] : memref<25x19x32xbf16, #tpu.memory_space<vmem>>, vector<1x19x32xbf16>
    %133 = vector.shape_cast %132 : vector<1x19x32xbf16> to vector<19x32xbf16>
    %cst_123 = arith.constant dense<0.000000e+00> : vector<32x32xf32>
    %134 = tpu.matmul %128, %133, %cst_123 {dimension_numbers = #tpu.dot_dimension_numbers<[1], [0], [0], [1], [0, 0, 1, 1], [], []>} : vector<32x19xbf16>, vector<19x32xbf16>, vector<32x32xf32> -> vector<32x32xf32>
    %c9_124 = arith.constant 9 : index
    %c0_125 = arith.constant 0 : index
    %c0_126 = arith.constant 0 : index
    %135 = vector.load %arg6[%c9_124, %c0_125, %c0_126] : memref<25x8x32xbf16, #tpu.memory_space<vmem>>, vector<1x8x32xbf16>
    %136 = vector.shape_cast %135 : vector<1x8x32xbf16> to vector<8x32xbf16>
    %cst_127 = arith.constant dense<0.000000e+00> : vector<32x32xf32>
    %137 = tpu.matmul %131, %136, %cst_127 {dimension_numbers = #tpu.dot_dimension_numbers<[1], [0], [0], [1], [0, 0, 1, 1], [], []>} : vector<32x8xbf16>, vector<8x32xbf16>, vector<32x32xf32> -> vector<32x32xf32>
    %138 = arith.addf %134, %137 : vector<32x32xf32>
    %139 = arith.addf %125, %138 : vector<32x32xf32>
    %c0_128 = arith.constant 0 : index
    %c16 = arith.constant 16 : index
    %c0_129 = arith.constant 0 : index
    %140 = vector.load %arg1[%c0_128, %c16, %c0_129] : memref<1x72x19xf32, #tpu.memory_space<vmem>>, vector<1x32x19xf32>
    %141 = vector.shape_cast %140 : vector<1x32x19xf32> to vector<32x19xf32>
    %142 = arith.truncf %141 : vector<32x19xf32> to vector<32x19xbf16>
    %c0_130 = arith.constant 0 : index
    %c16_131 = arith.constant 16 : index
    %c0_132 = arith.constant 0 : index
    %143 = vector.load %arg2[%c0_130, %c16_131, %c0_132] : memref<1x72x8xf32, #tpu.memory_space<vmem>>, vector<1x32x8xf32>
    %144 = vector.shape_cast %143 : vector<1x32x8xf32> to vector<32x8xf32>
    %145 = arith.truncf %144 : vector<32x8xf32> to vector<32x8xbf16>
    %c10_133 = arith.constant 10 : index
    %c0_134 = arith.constant 0 : index
    %c0_135 = arith.constant 0 : index
    %146 = vector.load %arg5[%c10_133, %c0_134, %c0_135] : memref<25x19x32xbf16, #tpu.memory_space<vmem>>, vector<1x19x32xbf16>
    %147 = vector.shape_cast %146 : vector<1x19x32xbf16> to vector<19x32xbf16>
    %cst_136 = arith.constant dense<0.000000e+00> : vector<32x32xf32>
    %148 = tpu.matmul %142, %147, %cst_136 {dimension_numbers = #tpu.dot_dimension_numbers<[1], [0], [0], [1], [0, 0, 1, 1], [], []>} : vector<32x19xbf16>, vector<19x32xbf16>, vector<32x32xf32> -> vector<32x32xf32>
    %c10_137 = arith.constant 10 : index
    %c0_138 = arith.constant 0 : index
    %c0_139 = arith.constant 0 : index
    %149 = vector.load %arg6[%c10_137, %c0_138, %c0_139] : memref<25x8x32xbf16, #tpu.memory_space<vmem>>, vector<1x8x32xbf16>
    %150 = vector.shape_cast %149 : vector<1x8x32xbf16> to vector<8x32xbf16>
    %cst_140 = arith.constant dense<0.000000e+00> : vector<32x32xf32>
    %151 = tpu.matmul %145, %150, %cst_140 {dimension_numbers = #tpu.dot_dimension_numbers<[1], [0], [0], [1], [0, 0, 1, 1], [], []>} : vector<32x8xbf16>, vector<8x32xbf16>, vector<32x32xf32> -> vector<32x32xf32>
    %152 = arith.addf %148, %151 : vector<32x32xf32>
    %153 = arith.addf %139, %152 : vector<32x32xf32>
    %c0_141 = arith.constant 0 : index
    %c17 = arith.constant 17 : index
    %c0_142 = arith.constant 0 : index
    %154 = vector.load %arg1[%c0_141, %c17, %c0_142] : memref<1x72x19xf32, #tpu.memory_space<vmem>>, vector<1x32x19xf32>
    %155 = vector.shape_cast %154 : vector<1x32x19xf32> to vector<32x19xf32>
    %156 = arith.truncf %155 : vector<32x19xf32> to vector<32x19xbf16>
    %c0_143 = arith.constant 0 : index
    %c17_144 = arith.constant 17 : index
    %c0_145 = arith.constant 0 : index
    %157 = vector.load %arg2[%c0_143, %c17_144, %c0_145] : memref<1x72x8xf32, #tpu.memory_space<vmem>>, vector<1x32x8xf32>
    %158 = vector.shape_cast %157 : vector<1x32x8xf32> to vector<32x8xf32>
    %159 = arith.truncf %158 : vector<32x8xf32> to vector<32x8xbf16>
    %c11_146 = arith.constant 11 : index
    %c0_147 = arith.constant 0 : index
    %c0_148 = arith.constant 0 : index
    %160 = vector.load %arg5[%c11_146, %c0_147, %c0_148] : memref<25x19x32xbf16, #tpu.memory_space<vmem>>, vector<1x19x32xbf16>
    %161 = vector.shape_cast %160 : vector<1x19x32xbf16> to vector<19x32xbf16>
    %cst_149 = arith.constant dense<0.000000e+00> : vector<32x32xf32>
    %162 = tpu.matmul %156, %161, %cst_149 {dimension_numbers = #tpu.dot_dimension_numbers<[1], [0], [0], [1], [0, 0, 1, 1], [], []>} : vector<32x19xbf16>, vector<19x32xbf16>, vector<32x32xf32> -> vector<32x32xf32>
    %c11_150 = arith.constant 11 : index
    %c0_151 = arith.constant 0 : index
    %c0_152 = arith.constant 0 : index
    %163 = vector.load %arg6[%c11_150, %c0_151, %c0_152] : memref<25x8x32xbf16, #tpu.memory_space<vmem>>, vector<1x8x32xbf16>
    %164 = vector.shape_cast %163 : vector<1x8x32xbf16> to vector<8x32xbf16>
    %cst_153 = arith.constant dense<0.000000e+00> : vector<32x32xf32>
    %165 = tpu.matmul %159, %164, %cst_153 {dimension_numbers = #tpu.dot_dimension_numbers<[1], [0], [0], [1], [0, 0, 1, 1], [], []>} : vector<32x8xbf16>, vector<8x32xbf16>, vector<32x32xf32> -> vector<32x32xf32>
    %166 = arith.addf %162, %165 : vector<32x32xf32>
    %167 = arith.addf %153, %166 : vector<32x32xf32>
    %c0_154 = arith.constant 0 : index
    %c18 = arith.constant 18 : index
    %c0_155 = arith.constant 0 : index
    %168 = vector.load %arg1[%c0_154, %c18, %c0_155] : memref<1x72x19xf32, #tpu.memory_space<vmem>>, vector<1x32x19xf32>
    %169 = vector.shape_cast %168 : vector<1x32x19xf32> to vector<32x19xf32>
    %170 = arith.truncf %169 : vector<32x19xf32> to vector<32x19xbf16>
    %c0_156 = arith.constant 0 : index
    %c18_157 = arith.constant 18 : index
    %c0_158 = arith.constant 0 : index
    %171 = vector.load %arg2[%c0_156, %c18_157, %c0_158] : memref<1x72x8xf32, #tpu.memory_space<vmem>>, vector<1x32x8xf32>
    %172 = vector.shape_cast %171 : vector<1x32x8xf32> to vector<32x8xf32>
    %173 = arith.truncf %172 : vector<32x8xf32> to vector<32x8xbf16>
    %c12_159 = arith.constant 12 : index
    %c0_160 = arith.constant 0 : index
    %c0_161 = arith.constant 0 : index
    %174 = vector.load %arg5[%c12_159, %c0_160, %c0_161] : memref<25x19x32xbf16, #tpu.memory_space<vmem>>, vector<1x19x32xbf16>
    %175 = vector.shape_cast %174 : vector<1x19x32xbf16> to vector<19x32xbf16>
    %cst_162 = arith.constant dense<0.000000e+00> : vector<32x32xf32>
    %176 = tpu.matmul %170, %175, %cst_162 {dimension_numbers = #tpu.dot_dimension_numbers<[1], [0], [0], [1], [0, 0, 1, 1], [], []>} : vector<32x19xbf16>, vector<19x32xbf16>, vector<32x32xf32> -> vector<32x32xf32>
    %c12_163 = arith.constant 12 : index
    %c0_164 = arith.constant 0 : index
    %c0_165 = arith.constant 0 : index
    %177 = vector.load %arg6[%c12_163, %c0_164, %c0_165] : memref<25x8x32xbf16, #tpu.memory_space<vmem>>, vector<1x8x32xbf16>
    %178 = vector.shape_cast %177 : vector<1x8x32xbf16> to vector<8x32xbf16>
    %cst_166 = arith.constant dense<0.000000e+00> : vector<32x32xf32>
    %179 = tpu.matmul %173, %178, %cst_166 {dimension_numbers = #tpu.dot_dimension_numbers<[1], [0], [0], [1], [0, 0, 1, 1], [], []>} : vector<32x8xbf16>, vector<8x32xbf16>, vector<32x32xf32> -> vector<32x32xf32>
    %180 = arith.addf %176, %179 : vector<32x32xf32>
    %181 = arith.addf %167, %180 : vector<32x32xf32>
    %c0_167 = arith.constant 0 : index
    %c19 = arith.constant 19 : index
    %c0_168 = arith.constant 0 : index
    %182 = vector.load %arg1[%c0_167, %c19, %c0_168] : memref<1x72x19xf32, #tpu.memory_space<vmem>>, vector<1x32x19xf32>
    %183 = vector.shape_cast %182 : vector<1x32x19xf32> to vector<32x19xf32>
    %184 = arith.truncf %183 : vector<32x19xf32> to vector<32x19xbf16>
    %c0_169 = arith.constant 0 : index
    %c19_170 = arith.constant 19 : index
    %c0_171 = arith.constant 0 : index
    %185 = vector.load %arg2[%c0_169, %c19_170, %c0_171] : memref<1x72x8xf32, #tpu.memory_space<vmem>>, vector<1x32x8xf32>
    %186 = vector.shape_cast %185 : vector<1x32x8xf32> to vector<32x8xf32>
    %187 = arith.truncf %186 : vector<32x8xf32> to vector<32x8xbf16>
    %c13 = arith.constant 13 : index
    %c0_172 = arith.constant 0 : index
    %c0_173 = arith.constant 0 : index
    %188 = vector.load %arg5[%c13, %c0_172, %c0_173] : memref<25x19x32xbf16, #tpu.memory_space<vmem>>, vector<1x19x32xbf16>
    %189 = vector.shape_cast %188 : vector<1x19x32xbf16> to vector<19x32xbf16>
    %cst_174 = arith.constant dense<0.000000e+00> : vector<32x32xf32>
    %190 = tpu.matmul %184, %189, %cst_174 {dimension_numbers = #tpu.dot_dimension_numbers<[1], [0], [0], [1], [0, 0, 1, 1], [], []>} : vector<32x19xbf16>, vector<19x32xbf16>, vector<32x32xf32> -> vector<32x32xf32>
    %c13_175 = arith.constant 13 : index
    %c0_176 = arith.constant 0 : index
    %c0_177 = arith.constant 0 : index
    %191 = vector.load %arg6[%c13_175, %c0_176, %c0_177] : memref<25x8x32xbf16, #tpu.memory_space<vmem>>, vector<1x8x32xbf16>
    %192 = vector.shape_cast %191 : vector<1x8x32xbf16> to vector<8x32xbf16>
    %cst_178 = arith.constant dense<0.000000e+00> : vector<32x32xf32>
    %193 = tpu.matmul %187, %192, %cst_178 {dimension_numbers = #tpu.dot_dimension_numbers<[1], [0], [0], [1], [0, 0, 1, 1], [], []>} : vector<32x8xbf16>, vector<8x32xbf16>, vector<32x32xf32> -> vector<32x32xf32>
    %194 = arith.addf %190, %193 : vector<32x32xf32>
    %195 = arith.addf %181, %194 : vector<32x32xf32>
    %c0_179 = arith.constant 0 : index
    %c20 = arith.constant 20 : index
    %c0_180 = arith.constant 0 : index
    %196 = vector.load %arg1[%c0_179, %c20, %c0_180] : memref<1x72x19xf32, #tpu.memory_space<vmem>>, vector<1x32x19xf32>
    %197 = vector.shape_cast %196 : vector<1x32x19xf32> to vector<32x19xf32>
    %198 = arith.truncf %197 : vector<32x19xf32> to vector<32x19xbf16>
    %c0_181 = arith.constant 0 : index
    %c20_182 = arith.constant 20 : index
    %c0_183 = arith.constant 0 : index
    %199 = vector.load %arg2[%c0_181, %c20_182, %c0_183] : memref<1x72x8xf32, #tpu.memory_space<vmem>>, vector<1x32x8xf32>
    %200 = vector.shape_cast %199 : vector<1x32x8xf32> to vector<32x8xf32>
    %201 = arith.truncf %200 : vector<32x8xf32> to vector<32x8xbf16>
    %c14 = arith.constant 14 : index
    %c0_184 = arith.constant 0 : index
    %c0_185 = arith.constant 0 : index
    %202 = vector.load %arg5[%c14, %c0_184, %c0_185] : memref<25x19x32xbf16, #tpu.memory_space<vmem>>, vector<1x19x32xbf16>
    %203 = vector.shape_cast %202 : vector<1x19x32xbf16> to vector<19x32xbf16>
    %cst_186 = arith.constant dense<0.000000e+00> : vector<32x32xf32>
    %204 = tpu.matmul %198, %203, %cst_186 {dimension_numbers = #tpu.dot_dimension_numbers<[1], [0], [0], [1], [0, 0, 1, 1], [], []>} : vector<32x19xbf16>, vector<19x32xbf16>, vector<32x32xf32> -> vector<32x32xf32>
    %c14_187 = arith.constant 14 : index
    %c0_188 = arith.constant 0 : index
    %c0_189 = arith.constant 0 : index
    %205 = vector.load %arg6[%c14_187, %c0_188, %c0_189] : memref<25x8x32xbf16, #tpu.memory_space<vmem>>, vector<1x8x32xbf16>
    %206 = vector.shape_cast %205 : vector<1x8x32xbf16> to vector<8x32xbf16>
    %cst_190 = arith.constant dense<0.000000e+00> : vector<32x32xf32>
    %207 = tpu.matmul %201, %206, %cst_190 {dimension_numbers = #tpu.dot_dimension_numbers<[1], [0], [0], [1], [0, 0, 1, 1], [], []>} : vector<32x8xbf16>, vector<8x32xbf16>, vector<32x32xf32> -> vector<32x32xf32>
    %208 = arith.addf %204, %207 : vector<32x32xf32>
    %209 = arith.addf %195, %208 : vector<32x32xf32>
    %c0_191 = arith.constant 0 : index
    %c24 = arith.constant 24 : index
    %c0_192 = arith.constant 0 : index
    %210 = vector.load %arg1[%c0_191, %c24, %c0_192] : memref<1x72x19xf32, #tpu.memory_space<vmem>>, vector<1x32x19xf32>
    %211 = vector.shape_cast %210 : vector<1x32x19xf32> to vector<32x19xf32>
    %212 = arith.truncf %211 : vector<32x19xf32> to vector<32x19xbf16>
    %c0_193 = arith.constant 0 : index
    %c24_194 = arith.constant 24 : index
    %c0_195 = arith.constant 0 : index
    %213 = vector.load %arg2[%c0_193, %c24_194, %c0_195] : memref<1x72x8xf32, #tpu.memory_space<vmem>>, vector<1x32x8xf32>
    %214 = vector.shape_cast %213 : vector<1x32x8xf32> to vector<32x8xf32>
    %215 = arith.truncf %214 : vector<32x8xf32> to vector<32x8xbf16>
    %c15 = arith.constant 15 : index
    %c0_196 = arith.constant 0 : index
    %c0_197 = arith.constant 0 : index
    %216 = vector.load %arg5[%c15, %c0_196, %c0_197] : memref<25x19x32xbf16, #tpu.memory_space<vmem>>, vector<1x19x32xbf16>
    %217 = vector.shape_cast %216 : vector<1x19x32xbf16> to vector<19x32xbf16>
    %cst_198 = arith.constant dense<0.000000e+00> : vector<32x32xf32>
    %218 = tpu.matmul %212, %217, %cst_198 {dimension_numbers = #tpu.dot_dimension_numbers<[1], [0], [0], [1], [0, 0, 1, 1], [], []>} : vector<32x19xbf16>, vector<19x32xbf16>, vector<32x32xf32> -> vector<32x32xf32>
    %c15_199 = arith.constant 15 : index
    %c0_200 = arith.constant 0 : index
    %c0_201 = arith.constant 0 : index
    %219 = vector.load %arg6[%c15_199, %c0_200, %c0_201] : memref<25x8x32xbf16, #tpu.memory_space<vmem>>, vector<1x8x32xbf16>
    %220 = vector.shape_cast %219 : vector<1x8x32xbf16> to vector<8x32xbf16>
    %cst_202 = arith.constant dense<0.000000e+00> : vector<32x32xf32>
    %221 = tpu.matmul %215, %220, %cst_202 {dimension_numbers = #tpu.dot_dimension_numbers<[1], [0], [0], [1], [0, 0, 1, 1], [], []>} : vector<32x8xbf16>, vector<8x32xbf16>, vector<32x32xf32> -> vector<32x32xf32>
    %222 = arith.addf %218, %221 : vector<32x32xf32>
    %223 = arith.addf %209, %222 : vector<32x32xf32>
    %c0_203 = arith.constant 0 : index
    %c25 = arith.constant 25 : index
    %c0_204 = arith.constant 0 : index
    %224 = vector.load %arg1[%c0_203, %c25, %c0_204] : memref<1x72x19xf32, #tpu.memory_space<vmem>>, vector<1x32x19xf32>
    %225 = vector.shape_cast %224 : vector<1x32x19xf32> to vector<32x19xf32>
    %226 = arith.truncf %225 : vector<32x19xf32> to vector<32x19xbf16>
    %c0_205 = arith.constant 0 : index
    %c25_206 = arith.constant 25 : index
    %c0_207 = arith.constant 0 : index
    %227 = vector.load %arg2[%c0_205, %c25_206, %c0_207] : memref<1x72x8xf32, #tpu.memory_space<vmem>>, vector<1x32x8xf32>
    %228 = vector.shape_cast %227 : vector<1x32x8xf32> to vector<32x8xf32>
    %229 = arith.truncf %228 : vector<32x8xf32> to vector<32x8xbf16>
    %c16_208 = arith.constant 16 : index
    %c0_209 = arith.constant 0 : index
    %c0_210 = arith.constant 0 : index
    %230 = vector.load %arg5[%c16_208, %c0_209, %c0_210] : memref<25x19x32xbf16, #tpu.memory_space<vmem>>, vector<1x19x32xbf16>
    %231 = vector.shape_cast %230 : vector<1x19x32xbf16> to vector<19x32xbf16>
    %cst_211 = arith.constant dense<0.000000e+00> : vector<32x32xf32>
    %232 = tpu.matmul %226, %231, %cst_211 {dimension_numbers = #tpu.dot_dimension_numbers<[1], [0], [0], [1], [0, 0, 1, 1], [], []>} : vector<32x19xbf16>, vector<19x32xbf16>, vector<32x32xf32> -> vector<32x32xf32>
    %c16_212 = arith.constant 16 : index
    %c0_213 = arith.constant 0 : index
    %c0_214 = arith.constant 0 : index
    %233 = vector.load %arg6[%c16_212, %c0_213, %c0_214] : memref<25x8x32xbf16, #tpu.memory_space<vmem>>, vector<1x8x32xbf16>
    %234 = vector.shape_cast %233 : vector<1x8x32xbf16> to vector<8x32xbf16>
    %cst_215 = arith.constant dense<0.000000e+00> : vector<32x32xf32>
    %235 = tpu.matmul %229, %234, %cst_215 {dimension_numbers = #tpu.dot_dimension_numbers<[1], [0], [0], [1], [0, 0, 1, 1], [], []>} : vector<32x8xbf16>, vector<8x32xbf16>, vector<32x32xf32> -> vector<32x32xf32>
    %236 = arith.addf %232, %235 : vector<32x32xf32>
    %237 = arith.addf %223, %236 : vector<32x32xf32>
    %c0_216 = arith.constant 0 : index
    %c26 = arith.constant 26 : index
    %c0_217 = arith.constant 0 : index
    %238 = vector.load %arg1[%c0_216, %c26, %c0_217] : memref<1x72x19xf32, #tpu.memory_space<vmem>>, vector<1x32x19xf32>
    %239 = vector.shape_cast %238 : vector<1x32x19xf32> to vector<32x19xf32>
    %240 = arith.truncf %239 : vector<32x19xf32> to vector<32x19xbf16>
    %c0_218 = arith.constant 0 : index
    %c26_219 = arith.constant 26 : index
    %c0_220 = arith.constant 0 : index
    %241 = vector.load %arg2[%c0_218, %c26_219, %c0_220] : memref<1x72x8xf32, #tpu.memory_space<vmem>>, vector<1x32x8xf32>
    %242 = vector.shape_cast %241 : vector<1x32x8xf32> to vector<32x8xf32>
    %243 = arith.truncf %242 : vector<32x8xf32> to vector<32x8xbf16>
    %c17_221 = arith.constant 17 : index
    %c0_222 = arith.constant 0 : index
    %c0_223 = arith.constant 0 : index
    %244 = vector.load %arg5[%c17_221, %c0_222, %c0_223] : memref<25x19x32xbf16, #tpu.memory_space<vmem>>, vector<1x19x32xbf16>
    %245 = vector.shape_cast %244 : vector<1x19x32xbf16> to vector<19x32xbf16>
    %cst_224 = arith.constant dense<0.000000e+00> : vector<32x32xf32>
    %246 = tpu.matmul %240, %245, %cst_224 {dimension_numbers = #tpu.dot_dimension_numbers<[1], [0], [0], [1], [0, 0, 1, 1], [], []>} : vector<32x19xbf16>, vector<19x32xbf16>, vector<32x32xf32> -> vector<32x32xf32>
    %c17_225 = arith.constant 17 : index
    %c0_226 = arith.constant 0 : index
    %c0_227 = arith.constant 0 : index
    %247 = vector.load %arg6[%c17_225, %c0_226, %c0_227] : memref<25x8x32xbf16, #tpu.memory_space<vmem>>, vector<1x8x32xbf16>
    %248 = vector.shape_cast %247 : vector<1x8x32xbf16> to vector<8x32xbf16>
    %cst_228 = arith.constant dense<0.000000e+00> : vector<32x32xf32>
    %249 = tpu.matmul %243, %248, %cst_228 {dimension_numbers = #tpu.dot_dimension_numbers<[1], [0], [0], [1], [0, 0, 1, 1], [], []>} : vector<32x8xbf16>, vector<8x32xbf16>, vector<32x32xf32> -> vector<32x32xf32>
    %250 = arith.addf %246, %249 : vector<32x32xf32>
    %251 = arith.addf %237, %250 : vector<32x32xf32>
    %c0_229 = arith.constant 0 : index
    %c27 = arith.constant 27 : index
    %c0_230 = arith.constant 0 : index
    %252 = vector.load %arg1[%c0_229, %c27, %c0_230] : memref<1x72x19xf32, #tpu.memory_space<vmem>>, vector<1x32x19xf32>
    %253 = vector.shape_cast %252 : vector<1x32x19xf32> to vector<32x19xf32>
    %254 = arith.truncf %253 : vector<32x19xf32> to vector<32x19xbf16>
    %c0_231 = arith.constant 0 : index
    %c27_232 = arith.constant 27 : index
    %c0_233 = arith.constant 0 : index
    %255 = vector.load %arg2[%c0_231, %c27_232, %c0_233] : memref<1x72x8xf32, #tpu.memory_space<vmem>>, vector<1x32x8xf32>
    %256 = vector.shape_cast %255 : vector<1x32x8xf32> to vector<32x8xf32>
    %257 = arith.truncf %256 : vector<32x8xf32> to vector<32x8xbf16>
    %c18_234 = arith.constant 18 : index
    %c0_235 = arith.constant 0 : index
    %c0_236 = arith.constant 0 : index
    %258 = vector.load %arg5[%c18_234, %c0_235, %c0_236] : memref<25x19x32xbf16, #tpu.memory_space<vmem>>, vector<1x19x32xbf16>
    %259 = vector.shape_cast %258 : vector<1x19x32xbf16> to vector<19x32xbf16>
    %cst_237 = arith.constant dense<0.000000e+00> : vector<32x32xf32>
    %260 = tpu.matmul %254, %259, %cst_237 {dimension_numbers = #tpu.dot_dimension_numbers<[1], [0], [0], [1], [0, 0, 1, 1], [], []>} : vector<32x19xbf16>, vector<19x32xbf16>, vector<32x32xf32> -> vector<32x32xf32>
    %c18_238 = arith.constant 18 : index
    %c0_239 = arith.constant 0 : index
    %c0_240 = arith.constant 0 : index
    %261 = vector.load %arg6[%c18_238, %c0_239, %c0_240] : memref<25x8x32xbf16, #tpu.memory_space<vmem>>, vector<1x8x32xbf16>
    %262 = vector.shape_cast %261 : vector<1x8x32xbf16> to vector<8x32xbf16>
    %cst_241 = arith.constant dense<0.000000e+00> : vector<32x32xf32>
    %263 = tpu.matmul %257, %262, %cst_241 {dimension_numbers = #tpu.dot_dimension_numbers<[1], [0], [0], [1], [0, 0, 1, 1], [], []>} : vector<32x8xbf16>, vector<8x32xbf16>, vector<32x32xf32> -> vector<32x32xf32>
    %264 = arith.addf %260, %263 : vector<32x32xf32>
    %265 = arith.addf %251, %264 : vector<32x32xf32>
    %c0_242 = arith.constant 0 : index
    %c28 = arith.constant 28 : index
    %c0_243 = arith.constant 0 : index
    %266 = vector.load %arg1[%c0_242, %c28, %c0_243] : memref<1x72x19xf32, #tpu.memory_space<vmem>>, vector<1x32x19xf32>
    %267 = vector.shape_cast %266 : vector<1x32x19xf32> to vector<32x19xf32>
    %268 = arith.truncf %267 : vector<32x19xf32> to vector<32x19xbf16>
    %c0_244 = arith.constant 0 : index
    %c28_245 = arith.constant 28 : index
    %c0_246 = arith.constant 0 : index
    %269 = vector.load %arg2[%c0_244, %c28_245, %c0_246] : memref<1x72x8xf32, #tpu.memory_space<vmem>>, vector<1x32x8xf32>
    %270 = vector.shape_cast %269 : vector<1x32x8xf32> to vector<32x8xf32>
    %271 = arith.truncf %270 : vector<32x8xf32> to vector<32x8xbf16>
    %c19_247 = arith.constant 19 : index
    %c0_248 = arith.constant 0 : index
    %c0_249 = arith.constant 0 : index
    %272 = vector.load %arg5[%c19_247, %c0_248, %c0_249] : memref<25x19x32xbf16, #tpu.memory_space<vmem>>, vector<1x19x32xbf16>
    %273 = vector.shape_cast %272 : vector<1x19x32xbf16> to vector<19x32xbf16>
    %cst_250 = arith.constant dense<0.000000e+00> : vector<32x32xf32>
    %274 = tpu.matmul %268, %273, %cst_250 {dimension_numbers = #tpu.dot_dimension_numbers<[1], [0], [0], [1], [0, 0, 1, 1], [], []>} : vector<32x19xbf16>, vector<19x32xbf16>, vector<32x32xf32> -> vector<32x32xf32>
    %c19_251 = arith.constant 19 : index
    %c0_252 = arith.constant 0 : index
    %c0_253 = arith.constant 0 : index
    %275 = vector.load %arg6[%c19_251, %c0_252, %c0_253] : memref<25x8x32xbf16, #tpu.memory_space<vmem>>, vector<1x8x32xbf16>
    %276 = vector.shape_cast %275 : vector<1x8x32xbf16> to vector<8x32xbf16>
    %cst_254 = arith.constant dense<0.000000e+00> : vector<32x32xf32>
    %277 = tpu.matmul %271, %276, %cst_254 {dimension_numbers = #tpu.dot_dimension_numbers<[1], [0], [0], [1], [0, 0, 1, 1], [], []>} : vector<32x8xbf16>, vector<8x32xbf16>, vector<32x32xf32> -> vector<32x32xf32>
    %278 = arith.addf %274, %277 : vector<32x32xf32>
    %279 = arith.addf %265, %278 : vector<32x32xf32>
    %c0_255 = arith.constant 0 : index
    %c32 = arith.constant 32 : index
    %c0_256 = arith.constant 0 : index
    %280 = vector.load %arg1[%c0_255, %c32, %c0_256] : memref<1x72x19xf32, #tpu.memory_space<vmem>>, vector<1x32x19xf32>
    %281 = vector.shape_cast %280 : vector<1x32x19xf32> to vector<32x19xf32>
    %282 = arith.truncf %281 : vector<32x19xf32> to vector<32x19xbf16>
    %c0_257 = arith.constant 0 : index
    %c32_258 = arith.constant 32 : index
    %c0_259 = arith.constant 0 : index
    %283 = vector.load %arg2[%c0_257, %c32_258, %c0_259] : memref<1x72x8xf32, #tpu.memory_space<vmem>>, vector<1x32x8xf32>
    %284 = vector.shape_cast %283 : vector<1x32x8xf32> to vector<32x8xf32>
    %285 = arith.truncf %284 : vector<32x8xf32> to vector<32x8xbf16>
    %c20_260 = arith.constant 20 : index
    %c0_261 = arith.constant 0 : index
    %c0_262 = arith.constant 0 : index
    %286 = vector.load %arg5[%c20_260, %c0_261, %c0_262] : memref<25x19x32xbf16, #tpu.memory_space<vmem>>, vector<1x19x32xbf16>
    %287 = vector.shape_cast %286 : vector<1x19x32xbf16> to vector<19x32xbf16>
    %cst_263 = arith.constant dense<0.000000e+00> : vector<32x32xf32>
    %288 = tpu.matmul %282, %287, %cst_263 {dimension_numbers = #tpu.dot_dimension_numbers<[1], [0], [0], [1], [0, 0, 1, 1], [], []>} : vector<32x19xbf16>, vector<19x32xbf16>, vector<32x32xf32> -> vector<32x32xf32>
    %c20_264 = arith.constant 20 : index
    %c0_265 = arith.constant 0 : index
    %c0_266 = arith.constant 0 : index
    %289 = vector.load %arg6[%c20_264, %c0_265, %c0_266] : memref<25x8x32xbf16, #tpu.memory_space<vmem>>, vector<1x8x32xbf16>
    %290 = vector.shape_cast %289 : vector<1x8x32xbf16> to vector<8x32xbf16>
    %cst_267 = arith.constant dense<0.000000e+00> : vector<32x32xf32>
    %291 = tpu.matmul %285, %290, %cst_267 {dimension_numbers = #tpu.dot_dimension_numbers<[1], [0], [0], [1], [0, 0, 1, 1], [], []>} : vector<32x8xbf16>, vector<8x32xbf16>, vector<32x32xf32> -> vector<32x32xf32>
    %292 = arith.addf %288, %291 : vector<32x32xf32>
    %293 = arith.addf %279, %292 : vector<32x32xf32>
    %c0_268 = arith.constant 0 : index
    %c33 = arith.constant 33 : index
    %c0_269 = arith.constant 0 : index
    %294 = vector.load %arg1[%c0_268, %c33, %c0_269] : memref<1x72x19xf32, #tpu.memory_space<vmem>>, vector<1x32x19xf32>
    %295 = vector.shape_cast %294 : vector<1x32x19xf32> to vector<32x19xf32>
    %296 = arith.truncf %295 : vector<32x19xf32> to vector<32x19xbf16>
    %c0_270 = arith.constant 0 : index
    %c33_271 = arith.constant 33 : index
    %c0_272 = arith.constant 0 : index
    %297 = vector.load %arg2[%c0_270, %c33_271, %c0_272] : memref<1x72x8xf32, #tpu.memory_space<vmem>>, vector<1x32x8xf32>
    %298 = vector.shape_cast %297 : vector<1x32x8xf32> to vector<32x8xf32>
    %299 = arith.truncf %298 : vector<32x8xf32> to vector<32x8xbf16>
    %c21 = arith.constant 21 : index
    %c0_273 = arith.constant 0 : index
    %c0_274 = arith.constant 0 : index
    %300 = vector.load %arg5[%c21, %c0_273, %c0_274] : memref<25x19x32xbf16, #tpu.memory_space<vmem>>, vector<1x19x32xbf16>
    %301 = vector.shape_cast %300 : vector<1x19x32xbf16> to vector<19x32xbf16>
    %cst_275 = arith.constant dense<0.000000e+00> : vector<32x32xf32>
    %302 = tpu.matmul %296, %301, %cst_275 {dimension_numbers = #tpu.dot_dimension_numbers<[1], [0], [0], [1], [0, 0, 1, 1], [], []>} : vector<32x19xbf16>, vector<19x32xbf16>, vector<32x32xf32> -> vector<32x32xf32>
    %c21_276 = arith.constant 21 : index
    %c0_277 = arith.constant 0 : index
    %c0_278 = arith.constant 0 : index
    %303 = vector.load %arg6[%c21_276, %c0_277, %c0_278] : memref<25x8x32xbf16, #tpu.memory_space<vmem>>, vector<1x8x32xbf16>
    %304 = vector.shape_cast %303 : vector<1x8x32xbf16> to vector<8x32xbf16>
    %cst_279 = arith.constant dense<0.000000e+00> : vector<32x32xf32>
    %305 = tpu.matmul %299, %304, %cst_279 {dimension_numbers = #tpu.dot_dimension_numbers<[1], [0], [0], [1], [0, 0, 1, 1], [], []>} : vector<32x8xbf16>, vector<8x32xbf16>, vector<32x32xf32> -> vector<32x32xf32>
    %306 = arith.addf %302, %305 : vector<32x32xf32>
    %307 = arith.addf %293, %306 : vector<32x32xf32>
    %c0_280 = arith.constant 0 : index
    %c34 = arith.constant 34 : index
    %c0_281 = arith.constant 0 : index
    %308 = vector.load %arg1[%c0_280, %c34, %c0_281] : memref<1x72x19xf32, #tpu.memory_space<vmem>>, vector<1x32x19xf32>
    %309 = vector.shape_cast %308 : vector<1x32x19xf32> to vector<32x19xf32>
    %310 = arith.truncf %309 : vector<32x19xf32> to vector<32x19xbf16>
    %c0_282 = arith.constant 0 : index
    %c34_283 = arith.constant 34 : index
    %c0_284 = arith.constant 0 : index
    %311 = vector.load %arg2[%c0_282, %c34_283, %c0_284] : memref<1x72x8xf32, #tpu.memory_space<vmem>>, vector<1x32x8xf32>
    %312 = vector.shape_cast %311 : vector<1x32x8xf32> to vector<32x8xf32>
    %313 = arith.truncf %312 : vector<32x8xf32> to vector<32x8xbf16>
    %c22 = arith.constant 22 : index
    %c0_285 = arith.constant 0 : index
    %c0_286 = arith.constant 0 : index
    %314 = vector.load %arg5[%c22, %c0_285, %c0_286] : memref<25x19x32xbf16, #tpu.memory_space<vmem>>, vector<1x19x32xbf16>
    %315 = vector.shape_cast %314 : vector<1x19x32xbf16> to vector<19x32xbf16>
    %cst_287 = arith.constant dense<0.000000e+00> : vector<32x32xf32>
    %316 = tpu.matmul %310, %315, %cst_287 {dimension_numbers = #tpu.dot_dimension_numbers<[1], [0], [0], [1], [0, 0, 1, 1], [], []>} : vector<32x19xbf16>, vector<19x32xbf16>, vector<32x32xf32> -> vector<32x32xf32>
    %c22_288 = arith.constant 22 : index
    %c0_289 = arith.constant 0 : index
    %c0_290 = arith.constant 0 : index
    %317 = vector.load %arg6[%c22_288, %c0_289, %c0_290] : memref<25x8x32xbf16, #tpu.memory_space<vmem>>, vector<1x8x32xbf16>
    %318 = vector.shape_cast %317 : vector<1x8x32xbf16> to vector<8x32xbf16>
    %cst_291 = arith.constant dense<0.000000e+00> : vector<32x32xf32>
    %319 = tpu.matmul %313, %318, %cst_291 {dimension_numbers = #tpu.dot_dimension_numbers<[1], [0], [0], [1], [0, 0, 1, 1], [], []>} : vector<32x8xbf16>, vector<8x32xbf16>, vector<32x32xf32> -> vector<32x32xf32>
    %320 = arith.addf %316, %319 : vector<32x32xf32>
    %321 = arith.addf %307, %320 : vector<32x32xf32>
    %c0_292 = arith.constant 0 : index
    %c35 = arith.constant 35 : index
    %c0_293 = arith.constant 0 : index
    %322 = vector.load %arg1[%c0_292, %c35, %c0_293] : memref<1x72x19xf32, #tpu.memory_space<vmem>>, vector<1x32x19xf32>
    %323 = vector.shape_cast %322 : vector<1x32x19xf32> to vector<32x19xf32>
    %324 = arith.truncf %323 : vector<32x19xf32> to vector<32x19xbf16>
    %c0_294 = arith.constant 0 : index
    %c35_295 = arith.constant 35 : index
    %c0_296 = arith.constant 0 : index
    %325 = vector.load %arg2[%c0_294, %c35_295, %c0_296] : memref<1x72x8xf32, #tpu.memory_space<vmem>>, vector<1x32x8xf32>
    %326 = vector.shape_cast %325 : vector<1x32x8xf32> to vector<32x8xf32>
    %327 = arith.truncf %326 : vector<32x8xf32> to vector<32x8xbf16>
    %c23 = arith.constant 23 : index
    %c0_297 = arith.constant 0 : index
    %c0_298 = arith.constant 0 : index
    %328 = vector.load %arg5[%c23, %c0_297, %c0_298] : memref<25x19x32xbf16, #tpu.memory_space<vmem>>, vector<1x19x32xbf16>
    %329 = vector.shape_cast %328 : vector<1x19x32xbf16> to vector<19x32xbf16>
    %cst_299 = arith.constant dense<0.000000e+00> : vector<32x32xf32>
    %330 = tpu.matmul %324, %329, %cst_299 {dimension_numbers = #tpu.dot_dimension_numbers<[1], [0], [0], [1], [0, 0, 1, 1], [], []>} : vector<32x19xbf16>, vector<19x32xbf16>, vector<32x32xf32> -> vector<32x32xf32>
    %c23_300 = arith.constant 23 : index
    %c0_301 = arith.constant 0 : index
    %c0_302 = arith.constant 0 : index
    %331 = vector.load %arg6[%c23_300, %c0_301, %c0_302] : memref<25x8x32xbf16, #tpu.memory_space<vmem>>, vector<1x8x32xbf16>
    %332 = vector.shape_cast %331 : vector<1x8x32xbf16> to vector<8x32xbf16>
    %cst_303 = arith.constant dense<0.000000e+00> : vector<32x32xf32>
    %333 = tpu.matmul %327, %332, %cst_303 {dimension_numbers = #tpu.dot_dimension_numbers<[1], [0], [0], [1], [0, 0, 1, 1], [], []>} : vector<32x8xbf16>, vector<8x32xbf16>, vector<32x32xf32> -> vector<32x32xf32>
    %334 = arith.addf %330, %333 : vector<32x32xf32>
    %335 = arith.addf %321, %334 : vector<32x32xf32>
    %c0_304 = arith.constant 0 : index
    %c36 = arith.constant 36 : index
    %c0_305 = arith.constant 0 : index
    %336 = vector.load %arg1[%c0_304, %c36, %c0_305] : memref<1x72x19xf32, #tpu.memory_space<vmem>>, vector<1x32x19xf32>
    %337 = vector.shape_cast %336 : vector<1x32x19xf32> to vector<32x19xf32>
    %338 = arith.truncf %337 : vector<32x19xf32> to vector<32x19xbf16>
    %c0_306 = arith.constant 0 : index
    %c36_307 = arith.constant 36 : index
    %c0_308 = arith.constant 0 : index
    %339 = vector.load %arg2[%c0_306, %c36_307, %c0_308] : memref<1x72x8xf32, #tpu.memory_space<vmem>>, vector<1x32x8xf32>
    %340 = vector.shape_cast %339 : vector<1x32x8xf32> to vector<32x8xf32>
    %341 = arith.truncf %340 : vector<32x8xf32> to vector<32x8xbf16>
    %c24_309 = arith.constant 24 : index
    %c0_310 = arith.constant 0 : index
    %c0_311 = arith.constant 0 : index
    %342 = vector.load %arg5[%c24_309, %c0_310, %c0_311] : memref<25x19x32xbf16, #tpu.memory_space<vmem>>, vector<1x19x32xbf16>
    %343 = vector.shape_cast %342 : vector<1x19x32xbf16> to vector<19x32xbf16>
    %cst_312 = arith.constant dense<0.000000e+00> : vector<32x32xf32>
    %344 = tpu.matmul %338, %343, %cst_312 {dimension_numbers = #tpu.dot_dimension_numbers<[1], [0], [0], [1], [0, 0, 1, 1], [], []>} : vector<32x19xbf16>, vector<19x32xbf16>, vector<32x32xf32> -> vector<32x32xf32>
    %c24_313 = arith.constant 24 : index
    %c0_314 = arith.constant 0 : index
    %c0_315 = arith.constant 0 : index
    %345 = vector.load %arg6[%c24_313, %c0_314, %c0_315] : memref<25x8x32xbf16, #tpu.memory_space<vmem>>, vector<1x8x32xbf16>
    %346 = vector.shape_cast %345 : vector<1x8x32xbf16> to vector<8x32xbf16>
    %cst_316 = arith.constant dense<0.000000e+00> : vector<32x32xf32>
    %347 = tpu.matmul %341, %346, %cst_316 {dimension_numbers = #tpu.dot_dimension_numbers<[1], [0], [0], [1], [0, 0, 1, 1], [], []>} : vector<32x8xbf16>, vector<8x32xbf16>, vector<32x32xf32> -> vector<32x32xf32>
    %348 = arith.addf %344, %347 : vector<32x32xf32>
    %349 = arith.addf %335, %348 : vector<32x32xf32>
    %c0_317 = arith.constant 0 : index
    %c0_318 = arith.constant 0 : index
    %350 = vector.load %arg7[%c0_317, %c0_318] : memref<1x32xf32, #tpu.memory_space<vmem>>, vector<1x32xf32>
    %351 = vector.broadcast %350 : vector<1x32xf32> to vector<32x32xf32>
    %352 = arith.addf %349, %351 : vector<32x32xf32>
    %353 = vector.extract_strided_slice %352 {offsets = [0, 0], sizes = [32, 8], strides = [1, 1]} : vector<32x32xf32> to vector<32x8xf32>
    %354 = arith.negf %353 : vector<32x8xf32>
    %355 = math.exp %354 : vector<32x8xf32>
    %cst_319 = arith.constant 1.000000e+00 : f32
    %356 = vector.broadcast %cst_319 : f32 to vector<32x8xf32>
    %357 = arith.addf %356, %355 : vector<32x8xf32>
    %358 = arith.divf %356, %357 : vector<32x8xf32>
    %359 = vector.extract_strided_slice %352 {offsets = [0, 8], sizes = [32, 8], strides = [1, 1]} : vector<32x32xf32> to vector<32x8xf32>
    %360 = arith.negf %359 : vector<32x8xf32>
    %361 = math.exp %360 : vector<32x8xf32>
    %cst_320 = arith.constant 1.000000e+00 : f32
    %362 = vector.broadcast %cst_320 : f32 to vector<32x8xf32>
    %363 = arith.addf %362, %361 : vector<32x8xf32>
    %364 = arith.divf %362, %363 : vector<32x8xf32>
    %365 = vector.extract_strided_slice %352 {offsets = [0, 16], sizes = [32, 8], strides = [1, 1]} : vector<32x32xf32> to vector<32x8xf32>
    %366 = arith.negf %365 : vector<32x8xf32>
    %367 = math.exp %366 : vector<32x8xf32>
    %cst_321 = arith.constant 1.000000e+00 : f32
    %368 = vector.broadcast %cst_321 : f32 to vector<32x8xf32>
    %369 = arith.addf %368, %367 : vector<32x8xf32>
    %370 = arith.divf %368, %369 : vector<32x8xf32>
    %371 = vector.extract_strided_slice %352 {offsets = [0, 24], sizes = [32, 8], strides = [1, 1]} : vector<32x32xf32> to vector<32x8xf32>
    %372 = math.tanh %371 : vector<32x8xf32>
    %c0_322 = arith.constant 0 : index
    %c0_323 = arith.constant 0 : index
    %c0_324 = arith.constant 0 : index
    %373 = vector.load %arg3[%c0_322, %c0_323, %c0_324] : memref<1x32x8xf32, #tpu.memory_space<vmem>>, vector<1x32x8xf32>
    %374 = vector.shape_cast %373 : vector<1x32x8xf32> to vector<32x8xf32>
    %375 = arith.mulf %364, %374 : vector<32x8xf32>
    %376 = arith.mulf %358, %372 : vector<32x8xf32>
    %377 = arith.addf %375, %376 : vector<32x8xf32>
    %378 = math.tanh %377 : vector<32x8xf32>
    %379 = arith.mulf %370, %378 : vector<32x8xf32>
    %c0_325 = arith.constant 0 : index
    %c0_326 = arith.constant 0 : index
    %c0_327 = arith.constant 0 : index
    %380 = vector.load %arg13[%c0_325, %c0_326, %c0_327] : memref<1x32x8xf32, #tpu.memory_space<vmem>>, vector<1x32x8xf32>
    %381 = vector.shape_cast %380 : vector<1x32x8xf32> to vector<32x8xf32>
    %382 = vector.shape_cast %377 : vector<32x8xf32> to vector<1x32x8xf32>
    tpu.vector_store %arg13[%c0_325, %c0_326, %c0_327], %382 {strides = array<i32>} : memref<1x32x8xf32, #tpu.memory_space<vmem>>, vector<1x32x8xf32>,
    %383 = vector.broadcast %0 : vector<32x1xf32> to vector<32x8xf32>
    %384 = arith.mulf %379, %383 : vector<32x8xf32>
    %cst_328 = arith.constant 0.000000e+00 : f32
    %385 = vector.broadcast %cst_328 : f32 to vector<72x8xf32>
    %c0_329 = arith.constant 0 : index
    %c0_330 = arith.constant 0 : index
    %c0_331 = arith.constant 0 : index
    %386 = vector.load %arg12[%c0_329, %c0_330, %c0_331] : memref<1x72x8xf32, #tpu.memory_space<vmem>>, vector<1x72x8xf32>
    %387 = vector.shape_cast %386 : vector<1x72x8xf32> to vector<72x8xf32>
    %388 = vector.shape_cast %385 : vector<72x8xf32> to vector<1x72x8xf32>
    tpu.vector_store %arg12[%c0_329, %c0_330, %c0_331], %388 {strides = array<i32>} : memref<1x72x8xf32, #tpu.memory_space<vmem>>, vector<1x72x8xf32>,
    %c0_332 = arith.constant 0 : index
    %c18_333 = arith.constant 18 : index
    %c0_334 = arith.constant 0 : index
    %389 = vector.load %arg12[%c0_332, %c18_333, %c0_334] : memref<1x72x8xf32, #tpu.memory_space<vmem>>, vector<1x32x8xf32>
    %390 = vector.shape_cast %389 : vector<1x32x8xf32> to vector<32x8xf32>
    %391 = vector.shape_cast %384 : vector<32x8xf32> to vector<1x32x8xf32>
    tpu.vector_store %arg12[%c0_332, %c18_333, %c0_334], %391 {strides = array<i32>} : memref<1x72x8xf32, #tpu.memory_space<vmem>>, vector<1x32x8xf32>,
    %c0_335 = arith.constant 0 : index
    %c0_336 = arith.constant 0 : index
    %c0_337 = arith.constant 0 : index
    %392 = vector.load %arg12[%c0_335, %c0_336, %c0_337] : memref<1x72x8xf32, #tpu.memory_space<vmem>>, vector<1x32x8xf32>
    %393 = vector.shape_cast %392 : vector<1x32x8xf32> to vector<32x8xf32>
    %394 = arith.truncf %393 : vector<32x8xf32> to vector<32x8xbf16>
    %c0_338 = arith.constant 0 : index
    %c0_339 = arith.constant 0 : index
    %c0_340 = arith.constant 0 : index
    %395 = vector.load %arg8[%c0_338, %c0_339, %c0_340] : memref<25x8x8xbf16, #tpu.memory_space<vmem>>, vector<1x8x8xbf16>
    %396 = vector.shape_cast %395 : vector<1x8x8xbf16> to vector<8x8xbf16>
    %cst_341 = arith.constant dense<0.000000e+00> : vector<32x8xf32>
    %397 = tpu.matmul %394, %396, %cst_341 {dimension_numbers = #tpu.dot_dimension_numbers<[1], [0], [0], [1], [0, 0, 1, 1], [], []>} : vector<32x8xbf16>, vector<8x8xbf16>, vector<32x8xf32> -> vector<32x8xf32>
    %c0_342 = arith.constant 0 : index
    %c1_343 = arith.constant 1 : index
    %c0_344 = arith.constant 0 : index
    %398 = vector.load %arg12[%c0_342, %c1_343, %c0_344] : memref<1x72x8xf32, #tpu.memory_space<vmem>>, vector<1x32x8xf32>
    %399 = vector.shape_cast %398 : vector<1x32x8xf32> to vector<32x8xf32>
    %400 = arith.truncf %399 : vector<32x8xf32> to vector<32x8xbf16>
    %c1_345 = arith.constant 1 : index
    %c0_346 = arith.constant 0 : index
    %c0_347 = arith.constant 0 : index
    %401 = vector.load %arg8[%c1_345, %c0_346, %c0_347] : memref<25x8x8xbf16, #tpu.memory_space<vmem>>, vector<1x8x8xbf16>
    %402 = vector.shape_cast %401 : vector<1x8x8xbf16> to vector<8x8xbf16>
    %cst_348 = arith.constant dense<0.000000e+00> : vector<32x8xf32>
    %403 = tpu.matmul %400, %402, %cst_348 {dimension_numbers = #tpu.dot_dimension_numbers<[1], [0], [0], [1], [0, 0, 1, 1], [], []>} : vector<32x8xbf16>, vector<8x8xbf16>, vector<32x8xf32> -> vector<32x8xf32>
    %404 = arith.addf %397, %403 : vector<32x8xf32>
    %c0_349 = arith.constant 0 : index
    %c2_350 = arith.constant 2 : index
    %c0_351 = arith.constant 0 : index
    %405 = vector.load %arg12[%c0_349, %c2_350, %c0_351] : memref<1x72x8xf32, #tpu.memory_space<vmem>>, vector<1x32x8xf32>
    %406 = vector.shape_cast %405 : vector<1x32x8xf32> to vector<32x8xf32>
    %407 = arith.truncf %406 : vector<32x8xf32> to vector<32x8xbf16>
    %c2_352 = arith.constant 2 : index
    %c0_353 = arith.constant 0 : index
    %c0_354 = arith.constant 0 : index
    %408 = vector.load %arg8[%c2_352, %c0_353, %c0_354] : memref<25x8x8xbf16, #tpu.memory_space<vmem>>, vector<1x8x8xbf16>
    %409 = vector.shape_cast %408 : vector<1x8x8xbf16> to vector<8x8xbf16>
    %cst_355 = arith.constant dense<0.000000e+00> : vector<32x8xf32>
    %410 = tpu.matmul %407, %409, %cst_355 {dimension_numbers = #tpu.dot_dimension_numbers<[1], [0], [0], [1], [0, 0, 1, 1], [], []>} : vector<32x8xbf16>, vector<8x8xbf16>, vector<32x8xf32> -> vector<32x8xf32>
    %411 = arith.addf %404, %410 : vector<32x8xf32>
    %c0_356 = arith.constant 0 : index
    %c3_357 = arith.constant 3 : index
    %c0_358 = arith.constant 0 : index
    %412 = vector.load %arg12[%c0_356, %c3_357, %c0_358] : memref<1x72x8xf32, #tpu.memory_space<vmem>>, vector<1x32x8xf32>
    %413 = vector.shape_cast %412 : vector<1x32x8xf32> to vector<32x8xf32>
    %414 = arith.truncf %413 : vector<32x8xf32> to vector<32x8xbf16>
    %c3_359 = arith.constant 3 : index
    %c0_360 = arith.constant 0 : index
    %c0_361 = arith.constant 0 : index
    %415 = vector.load %arg8[%c3_359, %c0_360, %c0_361] : memref<25x8x8xbf16, #tpu.memory_space<vmem>>, vector<1x8x8xbf16>
    %416 = vector.shape_cast %415 : vector<1x8x8xbf16> to vector<8x8xbf16>
    %cst_362 = arith.constant dense<0.000000e+00> : vector<32x8xf32>
    %417 = tpu.matmul %414, %416, %cst_362 {dimension_numbers = #tpu.dot_dimension_numbers<[1], [0], [0], [1], [0, 0, 1, 1], [], []>} : vector<32x8xbf16>, vector<8x8xbf16>, vector<32x8xf32> -> vector<32x8xf32>
    %418 = arith.addf %411, %417 : vector<32x8xf32>
    %c0_363 = arith.constant 0 : index
    %c4_364 = arith.constant 4 : index
    %c0_365 = arith.constant 0 : index
    %419 = vector.load %arg12[%c0_363, %c4_364, %c0_365] : memref<1x72x8xf32, #tpu.memory_space<vmem>>, vector<1x32x8xf32>
    %420 = vector.shape_cast %419 : vector<1x32x8xf32> to vector<32x8xf32>
    %421 = arith.truncf %420 : vector<32x8xf32> to vector<32x8xbf16>
    %c4_366 = arith.constant 4 : index
    %c0_367 = arith.constant 0 : index
    %c0_368 = arith.constant 0 : index
    %422 = vector.load %arg8[%c4_366, %c0_367, %c0_368] : memref<25x8x8xbf16, #tpu.memory_space<vmem>>, vector<1x8x8xbf16>
    %423 = vector.shape_cast %422 : vector<1x8x8xbf16> to vector<8x8xbf16>
    %cst_369 = arith.constant dense<0.000000e+00> : vector<32x8xf32>
    %424 = tpu.matmul %421, %423, %cst_369 {dimension_numbers = #tpu.dot_dimension_numbers<[1], [0], [0], [1], [0, 0, 1, 1], [], []>} : vector<32x8xbf16>, vector<8x8xbf16>, vector<32x8xf32> -> vector<32x8xf32>
    %425 = arith.addf %418, %424 : vector<32x8xf32>
    %c0_370 = arith.constant 0 : index
    %c8_371 = arith.constant 8 : index
    %c0_372 = arith.constant 0 : index
    %426 = vector.load %arg12[%c0_370, %c8_371, %c0_372] : memref<1x72x8xf32, #tpu.memory_space<vmem>>, vector<1x32x8xf32>
    %427 = vector.shape_cast %426 : vector<1x32x8xf32> to vector<32x8xf32>
    %428 = arith.truncf %427 : vector<32x8xf32> to vector<32x8xbf16>
    %c5_373 = arith.constant 5 : index
    %c0_374 = arith.constant 0 : index
    %c0_375 = arith.constant 0 : index
    %429 = vector.load %arg8[%c5_373, %c0_374, %c0_375] : memref<25x8x8xbf16, #tpu.memory_space<vmem>>, vector<1x8x8xbf16>
    %430 = vector.shape_cast %429 : vector<1x8x8xbf16> to vector<8x8xbf16>
    %cst_376 = arith.constant dense<0.000000e+00> : vector<32x8xf32>
    %431 = tpu.matmul %428, %430, %cst_376 {dimension_numbers = #tpu.dot_dimension_numbers<[1], [0], [0], [1], [0, 0, 1, 1], [], []>} : vector<32x8xbf16>, vector<8x8xbf16>, vector<32x8xf32> -> vector<32x8xf32>
    %432 = arith.addf %425, %431 : vector<32x8xf32>
    %c0_377 = arith.constant 0 : index
    %c9_378 = arith.constant 9 : index
    %c0_379 = arith.constant 0 : index
    %433 = vector.load %arg12[%c0_377, %c9_378, %c0_379] : memref<1x72x8xf32, #tpu.memory_space<vmem>>, vector<1x32x8xf32>
    %434 = vector.shape_cast %433 : vector<1x32x8xf32> to vector<32x8xf32>
    %435 = arith.truncf %434 : vector<32x8xf32> to vector<32x8xbf16>
    %c6_380 = arith.constant 6 : index
    %c0_381 = arith.constant 0 : index
    %c0_382 = arith.constant 0 : index
    %436 = vector.load %arg8[%c6_380, %c0_381, %c0_382] : memref<25x8x8xbf16, #tpu.memory_space<vmem>>, vector<1x8x8xbf16>
    %437 = vector.shape_cast %436 : vector<1x8x8xbf16> to vector<8x8xbf16>
    %cst_383 = arith.constant dense<0.000000e+00> : vector<32x8xf32>
    %438 = tpu.matmul %435, %437, %cst_383 {dimension_numbers = #tpu.dot_dimension_numbers<[1], [0], [0], [1], [0, 0, 1, 1], [], []>} : vector<32x8xbf16>, vector<8x8xbf16>, vector<32x8xf32> -> vector<32x8xf32>
    %439 = arith.addf %432, %438 : vector<32x8xf32>
    %c0_384 = arith.constant 0 : index
    %c10_385 = arith.constant 10 : index
    %c0_386 = arith.constant 0 : index
    %440 = vector.load %arg12[%c0_384, %c10_385, %c0_386] : memref<1x72x8xf32, #tpu.memory_space<vmem>>, vector<1x32x8xf32>
    %441 = vector.shape_cast %440 : vector<1x32x8xf32> to vector<32x8xf32>
    %442 = arith.truncf %441 : vector<32x8xf32> to vector<32x8xbf16>
    %c7_387 = arith.constant 7 : index
    %c0_388 = arith.constant 0 : index
    %c0_389 = arith.constant 0 : index
    %443 = vector.load %arg8[%c7_387, %c0_388, %c0_389] : memref<25x8x8xbf16, #tpu.memory_space<vmem>>, vector<1x8x8xbf16>
    %444 = vector.shape_cast %443 : vector<1x8x8xbf16> to vector<8x8xbf16>
    %cst_390 = arith.constant dense<0.000000e+00> : vector<32x8xf32>
    %445 = tpu.matmul %442, %444, %cst_390 {dimension_numbers = #tpu.dot_dimension_numbers<[1], [0], [0], [1], [0, 0, 1, 1], [], []>} : vector<32x8xbf16>, vector<8x8xbf16>, vector<32x8xf32> -> vector<32x8xf32>
    %446 = arith.addf %439, %445 : vector<32x8xf32>
    %c0_391 = arith.constant 0 : index
    %c11_392 = arith.constant 11 : index
    %c0_393 = arith.constant 0 : index
    %447 = vector.load %arg12[%c0_391, %c11_392, %c0_393] : memref<1x72x8xf32, #tpu.memory_space<vmem>>, vector<1x32x8xf32>
    %448 = vector.shape_cast %447 : vector<1x32x8xf32> to vector<32x8xf32>
    %449 = arith.truncf %448 : vector<32x8xf32> to vector<32x8xbf16>
    %c8_394 = arith.constant 8 : index
    %c0_395 = arith.constant 0 : index
    %c0_396 = arith.constant 0 : index
    %450 = vector.load %arg8[%c8_394, %c0_395, %c0_396] : memref<25x8x8xbf16, #tpu.memory_space<vmem>>, vector<1x8x8xbf16>
    %451 = vector.shape_cast %450 : vector<1x8x8xbf16> to vector<8x8xbf16>
    %cst_397 = arith.constant dense<0.000000e+00> : vector<32x8xf32>
    %452 = tpu.matmul %449, %451, %cst_397 {dimension_numbers = #tpu.dot_dimension_numbers<[1], [0], [0], [1], [0, 0, 1, 1], [], []>} : vector<32x8xbf16>, vector<8x8xbf16>, vector<32x8xf32> -> vector<32x8xf32>
    %453 = arith.addf %446, %452 : vector<32x8xf32>
    %c0_398 = arith.constant 0 : index
    %c12_399 = arith.constant 12 : index
    %c0_400 = arith.constant 0 : index
    %454 = vector.load %arg12[%c0_398, %c12_399, %c0_400] : memref<1x72x8xf32, #tpu.memory_space<vmem>>, vector<1x32x8xf32>
    %455 = vector.shape_cast %454 : vector<1x32x8xf32> to vector<32x8xf32>
    %456 = arith.truncf %455 : vector<32x8xf32> to vector<32x8xbf16>
    %c9_401 = arith.constant 9 : index
    %c0_402 = arith.constant 0 : index
    %c0_403 = arith.constant 0 : index
    %457 = vector.load %arg8[%c9_401, %c0_402, %c0_403] : memref<25x8x8xbf16, #tpu.memory_space<vmem>>, vector<1x8x8xbf16>
    %458 = vector.shape_cast %457 : vector<1x8x8xbf16> to vector<8x8xbf16>
    %cst_404 = arith.constant dense<0.000000e+00> : vector<32x8xf32>
    %459 = tpu.matmul %456, %458, %cst_404 {dimension_numbers = #tpu.dot_dimension_numbers<[1], [0], [0], [1], [0, 0, 1, 1], [], []>} : vector<32x8xbf16>, vector<8x8xbf16>, vector<32x8xf32> -> vector<32x8xf32>
    %460 = arith.addf %453, %459 : vector<32x8xf32>
    %c0_405 = arith.constant 0 : index
    %c16_406 = arith.constant 16 : index
    %c0_407 = arith.constant 0 : index
    %461 = vector.load %arg12[%c0_405, %c16_406, %c0_407] : memref<1x72x8xf32, #tpu.memory_space<vmem>>, vector<1x32x8xf32>
    %462 = vector.shape_cast %461 : vector<1x32x8xf32> to vector<32x8xf32>
    %463 = arith.truncf %462 : vector<32x8xf32> to vector<32x8xbf16>
    %c10_408 = arith.constant 10 : index
    %c0_409 = arith.constant 0 : index
    %c0_410 = arith.constant 0 : index
    %464 = vector.load %arg8[%c10_408, %c0_409, %c0_410] : memref<25x8x8xbf16, #tpu.memory_space<vmem>>, vector<1x8x8xbf16>
    %465 = vector.shape_cast %464 : vector<1x8x8xbf16> to vector<8x8xbf16>
    %cst_411 = arith.constant dense<0.000000e+00> : vector<32x8xf32>
    %466 = tpu.matmul %463, %465, %cst_411 {dimension_numbers = #tpu.dot_dimension_numbers<[1], [0], [0], [1], [0, 0, 1, 1], [], []>} : vector<32x8xbf16>, vector<8x8xbf16>, vector<32x8xf32> -> vector<32x8xf32>
    %467 = arith.addf %460, %466 : vector<32x8xf32>
    %c0_412 = arith.constant 0 : index
    %c17_413 = arith.constant 17 : index
    %c0_414 = arith.constant 0 : index
    %468 = vector.load %arg12[%c0_412, %c17_413, %c0_414] : memref<1x72x8xf32, #tpu.memory_space<vmem>>, vector<1x32x8xf32>
    %469 = vector.shape_cast %468 : vector<1x32x8xf32> to vector<32x8xf32>
    %470 = arith.truncf %469 : vector<32x8xf32> to vector<32x8xbf16>
    %c11_415 = arith.constant 11 : index
    %c0_416 = arith.constant 0 : index
    %c0_417 = arith.constant 0 : index
    %471 = vector.load %arg8[%c11_415, %c0_416, %c0_417] : memref<25x8x8xbf16, #tpu.memory_space<vmem>>, vector<1x8x8xbf16>
    %472 = vector.shape_cast %471 : vector<1x8x8xbf16> to vector<8x8xbf16>
    %cst_418 = arith.constant dense<0.000000e+00> : vector<32x8xf32>
    %473 = tpu.matmul %470, %472, %cst_418 {dimension_numbers = #tpu.dot_dimension_numbers<[1], [0], [0], [1], [0, 0, 1, 1], [], []>} : vector<32x8xbf16>, vector<8x8xbf16>, vector<32x8xf32> -> vector<32x8xf32>
    %474 = arith.addf %467, %473 : vector<32x8xf32>
    %c0_419 = arith.constant 0 : index
    %c18_420 = arith.constant 18 : index
    %c0_421 = arith.constant 0 : index
    %475 = vector.load %arg12[%c0_419, %c18_420, %c0_421] : memref<1x72x8xf32, #tpu.memory_space<vmem>>, vector<1x32x8xf32>
    %476 = vector.shape_cast %475 : vector<1x32x8xf32> to vector<32x8xf32>
    %477 = arith.truncf %476 : vector<32x8xf32> to vector<32x8xbf16>
    %c12_422 = arith.constant 12 : index
    %c0_423 = arith.constant 0 : index
    %c0_424 = arith.constant 0 : index
    %478 = vector.load %arg8[%c12_422, %c0_423, %c0_424] : memref<25x8x8xbf16, #tpu.memory_space<vmem>>, vector<1x8x8xbf16>
    %479 = vector.shape_cast %478 : vector<1x8x8xbf16> to vector<8x8xbf16>
    %cst_425 = arith.constant dense<0.000000e+00> : vector<32x8xf32>
    %480 = tpu.matmul %477, %479, %cst_425 {dimension_numbers = #tpu.dot_dimension_numbers<[1], [0], [0], [1], [0, 0, 1, 1], [], []>} : vector<32x8xbf16>, vector<8x8xbf16>, vector<32x8xf32> -> vector<32x8xf32>
    %481 = arith.addf %474, %480 : vector<32x8xf32>
    %c0_426 = arith.constant 0 : index
    %c19_427 = arith.constant 19 : index
    %c0_428 = arith.constant 0 : index
    %482 = vector.load %arg12[%c0_426, %c19_427, %c0_428] : memref<1x72x8xf32, #tpu.memory_space<vmem>>, vector<1x32x8xf32>
    %483 = vector.shape_cast %482 : vector<1x32x8xf32> to vector<32x8xf32>
    %484 = arith.truncf %483 : vector<32x8xf32> to vector<32x8xbf16>
    %c13_429 = arith.constant 13 : index
    %c0_430 = arith.constant 0 : index
    %c0_431 = arith.constant 0 : index
    %485 = vector.load %arg8[%c13_429, %c0_430, %c0_431] : memref<25x8x8xbf16, #tpu.memory_space<vmem>>, vector<1x8x8xbf16>
    %486 = vector.shape_cast %485 : vector<1x8x8xbf16> to vector<8x8xbf16>
    %cst_432 = arith.constant dense<0.000000e+00> : vector<32x8xf32>
    %487 = tpu.matmul %484, %486, %cst_432 {dimension_numbers = #tpu.dot_dimension_numbers<[1], [0], [0], [1], [0, 0, 1, 1], [], []>} : vector<32x8xbf16>, vector<8x8xbf16>, vector<32x8xf32> -> vector<32x8xf32>
    %488 = arith.addf %481, %487 : vector<32x8xf32>
    %c0_433 = arith.constant 0 : index
    %c20_434 = arith.constant 20 : index
    %c0_435 = arith.constant 0 : index
    %489 = vector.load %arg12[%c0_433, %c20_434, %c0_435] : memref<1x72x8xf32, #tpu.memory_space<vmem>>, vector<1x32x8xf32>
    %490 = vector.shape_cast %489 : vector<1x32x8xf32> to vector<32x8xf32>
    %491 = arith.truncf %490 : vector<32x8xf32> to vector<32x8xbf16>
    %c14_436 = arith.constant 14 : index
    %c0_437 = arith.constant 0 : index
    %c0_438 = arith.constant 0 : index
    %492 = vector.load %arg8[%c14_436, %c0_437, %c0_438] : memref<25x8x8xbf16, #tpu.memory_space<vmem>>, vector<1x8x8xbf16>
    %493 = vector.shape_cast %492 : vector<1x8x8xbf16> to vector<8x8xbf16>
    %cst_439 = arith.constant dense<0.000000e+00> : vector<32x8xf32>
    %494 = tpu.matmul %491, %493, %cst_439 {dimension_numbers = #tpu.dot_dimension_numbers<[1], [0], [0], [1], [0, 0, 1, 1], [], []>} : vector<32x8xbf16>, vector<8x8xbf16>, vector<32x8xf32> -> vector<32x8xf32>
    %495 = arith.addf %488, %494 : vector<32x8xf32>
    %c0_440 = arith.constant 0 : index
    %c24_441 = arith.constant 24 : index
    %c0_442 = arith.constant 0 : index
    %496 = vector.load %arg12[%c0_440, %c24_441, %c0_442] : memref<1x72x8xf32, #tpu.memory_space<vmem>>, vector<1x32x8xf32>
    %497 = vector.shape_cast %496 : vector<1x32x8xf32> to vector<32x8xf32>
    %498 = arith.truncf %497 : vector<32x8xf32> to vector<32x8xbf16>
    %c15_443 = arith.constant 15 : index
    %c0_444 = arith.constant 0 : index
    %c0_445 = arith.constant 0 : index
    %499 = vector.load %arg8[%c15_443, %c0_444, %c0_445] : memref<25x8x8xbf16, #tpu.memory_space<vmem>>, vector<1x8x8xbf16>
    %500 = vector.shape_cast %499 : vector<1x8x8xbf16> to vector<8x8xbf16>
    %cst_446 = arith.constant dense<0.000000e+00> : vector<32x8xf32>
    %501 = tpu.matmul %498, %500, %cst_446 {dimension_numbers = #tpu.dot_dimension_numbers<[1], [0], [0], [1], [0, 0, 1, 1], [], []>} : vector<32x8xbf16>, vector<8x8xbf16>, vector<32x8xf32> -> vector<32x8xf32>
    %502 = arith.addf %495, %501 : vector<32x8xf32>
    %c0_447 = arith.constant 0 : index
    %c25_448 = arith.constant 25 : index
    %c0_449 = arith.constant 0 : index
    %503 = vector.load %arg12[%c0_447, %c25_448, %c0_449] : memref<1x72x8xf32, #tpu.memory_space<vmem>>, vector<1x32x8xf32>
    %504 = vector.shape_cast %503 : vector<1x32x8xf32> to vector<32x8xf32>
    %505 = arith.truncf %504 : vector<32x8xf32> to vector<32x8xbf16>
    %c16_450 = arith.constant 16 : index
    %c0_451 = arith.constant 0 : index
    %c0_452 = arith.constant 0 : index
    %506 = vector.load %arg8[%c16_450, %c0_451, %c0_452] : memref<25x8x8xbf16, #tpu.memory_space<vmem>>, vector<1x8x8xbf16>
    %507 = vector.shape_cast %506 : vector<1x8x8xbf16> to vector<8x8xbf16>
    %cst_453 = arith.constant dense<0.000000e+00> : vector<32x8xf32>
    %508 = tpu.matmul %505, %507, %cst_453 {dimension_numbers = #tpu.dot_dimension_numbers<[1], [0], [0], [1], [0, 0, 1, 1], [], []>} : vector<32x8xbf16>, vector<8x8xbf16>, vector<32x8xf32> -> vector<32x8xf32>
    %509 = arith.addf %502, %508 : vector<32x8xf32>
    %c0_454 = arith.constant 0 : index
    %c26_455 = arith.constant 26 : index
    %c0_456 = arith.constant 0 : index
    %510 = vector.load %arg12[%c0_454, %c26_455, %c0_456] : memref<1x72x8xf32, #tpu.memory_space<vmem>>, vector<1x32x8xf32>
    %511 = vector.shape_cast %510 : vector<1x32x8xf32> to vector<32x8xf32>
    %512 = arith.truncf %511 : vector<32x8xf32> to vector<32x8xbf16>
    %c17_457 = arith.constant 17 : index
    %c0_458 = arith.constant 0 : index
    %c0_459 = arith.constant 0 : index
    %513 = vector.load %arg8[%c17_457, %c0_458, %c0_459] : memref<25x8x8xbf16, #tpu.memory_space<vmem>>, vector<1x8x8xbf16>
    %514 = vector.shape_cast %513 : vector<1x8x8xbf16> to vector<8x8xbf16>
    %cst_460 = arith.constant dense<0.000000e+00> : vector<32x8xf32>
    %515 = tpu.matmul %512, %514, %cst_460 {dimension_numbers = #tpu.dot_dimension_numbers<[1], [0], [0], [1], [0, 0, 1, 1], [], []>} : vector<32x8xbf16>, vector<8x8xbf16>, vector<32x8xf32> -> vector<32x8xf32>
    %516 = arith.addf %509, %515 : vector<32x8xf32>
    %c0_461 = arith.constant 0 : index
    %c27_462 = arith.constant 27 : index
    %c0_463 = arith.constant 0 : index
    %517 = vector.load %arg12[%c0_461, %c27_462, %c0_463] : memref<1x72x8xf32, #tpu.memory_space<vmem>>, vector<1x32x8xf32>
    %518 = vector.shape_cast %517 : vector<1x32x8xf32> to vector<32x8xf32>
    %519 = arith.truncf %518 : vector<32x8xf32> to vector<32x8xbf16>
    %c18_464 = arith.constant 18 : index
    %c0_465 = arith.constant 0 : index
    %c0_466 = arith.constant 0 : index
    %520 = vector.load %arg8[%c18_464, %c0_465, %c0_466] : memref<25x8x8xbf16, #tpu.memory_space<vmem>>, vector<1x8x8xbf16>
    %521 = vector.shape_cast %520 : vector<1x8x8xbf16> to vector<8x8xbf16>
    %cst_467 = arith.constant dense<0.000000e+00> : vector<32x8xf32>
    %522 = tpu.matmul %519, %521, %cst_467 {dimension_numbers = #tpu.dot_dimension_numbers<[1], [0], [0], [1], [0, 0, 1, 1], [], []>} : vector<32x8xbf16>, vector<8x8xbf16>, vector<32x8xf32> -> vector<32x8xf32>
    %523 = arith.addf %516, %522 : vector<32x8xf32>
    %c0_468 = arith.constant 0 : index
    %c28_469 = arith.constant 28 : index
    %c0_470 = arith.constant 0 : index
    %524 = vector.load %arg12[%c0_468, %c28_469, %c0_470] : memref<1x72x8xf32, #tpu.memory_space<vmem>>, vector<1x32x8xf32>
    %525 = vector.shape_cast %524 : vector<1x32x8xf32> to vector<32x8xf32>
    %526 = arith.truncf %525 : vector<32x8xf32> to vector<32x8xbf16>
    %c19_471 = arith.constant 19 : index
    %c0_472 = arith.constant 0 : index
    %c0_473 = arith.constant 0 : index
    %527 = vector.load %arg8[%c19_471, %c0_472, %c0_473] : memref<25x8x8xbf16, #tpu.memory_space<vmem>>, vector<1x8x8xbf16>
    %528 = vector.shape_cast %527 : vector<1x8x8xbf16> to vector<8x8xbf16>
    %cst_474 = arith.constant dense<0.000000e+00> : vector<32x8xf32>
    %529 = tpu.matmul %526, %528, %cst_474 {dimension_numbers = #tpu.dot_dimension_numbers<[1], [0], [0], [1], [0, 0, 1, 1], [], []>} : vector<32x8xbf16>, vector<8x8xbf16>, vector<32x8xf32> -> vector<32x8xf32>
    %530 = arith.addf %523, %529 : vector<32x8xf32>
    %c0_475 = arith.constant 0 : index
    %c32_476 = arith.constant 32 : index
    %c0_477 = arith.constant 0 : index
    %531 = vector.load %arg12[%c0_475, %c32_476, %c0_477] : memref<1x72x8xf32, #tpu.memory_space<vmem>>, vector<1x32x8xf32>
    %532 = vector.shape_cast %531 : vector<1x32x8xf32> to vector<32x8xf32>
    %533 = arith.truncf %532 : vector<32x8xf32> to vector<32x8xbf16>
    %c20_478 = arith.constant 20 : index
    %c0_479 = arith.constant 0 : index
    %c0_480 = arith.constant 0 : index
    %534 = vector.load %arg8[%c20_478, %c0_479, %c0_480] : memref<25x8x8xbf16, #tpu.memory_space<vmem>>, vector<1x8x8xbf16>
    %535 = vector.shape_cast %534 : vector<1x8x8xbf16> to vector<8x8xbf16>
    %cst_481 = arith.constant dense<0.000000e+00> : vector<32x8xf32>
    %536 = tpu.matmul %533, %535, %cst_481 {dimension_numbers = #tpu.dot_dimension_numbers<[1], [0], [0], [1], [0, 0, 1, 1], [], []>} : vector<32x8xbf16>, vector<8x8xbf16>, vector<32x8xf32> -> vector<32x8xf32>
    %537 = arith.addf %530, %536 : vector<32x8xf32>
    %c0_482 = arith.constant 0 : index
    %c33_483 = arith.constant 33 : index
    %c0_484 = arith.constant 0 : index
    %538 = vector.load %arg12[%c0_482, %c33_483, %c0_484] : memref<1x72x8xf32, #tpu.memory_space<vmem>>, vector<1x32x8xf32>
    %539 = vector.shape_cast %538 : vector<1x32x8xf32> to vector<32x8xf32>
    %540 = arith.truncf %539 : vector<32x8xf32> to vector<32x8xbf16>
    %c21_485 = arith.constant 21 : index
    %c0_486 = arith.constant 0 : index
    %c0_487 = arith.constant 0 : index
    %541 = vector.load %arg8[%c21_485, %c0_486, %c0_487] : memref<25x8x8xbf16, #tpu.memory_space<vmem>>, vector<1x8x8xbf16>
    %542 = vector.shape_cast %541 : vector<1x8x8xbf16> to vector<8x8xbf16>
    %cst_488 = arith.constant dense<0.000000e+00> : vector<32x8xf32>
    %543 = tpu.matmul %540, %542, %cst_488 {dimension_numbers = #tpu.dot_dimension_numbers<[1], [0], [0], [1], [0, 0, 1, 1], [], []>} : vector<32x8xbf16>, vector<8x8xbf16>, vector<32x8xf32> -> vector<32x8xf32>
    %544 = arith.addf %537, %543 : vector<32x8xf32>
    %c0_489 = arith.constant 0 : index
    %c34_490 = arith.constant 34 : index
    %c0_491 = arith.constant 0 : index
    %545 = vector.load %arg12[%c0_489, %c34_490, %c0_491] : memref<1x72x8xf32, #tpu.memory_space<vmem>>, vector<1x32x8xf32>
    %546 = vector.shape_cast %545 : vector<1x32x8xf32> to vector<32x8xf32>
    %547 = arith.truncf %546 : vector<32x8xf32> to vector<32x8xbf16>
    %c22_492 = arith.constant 22 : index
    %c0_493 = arith.constant 0 : index
    %c0_494 = arith.constant 0 : index
    %548 = vector.load %arg8[%c22_492, %c0_493, %c0_494] : memref<25x8x8xbf16, #tpu.memory_space<vmem>>, vector<1x8x8xbf16>
    %549 = vector.shape_cast %548 : vector<1x8x8xbf16> to vector<8x8xbf16>
    %cst_495 = arith.constant dense<0.000000e+00> : vector<32x8xf32>
    %550 = tpu.matmul %547, %549, %cst_495 {dimension_numbers = #tpu.dot_dimension_numbers<[1], [0], [0], [1], [0, 0, 1, 1], [], []>} : vector<32x8xbf16>, vector<8x8xbf16>, vector<32x8xf32> -> vector<32x8xf32>
    %551 = arith.addf %544, %550 : vector<32x8xf32>
    %c0_496 = arith.constant 0 : index
    %c35_497 = arith.constant 35 : index
    %c0_498 = arith.constant 0 : index
    %552 = vector.load %arg12[%c0_496, %c35_497, %c0_498] : memref<1x72x8xf32, #tpu.memory_space<vmem>>, vector<1x32x8xf32>
    %553 = vector.shape_cast %552 : vector<1x32x8xf32> to vector<32x8xf32>
    %554 = arith.truncf %553 : vector<32x8xf32> to vector<32x8xbf16>
    %c23_499 = arith.constant 23 : index
    %c0_500 = arith.constant 0 : index
    %c0_501 = arith.constant 0 : index
    %555 = vector.load %arg8[%c23_499, %c0_500, %c0_501] : memref<25x8x8xbf16, #tpu.memory_space<vmem>>, vector<1x8x8xbf16>
    %556 = vector.shape_cast %555 : vector<1x8x8xbf16> to vector<8x8xbf16>
    %cst_502 = arith.constant dense<0.000000e+00> : vector<32x8xf32>
    %557 = tpu.matmul %554, %556, %cst_502 {dimension_numbers = #tpu.dot_dimension_numbers<[1], [0], [0], [1], [0, 0, 1, 1], [], []>} : vector<32x8xbf16>, vector<8x8xbf16>, vector<32x8xf32> -> vector<32x8xf32>
    %558 = arith.addf %551, %557 : vector<32x8xf32>
    %c0_503 = arith.constant 0 : index
    %c36_504 = arith.constant 36 : index
    %c0_505 = arith.constant 0 : index
    %559 = vector.load %arg12[%c0_503, %c36_504, %c0_505] : memref<1x72x8xf32, #tpu.memory_space<vmem>>, vector<1x32x8xf32>
    %560 = vector.shape_cast %559 : vector<1x32x8xf32> to vector<32x8xf32>
    %561 = arith.truncf %560 : vector<32x8xf32> to vector<32x8xbf16>
    %c24_506 = arith.constant 24 : index
    %c0_507 = arith.constant 0 : index
    %c0_508 = arith.constant 0 : index
    %562 = vector.load %arg8[%c24_506, %c0_507, %c0_508] : memref<25x8x8xbf16, #tpu.memory_space<vmem>>, vector<1x8x8xbf16>
    %563 = vector.shape_cast %562 : vector<1x8x8xbf16> to vector<8x8xbf16>
    %cst_509 = arith.constant dense<0.000000e+00> : vector<32x8xf32>
    %564 = tpu.matmul %561, %563, %cst_509 {dimension_numbers = #tpu.dot_dimension_numbers<[1], [0], [0], [1], [0, 0, 1, 1], [], []>} : vector<32x8xbf16>, vector<8x8xbf16>, vector<32x8xf32> -> vector<32x8xf32>
    %565 = arith.addf %558, %564 : vector<32x8xf32>
    %c0_510 = arith.constant 0 : index
    %c0_511 = arith.constant 0 : index
    %566 = vector.load %arg9[%c0_510, %c0_511] : memref<1x8xf32, #tpu.memory_space<vmem>>, vector<1x8xf32>
    %567 = vector.broadcast %566 : vector<1x8xf32> to vector<32x8xf32>
    %568 = arith.addf %565, %567 : vector<32x8xf32>
    %cst_512 = arith.constant 0.000000e+00 : f32
    %569 = vector.broadcast %cst_512 : f32 to vector<32x8xf32>
    %570 = arith.maximumf %568, %569 : vector<32x8xf32>
    %571 = vector.broadcast %0 : vector<32x1xf32> to vector<32x8xf32>
    %572 = arith.mulf %570, %571 : vector<32x8xf32>
    %cst_513 = arith.constant 0.000000e+00 : f32
    %573 = vector.broadcast %cst_513 : f32 to vector<56x8xf32>
    %c0_514 = arith.constant 0 : index
    %c0_515 = arith.constant 0 : index
    %574 = vector.load %arg15[%c0_514, %c0_515] : memref<56x8xf32, #tpu.memory_space<vmem>>, vector<56x8xf32>
    tpu.vector_store %arg15[%c0_514, %c0_515], %573 {strides = array<i32>} : memref<56x8xf32, #tpu.memory_space<vmem>>, vector<56x8xf32>,
    %c9_516 = arith.constant 9 : index
    %c0_517 = arith.constant 0 : index
    %575 = vector.load %arg15[%c9_516, %c0_517] : memref<56x8xf32, #tpu.memory_space<vmem>>, vector<32x8xf32>
    tpu.vector_store %arg15[%c9_516, %c0_517], %572 {strides = array<i32>} : memref<56x8xf32, #tpu.memory_space<vmem>>, vector<32x8xf32>,
    %c0_518 = arith.constant 0 : index
    %c0_519 = arith.constant 0 : index
    %576 = vector.load %arg15[%c0_518, %c0_519] : memref<56x8xf32, #tpu.memory_space<vmem>>, vector<32x8xf32>
    %577 = arith.truncf %576 : vector<32x8xf32> to vector<32x8xbf16>
    %c0_520 = arith.constant 0 : index
    %c0_521 = arith.constant 0 : index
    %c0_522 = arith.constant 0 : index
    %578 = vector.load %arg10[%c0_520, %c0_521, %c0_522] : memref<16x8x16xbf16, #tpu.memory_space<vmem>>, vector<1x8x16xbf16>
    %579 = vector.shape_cast %578 : vector<1x8x16xbf16> to vector<8x16xbf16>
    %cst_523 = arith.constant dense<0.000000e+00> : vector<32x16xf32>
    %580 = tpu.matmul %577, %579, %cst_523 {dimension_numbers = #tpu.dot_dimension_numbers<[1], [0], [0], [1], [0, 0, 1, 1], [], []>} : vector<32x8xbf16>, vector<8x16xbf16>, vector<32x16xf32> -> vector<32x16xf32>
    %c1_524 = arith.constant 1 : index
    %c0_525 = arith.constant 0 : index
    %581 = vector.load %arg15[%c1_524, %c0_525] : memref<56x8xf32, #tpu.memory_space<vmem>>, vector<32x8xf32>
    %582 = arith.truncf %581 : vector<32x8xf32> to vector<32x8xbf16>
    %c1_526 = arith.constant 1 : index
    %c0_527 = arith.constant 0 : index
    %c0_528 = arith.constant 0 : index
    %583 = vector.load %arg10[%c1_526, %c0_527, %c0_528] : memref<16x8x16xbf16, #tpu.memory_space<vmem>>, vector<1x8x16xbf16>
    %584 = vector.shape_cast %583 : vector<1x8x16xbf16> to vector<8x16xbf16>
    %cst_529 = arith.constant dense<0.000000e+00> : vector<32x16xf32>
    %585 = tpu.matmul %582, %584, %cst_529 {dimension_numbers = #tpu.dot_dimension_numbers<[1], [0], [0], [1], [0, 0, 1, 1], [], []>} : vector<32x8xbf16>, vector<8x16xbf16>, vector<32x16xf32> -> vector<32x16xf32>
    %586 = arith.addf %580, %585 : vector<32x16xf32>
    %c8_530 = arith.constant 8 : index
    %c0_531 = arith.constant 0 : index
    %587 = vector.load %arg15[%c8_530, %c0_531] : memref<56x8xf32, #tpu.memory_space<vmem>>, vector<32x8xf32>
    %588 = arith.truncf %587 : vector<32x8xf32> to vector<32x8xbf16>
    %c2_532 = arith.constant 2 : index
    %c0_533 = arith.constant 0 : index
    %c0_534 = arith.constant 0 : index
    %589 = vector.load %arg10[%c2_532, %c0_533, %c0_534] : memref<16x8x16xbf16, #tpu.memory_space<vmem>>, vector<1x8x16xbf16>
    %590 = vector.shape_cast %589 : vector<1x8x16xbf16> to vector<8x16xbf16>
    %cst_535 = arith.constant dense<0.000000e+00> : vector<32x16xf32>
    %591 = tpu.matmul %588, %590, %cst_535 {dimension_numbers = #tpu.dot_dimension_numbers<[1], [0], [0], [1], [0, 0, 1, 1], [], []>} : vector<32x8xbf16>, vector<8x16xbf16>, vector<32x16xf32> -> vector<32x16xf32>
    %592 = arith.addf %586, %591 : vector<32x16xf32>
    %c9_536 = arith.constant 9 : index
    %c0_537 = arith.constant 0 : index
    %593 = vector.load %arg15[%c9_536, %c0_537] : memref<56x8xf32, #tpu.memory_space<vmem>>, vector<32x8xf32>
    %594 = arith.truncf %593 : vector<32x8xf32> to vector<32x8xbf16>
    %c3_538 = arith.constant 3 : index
    %c0_539 = arith.constant 0 : index
    %c0_540 = arith.constant 0 : index
    %595 = vector.load %arg10[%c3_538, %c0_539, %c0_540] : memref<16x8x16xbf16, #tpu.memory_space<vmem>>, vector<1x8x16xbf16>
    %596 = vector.shape_cast %595 : vector<1x8x16xbf16> to vector<8x16xbf16>
    %cst_541 = arith.constant dense<0.000000e+00> : vector<32x16xf32>
    %597 = tpu.matmul %594, %596, %cst_541 {dimension_numbers = #tpu.dot_dimension_numbers<[1], [0], [0], [1], [0, 0, 1, 1], [], []>} : vector<32x8xbf16>, vector<8x16xbf16>, vector<32x16xf32> -> vector<32x16xf32>
    %598 = arith.addf %592, %597 : vector<32x16xf32>
    %c1_542 = arith.constant 1 : index
    %c0_543 = arith.constant 0 : index
    %599 = vector.load %arg15[%c1_542, %c0_543] : memref<56x8xf32, #tpu.memory_space<vmem>>, vector<32x8xf32>
    %600 = arith.truncf %599 : vector<32x8xf32> to vector<32x8xbf16>
    %c4_544 = arith.constant 4 : index
    %c0_545 = arith.constant 0 : index
    %c0_546 = arith.constant 0 : index
    %601 = vector.load %arg10[%c4_544, %c0_545, %c0_546] : memref<16x8x16xbf16, #tpu.memory_space<vmem>>, vector<1x8x16xbf16>
    %602 = vector.shape_cast %601 : vector<1x8x16xbf16> to vector<8x16xbf16>
    %cst_547 = arith.constant dense<0.000000e+00> : vector<32x16xf32>
    %603 = tpu.matmul %600, %602, %cst_547 {dimension_numbers = #tpu.dot_dimension_numbers<[1], [0], [0], [1], [0, 0, 1, 1], [], []>} : vector<32x8xbf16>, vector<8x16xbf16>, vector<32x16xf32> -> vector<32x16xf32>
    %c2_548 = arith.constant 2 : index
    %c0_549 = arith.constant 0 : index
    %604 = vector.load %arg15[%c2_548, %c0_549] : memref<56x8xf32, #tpu.memory_space<vmem>>, vector<32x8xf32>
    %605 = arith.truncf %604 : vector<32x8xf32> to vector<32x8xbf16>
    %c5_550 = arith.constant 5 : index
    %c0_551 = arith.constant 0 : index
    %c0_552 = arith.constant 0 : index
    %606 = vector.load %arg10[%c5_550, %c0_551, %c0_552] : memref<16x8x16xbf16, #tpu.memory_space<vmem>>, vector<1x8x16xbf16>
    %607 = vector.shape_cast %606 : vector<1x8x16xbf16> to vector<8x16xbf16>
    %cst_553 = arith.constant dense<0.000000e+00> : vector<32x16xf32>
    %608 = tpu.matmul %605, %607, %cst_553 {dimension_numbers = #tpu.dot_dimension_numbers<[1], [0], [0], [1], [0, 0, 1, 1], [], []>} : vector<32x8xbf16>, vector<8x16xbf16>, vector<32x16xf32> -> vector<32x16xf32>
    %609 = arith.addf %603, %608 : vector<32x16xf32>
    %c9_554 = arith.constant 9 : index
    %c0_555 = arith.constant 0 : index
    %610 = vector.load %arg15[%c9_554, %c0_555] : memref<56x8xf32, #tpu.memory_space<vmem>>, vector<32x8xf32>
    %611 = arith.truncf %610 : vector<32x8xf32> to vector<32x8xbf16>
    %c6_556 = arith.constant 6 : index
    %c0_557 = arith.constant 0 : index
    %c0_558 = arith.constant 0 : index
    %612 = vector.load %arg10[%c6_556, %c0_557, %c0_558] : memref<16x8x16xbf16, #tpu.memory_space<vmem>>, vector<1x8x16xbf16>
    %613 = vector.shape_cast %612 : vector<1x8x16xbf16> to vector<8x16xbf16>
    %cst_559 = arith.constant dense<0.000000e+00> : vector<32x16xf32>
    %614 = tpu.matmul %611, %613, %cst_559 {dimension_numbers = #tpu.dot_dimension_numbers<[1], [0], [0], [1], [0, 0, 1, 1], [], []>} : vector<32x8xbf16>, vector<8x16xbf16>, vector<32x16xf32> -> vector<32x16xf32>
    %615 = arith.addf %609, %614 : vector<32x16xf32>
    %c10_560 = arith.constant 10 : index
    %c0_561 = arith.constant 0 : index
    %616 = vector.load %arg15[%c10_560, %c0_561] : memref<56x8xf32, #tpu.memory_space<vmem>>, vector<32x8xf32>
    %617 = arith.truncf %616 : vector<32x8xf32> to vector<32x8xbf16>
    %c7_562 = arith.constant 7 : index
    %c0_563 = arith.constant 0 : index
    %c0_564 = arith.constant 0 : index
    %618 = vector.load %arg10[%c7_562, %c0_563, %c0_564] : memref<16x8x16xbf16, #tpu.memory_space<vmem>>, vector<1x8x16xbf16>
    %619 = vector.shape_cast %618 : vector<1x8x16xbf16> to vector<8x16xbf16>
    %cst_565 = arith.constant dense<0.000000e+00> : vector<32x16xf32>
    %620 = tpu.matmul %617, %619, %cst_565 {dimension_numbers = #tpu.dot_dimension_numbers<[1], [0], [0], [1], [0, 0, 1, 1], [], []>} : vector<32x8xbf16>, vector<8x16xbf16>, vector<32x16xf32> -> vector<32x16xf32>
    %621 = arith.addf %615, %620 : vector<32x16xf32>
    %c8_566 = arith.constant 8 : index
    %c0_567 = arith.constant 0 : index
    %622 = vector.load %arg15[%c8_566, %c0_567] : memref<56x8xf32, #tpu.memory_space<vmem>>, vector<32x8xf32>
    %623 = arith.truncf %622 : vector<32x8xf32> to vector<32x8xbf16>
    %c8_568 = arith.constant 8 : index
    %c0_569 = arith.constant 0 : index
    %c0_570 = arith.constant 0 : index
    %624 = vector.load %arg10[%c8_568, %c0_569, %c0_570] : memref<16x8x16xbf16, #tpu.memory_space<vmem>>, vector<1x8x16xbf16>
    %625 = vector.shape_cast %624 : vector<1x8x16xbf16> to vector<8x16xbf16>
    %cst_571 = arith.constant dense<0.000000e+00> : vector<32x16xf32>
    %626 = tpu.matmul %623, %625, %cst_571 {dimension_numbers = #tpu.dot_dimension_numbers<[1], [0], [0], [1], [0, 0, 1, 1], [], []>} : vector<32x8xbf16>, vector<8x16xbf16>, vector<32x16xf32> -> vector<32x16xf32>
    %c9_572 = arith.constant 9 : index
    %c0_573 = arith.constant 0 : index
    %627 = vector.load %arg15[%c9_572, %c0_573] : memref<56x8xf32, #tpu.memory_space<vmem>>, vector<32x8xf32>
    %628 = arith.truncf %627 : vector<32x8xf32> to vector<32x8xbf16>
    %c9_574 = arith.constant 9 : index
    %c0_575 = arith.constant 0 : index
    %c0_576 = arith.constant 0 : index
    %629 = vector.load %arg10[%c9_574, %c0_575, %c0_576] : memref<16x8x16xbf16, #tpu.memory_space<vmem>>, vector<1x8x16xbf16>
    %630 = vector.shape_cast %629 : vector<1x8x16xbf16> to vector<8x16xbf16>
    %cst_577 = arith.constant dense<0.000000e+00> : vector<32x16xf32>
    %631 = tpu.matmul %628, %630, %cst_577 {dimension_numbers = #tpu.dot_dimension_numbers<[1], [0], [0], [1], [0, 0, 1, 1], [], []>} : vector<32x8xbf16>, vector<8x16xbf16>, vector<32x16xf32> -> vector<32x16xf32>
    %632 = arith.addf %626, %631 : vector<32x16xf32>
    %c16_578 = arith.constant 16 : index
    %c0_579 = arith.constant 0 : index
    %633 = vector.load %arg15[%c16_578, %c0_579] : memref<56x8xf32, #tpu.memory_space<vmem>>, vector<32x8xf32>
    %634 = arith.truncf %633 : vector<32x8xf32> to vector<32x8xbf16>
    %c10_580 = arith.constant 10 : index
    %c0_581 = arith.constant 0 : index
    %c0_582 = arith.constant 0 : index
    %635 = vector.load %arg10[%c10_580, %c0_581, %c0_582] : memref<16x8x16xbf16, #tpu.memory_space<vmem>>, vector<1x8x16xbf16>
    %636 = vector.shape_cast %635 : vector<1x8x16xbf16> to vector<8x16xbf16>
    %cst_583 = arith.constant dense<0.000000e+00> : vector<32x16xf32>
    %637 = tpu.matmul %634, %636, %cst_583 {dimension_numbers = #tpu.dot_dimension_numbers<[1], [0], [0], [1], [0, 0, 1, 1], [], []>} : vector<32x8xbf16>, vector<8x16xbf16>, vector<32x16xf32> -> vector<32x16xf32>
    %638 = arith.addf %632, %637 : vector<32x16xf32>
    %c17_584 = arith.constant 17 : index
    %c0_585 = arith.constant 0 : index
    %639 = vector.load %arg15[%c17_584, %c0_585] : memref<56x8xf32, #tpu.memory_space<vmem>>, vector<32x8xf32>
    %640 = arith.truncf %639 : vector<32x8xf32> to vector<32x8xbf16>
    %c11_586 = arith.constant 11 : index
    %c0_587 = arith.constant 0 : index
    %c0_588 = arith.constant 0 : index
    %641 = vector.load %arg10[%c11_586, %c0_587, %c0_588] : memref<16x8x16xbf16, #tpu.memory_space<vmem>>, vector<1x8x16xbf16>
    %642 = vector.shape_cast %641 : vector<1x8x16xbf16> to vector<8x16xbf16>
    %cst_589 = arith.constant dense<0.000000e+00> : vector<32x16xf32>
    %643 = tpu.matmul %640, %642, %cst_589 {dimension_numbers = #tpu.dot_dimension_numbers<[1], [0], [0], [1], [0, 0, 1, 1], [], []>} : vector<32x8xbf16>, vector<8x16xbf16>, vector<32x16xf32> -> vector<32x16xf32>
    %644 = arith.addf %638, %643 : vector<32x16xf32>
    %c9_590 = arith.constant 9 : index
    %c0_591 = arith.constant 0 : index
    %645 = vector.load %arg15[%c9_590, %c0_591] : memref<56x8xf32, #tpu.memory_space<vmem>>, vector<32x8xf32>
    %646 = arith.truncf %645 : vector<32x8xf32> to vector<32x8xbf16>
    %c12_592 = arith.constant 12 : index
    %c0_593 = arith.constant 0 : index
    %c0_594 = arith.constant 0 : index
    %647 = vector.load %arg10[%c12_592, %c0_593, %c0_594] : memref<16x8x16xbf16, #tpu.memory_space<vmem>>, vector<1x8x16xbf16>
    %648 = vector.shape_cast %647 : vector<1x8x16xbf16> to vector<8x16xbf16>
    %cst_595 = arith.constant dense<0.000000e+00> : vector<32x16xf32>
    %649 = tpu.matmul %646, %648, %cst_595 {dimension_numbers = #tpu.dot_dimension_numbers<[1], [0], [0], [1], [0, 0, 1, 1], [], []>} : vector<32x8xbf16>, vector<8x16xbf16>, vector<32x16xf32> -> vector<32x16xf32>
    %c10_596 = arith.constant 10 : index
    %c0_597 = arith.constant 0 : index
    %650 = vector.load %arg15[%c10_596, %c0_597] : memref<56x8xf32, #tpu.memory_space<vmem>>, vector<32x8xf32>
    %651 = arith.truncf %650 : vector<32x8xf32> to vector<32x8xbf16>
    %c13_598 = arith.constant 13 : index
    %c0_599 = arith.constant 0 : index
    %c0_600 = arith.constant 0 : index
    %652 = vector.load %arg10[%c13_598, %c0_599, %c0_600] : memref<16x8x16xbf16, #tpu.memory_space<vmem>>, vector<1x8x16xbf16>
    %653 = vector.shape_cast %652 : vector<1x8x16xbf16> to vector<8x16xbf16>
    %cst_601 = arith.constant dense<0.000000e+00> : vector<32x16xf32>
    %654 = tpu.matmul %651, %653, %cst_601 {dimension_numbers = #tpu.dot_dimension_numbers<[1], [0], [0], [1], [0, 0, 1, 1], [], []>} : vector<32x8xbf16>, vector<8x16xbf16>, vector<32x16xf32> -> vector<32x16xf32>
    %655 = arith.addf %649, %654 : vector<32x16xf32>
    %c17_602 = arith.constant 17 : index
    %c0_603 = arith.constant 0 : index
    %656 = vector.load %arg15[%c17_602, %c0_603] : memref<56x8xf32, #tpu.memory_space<vmem>>, vector<32x8xf32>
    %657 = arith.truncf %656 : vector<32x8xf32> to vector<32x8xbf16>
    %c14_604 = arith.constant 14 : index
    %c0_605 = arith.constant 0 : index
    %c0_606 = arith.constant 0 : index
    %658 = vector.load %arg10[%c14_604, %c0_605, %c0_606] : memref<16x8x16xbf16, #tpu.memory_space<vmem>>, vector<1x8x16xbf16>
    %659 = vector.shape_cast %658 : vector<1x8x16xbf16> to vector<8x16xbf16>
    %cst_607 = arith.constant dense<0.000000e+00> : vector<32x16xf32>
    %660 = tpu.matmul %657, %659, %cst_607 {dimension_numbers = #tpu.dot_dimension_numbers<[1], [0], [0], [1], [0, 0, 1, 1], [], []>} : vector<32x8xbf16>, vector<8x16xbf16>, vector<32x16xf32> -> vector<32x16xf32>
    %661 = arith.addf %655, %660 : vector<32x16xf32>
    %c18_608 = arith.constant 18 : index
    %c0_609 = arith.constant 0 : index
    %662 = vector.load %arg15[%c18_608, %c0_609] : memref<56x8xf32, #tpu.memory_space<vmem>>, vector<32x8xf32>
    %663 = arith.truncf %662 : vector<32x8xf32> to vector<32x8xbf16>
    %c15_610 = arith.constant 15 : index
    %c0_611 = arith.constant 0 : index
    %c0_612 = arith.constant 0 : index
    %664 = vector.load %arg10[%c15_610, %c0_611, %c0_612] : memref<16x8x16xbf16, #tpu.memory_space<vmem>>, vector<1x8x16xbf16>
    %665 = vector.shape_cast %664 : vector<1x8x16xbf16> to vector<8x16xbf16>
    %cst_613 = arith.constant dense<0.000000e+00> : vector<32x16xf32>
    %666 = tpu.matmul %663, %665, %cst_613 {dimension_numbers = #tpu.dot_dimension_numbers<[1], [0], [0], [1], [0, 0, 1, 1], [], []>} : vector<32x8xbf16>, vector<8x16xbf16>, vector<32x16xf32> -> vector<32x16xf32>
    %667 = arith.addf %661, %666 : vector<32x16xf32>
    %668 = tpu.concatenate %598, %621, %644, %667 in 1 : vector<32x16xf32>, vector<32x16xf32>, vector<32x16xf32>, vector<32x16xf32> -> vector<32x64xf32>
    %c0_614 = arith.constant 0 : index
    %c0_615 = arith.constant 0 : index
    %669 = vector.load %arg11[%c0_614, %c0_615] : memref<1x64xf32, #tpu.memory_space<vmem>>, vector<1x64xf32>
    %670 = vector.broadcast %669 : vector<1x64xf32> to vector<32x64xf32>
    %671 = arith.addf %668, %670 : vector<32x64xf32>
    %cst_616 = arith.constant 0.000000e+00 : f32
    %672 = vector.broadcast %cst_616 : f32 to vector<32x64xf32>
    %673 = arith.maximumf %671, %672 : vector<32x64xf32>
    %c0_617 = arith.constant 0 : index
    %c0_618 = arith.constant 0 : index
    %c0_619 = arith.constant 0 : index
    %674 = vector.load %arg14[%c0_617, %c0_618, %c0_619] : memref<1x32x64xf32, #tpu.memory_space<vmem>>, vector<1x32x64xf32>
    %675 = vector.shape_cast %674 : vector<1x32x64xf32> to vector<32x64xf32>
    %676 = vector.shape_cast %673 : vector<32x64xf32> to vector<1x32x64xf32>
    tpu.vector_store %arg14[%c0_617, %c0_618, %c0_619], %676 {strides = array<i32>} : memref<1x32x64xf32, #tpu.memory_space<vmem>>, vector<1x32x64xf32>,
    return
  }
  func.func @transform_0(%arg0: i32) -> (i32, i32, i32) {
    %c0_i32 = arith.constant 0 : i32
    %c0_i32_0 = arith.constant 0 : i32
    %c0_i32_1 = arith.constant 0 : i32
    return %arg0, %c0_i32, %c0_i32_0 : i32, i32, i32
  }
  func.func @transform_1(%arg0: i32) -> (i32, i32, i32) {
    %c0_i32 = arith.constant 0 : i32
    %c0_i32_0 = arith.constant 0 : i32
    %c0_i32_1 = arith.constant 0 : i32
    return %arg0, %c0_i32, %c0_i32_0 : i32, i32, i32
  }
  func.func @transform_2(%arg0: i32) -> (i32, i32, i32) {
    %c0_i32 = arith.constant 0 : i32
    %c0_i32_0 = arith.constant 0 : i32
    %c0_i32_1 = arith.constant 0 : i32
    return %arg0, %c0_i32, %c0_i32_0 : i32, i32, i32
  }
  func.func @transform_3(%arg0: i32) -> (i32, i32) {
    %c0_i32 = arith.constant 0 : i32
    %c0_i32_0 = arith.constant 0 : i32
    %c0_i32_1 = arith.constant 0 : i32
    return %c0_i32, %c0_i32_0 : i32, i32
  }
  func.func @transform_4(%arg0: i32) -> (i32, i32, i32) {
    %c0_i32 = arith.constant 0 : i32
    %c0_i32_0 = arith.constant 0 : i32
    %c0_i32_1 = arith.constant 0 : i32
    %c0_i32_2 = arith.constant 0 : i32
    return %c0_i32, %c0_i32_0, %c0_i32_1 : i32, i32, i32
  }
  func.func @transform_5(%arg0: i32) -> (i32, i32, i32) {
    %c0_i32 = arith.constant 0 : i32
    %c0_i32_0 = arith.constant 0 : i32
    %c0_i32_1 = arith.constant 0 : i32
    %c0_i32_2 = arith.constant 0 : i32
    return %c0_i32, %c0_i32_0, %c0_i32_1 : i32, i32, i32
  }
  func.func @transform_6(%arg0: i32) -> (i32, i32) {
    %c0_i32 = arith.constant 0 : i32
    %c0_i32_0 = arith.constant 0 : i32
    %c0_i32_1 = arith.constant 0 : i32
    return %c0_i32, %c0_i32_0 : i32, i32
  }
  func.func @transform_7(%arg0: i32) -> (i32, i32, i32) {
    %c0_i32 = arith.constant 0 : i32
    %c0_i32_0 = arith.constant 0 : i32
    %c0_i32_1 = arith.constant 0 : i32
    %c0_i32_2 = arith.constant 0 : i32
    return %c0_i32, %c0_i32_0, %c0_i32_1 : i32, i32, i32
  }
  func.func @transform_8(%arg0: i32) -> (i32, i32) {
    %c0_i32 = arith.constant 0 : i32
    %c0_i32_0 = arith.constant 0 : i32
    %c0_i32_1 = arith.constant 0 : i32
    return %c0_i32, %c0_i32_0 : i32, i32
  }
  func.func @transform_9(%arg0: i32) -> (i32, i32, i32) {
    %c0_i32 = arith.constant 0 : i32
    %c0_i32_0 = arith.constant 0 : i32
    %c0_i32_1 = arith.constant 0 : i32
    %c0_i32_2 = arith.constant 0 : i32
    return %c0_i32, %c0_i32_0, %c0_i32_1 : i32, i32, i32
  }
  func.func @transform_10(%arg0: i32) -> (i32, i32) {
    %c0_i32 = arith.constant 0 : i32
    %c0_i32_0 = arith.constant 0 : i32
    %c0_i32_1 = arith.constant 0 : i32
    return %c0_i32, %c0_i32_0 : i32, i32
  }
  func.func @transform_11(%arg0: i32) -> (i32, i32, i32) {
    %c0_i32 = arith.constant 0 : i32
    %c0_i32_0 = arith.constant 0 : i32
    %c0_i32_1 = arith.constant 0 : i32
    return %arg0, %c0_i32, %c0_i32_0 : i32, i32, i32
  }
  func.func @transform_12(%arg0: i32) -> (i32, i32, i32) {
    %c0_i32 = arith.constant 0 : i32
    %c0_i32_0 = arith.constant 0 : i32
    %c0_i32_1 = arith.constant 0 : i32
    return %arg0, %c0_i32, %c0_i32_0 : i32, i32, i32
  }
  func.func @transform_13(%arg0: i32) -> (i32, i32, i32) {
    %c0_i32 = arith.constant 0 : i32
    %c0_i32_0 = arith.constant 0 : i32
    %c0_i32_1 = arith.constant 0 : i32
    return %arg0, %c0_i32, %c0_i32_0 : i32, i32, i32
  }
}

module attributes {stable_mosaic.version = 11 : i64} {
  func.func @kernel(%arg0: i32, %arg1: memref<1x72x19xf32, #tpu.memory_space<vmem>>, %arg2: memref<1x72x8xf32, #tpu.memory_space<vmem>>, %arg3: memref<1x32x8xf32, #tpu.memory_space<vmem>>, %arg4: memref<32x1xf32, #tpu.memory_space<vmem>>, %arg5: memref<25x19x32xbf16, #tpu.memory_space<vmem>>, %arg6: memref<25x8x32xbf16, #tpu.memory_space<vmem>>, %arg7: memref<1x32xf32, #tpu.memory_space<vmem>>, %arg8: memref<25x8x8xbf16, #tpu.memory_space<vmem>>, %arg9: memref<1x8xf32, #tpu.memory_space<vmem>>, %arg10: memref<16x8x16xbf16, #tpu.memory_space<vmem>>, %arg11: memref<1x64xf32, #tpu.memory_space<vmem>>, %arg12: memref<1x72x8xf32, #tpu.memory_space<vmem>>, %arg13: memref<1x32x8xf32, #tpu.memory_space<vmem>>, %arg14: memref<1x32x64xf32, #tpu.memory_space<vmem>>, %arg15: memref<56x8xf32, #tpu.memory_space<vmem>>) attributes {dimension_semantics = [#tpu.dimension_semantics<parallel>], iteration_bounds = array<i64: 3>, scalar_prefetch = 0 : i64, scratch_operands = 1 : i64, tpu.core_type = #tpu.core_type<tc>, window_params = [{transform_indices = @transform_0, window_bounds = array<i64: 1, 72, 19>}, {transform_indices = @transform_1, window_bounds = array<i64: 1, 72, 8>}, {transform_indices = @transform_2, window_bounds = array<i64: 1, 32, 8>}, {pipeline_mode = #tpu.pipeline_mode<synchronous>, transform_indices = @transform_3, window_bounds = array<i64: 32, 1>}, {pipeline_mode = #tpu.pipeline_mode<synchronous>, transform_indices = @transform_4, window_bounds = array<i64: 25, 19, 32>}, {pipeline_mode = #tpu.pipeline_mode<synchronous>, transform_indices = @transform_5, window_bounds = array<i64: 25, 8, 32>}, {pipeline_mode = #tpu.pipeline_mode<synchronous>, transform_indices = @transform_6, window_bounds = array<i64: 1, 32>}, {pipeline_mode = #tpu.pipeline_mode<synchronous>, transform_indices = @transform_7, window_bounds = array<i64: 25, 8, 8>}, {pipeline_mode = #tpu.pipeline_mode<synchronous>, transform_indices = @transform_8, window_bounds = array<i64: 1, 8>}, {pipeline_mode = #tpu.pipeline_mode<synchronous>, transform_indices = @transform_9, window_bounds = array<i64: 16, 8, 16>}, {pipeline_mode = #tpu.pipeline_mode<synchronous>, transform_indices = @transform_10, window_bounds = array<i64: 1, 64>}, {transform_indices = @transform_11, window_bounds = array<i64: 1, 72, 8>}, {transform_indices = @transform_12, window_bounds = array<i64: 1, 32, 8>}, {transform_indices = @transform_13, window_bounds = array<i64: 1, 32, 64>}]} {
    %c0 = arith.constant 0 : index
    %c0_0 = arith.constant 0 : index
    %0 = vector.load %arg4[%c0, %c0_0] : memref<32x1xf32, #tpu.memory_space<vmem>>, vector<32x1xf32>
    %c0_1 = arith.constant 0 : index
    %c0_2 = arith.constant 0 : index
    %c0_3 = arith.constant 0 : index
    %1 = vector.load %arg1[%c0_1, %c0_2, %c0_3] : memref<1x72x19xf32, #tpu.memory_space<vmem>>, vector<1x32x19xf32>
    %2 = vector.shape_cast %1 : vector<1x32x19xf32> to vector<32x19xf32>
    %3 = arith.truncf %2 : vector<32x19xf32> to vector<32x19xbf16>
    %c0_4 = arith.constant 0 : index
    %c0_5 = arith.constant 0 : index
    %c0_6 = arith.constant 0 : index
    %4 = vector.load %arg2[%c0_4, %c0_5, %c0_6] : memref<1x72x8xf32, #tpu.memory_space<vmem>>, vector<1x32x8xf32>
    %5 = vector.shape_cast %4 : vector<1x32x8xf32> to vector<32x8xf32>
    %6 = arith.truncf %5 : vector<32x8xf32> to vector<32x8xbf16>
    %c0_7 = arith.constant 0 : index
    %c0_8 = arith.constant 0 : index
    %c0_9 = arith.constant 0 : index
    %7 = vector.load %arg5[%c0_7, %c0_8, %c0_9] : memref<25x19x32xbf16, #tpu.memory_space<vmem>>, vector<1x19x32xbf16>
    %8 = vector.shape_cast %7 : vector<1x19x32xbf16> to vector<19x32xbf16>
    %cst = arith.constant dense<0.000000e+00> : vector<32x32xf32>
    %9 = tpu.matmul %3, %8, %cst {dimension_numbers = #tpu.dot_dimension_numbers<[1], [0], [0], [1], [0, 0, 1, 1], [], []>} : vector<32x19xbf16>, vector<19x32xbf16>, vector<32x32xf32> -> vector<32x32xf32>
    %c0_10 = arith.constant 0 : index
    %c0_11 = arith.constant 0 : index
    %c0_12 = arith.constant 0 : index
    %10 = vector.load %arg6[%c0_10, %c0_11, %c0_12] : memref<25x8x32xbf16, #tpu.memory_space<vmem>>, vector<1x8x32xbf16>
    %11 = vector.shape_cast %10 : vector<1x8x32xbf16> to vector<8x32xbf16>
    %cst_13 = arith.constant dense<0.000000e+00> : vector<32x32xf32>
    %12 = tpu.matmul %6, %11, %cst_13 {dimension_numbers = #tpu.dot_dimension_numbers<[1], [0], [0], [1], [0, 0, 1, 1], [], []>} : vector<32x8xbf16>, vector<8x32xbf16>, vector<32x32xf32> -> vector<32x32xf32>
    %13 = arith.addf %9, %12 : vector<32x32xf32>
    %c0_14 = arith.constant 0 : index
    %c1 = arith.constant 1 : index
    %c0_15 = arith.constant 0 : index
    %14 = vector.load %arg1[%c0_14, %c1, %c0_15] : memref<1x72x19xf32, #tpu.memory_space<vmem>>, vector<1x32x19xf32>
    %15 = vector.shape_cast %14 : vector<1x32x19xf32> to vector<32x19xf32>
    %16 = arith.truncf %15 : vector<32x19xf32> to vector<32x19xbf16>
    %c0_16 = arith.constant 0 : index
    %c1_17 = arith.constant 1 : index
    %c0_18 = arith.constant 0 : index
    %17 = vector.load %arg2[%c0_16, %c1_17, %c0_18] : memref<1x72x8xf32, #tpu.memory_space<vmem>>, vector<1x32x8xf32>
    %18 = vector.shape_cast %17 : vector<1x32x8xf32> to vector<32x8xf32>
    %19 = arith.truncf %18 : vector<32x8xf32> to vector<32x8xbf16>
    %c1_19 = arith.constant 1 : index
    %c0_20 = arith.constant 0 : index
    %c0_21 = arith.constant 0 : index
    %20 = vector.load %arg5[%c1_19, %c0_20, %c0_21] : memref<25x19x32xbf16, #tpu.memory_space<vmem>>, vector<1x19x32xbf16>
    %21 = vector.shape_cast %20 : vector<1x19x32xbf16> to vector<19x32xbf16>
    %cst_22 = arith.constant dense<0.000000e+00> : vector<32x32xf32>
    %22 = tpu.matmul %16, %21, %cst_22 {dimension_numbers = #tpu.dot_dimension_numbers<[1], [0], [0], [1], [0, 0, 1, 1], [], []>} : vector<32x19xbf16>, vector<19x32xbf16>, vector<32x32xf32> -> vector<32x32xf32>
    %c1_23 = arith.constant 1 : index
    %c0_24 = arith.constant 0 : index
    %c0_25 = arith.constant 0 : index
    %23 = vector.load %arg6[%c1_23, %c0_24, %c0_25] : memref<25x8x32xbf16, #tpu.memory_space<vmem>>, vector<1x8x32xbf16>
    %24 = vector.shape_cast %23 : vector<1x8x32xbf16> to vector<8x32xbf16>
    %cst_26 = arith.constant dense<0.000000e+00> : vector<32x32xf32>
    %25 = tpu.matmul %19, %24, %cst_26 {dimension_numbers = #tpu.dot_dimension_numbers<[1], [0], [0], [1], [0, 0, 1, 1], [], []>} : vector<32x8xbf16>, vector<8x32xbf16>, vector<32x32xf32> -> vector<32x32xf32>
    %26 = arith.addf %22, %25 : vector<32x32xf32>
    %27 = arith.addf %13, %26 : vector<32x32xf32>
    %c0_27 = arith.constant 0 : index
    %c2 = arith.constant 2 : index
    %c0_28 = arith.constant 0 : index
    %28 = vector.load %arg1[%c0_27, %c2, %c0_28] : memref<1x72x19xf32, #tpu.memory_space<vmem>>, vector<1x32x19xf32>
    %29 = vector.shape_cast %28 : vector<1x32x19xf32> to vector<32x19xf32>
    %30 = arith.truncf %29 : vector<32x19xf32> to vector<32x19xbf16>
    %c0_29 = arith.constant 0 : index
    %c2_30 = arith.constant 2 : index
    %c0_31 = arith.constant 0 : index
    %31 = vector.load %arg2[%c0_29, %c2_30, %c0_31] : memref<1x72x8xf32, #tpu.memory_space<vmem>>, vector<1x32x8xf32>
    %32 = vector.shape_cast %31 : vector<1x32x8xf32> to vector<32x8xf32>
    %33 = arith.truncf %32 : vector<32x8xf32> to vector<32x8xbf16>
    %c2_32 = arith.constant 2 : index
    %c0_33 = arith.constant 0 : index
    %c0_34 = arith.constant 0 : index
    %34 = vector.load %arg5[%c2_32, %c0_33, %c0_34] : memref<25x19x32xbf16, #tpu.memory_space<vmem>>, vector<1x19x32xbf16>
    %35 = vector.shape_cast %34 : vector<1x19x32xbf16> to vector<19x32xbf16>
    %cst_35 = arith.constant dense<0.000000e+00> : vector<32x32xf32>
    %36 = tpu.matmul %30, %35, %cst_35 {dimension_numbers = #tpu.dot_dimension_numbers<[1], [0], [0], [1], [0, 0, 1, 1], [], []>} : vector<32x19xbf16>, vector<19x32xbf16>, vector<32x32xf32> -> vector<32x32xf32>
    %c2_36 = arith.constant 2 : index
    %c0_37 = arith.constant 0 : index
    %c0_38 = arith.constant 0 : index
    %37 = vector.load %arg6[%c2_36, %c0_37, %c0_38] : memref<25x8x32xbf16, #tpu.memory_space<vmem>>, vector<1x8x32xbf16>
    %38 = vector.shape_cast %37 : vector<1x8x32xbf16> to vector<8x32xbf16>
    %cst_39 = arith.constant dense<0.000000e+00> : vector<32x32xf32>
    %39 = tpu.matmul %33, %38, %cst_39 {dimension_numbers = #tpu.dot_dimension_numbers<[1], [0], [0], [1], [0, 0, 1, 1], [], []>} : vector<32x8xbf16>, vector<8x32xbf16>, vector<32x32xf32> -> vector<32x32xf32>
    %40 = arith.addf %36, %39 : vector<32x32xf32>
    %41 = arith.addf %27, %40 : vector<32x32xf32>
    %c0_40 = arith.constant 0 : index
    %c3 = arith.constant 3 : index
    %c0_41 = arith.constant 0 : index
    %42 = vector.load %arg1[%c0_40, %c3, %c0_41] : memref<1x72x19xf32, #tpu.memory_space<vmem>>, vector<1x32x19xf32>
    %43 = vector.shape_cast %42 : vector<1x32x19xf32> to vector<32x19xf32>
    %44 = arith.truncf %43 : vector<32x19xf32> to vector<32x19xbf16>
    %c0_42 = arith.constant 0 : index
    %c3_43 = arith.constant 3 : index
    %c0_44 = arith.constant 0 : index
    %45 = vector.load %arg2[%c0_42, %c3_43, %c0_44] : memref<1x72x8xf32, #tpu.memory_space<vmem>>, vector<1x32x8xf32>
    %46 = vector.shape_cast %45 : vector<1x32x8xf32> to vector<32x8xf32>
    %47 = arith.truncf %46 : vector<32x8xf32> to vector<32x8xbf16>
    %c3_45 = arith.constant 3 : index
    %c0_46 = arith.constant 0 : index
    %c0_47 = arith.constant 0 : index
    %48 = vector.load %arg5[%c3_45, %c0_46, %c0_47] : memref<25x19x32xbf16, #tpu.memory_space<vmem>>, vector<1x19x32xbf16>
    %49 = vector.shape_cast %48 : vector<1x19x32xbf16> to vector<19x32xbf16>
    %cst_48 = arith.constant dense<0.000000e+00> : vector<32x32xf32>
    %50 = tpu.matmul %44, %49, %cst_48 {dimension_numbers = #tpu.dot_dimension_numbers<[1], [0], [0], [1], [0, 0, 1, 1], [], []>} : vector<32x19xbf16>, vector<19x32xbf16>, vector<32x32xf32> -> vector<32x32xf32>
    %c3_49 = arith.constant 3 : index
    %c0_50 = arith.constant 0 : index
    %c0_51 = arith.constant 0 : index
    %51 = vector.load %arg6[%c3_49, %c0_50, %c0_51] : memref<25x8x32xbf16, #tpu.memory_space<vmem>>, vector<1x8x32xbf16>
    %52 = vector.shape_cast %51 : vector<1x8x32xbf16> to vector<8x32xbf16>
    %cst_52 = arith.constant dense<0.000000e+00> : vector<32x32xf32>
    %53 = tpu.matmul %47, %52, %cst_52 {dimension_numbers = #tpu.dot_dimension_numbers<[1], [0], [0], [1], [0, 0, 1, 1], [], []>} : vector<32x8xbf16>, vector<8x32xbf16>, vector<32x32xf32> -> vector<32x32xf32>
    %54 = arith.addf %50, %53 : vector<32x32xf32>
    %55 = arith.addf %41, %54 : vector<32x32xf32>
    %c0_53 = arith.constant 0 : index
    %c4 = arith.constant 4 : index
    %c0_54 = arith.constant 0 : index
    %56 = vector.load %arg1[%c0_53, %c4, %c0_54] : memref<1x72x19xf32, #tpu.memory_space<vmem>>, vector<1x32x19xf32>
    %57 = vector.shape_cast %56 : vector<1x32x19xf32> to vector<32x19xf32>
    %58 = arith.truncf %57 : vector<32x19xf32> to vector<32x19xbf16>
    %c0_55 = arith.constant 0 : index
    %c4_56 = arith.constant 4 : index
    %c0_57 = arith.constant 0 : index
    %59 = vector.load %arg2[%c0_55, %c4_56, %c0_57] : memref<1x72x8xf32, #tpu.memory_space<vmem>>, vector<1x32x8xf32>
    %60 = vector.shape_cast %59 : vector<1x32x8xf32> to vector<32x8xf32>
    %61 = arith.truncf %60 : vector<32x8xf32> to vector<32x8xbf16>
    %c4_58 = arith.constant 4 : index
    %c0_59 = arith.constant 0 : index
    %c0_60 = arith.constant 0 : index
    %62 = vector.load %arg5[%c4_58, %c0_59, %c0_60] : memref<25x19x32xbf16, #tpu.memory_space<vmem>>, vector<1x19x32xbf16>
    %63 = vector.shape_cast %62 : vector<1x19x32xbf16> to vector<19x32xbf16>
    %cst_61 = arith.constant dense<0.000000e+00> : vector<32x32xf32>
    %64 = tpu.matmul %58, %63, %cst_61 {dimension_numbers = #tpu.dot_dimension_numbers<[1], [0], [0], [1], [0, 0, 1, 1], [], []>} : vector<32x19xbf16>, vector<19x32xbf16>, vector<32x32xf32> -> vector<32x32xf32>
    %c4_62 = arith.constant 4 : index
    %c0_63 = arith.constant 0 : index
    %c0_64 = arith.constant 0 : index
    %65 = vector.load %arg6[%c4_62, %c0_63, %c0_64] : memref<25x8x32xbf16, #tpu.memory_space<vmem>>, vector<1x8x32xbf16>
    %66 = vector.shape_cast %65 : vector<1x8x32xbf16> to vector<8x32xbf16>
    %cst_65 = arith.constant dense<0.000000e+00> : vector<32x32xf32>
    %67 = tpu.matmul %61, %66, %cst_65 {dimension_numbers = #tpu.dot_dimension_numbers<[1], [0], [0], [1], [0, 0, 1, 1], [], []>} : vector<32x8xbf16>, vector<8x32xbf16>, vector<32x32xf32> -> vector<32x32xf32>
    %68 = arith.addf %64, %67 : vector<32x32xf32>
    %69 = arith.addf %55, %68 : vector<32x32xf32>
    %c0_66 = arith.constant 0 : index
    %c8 = arith.constant 8 : index
    %c0_67 = arith.constant 0 : index
    %70 = vector.load %arg1[%c0_66, %c8, %c0_67] : memref<1x72x19xf32, #tpu.memory_space<vmem>>, vector<1x32x19xf32>
    %71 = vector.shape_cast %70 : vector<1x32x19xf32> to vector<32x19xf32>
    %72 = arith.truncf %71 : vector<32x19xf32> to vector<32x19xbf16>
    %c0_68 = arith.constant 0 : index
    %c8_69 = arith.constant 8 : index
    %c0_70 = arith.constant 0 : index
    %73 = vector.load %arg2[%c0_68, %c8_69, %c0_70] : memref<1x72x8xf32, #tpu.memory_space<vmem>>, vector<1x32x8xf32>
    %74 = vector.shape_cast %73 : vector<1x32x8xf32> to vector<32x8xf32>
    %75 = arith.truncf %74 : vector<32x8xf32> to vector<32x8xbf16>
    %c5 = arith.constant 5 : index
    %c0_71 = arith.constant 0 : index
    %c0_72 = arith.constant 0 : index
    %76 = vector.load %arg5[%c5, %c0_71, %c0_72] : memref<25x19x32xbf16, #tpu.memory_space<vmem>>, vector<1x19x32xbf16>
    %77 = vector.shape_cast %76 : vector<1x19x32xbf16> to vector<19x32xbf16>
    %cst_73 = arith.constant dense<0.000000e+00> : vector<32x32xf32>
    %78 = tpu.matmul %72, %77, %cst_73 {dimension_numbers = #tpu.dot_dimension_numbers<[1], [0], [0], [1], [0, 0, 1, 1], [], []>} : vector<32x19xbf16>, vector<19x32xbf16>, vector<32x32xf32> -> vector<32x32xf32>
    %c5_74 = arith.constant 5 : index
    %c0_75 = arith.constant 0 : index
    %c0_76 = arith.constant 0 : index
    %79 = vector.load %arg6[%c5_74, %c0_75, %c0_76] : memref<25x8x32xbf16, #tpu.memory_space<vmem>>, vector<1x8x32xbf16>
    %80 = vector.shape_cast %79 : vector<1x8x32xbf16> to vector<8x32xbf16>
    %cst_77 = arith.constant dense<0.000000e+00> : vector<32x32xf32>
    %81 = tpu.matmul %75, %80, %cst_77 {dimension_numbers = #tpu.dot_dimension_numbers<[1], [0], [0], [1], [0, 0, 1, 1], [], []>} : vector<32x8xbf16>, vector<8x32xbf16>, vector<32x32xf32> -> vector<32x32xf32>
    %82 = arith.addf %78, %81 : vector<32x32xf32>
    %83 = arith.addf %69, %82 : vector<32x32xf32>
    %c0_78 = arith.constant 0 : index
    %c9 = arith.constant 9 : index
    %c0_79 = arith.constant 0 : index
    %84 = vector.load %arg1[%c0_78, %c9, %c0_79] : memref<1x72x19xf32, #tpu.memory_space<vmem>>, vector<1x32x19xf32>
    %85 = vector.shape_cast %84 : vector<1x32x19xf32> to vector<32x19xf32>
    %86 = arith.truncf %85 : vector<32x19xf32> to vector<32x19xbf16>
    %c0_80 = arith.constant 0 : index
    %c9_81 = arith.constant 9 : index
    %c0_82 = arith.constant 0 : index
    %87 = vector.load %arg2[%c0_80, %c9_81, %c0_82] : memref<1x72x8xf32, #tpu.memory_space<vmem>>, vector<1x32x8xf32>
    %88 = vector.shape_cast %87 : vector<1x32x8xf32> to vector<32x8xf32>
    %89 = arith.truncf %88 : vector<32x8xf32> to vector<32x8xbf16>
    %c6 = arith.constant 6 : index
    %c0_83 = arith.constant 0 : index
    %c0_84 = arith.constant 0 : index
    %90 = vector.load %arg5[%c6, %c0_83, %c0_84] : memref<25x19x32xbf16, #tpu.memory_space<vmem>>, vector<1x19x32xbf16>
    %91 = vector.shape_cast %90 : vector<1x19x32xbf16> to vector<19x32xbf16>
    %cst_85 = arith.constant dense<0.000000e+00> : vector<32x32xf32>
    %92 = tpu.matmul %86, %91, %cst_85 {dimension_numbers = #tpu.dot_dimension_numbers<[1], [0], [0], [1], [0, 0, 1, 1], [], []>} : vector<32x19xbf16>, vector<19x32xbf16>, vector<32x32xf32> -> vector<32x32xf32>
    %c6_86 = arith.constant 6 : index
    %c0_87 = arith.constant 0 : index
    %c0_88 = arith.constant 0 : index
    %93 = vector.load %arg6[%c6_86, %c0_87, %c0_88] : memref<25x8x32xbf16, #tpu.memory_space<vmem>>, vector<1x8x32xbf16>
    %94 = vector.shape_cast %93 : vector<1x8x32xbf16> to vector<8x32xbf16>
    %cst_89 = arith.constant dense<0.000000e+00> : vector<32x32xf32>
    %95 = tpu.matmul %89, %94, %cst_89 {dimension_numbers = #tpu.dot_dimension_numbers<[1], [0], [0], [1], [0, 0, 1, 1], [], []>} : vector<32x8xbf16>, vector<8x32xbf16>, vector<32x32xf32> -> vector<32x32xf32>
    %96 = arith.addf %92, %95 : vector<32x32xf32>
    %97 = arith.addf %83, %96 : vector<32x32xf32>
    %c0_90 = arith.constant 0 : index
    %c10 = arith.constant 10 : index
    %c0_91 = arith.constant 0 : index
    %98 = vector.load %arg1[%c0_90, %c10, %c0_91] : memref<1x72x19xf32, #tpu.memory_space<vmem>>, vector<1x32x19xf32>
    %99 = vector.shape_cast %98 : vector<1x32x19xf32> to vector<32x19xf32>
    %100 = arith.truncf %99 : vector<32x19xf32> to vector<32x19xbf16>
    %c0_92 = arith.constant 0 : index
    %c10_93 = arith.constant 10 : index
    %c0_94 = arith.constant 0 : index
    %101 = vector.load %arg2[%c0_92, %c10_93, %c0_94] : memref<1x72x8xf32, #tpu.memory_space<vmem>>, vector<1x32x8xf32>
    %102 = vector.shape_cast %101 : vector<1x32x8xf32> to vector<32x8xf32>
    %103 = arith.truncf %102 : vector<32x8xf32> to vector<32x8xbf16>
    %c7 = arith.constant 7 : index
    %c0_95 = arith.constant 0 : index
    %c0_96 = arith.constant 0 : index
    %104 = vector.load %arg5[%c7, %c0_95, %c0_96] : memref<25x19x32xbf16, #tpu.memory_space<vmem>>, vector<1x19x32xbf16>
    %105 = vector.shape_cast %104 : vector<1x19x32xbf16> to vector<19x32xbf16>
    %cst_97 = arith.constant dense<0.000000e+00> : vector<32x32xf32>
    %106 = tpu.matmul %100, %105, %cst_97 {dimension_numbers = #tpu.dot_dimension_numbers<[1], [0], [0], [1], [0, 0, 1, 1], [], []>} : vector<32x19xbf16>, vector<19x32xbf16>, vector<32x32xf32> -> vector<32x32xf32>
    %c7_98 = arith.constant 7 : index
    %c0_99 = arith.constant 0 : index
    %c0_100 = arith.constant 0 : index
    %107 = vector.load %arg6[%c7_98, %c0_99, %c0_100] : memref<25x8x32xbf16, #tpu.memory_space<vmem>>, vector<1x8x32xbf16>
    %108 = vector.shape_cast %107 : vector<1x8x32xbf16> to vector<8x32xbf16>
    %cst_101 = arith.constant dense<0.000000e+00> : vector<32x32xf32>
    %109 = tpu.matmul %103, %108, %cst_101 {dimension_numbers = #tpu.dot_dimension_numbers<[1], [0], [0], [1], [0, 0, 1, 1], [], []>} : vector<32x8xbf16>, vector<8x32xbf16>, vector<32x32xf32> -> vector<32x32xf32>
    %110 = arith.addf %106, %109 : vector<32x32xf32>
    %111 = arith.addf %97, %110 : vector<32x32xf32>
    %c0_102 = arith.constant 0 : index
    %c11 = arith.constant 11 : index
    %c0_103 = arith.constant 0 : index
    %112 = vector.load %arg1[%c0_102, %c11, %c0_103] : memref<1x72x19xf32, #tpu.memory_space<vmem>>, vector<1x32x19xf32>
    %113 = vector.shape_cast %112 : vector<1x32x19xf32> to vector<32x19xf32>
    %114 = arith.truncf %113 : vector<32x19xf32> to vector<32x19xbf16>
    %c0_104 = arith.constant 0 : index
    %c11_105 = arith.constant 11 : index
    %c0_106 = arith.constant 0 : index
    %115 = vector.load %arg2[%c0_104, %c11_105, %c0_106] : memref<1x72x8xf32, #tpu.memory_space<vmem>>, vector<1x32x8xf32>
    %116 = vector.shape_cast %115 : vector<1x32x8xf32> to vector<32x8xf32>
    %117 = arith.truncf %116 : vector<32x8xf32> to vector<32x8xbf16>
    %c8_107 = arith.constant 8 : index
    %c0_108 = arith.constant 0 : index
    %c0_109 = arith.constant 0 : index
    %118 = vector.load %arg5[%c8_107, %c0_108, %c0_109] : memref<25x19x32xbf16, #tpu.memory_space<vmem>>, vector<1x19x32xbf16>
    %119 = vector.shape_cast %118 : vector<1x19x32xbf16> to vector<19x32xbf16>
    %cst_110 = arith.constant dense<0.000000e+00> : vector<32x32xf32>
    %120 = tpu.matmul %114, %119, %cst_110 {dimension_numbers = #tpu.dot_dimension_numbers<[1], [0], [0], [1], [0, 0, 1, 1], [], []>} : vector<32x19xbf16>, vector<19x32xbf16>, vector<32x32xf32> -> vector<32x32xf32>
    %c8_111 = arith.constant 8 : index
    %c0_112 = arith.constant 0 : index
    %c0_113 = arith.constant 0 : index
    %121 = vector.load %arg6[%c8_111, %c0_112, %c0_113] : memref<25x8x32xbf16, #tpu.memory_space<vmem>>, vector<1x8x32xbf16>
    %122 = vector.shape_cast %121 : vector<1x8x32xbf16> to vector<8x32xbf16>
    %cst_114 = arith.constant dense<0.000000e+00> : vector<32x32xf32>
    %123 = tpu.matmul %117, %122, %cst_114 {dimension_numbers = #tpu.dot_dimension_numbers<[1], [0], [0], [1], [0, 0, 1, 1], [], []>} : vector<32x8xbf16>, vector<8x32xbf16>, vector<32x32xf32> -> vector<32x32xf32>
    %124 = arith.addf %120, %123 : vector<32x32xf32>
    %125 = arith.addf %111, %124 : vector<32x32xf32>
    %c0_115 = arith.constant 0 : index
    %c12 = arith.constant 12 : index
    %c0_116 = arith.constant 0 : index
    %126 = vector.load %arg1[%c0_115, %c12, %c0_116] : memref<1x72x19xf32, #tpu.memory_space<vmem>>, vector<1x32x19xf32>
    %127 = vector.shape_cast %126 : vector<1x32x19xf32> to vector<32x19xf32>
    %128 = arith.truncf %127 : vector<32x19xf32> to vector<32x19xbf16>
    %c0_117 = arith.constant 0 : index
    %c12_118 = arith.constant 12 : index
    %c0_119 = arith.constant 0 : index
    %129 = vector.load %arg2[%c0_117, %c12_118, %c0_119] : memref<1x72x8xf32, #tpu.memory_space<vmem>>, vector<1x32x8xf32>
    %130 = vector.shape_cast %129 : vector<1x32x8xf32> to vector<32x8xf32>
    %131 = arith.truncf %130 : vector<32x8xf32> to vector<32x8xbf16>
    %c9_120 = arith.constant 9 : index
    %c0_121 = arith.constant 0 : index
    %c0_122 = arith.constant 0 : index
    %132 = vector.load %arg5[%c9_120, %c0_121, %c0_122] : memref<25x19x32xbf16, #tpu.memory_space<vmem>>, vector<1x19x32xbf16>
    %133 = vector.shape_cast %132 : vector<1x19x32xbf16> to vector<19x32xbf16>
    %cst_123 = arith.constant dense<0.000000e+00> : vector<32x32xf32>
    %134 = tpu.matmul %128, %133, %cst_123 {dimension_numbers = #tpu.dot_dimension_numbers<[1], [0], [0], [1], [0, 0, 1, 1], [], []>} : vector<32x19xbf16>, vector<19x32xbf16>, vector<32x32xf32> -> vector<32x32xf32>
    %c9_124 = arith.constant 9 : index
    %c0_125 = arith.constant 0 : index
    %c0_126 = arith.constant 0 : index
    %135 = vector.load %arg6[%c9_124, %c0_125, %c0_126] : memref<25x8x32xbf16, #tpu.memory_space<vmem>>, vector<1x8x32xbf16>
    %136 = vector.shape_cast %135 : vector<1x8x32xbf16> to vector<8x32xbf16>
    %cst_127 = arith.constant dense<0.000000e+00> : vector<32x32xf32>
    %137 = tpu.matmul %131, %136, %cst_127 {dimension_numbers = #tpu.dot_dimension_numbers<[1], [0], [0], [1], [0, 0, 1, 1], [], []>} : vector<32x8xbf16>, vector<8x32xbf16>, vector<32x32xf32> -> vector<32x32xf32>
    %138 = arith.addf %134, %137 : vector<32x32xf32>
    %139 = arith.addf %125, %138 : vector<32x32xf32>
    %c0_128 = arith.constant 0 : index
    %c16 = arith.constant 16 : index
    %c0_129 = arith.constant 0 : index
    %140 = vector.load %arg1[%c0_128, %c16, %c0_129] : memref<1x72x19xf32, #tpu.memory_space<vmem>>, vector<1x32x19xf32>
    %141 = vector.shape_cast %140 : vector<1x32x19xf32> to vector<32x19xf32>
    %142 = arith.truncf %141 : vector<32x19xf32> to vector<32x19xbf16>
    %c0_130 = arith.constant 0 : index
    %c16_131 = arith.constant 16 : index
    %c0_132 = arith.constant 0 : index
    %143 = vector.load %arg2[%c0_130, %c16_131, %c0_132] : memref<1x72x8xf32, #tpu.memory_space<vmem>>, vector<1x32x8xf32>
    %144 = vector.shape_cast %143 : vector<1x32x8xf32> to vector<32x8xf32>
    %145 = arith.truncf %144 : vector<32x8xf32> to vector<32x8xbf16>
    %c10_133 = arith.constant 10 : index
    %c0_134 = arith.constant 0 : index
    %c0_135 = arith.constant 0 : index
    %146 = vector.load %arg5[%c10_133, %c0_134, %c0_135] : memref<25x19x32xbf16, #tpu.memory_space<vmem>>, vector<1x19x32xbf16>
    %147 = vector.shape_cast %146 : vector<1x19x32xbf16> to vector<19x32xbf16>
    %cst_136 = arith.constant dense<0.000000e+00> : vector<32x32xf32>
    %148 = tpu.matmul %142, %147, %cst_136 {dimension_numbers = #tpu.dot_dimension_numbers<[1], [0], [0], [1], [0, 0, 1, 1], [], []>} : vector<32x19xbf16>, vector<19x32xbf16>, vector<32x32xf32> -> vector<32x32xf32>
    %c10_137 = arith.constant 10 : index
    %c0_138 = arith.constant 0 : index
    %c0_139 = arith.constant 0 : index
    %149 = vector.load %arg6[%c10_137, %c0_138, %c0_139] : memref<25x8x32xbf16, #tpu.memory_space<vmem>>, vector<1x8x32xbf16>
    %150 = vector.shape_cast %149 : vector<1x8x32xbf16> to vector<8x32xbf16>
    %cst_140 = arith.constant dense<0.000000e+00> : vector<32x32xf32>
    %151 = tpu.matmul %145, %150, %cst_140 {dimension_numbers = #tpu.dot_dimension_numbers<[1], [0], [0], [1], [0, 0, 1, 1], [], []>} : vector<32x8xbf16>, vector<8x32xbf16>, vector<32x32xf32> -> vector<32x32xf32>
    %152 = arith.addf %148, %151 : vector<32x32xf32>
    %153 = arith.addf %139, %152 : vector<32x32xf32>
    %c0_141 = arith.constant 0 : index
    %c17 = arith.constant 17 : index
    %c0_142 = arith.constant 0 : index
    %154 = vector.load %arg1[%c0_141, %c17, %c0_142] : memref<1x72x19xf32, #tpu.memory_space<vmem>>, vector<1x32x19xf32>
    %155 = vector.shape_cast %154 : vector<1x32x19xf32> to vector<32x19xf32>
    %156 = arith.truncf %155 : vector<32x19xf32> to vector<32x19xbf16>
    %c0_143 = arith.constant 0 : index
    %c17_144 = arith.constant 17 : index
    %c0_145 = arith.constant 0 : index
    %157 = vector.load %arg2[%c0_143, %c17_144, %c0_145] : memref<1x72x8xf32, #tpu.memory_space<vmem>>, vector<1x32x8xf32>
    %158 = vector.shape_cast %157 : vector<1x32x8xf32> to vector<32x8xf32>
    %159 = arith.truncf %158 : vector<32x8xf32> to vector<32x8xbf16>
    %c11_146 = arith.constant 11 : index
    %c0_147 = arith.constant 0 : index
    %c0_148 = arith.constant 0 : index
    %160 = vector.load %arg5[%c11_146, %c0_147, %c0_148] : memref<25x19x32xbf16, #tpu.memory_space<vmem>>, vector<1x19x32xbf16>
    %161 = vector.shape_cast %160 : vector<1x19x32xbf16> to vector<19x32xbf16>
    %cst_149 = arith.constant dense<0.000000e+00> : vector<32x32xf32>
    %162 = tpu.matmul %156, %161, %cst_149 {dimension_numbers = #tpu.dot_dimension_numbers<[1], [0], [0], [1], [0, 0, 1, 1], [], []>} : vector<32x19xbf16>, vector<19x32xbf16>, vector<32x32xf32> -> vector<32x32xf32>
    %c11_150 = arith.constant 11 : index
    %c0_151 = arith.constant 0 : index
    %c0_152 = arith.constant 0 : index
    %163 = vector.load %arg6[%c11_150, %c0_151, %c0_152] : memref<25x8x32xbf16, #tpu.memory_space<vmem>>, vector<1x8x32xbf16>
    %164 = vector.shape_cast %163 : vector<1x8x32xbf16> to vector<8x32xbf16>
    %cst_153 = arith.constant dense<0.000000e+00> : vector<32x32xf32>
    %165 = tpu.matmul %159, %164, %cst_153 {dimension_numbers = #tpu.dot_dimension_numbers<[1], [0], [0], [1], [0, 0, 1, 1], [], []>} : vector<32x8xbf16>, vector<8x32xbf16>, vector<32x32xf32> -> vector<32x32xf32>
    %166 = arith.addf %162, %165 : vector<32x32xf32>
    %167 = arith.addf %153, %166 : vector<32x32xf32>
    %c0_154 = arith.constant 0 : index
    %c18 = arith.constant 18 : index
    %c0_155 = arith.constant 0 : index
    %168 = vector.load %arg1[%c0_154, %c18, %c0_155] : memref<1x72x19xf32, #tpu.memory_space<vmem>>, vector<1x32x19xf32>
    %169 = vector.shape_cast %168 : vector<1x32x19xf32> to vector<32x19xf32>
    %170 = arith.truncf %169 : vector<32x19xf32> to vector<32x19xbf16>
    %c0_156 = arith.constant 0 : index
    %c18_157 = arith.constant 18 : index
    %c0_158 = arith.constant 0 : index
    %171 = vector.load %arg2[%c0_156, %c18_157, %c0_158] : memref<1x72x8xf32, #tpu.memory_space<vmem>>, vector<1x32x8xf32>
    %172 = vector.shape_cast %171 : vector<1x32x8xf32> to vector<32x8xf32>
    %173 = arith.truncf %172 : vector<32x8xf32> to vector<32x8xbf16>
    %c12_159 = arith.constant 12 : index
    %c0_160 = arith.constant 0 : index
    %c0_161 = arith.constant 0 : index
    %174 = vector.load %arg5[%c12_159, %c0_160, %c0_161] : memref<25x19x32xbf16, #tpu.memory_space<vmem>>, vector<1x19x32xbf16>
    %175 = vector.shape_cast %174 : vector<1x19x32xbf16> to vector<19x32xbf16>
    %cst_162 = arith.constant dense<0.000000e+00> : vector<32x32xf32>
    %176 = tpu.matmul %170, %175, %cst_162 {dimension_numbers = #tpu.dot_dimension_numbers<[1], [0], [0], [1], [0, 0, 1, 1], [], []>} : vector<32x19xbf16>, vector<19x32xbf16>, vector<32x32xf32> -> vector<32x32xf32>
    %c12_163 = arith.constant 12 : index
    %c0_164 = arith.constant 0 : index
    %c0_165 = arith.constant 0 : index
    %177 = vector.load %arg6[%c12_163, %c0_164, %c0_165] : memref<25x8x32xbf16, #tpu.memory_space<vmem>>, vector<1x8x32xbf16>
    %178 = vector.shape_cast %177 : vector<1x8x32xbf16> to vector<8x32xbf16>
    %cst_166 = arith.constant dense<0.000000e+00> : vector<32x32xf32>
    %179 = tpu.matmul %173, %178, %cst_166 {dimension_numbers = #tpu.dot_dimension_numbers<[1], [0], [0], [1], [0, 0, 1, 1], [], []>} : vector<32x8xbf16>, vector<8x32xbf16>, vector<32x32xf32> -> vector<32x32xf32>
    %180 = arith.addf %176, %179 : vector<32x32xf32>
    %181 = arith.addf %167, %180 : vector<32x32xf32>
    %c0_167 = arith.constant 0 : index
    %c19 = arith.constant 19 : index
    %c0_168 = arith.constant 0 : index
    %182 = vector.load %arg1[%c0_167, %c19, %c0_168] : memref<1x72x19xf32, #tpu.memory_space<vmem>>, vector<1x32x19xf32>
    %183 = vector.shape_cast %182 : vector<1x32x19xf32> to vector<32x19xf32>
    %184 = arith.truncf %183 : vector<32x19xf32> to vector<32x19xbf16>
    %c0_169 = arith.constant 0 : index
    %c19_170 = arith.constant 19 : index
    %c0_171 = arith.constant 0 : index
    %185 = vector.load %arg2[%c0_169, %c19_170, %c0_171] : memref<1x72x8xf32, #tpu.memory_space<vmem>>, vector<1x32x8xf32>
    %186 = vector.shape_cast %185 : vector<1x32x8xf32> to vector<32x8xf32>
    %187 = arith.truncf %186 : vector<32x8xf32> to vector<32x8xbf16>
    %c13 = arith.constant 13 : index
    %c0_172 = arith.constant 0 : index
    %c0_173 = arith.constant 0 : index
    %188 = vector.load %arg5[%c13, %c0_172, %c0_173] : memref<25x19x32xbf16, #tpu.memory_space<vmem>>, vector<1x19x32xbf16>
    %189 = vector.shape_cast %188 : vector<1x19x32xbf16> to vector<19x32xbf16>
    %cst_174 = arith.constant dense<0.000000e+00> : vector<32x32xf32>
    %190 = tpu.matmul %184, %189, %cst_174 {dimension_numbers = #tpu.dot_dimension_numbers<[1], [0], [0], [1], [0, 0, 1, 1], [], []>} : vector<32x19xbf16>, vector<19x32xbf16>, vector<32x32xf32> -> vector<32x32xf32>
    %c13_175 = arith.constant 13 : index
    %c0_176 = arith.constant 0 : index
    %c0_177 = arith.constant 0 : index
    %191 = vector.load %arg6[%c13_175, %c0_176, %c0_177] : memref<25x8x32xbf16, #tpu.memory_space<vmem>>, vector<1x8x32xbf16>
    %192 = vector.shape_cast %191 : vector<1x8x32xbf16> to vector<8x32xbf16>
    %cst_178 = arith.constant dense<0.000000e+00> : vector<32x32xf32>
    %193 = tpu.matmul %187, %192, %cst_178 {dimension_numbers = #tpu.dot_dimension_numbers<[1], [0], [0], [1], [0, 0, 1, 1], [], []>} : vector<32x8xbf16>, vector<8x32xbf16>, vector<32x32xf32> -> vector<32x32xf32>
    %194 = arith.addf %190, %193 : vector<32x32xf32>
    %195 = arith.addf %181, %194 : vector<32x32xf32>
    %c0_179 = arith.constant 0 : index
    %c20 = arith.constant 20 : index
    %c0_180 = arith.constant 0 : index
    %196 = vector.load %arg1[%c0_179, %c20, %c0_180] : memref<1x72x19xf32, #tpu.memory_space<vmem>>, vector<1x32x19xf32>
    %197 = vector.shape_cast %196 : vector<1x32x19xf32> to vector<32x19xf32>
    %198 = arith.truncf %197 : vector<32x19xf32> to vector<32x19xbf16>
    %c0_181 = arith.constant 0 : index
    %c20_182 = arith.constant 20 : index
    %c0_183 = arith.constant 0 : index
    %199 = vector.load %arg2[%c0_181, %c20_182, %c0_183] : memref<1x72x8xf32, #tpu.memory_space<vmem>>, vector<1x32x8xf32>
    %200 = vector.shape_cast %199 : vector<1x32x8xf32> to vector<32x8xf32>
    %201 = arith.truncf %200 : vector<32x8xf32> to vector<32x8xbf16>
    %c14 = arith.constant 14 : index
    %c0_184 = arith.constant 0 : index
    %c0_185 = arith.constant 0 : index
    %202 = vector.load %arg5[%c14, %c0_184, %c0_185] : memref<25x19x32xbf16, #tpu.memory_space<vmem>>, vector<1x19x32xbf16>
    %203 = vector.shape_cast %202 : vector<1x19x32xbf16> to vector<19x32xbf16>
    %cst_186 = arith.constant dense<0.000000e+00> : vector<32x32xf32>
    %204 = tpu.matmul %198, %203, %cst_186 {dimension_numbers = #tpu.dot_dimension_numbers<[1], [0], [0], [1], [0, 0, 1, 1], [], []>} : vector<32x19xbf16>, vector<19x32xbf16>, vector<32x32xf32> -> vector<32x32xf32>
    %c14_187 = arith.constant 14 : index
    %c0_188 = arith.constant 0 : index
    %c0_189 = arith.constant 0 : index
    %205 = vector.load %arg6[%c14_187, %c0_188, %c0_189] : memref<25x8x32xbf16, #tpu.memory_space<vmem>>, vector<1x8x32xbf16>
    %206 = vector.shape_cast %205 : vector<1x8x32xbf16> to vector<8x32xbf16>
    %cst_190 = arith.constant dense<0.000000e+00> : vector<32x32xf32>
    %207 = tpu.matmul %201, %206, %cst_190 {dimension_numbers = #tpu.dot_dimension_numbers<[1], [0], [0], [1], [0, 0, 1, 1], [], []>} : vector<32x8xbf16>, vector<8x32xbf16>, vector<32x32xf32> -> vector<32x32xf32>
    %208 = arith.addf %204, %207 : vector<32x32xf32>
    %209 = arith.addf %195, %208 : vector<32x32xf32>
    %c0_191 = arith.constant 0 : index
    %c24 = arith.constant 24 : index
    %c0_192 = arith.constant 0 : index
    %210 = vector.load %arg1[%c0_191, %c24, %c0_192] : memref<1x72x19xf32, #tpu.memory_space<vmem>>, vector<1x32x19xf32>
    %211 = vector.shape_cast %210 : vector<1x32x19xf32> to vector<32x19xf32>
    %212 = arith.truncf %211 : vector<32x19xf32> to vector<32x19xbf16>
    %c0_193 = arith.constant 0 : index
    %c24_194 = arith.constant 24 : index
    %c0_195 = arith.constant 0 : index
    %213 = vector.load %arg2[%c0_193, %c24_194, %c0_195] : memref<1x72x8xf32, #tpu.memory_space<vmem>>, vector<1x32x8xf32>
    %214 = vector.shape_cast %213 : vector<1x32x8xf32> to vector<32x8xf32>
    %215 = arith.truncf %214 : vector<32x8xf32> to vector<32x8xbf16>
    %c15 = arith.constant 15 : index
    %c0_196 = arith.constant 0 : index
    %c0_197 = arith.constant 0 : index
    %216 = vector.load %arg5[%c15, %c0_196, %c0_197] : memref<25x19x32xbf16, #tpu.memory_space<vmem>>, vector<1x19x32xbf16>
    %217 = vector.shape_cast %216 : vector<1x19x32xbf16> to vector<19x32xbf16>
    %cst_198 = arith.constant dense<0.000000e+00> : vector<32x32xf32>
    %218 = tpu.matmul %212, %217, %cst_198 {dimension_numbers = #tpu.dot_dimension_numbers<[1], [0], [0], [1], [0, 0, 1, 1], [], []>} : vector<32x19xbf16>, vector<19x32xbf16>, vector<32x32xf32> -> vector<32x32xf32>
    %c15_199 = arith.constant 15 : index
    %c0_200 = arith.constant 0 : index
    %c0_201 = arith.constant 0 : index
    %219 = vector.load %arg6[%c15_199, %c0_200, %c0_201] : memref<25x8x32xbf16, #tpu.memory_space<vmem>>, vector<1x8x32xbf16>
    %220 = vector.shape_cast %219 : vector<1x8x32xbf16> to vector<8x32xbf16>
    %cst_202 = arith.constant dense<0.000000e+00> : vector<32x32xf32>
    %221 = tpu.matmul %215, %220, %cst_202 {dimension_numbers = #tpu.dot_dimension_numbers<[1], [0], [0], [1], [0, 0, 1, 1], [], []>} : vector<32x8xbf16>, vector<8x32xbf16>, vector<32x32xf32> -> vector<32x32xf32>
    %222 = arith.addf %218, %221 : vector<32x32xf32>
    %223 = arith.addf %209, %222 : vector<32x32xf32>
    %c0_203 = arith.constant 0 : index
    %c25 = arith.constant 25 : index
    %c0_204 = arith.constant 0 : index
    %224 = vector.load %arg1[%c0_203, %c25, %c0_204] : memref<1x72x19xf32, #tpu.memory_space<vmem>>, vector<1x32x19xf32>
    %225 = vector.shape_cast %224 : vector<1x32x19xf32> to vector<32x19xf32>
    %226 = arith.truncf %225 : vector<32x19xf32> to vector<32x19xbf16>
    %c0_205 = arith.constant 0 : index
    %c25_206 = arith.constant 25 : index
    %c0_207 = arith.constant 0 : index
    %227 = vector.load %arg2[%c0_205, %c25_206, %c0_207] : memref<1x72x8xf32, #tpu.memory_space<vmem>>, vector<1x32x8xf32>
    %228 = vector.shape_cast %227 : vector<1x32x8xf32> to vector<32x8xf32>
    %229 = arith.truncf %228 : vector<32x8xf32> to vector<32x8xbf16>
    %c16_208 = arith.constant 16 : index
    %c0_209 = arith.constant 0 : index
    %c0_210 = arith.constant 0 : index
    %230 = vector.load %arg5[%c16_208, %c0_209, %c0_210] : memref<25x19x32xbf16, #tpu.memory_space<vmem>>, vector<1x19x32xbf16>
    %231 = vector.shape_cast %230 : vector<1x19x32xbf16> to vector<19x32xbf16>
    %cst_211 = arith.constant dense<0.000000e+00> : vector<32x32xf32>
    %232 = tpu.matmul %226, %231, %cst_211 {dimension_numbers = #tpu.dot_dimension_numbers<[1], [0], [0], [1], [0, 0, 1, 1], [], []>} : vector<32x19xbf16>, vector<19x32xbf16>, vector<32x32xf32> -> vector<32x32xf32>
    %c16_212 = arith.constant 16 : index
    %c0_213 = arith.constant 0 : index
    %c0_214 = arith.constant 0 : index
    %233 = vector.load %arg6[%c16_212, %c0_213, %c0_214] : memref<25x8x32xbf16, #tpu.memory_space<vmem>>, vector<1x8x32xbf16>
    %234 = vector.shape_cast %233 : vector<1x8x32xbf16> to vector<8x32xbf16>
    %cst_215 = arith.constant dense<0.000000e+00> : vector<32x32xf32>
    %235 = tpu.matmul %229, %234, %cst_215 {dimension_numbers = #tpu.dot_dimension_numbers<[1], [0], [0], [1], [0, 0, 1, 1], [], []>} : vector<32x8xbf16>, vector<8x32xbf16>, vector<32x32xf32> -> vector<32x32xf32>
    %236 = arith.addf %232, %235 : vector<32x32xf32>
    %237 = arith.addf %223, %236 : vector<32x32xf32>
    %c0_216 = arith.constant 0 : index
    %c26 = arith.constant 26 : index
    %c0_217 = arith.constant 0 : index
    %238 = vector.load %arg1[%c0_216, %c26, %c0_217] : memref<1x72x19xf32, #tpu.memory_space<vmem>>, vector<1x32x19xf32>
    %239 = vector.shape_cast %238 : vector<1x32x19xf32> to vector<32x19xf32>
    %240 = arith.truncf %239 : vector<32x19xf32> to vector<32x19xbf16>
    %c0_218 = arith.constant 0 : index
    %c26_219 = arith.constant 26 : index
    %c0_220 = arith.constant 0 : index
    %241 = vector.load %arg2[%c0_218, %c26_219, %c0_220] : memref<1x72x8xf32, #tpu.memory_space<vmem>>, vector<1x32x8xf32>
    %242 = vector.shape_cast %241 : vector<1x32x8xf32> to vector<32x8xf32>
    %243 = arith.truncf %242 : vector<32x8xf32> to vector<32x8xbf16>
    %c17_221 = arith.constant 17 : index
    %c0_222 = arith.constant 0 : index
    %c0_223 = arith.constant 0 : index
    %244 = vector.load %arg5[%c17_221, %c0_222, %c0_223] : memref<25x19x32xbf16, #tpu.memory_space<vmem>>, vector<1x19x32xbf16>
    %245 = vector.shape_cast %244 : vector<1x19x32xbf16> to vector<19x32xbf16>
    %cst_224 = arith.constant dense<0.000000e+00> : vector<32x32xf32>
    %246 = tpu.matmul %240, %245, %cst_224 {dimension_numbers = #tpu.dot_dimension_numbers<[1], [0], [0], [1], [0, 0, 1, 1], [], []>} : vector<32x19xbf16>, vector<19x32xbf16>, vector<32x32xf32> -> vector<32x32xf32>
    %c17_225 = arith.constant 17 : index
    %c0_226 = arith.constant 0 : index
    %c0_227 = arith.constant 0 : index
    %247 = vector.load %arg6[%c17_225, %c0_226, %c0_227] : memref<25x8x32xbf16, #tpu.memory_space<vmem>>, vector<1x8x32xbf16>
    %248 = vector.shape_cast %247 : vector<1x8x32xbf16> to vector<8x32xbf16>
    %cst_228 = arith.constant dense<0.000000e+00> : vector<32x32xf32>
    %249 = tpu.matmul %243, %248, %cst_228 {dimension_numbers = #tpu.dot_dimension_numbers<[1], [0], [0], [1], [0, 0, 1, 1], [], []>} : vector<32x8xbf16>, vector<8x32xbf16>, vector<32x32xf32> -> vector<32x32xf32>
    %250 = arith.addf %246, %249 : vector<32x32xf32>
    %251 = arith.addf %237, %250 : vector<32x32xf32>
    %c0_229 = arith.constant 0 : index
    %c27 = arith.constant 27 : index
    %c0_230 = arith.constant 0 : index
    %252 = vector.load %arg1[%c0_229, %c27, %c0_230] : memref<1x72x19xf32, #tpu.memory_space<vmem>>, vector<1x32x19xf32>
    %253 = vector.shape_cast %252 : vector<1x32x19xf32> to vector<32x19xf32>
    %254 = arith.truncf %253 : vector<32x19xf32> to vector<32x19xbf16>
    %c0_231 = arith.constant 0 : index
    %c27_232 = arith.constant 27 : index
    %c0_233 = arith.constant 0 : index
    %255 = vector.load %arg2[%c0_231, %c27_232, %c0_233] : memref<1x72x8xf32, #tpu.memory_space<vmem>>, vector<1x32x8xf32>
    %256 = vector.shape_cast %255 : vector<1x32x8xf32> to vector<32x8xf32>
    %257 = arith.truncf %256 : vector<32x8xf32> to vector<32x8xbf16>
    %c18_234 = arith.constant 18 : index
    %c0_235 = arith.constant 0 : index
    %c0_236 = arith.constant 0 : index
    %258 = vector.load %arg5[%c18_234, %c0_235, %c0_236] : memref<25x19x32xbf16, #tpu.memory_space<vmem>>, vector<1x19x32xbf16>
    %259 = vector.shape_cast %258 : vector<1x19x32xbf16> to vector<19x32xbf16>
    %cst_237 = arith.constant dense<0.000000e+00> : vector<32x32xf32>
    %260 = tpu.matmul %254, %259, %cst_237 {dimension_numbers = #tpu.dot_dimension_numbers<[1], [0], [0], [1], [0, 0, 1, 1], [], []>} : vector<32x19xbf16>, vector<19x32xbf16>, vector<32x32xf32> -> vector<32x32xf32>
    %c18_238 = arith.constant 18 : index
    %c0_239 = arith.constant 0 : index
    %c0_240 = arith.constant 0 : index
    %261 = vector.load %arg6[%c18_238, %c0_239, %c0_240] : memref<25x8x32xbf16, #tpu.memory_space<vmem>>, vector<1x8x32xbf16>
    %262 = vector.shape_cast %261 : vector<1x8x32xbf16> to vector<8x32xbf16>
    %cst_241 = arith.constant dense<0.000000e+00> : vector<32x32xf32>
    %263 = tpu.matmul %257, %262, %cst_241 {dimension_numbers = #tpu.dot_dimension_numbers<[1], [0], [0], [1], [0, 0, 1, 1], [], []>} : vector<32x8xbf16>, vector<8x32xbf16>, vector<32x32xf32> -> vector<32x32xf32>
    %264 = arith.addf %260, %263 : vector<32x32xf32>
    %265 = arith.addf %251, %264 : vector<32x32xf32>
    %c0_242 = arith.constant 0 : index
    %c28 = arith.constant 28 : index
    %c0_243 = arith.constant 0 : index
    %266 = vector.load %arg1[%c0_242, %c28, %c0_243] : memref<1x72x19xf32, #tpu.memory_space<vmem>>, vector<1x32x19xf32>
    %267 = vector.shape_cast %266 : vector<1x32x19xf32> to vector<32x19xf32>
    %268 = arith.truncf %267 : vector<32x19xf32> to vector<32x19xbf16>
    %c0_244 = arith.constant 0 : index
    %c28_245 = arith.constant 28 : index
    %c0_246 = arith.constant 0 : index
    %269 = vector.load %arg2[%c0_244, %c28_245, %c0_246] : memref<1x72x8xf32, #tpu.memory_space<vmem>>, vector<1x32x8xf32>
    %270 = vector.shape_cast %269 : vector<1x32x8xf32> to vector<32x8xf32>
    %271 = arith.truncf %270 : vector<32x8xf32> to vector<32x8xbf16>
    %c19_247 = arith.constant 19 : index
    %c0_248 = arith.constant 0 : index
    %c0_249 = arith.constant 0 : index
    %272 = vector.load %arg5[%c19_247, %c0_248, %c0_249] : memref<25x19x32xbf16, #tpu.memory_space<vmem>>, vector<1x19x32xbf16>
    %273 = vector.shape_cast %272 : vector<1x19x32xbf16> to vector<19x32xbf16>
    %cst_250 = arith.constant dense<0.000000e+00> : vector<32x32xf32>
    %274 = tpu.matmul %268, %273, %cst_250 {dimension_numbers = #tpu.dot_dimension_numbers<[1], [0], [0], [1], [0, 0, 1, 1], [], []>} : vector<32x19xbf16>, vector<19x32xbf16>, vector<32x32xf32> -> vector<32x32xf32>
    %c19_251 = arith.constant 19 : index
    %c0_252 = arith.constant 0 : index
    %c0_253 = arith.constant 0 : index
    %275 = vector.load %arg6[%c19_251, %c0_252, %c0_253] : memref<25x8x32xbf16, #tpu.memory_space<vmem>>, vector<1x8x32xbf16>
    %276 = vector.shape_cast %275 : vector<1x8x32xbf16> to vector<8x32xbf16>
    %cst_254 = arith.constant dense<0.000000e+00> : vector<32x32xf32>
    %277 = tpu.matmul %271, %276, %cst_254 {dimension_numbers = #tpu.dot_dimension_numbers<[1], [0], [0], [1], [0, 0, 1, 1], [], []>} : vector<32x8xbf16>, vector<8x32xbf16>, vector<32x32xf32> -> vector<32x32xf32>
    %278 = arith.addf %274, %277 : vector<32x32xf32>
    %279 = arith.addf %265, %278 : vector<32x32xf32>
    %c0_255 = arith.constant 0 : index
    %c32 = arith.constant 32 : index
    %c0_256 = arith.constant 0 : index
    %280 = vector.load %arg1[%c0_255, %c32, %c0_256] : memref<1x72x19xf32, #tpu.memory_space<vmem>>, vector<1x32x19xf32>
    %281 = vector.shape_cast %280 : vector<1x32x19xf32> to vector<32x19xf32>
    %282 = arith.truncf %281 : vector<32x19xf32> to vector<32x19xbf16>
    %c0_257 = arith.constant 0 : index
    %c32_258 = arith.constant 32 : index
    %c0_259 = arith.constant 0 : index
    %283 = vector.load %arg2[%c0_257, %c32_258, %c0_259] : memref<1x72x8xf32, #tpu.memory_space<vmem>>, vector<1x32x8xf32>
    %284 = vector.shape_cast %283 : vector<1x32x8xf32> to vector<32x8xf32>
    %285 = arith.truncf %284 : vector<32x8xf32> to vector<32x8xbf16>
    %c20_260 = arith.constant 20 : index
    %c0_261 = arith.constant 0 : index
    %c0_262 = arith.constant 0 : index
    %286 = vector.load %arg5[%c20_260, %c0_261, %c0_262] : memref<25x19x32xbf16, #tpu.memory_space<vmem>>, vector<1x19x32xbf16>
    %287 = vector.shape_cast %286 : vector<1x19x32xbf16> to vector<19x32xbf16>
    %cst_263 = arith.constant dense<0.000000e+00> : vector<32x32xf32>
    %288 = tpu.matmul %282, %287, %cst_263 {dimension_numbers = #tpu.dot_dimension_numbers<[1], [0], [0], [1], [0, 0, 1, 1], [], []>} : vector<32x19xbf16>, vector<19x32xbf16>, vector<32x32xf32> -> vector<32x32xf32>
    %c20_264 = arith.constant 20 : index
    %c0_265 = arith.constant 0 : index
    %c0_266 = arith.constant 0 : index
    %289 = vector.load %arg6[%c20_264, %c0_265, %c0_266] : memref<25x8x32xbf16, #tpu.memory_space<vmem>>, vector<1x8x32xbf16>
    %290 = vector.shape_cast %289 : vector<1x8x32xbf16> to vector<8x32xbf16>
    %cst_267 = arith.constant dense<0.000000e+00> : vector<32x32xf32>
    %291 = tpu.matmul %285, %290, %cst_267 {dimension_numbers = #tpu.dot_dimension_numbers<[1], [0], [0], [1], [0, 0, 1, 1], [], []>} : vector<32x8xbf16>, vector<8x32xbf16>, vector<32x32xf32> -> vector<32x32xf32>
    %292 = arith.addf %288, %291 : vector<32x32xf32>
    %293 = arith.addf %279, %292 : vector<32x32xf32>
    %c0_268 = arith.constant 0 : index
    %c33 = arith.constant 33 : index
    %c0_269 = arith.constant 0 : index
    %294 = vector.load %arg1[%c0_268, %c33, %c0_269] : memref<1x72x19xf32, #tpu.memory_space<vmem>>, vector<1x32x19xf32>
    %295 = vector.shape_cast %294 : vector<1x32x19xf32> to vector<32x19xf32>
    %296 = arith.truncf %295 : vector<32x19xf32> to vector<32x19xbf16>
    %c0_270 = arith.constant 0 : index
    %c33_271 = arith.constant 33 : index
    %c0_272 = arith.constant 0 : index
    %297 = vector.load %arg2[%c0_270, %c33_271, %c0_272] : memref<1x72x8xf32, #tpu.memory_space<vmem>>, vector<1x32x8xf32>
    %298 = vector.shape_cast %297 : vector<1x32x8xf32> to vector<32x8xf32>
    %299 = arith.truncf %298 : vector<32x8xf32> to vector<32x8xbf16>
    %c21 = arith.constant 21 : index
    %c0_273 = arith.constant 0 : index
    %c0_274 = arith.constant 0 : index
    %300 = vector.load %arg5[%c21, %c0_273, %c0_274] : memref<25x19x32xbf16, #tpu.memory_space<vmem>>, vector<1x19x32xbf16>
    %301 = vector.shape_cast %300 : vector<1x19x32xbf16> to vector<19x32xbf16>
    %cst_275 = arith.constant dense<0.000000e+00> : vector<32x32xf32>
    %302 = tpu.matmul %296, %301, %cst_275 {dimension_numbers = #tpu.dot_dimension_numbers<[1], [0], [0], [1], [0, 0, 1, 1], [], []>} : vector<32x19xbf16>, vector<19x32xbf16>, vector<32x32xf32> -> vector<32x32xf32>
    %c21_276 = arith.constant 21 : index
    %c0_277 = arith.constant 0 : index
    %c0_278 = arith.constant 0 : index
    %303 = vector.load %arg6[%c21_276, %c0_277, %c0_278] : memref<25x8x32xbf16, #tpu.memory_space<vmem>>, vector<1x8x32xbf16>
    %304 = vector.shape_cast %303 : vector<1x8x32xbf16> to vector<8x32xbf16>
    %cst_279 = arith.constant dense<0.000000e+00> : vector<32x32xf32>
    %305 = tpu.matmul %299, %304, %cst_279 {dimension_numbers = #tpu.dot_dimension_numbers<[1], [0], [0], [1], [0, 0, 1, 1], [], []>} : vector<32x8xbf16>, vector<8x32xbf16>, vector<32x32xf32> -> vector<32x32xf32>
    %306 = arith.addf %302, %305 : vector<32x32xf32>
    %307 = arith.addf %293, %306 : vector<32x32xf32>
    %c0_280 = arith.constant 0 : index
    %c34 = arith.constant 34 : index
    %c0_281 = arith.constant 0 : index
    %308 = vector.load %arg1[%c0_280, %c34, %c0_281] : memref<1x72x19xf32, #tpu.memory_space<vmem>>, vector<1x32x19xf32>
    %309 = vector.shape_cast %308 : vector<1x32x19xf32> to vector<32x19xf32>
    %310 = arith.truncf %309 : vector<32x19xf32> to vector<32x19xbf16>
    %c0_282 = arith.constant 0 : index
    %c34_283 = arith.constant 34 : index
    %c0_284 = arith.constant 0 : index
    %311 = vector.load %arg2[%c0_282, %c34_283, %c0_284] : memref<1x72x8xf32, #tpu.memory_space<vmem>>, vector<1x32x8xf32>
    %312 = vector.shape_cast %311 : vector<1x32x8xf32> to vector<32x8xf32>
    %313 = arith.truncf %312 : vector<32x8xf32> to vector<32x8xbf16>
    %c22 = arith.constant 22 : index
    %c0_285 = arith.constant 0 : index
    %c0_286 = arith.constant 0 : index
    %314 = vector.load %arg5[%c22, %c0_285, %c0_286] : memref<25x19x32xbf16, #tpu.memory_space<vmem>>, vector<1x19x32xbf16>
    %315 = vector.shape_cast %314 : vector<1x19x32xbf16> to vector<19x32xbf16>
    %cst_287 = arith.constant dense<0.000000e+00> : vector<32x32xf32>
    %316 = tpu.matmul %310, %315, %cst_287 {dimension_numbers = #tpu.dot_dimension_numbers<[1], [0], [0], [1], [0, 0, 1, 1], [], []>} : vector<32x19xbf16>, vector<19x32xbf16>, vector<32x32xf32> -> vector<32x32xf32>
    %c22_288 = arith.constant 22 : index
    %c0_289 = arith.constant 0 : index
    %c0_290 = arith.constant 0 : index
    %317 = vector.load %arg6[%c22_288, %c0_289, %c0_290] : memref<25x8x32xbf16, #tpu.memory_space<vmem>>, vector<1x8x32xbf16>
    %318 = vector.shape_cast %317 : vector<1x8x32xbf16> to vector<8x32xbf16>
    %cst_291 = arith.constant dense<0.000000e+00> : vector<32x32xf32>
    %319 = tpu.matmul %313, %318, %cst_291 {dimension_numbers = #tpu.dot_dimension_numbers<[1], [0], [0], [1], [0, 0, 1, 1], [], []>} : vector<32x8xbf16>, vector<8x32xbf16>, vector<32x32xf32> -> vector<32x32xf32>
    %320 = arith.addf %316, %319 : vector<32x32xf32>
    %321 = arith.addf %307, %320 : vector<32x32xf32>
    %c0_292 = arith.constant 0 : index
    %c35 = arith.constant 35 : index
    %c0_293 = arith.constant 0 : index
    %322 = vector.load %arg1[%c0_292, %c35, %c0_293] : memref<1x72x19xf32, #tpu.memory_space<vmem>>, vector<1x32x19xf32>
    %323 = vector.shape_cast %322 : vector<1x32x19xf32> to vector<32x19xf32>
    %324 = arith.truncf %323 : vector<32x19xf32> to vector<32x19xbf16>
    %c0_294 = arith.constant 0 : index
    %c35_295 = arith.constant 35 : index
    %c0_296 = arith.constant 0 : index
    %325 = vector.load %arg2[%c0_294, %c35_295, %c0_296] : memref<1x72x8xf32, #tpu.memory_space<vmem>>, vector<1x32x8xf32>
    %326 = vector.shape_cast %325 : vector<1x32x8xf32> to vector<32x8xf32>
    %327 = arith.truncf %326 : vector<32x8xf32> to vector<32x8xbf16>
    %c23 = arith.constant 23 : index
    %c0_297 = arith.constant 0 : index
    %c0_298 = arith.constant 0 : index
    %328 = vector.load %arg5[%c23, %c0_297, %c0_298] : memref<25x19x32xbf16, #tpu.memory_space<vmem>>, vector<1x19x32xbf16>
    %329 = vector.shape_cast %328 : vector<1x19x32xbf16> to vector<19x32xbf16>
    %cst_299 = arith.constant dense<0.000000e+00> : vector<32x32xf32>
    %330 = tpu.matmul %324, %329, %cst_299 {dimension_numbers = #tpu.dot_dimension_numbers<[1], [0], [0], [1], [0, 0, 1, 1], [], []>} : vector<32x19xbf16>, vector<19x32xbf16>, vector<32x32xf32> -> vector<32x32xf32>
    %c23_300 = arith.constant 23 : index
    %c0_301 = arith.constant 0 : index
    %c0_302 = arith.constant 0 : index
    %331 = vector.load %arg6[%c23_300, %c0_301, %c0_302] : memref<25x8x32xbf16, #tpu.memory_space<vmem>>, vector<1x8x32xbf16>
    %332 = vector.shape_cast %331 : vector<1x8x32xbf16> to vector<8x32xbf16>
    %cst_303 = arith.constant dense<0.000000e+00> : vector<32x32xf32>
    %333 = tpu.matmul %327, %332, %cst_303 {dimension_numbers = #tpu.dot_dimension_numbers<[1], [0], [0], [1], [0, 0, 1, 1], [], []>} : vector<32x8xbf16>, vector<8x32xbf16>, vector<32x32xf32> -> vector<32x32xf32>
    %334 = arith.addf %330, %333 : vector<32x32xf32>
    %335 = arith.addf %321, %334 : vector<32x32xf32>
    %c0_304 = arith.constant 0 : index
    %c36 = arith.constant 36 : index
    %c0_305 = arith.constant 0 : index
    %336 = vector.load %arg1[%c0_304, %c36, %c0_305] : memref<1x72x19xf32, #tpu.memory_space<vmem>>, vector<1x32x19xf32>
    %337 = vector.shape_cast %336 : vector<1x32x19xf32> to vector<32x19xf32>
    %338 = arith.truncf %337 : vector<32x19xf32> to vector<32x19xbf16>
    %c0_306 = arith.constant 0 : index
    %c36_307 = arith.constant 36 : index
    %c0_308 = arith.constant 0 : index
    %339 = vector.load %arg2[%c0_306, %c36_307, %c0_308] : memref<1x72x8xf32, #tpu.memory_space<vmem>>, vector<1x32x8xf32>
    %340 = vector.shape_cast %339 : vector<1x32x8xf32> to vector<32x8xf32>
    %341 = arith.truncf %340 : vector<32x8xf32> to vector<32x8xbf16>
    %c24_309 = arith.constant 24 : index
    %c0_310 = arith.constant 0 : index
    %c0_311 = arith.constant 0 : index
    %342 = vector.load %arg5[%c24_309, %c0_310, %c0_311] : memref<25x19x32xbf16, #tpu.memory_space<vmem>>, vector<1x19x32xbf16>
    %343 = vector.shape_cast %342 : vector<1x19x32xbf16> to vector<19x32xbf16>
    %cst_312 = arith.constant dense<0.000000e+00> : vector<32x32xf32>
    %344 = tpu.matmul %338, %343, %cst_312 {dimension_numbers = #tpu.dot_dimension_numbers<[1], [0], [0], [1], [0, 0, 1, 1], [], []>} : vector<32x19xbf16>, vector<19x32xbf16>, vector<32x32xf32> -> vector<32x32xf32>
    %c24_313 = arith.constant 24 : index
    %c0_314 = arith.constant 0 : index
    %c0_315 = arith.constant 0 : index
    %345 = vector.load %arg6[%c24_313, %c0_314, %c0_315] : memref<25x8x32xbf16, #tpu.memory_space<vmem>>, vector<1x8x32xbf16>
    %346 = vector.shape_cast %345 : vector<1x8x32xbf16> to vector<8x32xbf16>
    %cst_316 = arith.constant dense<0.000000e+00> : vector<32x32xf32>
    %347 = tpu.matmul %341, %346, %cst_316 {dimension_numbers = #tpu.dot_dimension_numbers<[1], [0], [0], [1], [0, 0, 1, 1], [], []>} : vector<32x8xbf16>, vector<8x32xbf16>, vector<32x32xf32> -> vector<32x32xf32>
    %348 = arith.addf %344, %347 : vector<32x32xf32>
    %349 = arith.addf %335, %348 : vector<32x32xf32>
    %c0_317 = arith.constant 0 : index
    %c0_318 = arith.constant 0 : index
    %350 = vector.load %arg7[%c0_317, %c0_318] : memref<1x32xf32, #tpu.memory_space<vmem>>, vector<1x32xf32>
    %351 = vector.broadcast %350 : vector<1x32xf32> to vector<32x32xf32>
    %352 = arith.addf %349, %351 : vector<32x32xf32>
    %353 = vector.extract_strided_slice %352 {offsets = [0, 0], sizes = [32, 8], strides = [1, 1]} : vector<32x32xf32> to vector<32x8xf32>
    %354 = arith.negf %353 : vector<32x8xf32>
    %355 = math.exp %354 : vector<32x8xf32>
    %cst_319 = arith.constant 1.000000e+00 : f32
    %356 = vector.broadcast %cst_319 : f32 to vector<32x8xf32>
    %357 = arith.addf %356, %355 : vector<32x8xf32>
    %358 = arith.divf %356, %357 : vector<32x8xf32>
    %359 = vector.extract_strided_slice %352 {offsets = [0, 8], sizes = [32, 8], strides = [1, 1]} : vector<32x32xf32> to vector<32x8xf32>
    %360 = arith.negf %359 : vector<32x8xf32>
    %361 = math.exp %360 : vector<32x8xf32>
    %cst_320 = arith.constant 1.000000e+00 : f32
    %362 = vector.broadcast %cst_320 : f32 to vector<32x8xf32>
    %363 = arith.addf %362, %361 : vector<32x8xf32>
    %364 = arith.divf %362, %363 : vector<32x8xf32>
    %365 = vector.extract_strided_slice %352 {offsets = [0, 16], sizes = [32, 8], strides = [1, 1]} : vector<32x32xf32> to vector<32x8xf32>
    %366 = arith.negf %365 : vector<32x8xf32>
    %367 = math.exp %366 : vector<32x8xf32>
    %cst_321 = arith.constant 1.000000e+00 : f32
    %368 = vector.broadcast %cst_321 : f32 to vector<32x8xf32>
    %369 = arith.addf %368, %367 : vector<32x8xf32>
    %370 = arith.divf %368, %369 : vector<32x8xf32>
    %371 = vector.extract_strided_slice %352 {offsets = [0, 24], sizes = [32, 8], strides = [1, 1]} : vector<32x32xf32> to vector<32x8xf32>
    %372 = math.tanh %371 : vector<32x8xf32>
    %c0_322 = arith.constant 0 : index
    %c0_323 = arith.constant 0 : index
    %c0_324 = arith.constant 0 : index
    %373 = vector.load %arg3[%c0_322, %c0_323, %c0_324] : memref<1x32x8xf32, #tpu.memory_space<vmem>>, vector<1x32x8xf32>
    %374 = vector.shape_cast %373 : vector<1x32x8xf32> to vector<32x8xf32>
    %375 = arith.mulf %364, %374 : vector<32x8xf32>
    %376 = arith.mulf %358, %372 : vector<32x8xf32>
    %377 = arith.addf %375, %376 : vector<32x8xf32>
    %378 = math.tanh %377 : vector<32x8xf32>
    %379 = arith.mulf %370, %378 : vector<32x8xf32>
    %c0_325 = arith.constant 0 : index
    %c0_326 = arith.constant 0 : index
    %c0_327 = arith.constant 0 : index
    %380 = vector.load %arg13[%c0_325, %c0_326, %c0_327] : memref<1x32x8xf32, #tpu.memory_space<vmem>>, vector<1x32x8xf32>
    %381 = vector.shape_cast %380 : vector<1x32x8xf32> to vector<32x8xf32>
    %382 = vector.shape_cast %377 : vector<32x8xf32> to vector<1x32x8xf32>
    tpu.vector_store %arg13[%c0_325, %c0_326, %c0_327], %382 {strides = array<i32>} : memref<1x32x8xf32, #tpu.memory_space<vmem>>, vector<1x32x8xf32>,
    %383 = vector.broadcast %0 : vector<32x1xf32> to vector<32x8xf32>
    %384 = arith.mulf %379, %383 : vector<32x8xf32>
    %cst_328 = arith.constant 0.000000e+00 : f32
    %385 = vector.broadcast %cst_328 : f32 to vector<72x8xf32>
    %c0_329 = arith.constant 0 : index
    %c0_330 = arith.constant 0 : index
    %c0_331 = arith.constant 0 : index
    %386 = vector.load %arg12[%c0_329, %c0_330, %c0_331] : memref<1x72x8xf32, #tpu.memory_space<vmem>>, vector<1x72x8xf32>
    %387 = vector.shape_cast %386 : vector<1x72x8xf32> to vector<72x8xf32>
    %388 = vector.shape_cast %385 : vector<72x8xf32> to vector<1x72x8xf32>
    tpu.vector_store %arg12[%c0_329, %c0_330, %c0_331], %388 {strides = array<i32>} : memref<1x72x8xf32, #tpu.memory_space<vmem>>, vector<1x72x8xf32>,
    %c0_332 = arith.constant 0 : index
    %c18_333 = arith.constant 18 : index
    %c0_334 = arith.constant 0 : index
    %389 = vector.load %arg12[%c0_332, %c18_333, %c0_334] : memref<1x72x8xf32, #tpu.memory_space<vmem>>, vector<1x32x8xf32>
    %390 = vector.shape_cast %389 : vector<1x32x8xf32> to vector<32x8xf32>
    %391 = vector.shape_cast %384 : vector<32x8xf32> to vector<1x32x8xf32>
    tpu.vector_store %arg12[%c0_332, %c18_333, %c0_334], %391 {strides = array<i32>} : memref<1x72x8xf32, #tpu.memory_space<vmem>>, vector<1x32x8xf32>,
    %c0_335 = arith.constant 0 : index
    %c0_336 = arith.constant 0 : index
    %c0_337 = arith.constant 0 : index
    %392 = vector.load %arg12[%c0_335, %c0_336, %c0_337] : memref<1x72x8xf32, #tpu.memory_space<vmem>>, vector<1x32x8xf32>
    %393 = vector.shape_cast %392 : vector<1x32x8xf32> to vector<32x8xf32>
    %394 = arith.truncf %393 : vector<32x8xf32> to vector<32x8xbf16>
    %c0_338 = arith.constant 0 : index
    %c0_339 = arith.constant 0 : index
    %c0_340 = arith.constant 0 : index
    %395 = vector.load %arg8[%c0_338, %c0_339, %c0_340] : memref<25x8x8xbf16, #tpu.memory_space<vmem>>, vector<1x8x8xbf16>
    %396 = vector.shape_cast %395 : vector<1x8x8xbf16> to vector<8x8xbf16>
    %cst_341 = arith.constant dense<0.000000e+00> : vector<32x8xf32>
    %397 = tpu.matmul %394, %396, %cst_341 {dimension_numbers = #tpu.dot_dimension_numbers<[1], [0], [0], [1], [0, 0, 1, 1], [], []>} : vector<32x8xbf16>, vector<8x8xbf16>, vector<32x8xf32> -> vector<32x8xf32>
    %c0_342 = arith.constant 0 : index
    %c1_343 = arith.constant 1 : index
    %c0_344 = arith.constant 0 : index
    %398 = vector.load %arg12[%c0_342, %c1_343, %c0_344] : memref<1x72x8xf32, #tpu.memory_space<vmem>>, vector<1x32x8xf32>
    %399 = vector.shape_cast %398 : vector<1x32x8xf32> to vector<32x8xf32>
    %400 = arith.truncf %399 : vector<32x8xf32> to vector<32x8xbf16>
    %c1_345 = arith.constant 1 : index
    %c0_346 = arith.constant 0 : index
    %c0_347 = arith.constant 0 : index
    %401 = vector.load %arg8[%c1_345, %c0_346, %c0_347] : memref<25x8x8xbf16, #tpu.memory_space<vmem>>, vector<1x8x8xbf16>
    %402 = vector.shape_cast %401 : vector<1x8x8xbf16> to vector<8x8xbf16>
    %cst_348 = arith.constant dense<0.000000e+00> : vector<32x8xf32>
    %403 = tpu.matmul %400, %402, %cst_348 {dimension_numbers = #tpu.dot_dimension_numbers<[1], [0], [0], [1], [0, 0, 1, 1], [], []>} : vector<32x8xbf16>, vector<8x8xbf16>, vector<32x8xf32> -> vector<32x8xf32>
    %404 = arith.addf %397, %403 : vector<32x8xf32>
    %c0_349 = arith.constant 0 : index
    %c2_350 = arith.constant 2 : index
    %c0_351 = arith.constant 0 : index
    %405 = vector.load %arg12[%c0_349, %c2_350, %c0_351] : memref<1x72x8xf32, #tpu.memory_space<vmem>>, vector<1x32x8xf32>
    %406 = vector.shape_cast %405 : vector<1x32x8xf32> to vector<32x8xf32>
    %407 = arith.truncf %406 : vector<32x8xf32> to vector<32x8xbf16>
    %c2_352 = arith.constant 2 : index
    %c0_353 = arith.constant 0 : index
    %c0_354 = arith.constant 0 : index
    %408 = vector.load %arg8[%c2_352, %c0_353, %c0_354] : memref<25x8x8xbf16, #tpu.memory_space<vmem>>, vector<1x8x8xbf16>
    %409 = vector.shape_cast %408 : vector<1x8x8xbf16> to vector<8x8xbf16>
    %cst_355 = arith.constant dense<0.000000e+00> : vector<32x8xf32>
    %410 = tpu.matmul %407, %409, %cst_355 {dimension_numbers = #tpu.dot_dimension_numbers<[1], [0], [0], [1], [0, 0, 1, 1], [], []>} : vector<32x8xbf16>, vector<8x8xbf16>, vector<32x8xf32> -> vector<32x8xf32>
    %411 = arith.addf %404, %410 : vector<32x8xf32>
    %c0_356 = arith.constant 0 : index
    %c3_357 = arith.constant 3 : index
    %c0_358 = arith.constant 0 : index
    %412 = vector.load %arg12[%c0_356, %c3_357, %c0_358] : memref<1x72x8xf32, #tpu.memory_space<vmem>>, vector<1x32x8xf32>
    %413 = vector.shape_cast %412 : vector<1x32x8xf32> to vector<32x8xf32>
    %414 = arith.truncf %413 : vector<32x8xf32> to vector<32x8xbf16>
    %c3_359 = arith.constant 3 : index
    %c0_360 = arith.constant 0 : index
    %c0_361 = arith.constant 0 : index
    %415 = vector.load %arg8[%c3_359, %c0_360, %c0_361] : memref<25x8x8xbf16, #tpu.memory_space<vmem>>, vector<1x8x8xbf16>
    %416 = vector.shape_cast %415 : vector<1x8x8xbf16> to vector<8x8xbf16>
    %cst_362 = arith.constant dense<0.000000e+00> : vector<32x8xf32>
    %417 = tpu.matmul %414, %416, %cst_362 {dimension_numbers = #tpu.dot_dimension_numbers<[1], [0], [0], [1], [0, 0, 1, 1], [], []>} : vector<32x8xbf16>, vector<8x8xbf16>, vector<32x8xf32> -> vector<32x8xf32>
    %418 = arith.addf %411, %417 : vector<32x8xf32>
    %c0_363 = arith.constant 0 : index
    %c4_364 = arith.constant 4 : index
    %c0_365 = arith.constant 0 : index
    %419 = vector.load %arg12[%c0_363, %c4_364, %c0_365] : memref<1x72x8xf32, #tpu.memory_space<vmem>>, vector<1x32x8xf32>
    %420 = vector.shape_cast %419 : vector<1x32x8xf32> to vector<32x8xf32>
    %421 = arith.truncf %420 : vector<32x8xf32> to vector<32x8xbf16>
    %c4_366 = arith.constant 4 : index
    %c0_367 = arith.constant 0 : index
    %c0_368 = arith.constant 0 : index
    %422 = vector.load %arg8[%c4_366, %c0_367, %c0_368] : memref<25x8x8xbf16, #tpu.memory_space<vmem>>, vector<1x8x8xbf16>
    %423 = vector.shape_cast %422 : vector<1x8x8xbf16> to vector<8x8xbf16>
    %cst_369 = arith.constant dense<0.000000e+00> : vector<32x8xf32>
    %424 = tpu.matmul %421, %423, %cst_369 {dimension_numbers = #tpu.dot_dimension_numbers<[1], [0], [0], [1], [0, 0, 1, 1], [], []>} : vector<32x8xbf16>, vector<8x8xbf16>, vector<32x8xf32> -> vector<32x8xf32>
    %425 = arith.addf %418, %424 : vector<32x8xf32>
    %c0_370 = arith.constant 0 : index
    %c8_371 = arith.constant 8 : index
    %c0_372 = arith.constant 0 : index
    %426 = vector.load %arg12[%c0_370, %c8_371, %c0_372] : memref<1x72x8xf32, #tpu.memory_space<vmem>>, vector<1x32x8xf32>
    %427 = vector.shape_cast %426 : vector<1x32x8xf32> to vector<32x8xf32>
    %428 = arith.truncf %427 : vector<32x8xf32> to vector<32x8xbf16>
    %c5_373 = arith.constant 5 : index
    %c0_374 = arith.constant 0 : index
    %c0_375 = arith.constant 0 : index
    %429 = vector.load %arg8[%c5_373, %c0_374, %c0_375] : memref<25x8x8xbf16, #tpu.memory_space<vmem>>, vector<1x8x8xbf16>
    %430 = vector.shape_cast %429 : vector<1x8x8xbf16> to vector<8x8xbf16>
    %cst_376 = arith.constant dense<0.000000e+00> : vector<32x8xf32>
    %431 = tpu.matmul %428, %430, %cst_376 {dimension_numbers = #tpu.dot_dimension_numbers<[1], [0], [0], [1], [0, 0, 1, 1], [], []>} : vector<32x8xbf16>, vector<8x8xbf16>, vector<32x8xf32> -> vector<32x8xf32>
    %432 = arith.addf %425, %431 : vector<32x8xf32>
    %c0_377 = arith.constant 0 : index
    %c9_378 = arith.constant 9 : index
    %c0_379 = arith.constant 0 : index
    %433 = vector.load %arg12[%c0_377, %c9_378, %c0_379] : memref<1x72x8xf32, #tpu.memory_space<vmem>>, vector<1x32x8xf32>
    %434 = vector.shape_cast %433 : vector<1x32x8xf32> to vector<32x8xf32>
    %435 = arith.truncf %434 : vector<32x8xf32> to vector<32x8xbf16>
    %c6_380 = arith.constant 6 : index
    %c0_381 = arith.constant 0 : index
    %c0_382 = arith.constant 0 : index
    %436 = vector.load %arg8[%c6_380, %c0_381, %c0_382] : memref<25x8x8xbf16, #tpu.memory_space<vmem>>, vector<1x8x8xbf16>
    %437 = vector.shape_cast %436 : vector<1x8x8xbf16> to vector<8x8xbf16>
    %cst_383 = arith.constant dense<0.000000e+00> : vector<32x8xf32>
    %438 = tpu.matmul %435, %437, %cst_383 {dimension_numbers = #tpu.dot_dimension_numbers<[1], [0], [0], [1], [0, 0, 1, 1], [], []>} : vector<32x8xbf16>, vector<8x8xbf16>, vector<32x8xf32> -> vector<32x8xf32>
    %439 = arith.addf %432, %438 : vector<32x8xf32>
    %c0_384 = arith.constant 0 : index
    %c10_385 = arith.constant 10 : index
    %c0_386 = arith.constant 0 : index
    %440 = vector.load %arg12[%c0_384, %c10_385, %c0_386] : memref<1x72x8xf32, #tpu.memory_space<vmem>>, vector<1x32x8xf32>
    %441 = vector.shape_cast %440 : vector<1x32x8xf32> to vector<32x8xf32>
    %442 = arith.truncf %441 : vector<32x8xf32> to vector<32x8xbf16>
    %c7_387 = arith.constant 7 : index
    %c0_388 = arith.constant 0 : index
    %c0_389 = arith.constant 0 : index
    %443 = vector.load %arg8[%c7_387, %c0_388, %c0_389] : memref<25x8x8xbf16, #tpu.memory_space<vmem>>, vector<1x8x8xbf16>
    %444 = vector.shape_cast %443 : vector<1x8x8xbf16> to vector<8x8xbf16>
    %cst_390 = arith.constant dense<0.000000e+00> : vector<32x8xf32>
    %445 = tpu.matmul %442, %444, %cst_390 {dimension_numbers = #tpu.dot_dimension_numbers<[1], [0], [0], [1], [0, 0, 1, 1], [], []>} : vector<32x8xbf16>, vector<8x8xbf16>, vector<32x8xf32> -> vector<32x8xf32>
    %446 = arith.addf %439, %445 : vector<32x8xf32>
    %c0_391 = arith.constant 0 : index
    %c11_392 = arith.constant 11 : index
    %c0_393 = arith.constant 0 : index
    %447 = vector.load %arg12[%c0_391, %c11_392, %c0_393] : memref<1x72x8xf32, #tpu.memory_space<vmem>>, vector<1x32x8xf32>
    %448 = vector.shape_cast %447 : vector<1x32x8xf32> to vector<32x8xf32>
    %449 = arith.truncf %448 : vector<32x8xf32> to vector<32x8xbf16>
    %c8_394 = arith.constant 8 : index
    %c0_395 = arith.constant 0 : index
    %c0_396 = arith.constant 0 : index
    %450 = vector.load %arg8[%c8_394, %c0_395, %c0_396] : memref<25x8x8xbf16, #tpu.memory_space<vmem>>, vector<1x8x8xbf16>
    %451 = vector.shape_cast %450 : vector<1x8x8xbf16> to vector<8x8xbf16>
    %cst_397 = arith.constant dense<0.000000e+00> : vector<32x8xf32>
    %452 = tpu.matmul %449, %451, %cst_397 {dimension_numbers = #tpu.dot_dimension_numbers<[1], [0], [0], [1], [0, 0, 1, 1], [], []>} : vector<32x8xbf16>, vector<8x8xbf16>, vector<32x8xf32> -> vector<32x8xf32>
    %453 = arith.addf %446, %452 : vector<32x8xf32>
    %c0_398 = arith.constant 0 : index
    %c12_399 = arith.constant 12 : index
    %c0_400 = arith.constant 0 : index
    %454 = vector.load %arg12[%c0_398, %c12_399, %c0_400] : memref<1x72x8xf32, #tpu.memory_space<vmem>>, vector<1x32x8xf32>
    %455 = vector.shape_cast %454 : vector<1x32x8xf32> to vector<32x8xf32>
    %456 = arith.truncf %455 : vector<32x8xf32> to vector<32x8xbf16>
    %c9_401 = arith.constant 9 : index
    %c0_402 = arith.constant 0 : index
    %c0_403 = arith.constant 0 : index
    %457 = vector.load %arg8[%c9_401, %c0_402, %c0_403] : memref<25x8x8xbf16, #tpu.memory_space<vmem>>, vector<1x8x8xbf16>
    %458 = vector.shape_cast %457 : vector<1x8x8xbf16> to vector<8x8xbf16>
    %cst_404 = arith.constant dense<0.000000e+00> : vector<32x8xf32>
    %459 = tpu.matmul %456, %458, %cst_404 {dimension_numbers = #tpu.dot_dimension_numbers<[1], [0], [0], [1], [0, 0, 1, 1], [], []>} : vector<32x8xbf16>, vector<8x8xbf16>, vector<32x8xf32> -> vector<32x8xf32>
    %460 = arith.addf %453, %459 : vector<32x8xf32>
    %c0_405 = arith.constant 0 : index
    %c16_406 = arith.constant 16 : index
    %c0_407 = arith.constant 0 : index
    %461 = vector.load %arg12[%c0_405, %c16_406, %c0_407] : memref<1x72x8xf32, #tpu.memory_space<vmem>>, vector<1x32x8xf32>
    %462 = vector.shape_cast %461 : vector<1x32x8xf32> to vector<32x8xf32>
    %463 = arith.truncf %462 : vector<32x8xf32> to vector<32x8xbf16>
    %c10_408 = arith.constant 10 : index
    %c0_409 = arith.constant 0 : index
    %c0_410 = arith.constant 0 : index
    %464 = vector.load %arg8[%c10_408, %c0_409, %c0_410] : memref<25x8x8xbf16, #tpu.memory_space<vmem>>, vector<1x8x8xbf16>
    %465 = vector.shape_cast %464 : vector<1x8x8xbf16> to vector<8x8xbf16>
    %cst_411 = arith.constant dense<0.000000e+00> : vector<32x8xf32>
    %466 = tpu.matmul %463, %465, %cst_411 {dimension_numbers = #tpu.dot_dimension_numbers<[1], [0], [0], [1], [0, 0, 1, 1], [], []>} : vector<32x8xbf16>, vector<8x8xbf16>, vector<32x8xf32> -> vector<32x8xf32>
    %467 = arith.addf %460, %466 : vector<32x8xf32>
    %c0_412 = arith.constant 0 : index
    %c17_413 = arith.constant 17 : index
    %c0_414 = arith.constant 0 : index
    %468 = vector.load %arg12[%c0_412, %c17_413, %c0_414] : memref<1x72x8xf32, #tpu.memory_space<vmem>>, vector<1x32x8xf32>
    %469 = vector.shape_cast %468 : vector<1x32x8xf32> to vector<32x8xf32>
    %470 = arith.truncf %469 : vector<32x8xf32> to vector<32x8xbf16>
    %c11_415 = arith.constant 11 : index
    %c0_416 = arith.constant 0 : index
    %c0_417 = arith.constant 0 : index
    %471 = vector.load %arg8[%c11_415, %c0_416, %c0_417] : memref<25x8x8xbf16, #tpu.memory_space<vmem>>, vector<1x8x8xbf16>
    %472 = vector.shape_cast %471 : vector<1x8x8xbf16> to vector<8x8xbf16>
    %cst_418 = arith.constant dense<0.000000e+00> : vector<32x8xf32>
    %473 = tpu.matmul %470, %472, %cst_418 {dimension_numbers = #tpu.dot_dimension_numbers<[1], [0], [0], [1], [0, 0, 1, 1], [], []>} : vector<32x8xbf16>, vector<8x8xbf16>, vector<32x8xf32> -> vector<32x8xf32>
    %474 = arith.addf %467, %473 : vector<32x8xf32>
    %c0_419 = arith.constant 0 : index
    %c18_420 = arith.constant 18 : index
    %c0_421 = arith.constant 0 : index
    %475 = vector.load %arg12[%c0_419, %c18_420, %c0_421] : memref<1x72x8xf32, #tpu.memory_space<vmem>>, vector<1x32x8xf32>
    %476 = vector.shape_cast %475 : vector<1x32x8xf32> to vector<32x8xf32>
    %477 = arith.truncf %476 : vector<32x8xf32> to vector<32x8xbf16>
    %c12_422 = arith.constant 12 : index
    %c0_423 = arith.constant 0 : index
    %c0_424 = arith.constant 0 : index
    %478 = vector.load %arg8[%c12_422, %c0_423, %c0_424] : memref<25x8x8xbf16, #tpu.memory_space<vmem>>, vector<1x8x8xbf16>
    %479 = vector.shape_cast %478 : vector<1x8x8xbf16> to vector<8x8xbf16>
    %cst_425 = arith.constant dense<0.000000e+00> : vector<32x8xf32>
    %480 = tpu.matmul %477, %479, %cst_425 {dimension_numbers = #tpu.dot_dimension_numbers<[1], [0], [0], [1], [0, 0, 1, 1], [], []>} : vector<32x8xbf16>, vector<8x8xbf16>, vector<32x8xf32> -> vector<32x8xf32>
    %481 = arith.addf %474, %480 : vector<32x8xf32>
    %c0_426 = arith.constant 0 : index
    %c19_427 = arith.constant 19 : index
    %c0_428 = arith.constant 0 : index
    %482 = vector.load %arg12[%c0_426, %c19_427, %c0_428] : memref<1x72x8xf32, #tpu.memory_space<vmem>>, vector<1x32x8xf32>
    %483 = vector.shape_cast %482 : vector<1x32x8xf32> to vector<32x8xf32>
    %484 = arith.truncf %483 : vector<32x8xf32> to vector<32x8xbf16>
    %c13_429 = arith.constant 13 : index
    %c0_430 = arith.constant 0 : index
    %c0_431 = arith.constant 0 : index
    %485 = vector.load %arg8[%c13_429, %c0_430, %c0_431] : memref<25x8x8xbf16, #tpu.memory_space<vmem>>, vector<1x8x8xbf16>
    %486 = vector.shape_cast %485 : vector<1x8x8xbf16> to vector<8x8xbf16>
    %cst_432 = arith.constant dense<0.000000e+00> : vector<32x8xf32>
    %487 = tpu.matmul %484, %486, %cst_432 {dimension_numbers = #tpu.dot_dimension_numbers<[1], [0], [0], [1], [0, 0, 1, 1], [], []>} : vector<32x8xbf16>, vector<8x8xbf16>, vector<32x8xf32> -> vector<32x8xf32>
    %488 = arith.addf %481, %487 : vector<32x8xf32>
    %c0_433 = arith.constant 0 : index
    %c20_434 = arith.constant 20 : index
    %c0_435 = arith.constant 0 : index
    %489 = vector.load %arg12[%c0_433, %c20_434, %c0_435] : memref<1x72x8xf32, #tpu.memory_space<vmem>>, vector<1x32x8xf32>
    %490 = vector.shape_cast %489 : vector<1x32x8xf32> to vector<32x8xf32>
    %491 = arith.truncf %490 : vector<32x8xf32> to vector<32x8xbf16>
    %c14_436 = arith.constant 14 : index
    %c0_437 = arith.constant 0 : index
    %c0_438 = arith.constant 0 : index
    %492 = vector.load %arg8[%c14_436, %c0_437, %c0_438] : memref<25x8x8xbf16, #tpu.memory_space<vmem>>, vector<1x8x8xbf16>
    %493 = vector.shape_cast %492 : vector<1x8x8xbf16> to vector<8x8xbf16>
    %cst_439 = arith.constant dense<0.000000e+00> : vector<32x8xf32>
    %494 = tpu.matmul %491, %493, %cst_439 {dimension_numbers = #tpu.dot_dimension_numbers<[1], [0], [0], [1], [0, 0, 1, 1], [], []>} : vector<32x8xbf16>, vector<8x8xbf16>, vector<32x8xf32> -> vector<32x8xf32>
    %495 = arith.addf %488, %494 : vector<32x8xf32>
    %c0_440 = arith.constant 0 : index
    %c24_441 = arith.constant 24 : index
    %c0_442 = arith.constant 0 : index
    %496 = vector.load %arg12[%c0_440, %c24_441, %c0_442] : memref<1x72x8xf32, #tpu.memory_space<vmem>>, vector<1x32x8xf32>
    %497 = vector.shape_cast %496 : vector<1x32x8xf32> to vector<32x8xf32>
    %498 = arith.truncf %497 : vector<32x8xf32> to vector<32x8xbf16>
    %c15_443 = arith.constant 15 : index
    %c0_444 = arith.constant 0 : index
    %c0_445 = arith.constant 0 : index
    %499 = vector.load %arg8[%c15_443, %c0_444, %c0_445] : memref<25x8x8xbf16, #tpu.memory_space<vmem>>, vector<1x8x8xbf16>
    %500 = vector.shape_cast %499 : vector<1x8x8xbf16> to vector<8x8xbf16>
    %cst_446 = arith.constant dense<0.000000e+00> : vector<32x8xf32>
    %501 = tpu.matmul %498, %500, %cst_446 {dimension_numbers = #tpu.dot_dimension_numbers<[1], [0], [0], [1], [0, 0, 1, 1], [], []>} : vector<32x8xbf16>, vector<8x8xbf16>, vector<32x8xf32> -> vector<32x8xf32>
    %502 = arith.addf %495, %501 : vector<32x8xf32>
    %c0_447 = arith.constant 0 : index
    %c25_448 = arith.constant 25 : index
    %c0_449 = arith.constant 0 : index
    %503 = vector.load %arg12[%c0_447, %c25_448, %c0_449] : memref<1x72x8xf32, #tpu.memory_space<vmem>>, vector<1x32x8xf32>
    %504 = vector.shape_cast %503 : vector<1x32x8xf32> to vector<32x8xf32>
    %505 = arith.truncf %504 : vector<32x8xf32> to vector<32x8xbf16>
    %c16_450 = arith.constant 16 : index
    %c0_451 = arith.constant 0 : index
    %c0_452 = arith.constant 0 : index
    %506 = vector.load %arg8[%c16_450, %c0_451, %c0_452] : memref<25x8x8xbf16, #tpu.memory_space<vmem>>, vector<1x8x8xbf16>
    %507 = vector.shape_cast %506 : vector<1x8x8xbf16> to vector<8x8xbf16>
    %cst_453 = arith.constant dense<0.000000e+00> : vector<32x8xf32>
    %508 = tpu.matmul %505, %507, %cst_453 {dimension_numbers = #tpu.dot_dimension_numbers<[1], [0], [0], [1], [0, 0, 1, 1], [], []>} : vector<32x8xbf16>, vector<8x8xbf16>, vector<32x8xf32> -> vector<32x8xf32>
    %509 = arith.addf %502, %508 : vector<32x8xf32>
    %c0_454 = arith.constant 0 : index
    %c26_455 = arith.constant 26 : index
    %c0_456 = arith.constant 0 : index
    %510 = vector.load %arg12[%c0_454, %c26_455, %c0_456] : memref<1x72x8xf32, #tpu.memory_space<vmem>>, vector<1x32x8xf32>
    %511 = vector.shape_cast %510 : vector<1x32x8xf32> to vector<32x8xf32>
    %512 = arith.truncf %511 : vector<32x8xf32> to vector<32x8xbf16>
    %c17_457 = arith.constant 17 : index
    %c0_458 = arith.constant 0 : index
    %c0_459 = arith.constant 0 : index
    %513 = vector.load %arg8[%c17_457, %c0_458, %c0_459] : memref<25x8x8xbf16, #tpu.memory_space<vmem>>, vector<1x8x8xbf16>
    %514 = vector.shape_cast %513 : vector<1x8x8xbf16> to vector<8x8xbf16>
    %cst_460 = arith.constant dense<0.000000e+00> : vector<32x8xf32>
    %515 = tpu.matmul %512, %514, %cst_460 {dimension_numbers = #tpu.dot_dimension_numbers<[1], [0], [0], [1], [0, 0, 1, 1], [], []>} : vector<32x8xbf16>, vector<8x8xbf16>, vector<32x8xf32> -> vector<32x8xf32>
    %516 = arith.addf %509, %515 : vector<32x8xf32>
    %c0_461 = arith.constant 0 : index
    %c27_462 = arith.constant 27 : index
    %c0_463 = arith.constant 0 : index
    %517 = vector.load %arg12[%c0_461, %c27_462, %c0_463] : memref<1x72x8xf32, #tpu.memory_space<vmem>>, vector<1x32x8xf32>
    %518 = vector.shape_cast %517 : vector<1x32x8xf32> to vector<32x8xf32>
    %519 = arith.truncf %518 : vector<32x8xf32> to vector<32x8xbf16>
    %c18_464 = arith.constant 18 : index
    %c0_465 = arith.constant 0 : index
    %c0_466 = arith.constant 0 : index
    %520 = vector.load %arg8[%c18_464, %c0_465, %c0_466] : memref<25x8x8xbf16, #tpu.memory_space<vmem>>, vector<1x8x8xbf16>
    %521 = vector.shape_cast %520 : vector<1x8x8xbf16> to vector<8x8xbf16>
    %cst_467 = arith.constant dense<0.000000e+00> : vector<32x8xf32>
    %522 = tpu.matmul %519, %521, %cst_467 {dimension_numbers = #tpu.dot_dimension_numbers<[1], [0], [0], [1], [0, 0, 1, 1], [], []>} : vector<32x8xbf16>, vector<8x8xbf16>, vector<32x8xf32> -> vector<32x8xf32>
    %523 = arith.addf %516, %522 : vector<32x8xf32>
    %c0_468 = arith.constant 0 : index
    %c28_469 = arith.constant 28 : index
    %c0_470 = arith.constant 0 : index
    %524 = vector.load %arg12[%c0_468, %c28_469, %c0_470] : memref<1x72x8xf32, #tpu.memory_space<vmem>>, vector<1x32x8xf32>
    %525 = vector.shape_cast %524 : vector<1x32x8xf32> to vector<32x8xf32>
    %526 = arith.truncf %525 : vector<32x8xf32> to vector<32x8xbf16>
    %c19_471 = arith.constant 19 : index
    %c0_472 = arith.constant 0 : index
    %c0_473 = arith.constant 0 : index
    %527 = vector.load %arg8[%c19_471, %c0_472, %c0_473] : memref<25x8x8xbf16, #tpu.memory_space<vmem>>, vector<1x8x8xbf16>
    %528 = vector.shape_cast %527 : vector<1x8x8xbf16> to vector<8x8xbf16>
    %cst_474 = arith.constant dense<0.000000e+00> : vector<32x8xf32>
    %529 = tpu.matmul %526, %528, %cst_474 {dimension_numbers = #tpu.dot_dimension_numbers<[1], [0], [0], [1], [0, 0, 1, 1], [], []>} : vector<32x8xbf16>, vector<8x8xbf16>, vector<32x8xf32> -> vector<32x8xf32>
    %530 = arith.addf %523, %529 : vector<32x8xf32>
    %c0_475 = arith.constant 0 : index
    %c32_476 = arith.constant 32 : index
    %c0_477 = arith.constant 0 : index
    %531 = vector.load %arg12[%c0_475, %c32_476, %c0_477] : memref<1x72x8xf32, #tpu.memory_space<vmem>>, vector<1x32x8xf32>
    %532 = vector.shape_cast %531 : vector<1x32x8xf32> to vector<32x8xf32>
    %533 = arith.truncf %532 : vector<32x8xf32> to vector<32x8xbf16>
    %c20_478 = arith.constant 20 : index
    %c0_479 = arith.constant 0 : index
    %c0_480 = arith.constant 0 : index
    %534 = vector.load %arg8[%c20_478, %c0_479, %c0_480] : memref<25x8x8xbf16, #tpu.memory_space<vmem>>, vector<1x8x8xbf16>
    %535 = vector.shape_cast %534 : vector<1x8x8xbf16> to vector<8x8xbf16>
    %cst_481 = arith.constant dense<0.000000e+00> : vector<32x8xf32>
    %536 = tpu.matmul %533, %535, %cst_481 {dimension_numbers = #tpu.dot_dimension_numbers<[1], [0], [0], [1], [0, 0, 1, 1], [], []>} : vector<32x8xbf16>, vector<8x8xbf16>, vector<32x8xf32> -> vector<32x8xf32>
    %537 = arith.addf %530, %536 : vector<32x8xf32>
    %c0_482 = arith.constant 0 : index
    %c33_483 = arith.constant 33 : index
    %c0_484 = arith.constant 0 : index
    %538 = vector.load %arg12[%c0_482, %c33_483, %c0_484] : memref<1x72x8xf32, #tpu.memory_space<vmem>>, vector<1x32x8xf32>
    %539 = vector.shape_cast %538 : vector<1x32x8xf32> to vector<32x8xf32>
    %540 = arith.truncf %539 : vector<32x8xf32> to vector<32x8xbf16>
    %c21_485 = arith.constant 21 : index
    %c0_486 = arith.constant 0 : index
    %c0_487 = arith.constant 0 : index
    %541 = vector.load %arg8[%c21_485, %c0_486, %c0_487] : memref<25x8x8xbf16, #tpu.memory_space<vmem>>, vector<1x8x8xbf16>
    %542 = vector.shape_cast %541 : vector<1x8x8xbf16> to vector<8x8xbf16>
    %cst_488 = arith.constant dense<0.000000e+00> : vector<32x8xf32>
    %543 = tpu.matmul %540, %542, %cst_488 {dimension_numbers = #tpu.dot_dimension_numbers<[1], [0], [0], [1], [0, 0, 1, 1], [], []>} : vector<32x8xbf16>, vector<8x8xbf16>, vector<32x8xf32> -> vector<32x8xf32>
    %544 = arith.addf %537, %543 : vector<32x8xf32>
    %c0_489 = arith.constant 0 : index
    %c34_490 = arith.constant 34 : index
    %c0_491 = arith.constant 0 : index
    %545 = vector.load %arg12[%c0_489, %c34_490, %c0_491] : memref<1x72x8xf32, #tpu.memory_space<vmem>>, vector<1x32x8xf32>
    %546 = vector.shape_cast %545 : vector<1x32x8xf32> to vector<32x8xf32>
    %547 = arith.truncf %546 : vector<32x8xf32> to vector<32x8xbf16>
    %c22_492 = arith.constant 22 : index
    %c0_493 = arith.constant 0 : index
    %c0_494 = arith.constant 0 : index
    %548 = vector.load %arg8[%c22_492, %c0_493, %c0_494] : memref<25x8x8xbf16, #tpu.memory_space<vmem>>, vector<1x8x8xbf16>
    %549 = vector.shape_cast %548 : vector<1x8x8xbf16> to vector<8x8xbf16>
    %cst_495 = arith.constant dense<0.000000e+00> : vector<32x8xf32>
    %550 = tpu.matmul %547, %549, %cst_495 {dimension_numbers = #tpu.dot_dimension_numbers<[1], [0], [0], [1], [0, 0, 1, 1], [], []>} : vector<32x8xbf16>, vector<8x8xbf16>, vector<32x8xf32> -> vector<32x8xf32>
    %551 = arith.addf %544, %550 : vector<32x8xf32>
    %c0_496 = arith.constant 0 : index
    %c35_497 = arith.constant 35 : index
    %c0_498 = arith.constant 0 : index
    %552 = vector.load %arg12[%c0_496, %c35_497, %c0_498] : memref<1x72x8xf32, #tpu.memory_space<vmem>>, vector<1x32x8xf32>
    %553 = vector.shape_cast %552 : vector<1x32x8xf32> to vector<32x8xf32>
    %554 = arith.truncf %553 : vector<32x8xf32> to vector<32x8xbf16>
    %c23_499 = arith.constant 23 : index
    %c0_500 = arith.constant 0 : index
    %c0_501 = arith.constant 0 : index
    %555 = vector.load %arg8[%c23_499, %c0_500, %c0_501] : memref<25x8x8xbf16, #tpu.memory_space<vmem>>, vector<1x8x8xbf16>
    %556 = vector.shape_cast %555 : vector<1x8x8xbf16> to vector<8x8xbf16>
    %cst_502 = arith.constant dense<0.000000e+00> : vector<32x8xf32>
    %557 = tpu.matmul %554, %556, %cst_502 {dimension_numbers = #tpu.dot_dimension_numbers<[1], [0], [0], [1], [0, 0, 1, 1], [], []>} : vector<32x8xbf16>, vector<8x8xbf16>, vector<32x8xf32> -> vector<32x8xf32>
    %558 = arith.addf %551, %557 : vector<32x8xf32>
    %c0_503 = arith.constant 0 : index
    %c36_504 = arith.constant 36 : index
    %c0_505 = arith.constant 0 : index
    %559 = vector.load %arg12[%c0_503, %c36_504, %c0_505] : memref<1x72x8xf32, #tpu.memory_space<vmem>>, vector<1x32x8xf32>
    %560 = vector.shape_cast %559 : vector<1x32x8xf32> to vector<32x8xf32>
    %561 = arith.truncf %560 : vector<32x8xf32> to vector<32x8xbf16>
    %c24_506 = arith.constant 24 : index
    %c0_507 = arith.constant 0 : index
    %c0_508 = arith.constant 0 : index
    %562 = vector.load %arg8[%c24_506, %c0_507, %c0_508] : memref<25x8x8xbf16, #tpu.memory_space<vmem>>, vector<1x8x8xbf16>
    %563 = vector.shape_cast %562 : vector<1x8x8xbf16> to vector<8x8xbf16>
    %cst_509 = arith.constant dense<0.000000e+00> : vector<32x8xf32>
    %564 = tpu.matmul %561, %563, %cst_509 {dimension_numbers = #tpu.dot_dimension_numbers<[1], [0], [0], [1], [0, 0, 1, 1], [], []>} : vector<32x8xbf16>, vector<8x8xbf16>, vector<32x8xf32> -> vector<32x8xf32>
    %565 = arith.addf %558, %564 : vector<32x8xf32>
    %c0_510 = arith.constant 0 : index
    %c0_511 = arith.constant 0 : index
    %566 = vector.load %arg9[%c0_510, %c0_511] : memref<1x8xf32, #tpu.memory_space<vmem>>, vector<1x8xf32>
    %567 = vector.broadcast %566 : vector<1x8xf32> to vector<32x8xf32>
    %568 = arith.addf %565, %567 : vector<32x8xf32>
    %cst_512 = arith.constant 0.000000e+00 : f32
    %569 = vector.broadcast %cst_512 : f32 to vector<32x8xf32>
    %570 = arith.maximumf %568, %569 : vector<32x8xf32>
    %571 = vector.broadcast %0 : vector<32x1xf32> to vector<32x8xf32>
    %572 = arith.mulf %570, %571 : vector<32x8xf32>
    %cst_513 = arith.constant 0.000000e+00 : f32
    %573 = vector.broadcast %cst_513 : f32 to vector<56x8xf32>
    %c0_514 = arith.constant 0 : index
    %c0_515 = arith.constant 0 : index
    %574 = vector.load %arg15[%c0_514, %c0_515] : memref<56x8xf32, #tpu.memory_space<vmem>>, vector<56x8xf32>
    tpu.vector_store %arg15[%c0_514, %c0_515], %573 {strides = array<i32>} : memref<56x8xf32, #tpu.memory_space<vmem>>, vector<56x8xf32>,
    %c9_516 = arith.constant 9 : index
    %c0_517 = arith.constant 0 : index
    %575 = vector.load %arg15[%c9_516, %c0_517] : memref<56x8xf32, #tpu.memory_space<vmem>>, vector<32x8xf32>
    tpu.vector_store %arg15[%c9_516, %c0_517], %572 {strides = array<i32>} : memref<56x8xf32, #tpu.memory_space<vmem>>, vector<32x8xf32>,
    %c0_518 = arith.constant 0 : index
    %c0_519 = arith.constant 0 : index
    %576 = vector.load %arg15[%c0_518, %c0_519] : memref<56x8xf32, #tpu.memory_space<vmem>>, vector<32x8xf32>
    %577 = arith.truncf %576 : vector<32x8xf32> to vector<32x8xbf16>
    %c0_520 = arith.constant 0 : index
    %c0_521 = arith.constant 0 : index
    %c0_522 = arith.constant 0 : index
    %578 = vector.load %arg10[%c0_520, %c0_521, %c0_522] : memref<16x8x16xbf16, #tpu.memory_space<vmem>>, vector<1x8x16xbf16>
    %579 = vector.shape_cast %578 : vector<1x8x16xbf16> to vector<8x16xbf16>
    %cst_523 = arith.constant dense<0.000000e+00> : vector<32x16xf32>
    %580 = tpu.matmul %577, %579, %cst_523 {dimension_numbers = #tpu.dot_dimension_numbers<[1], [0], [0], [1], [0, 0, 1, 1], [], []>} : vector<32x8xbf16>, vector<8x16xbf16>, vector<32x16xf32> -> vector<32x16xf32>
    %c1_524 = arith.constant 1 : index
    %c0_525 = arith.constant 0 : index
    %581 = vector.load %arg15[%c1_524, %c0_525] : memref<56x8xf32, #tpu.memory_space<vmem>>, vector<32x8xf32>
    %582 = arith.truncf %581 : vector<32x8xf32> to vector<32x8xbf16>
    %c1_526 = arith.constant 1 : index
    %c0_527 = arith.constant 0 : index
    %c0_528 = arith.constant 0 : index
    %583 = vector.load %arg10[%c1_526, %c0_527, %c0_528] : memref<16x8x16xbf16, #tpu.memory_space<vmem>>, vector<1x8x16xbf16>
    %584 = vector.shape_cast %583 : vector<1x8x16xbf16> to vector<8x16xbf16>
    %cst_529 = arith.constant dense<0.000000e+00> : vector<32x16xf32>
    %585 = tpu.matmul %582, %584, %cst_529 {dimension_numbers = #tpu.dot_dimension_numbers<[1], [0], [0], [1], [0, 0, 1, 1], [], []>} : vector<32x8xbf16>, vector<8x16xbf16>, vector<32x16xf32> -> vector<32x16xf32>
    %586 = arith.addf %580, %585 : vector<32x16xf32>
    %c8_530 = arith.constant 8 : index
    %c0_531 = arith.constant 0 : index
    %587 = vector.load %arg15[%c8_530, %c0_531] : memref<56x8xf32, #tpu.memory_space<vmem>>, vector<32x8xf32>
    %588 = arith.truncf %587 : vector<32x8xf32> to vector<32x8xbf16>
    %c2_532 = arith.constant 2 : index
    %c0_533 = arith.constant 0 : index
    %c0_534 = arith.constant 0 : index
    %589 = vector.load %arg10[%c2_532, %c0_533, %c0_534] : memref<16x8x16xbf16, #tpu.memory_space<vmem>>, vector<1x8x16xbf16>
    %590 = vector.shape_cast %589 : vector<1x8x16xbf16> to vector<8x16xbf16>
    %cst_535 = arith.constant dense<0.000000e+00> : vector<32x16xf32>
    %591 = tpu.matmul %588, %590, %cst_535 {dimension_numbers = #tpu.dot_dimension_numbers<[1], [0], [0], [1], [0, 0, 1, 1], [], []>} : vector<32x8xbf16>, vector<8x16xbf16>, vector<32x16xf32> -> vector<32x16xf32>
    %592 = arith.addf %586, %591 : vector<32x16xf32>
    %c9_536 = arith.constant 9 : index
    %c0_537 = arith.constant 0 : index
    %593 = vector.load %arg15[%c9_536, %c0_537] : memref<56x8xf32, #tpu.memory_space<vmem>>, vector<32x8xf32>
    %594 = arith.truncf %593 : vector<32x8xf32> to vector<32x8xbf16>
    %c3_538 = arith.constant 3 : index
    %c0_539 = arith.constant 0 : index
    %c0_540 = arith.constant 0 : index
    %595 = vector.load %arg10[%c3_538, %c0_539, %c0_540] : memref<16x8x16xbf16, #tpu.memory_space<vmem>>, vector<1x8x16xbf16>
    %596 = vector.shape_cast %595 : vector<1x8x16xbf16> to vector<8x16xbf16>
    %cst_541 = arith.constant dense<0.000000e+00> : vector<32x16xf32>
    %597 = tpu.matmul %594, %596, %cst_541 {dimension_numbers = #tpu.dot_dimension_numbers<[1], [0], [0], [1], [0, 0, 1, 1], [], []>} : vector<32x8xbf16>, vector<8x16xbf16>, vector<32x16xf32> -> vector<32x16xf32>
    %598 = arith.addf %592, %597 : vector<32x16xf32>
    %c1_542 = arith.constant 1 : index
    %c0_543 = arith.constant 0 : index
    %599 = vector.load %arg15[%c1_542, %c0_543] : memref<56x8xf32, #tpu.memory_space<vmem>>, vector<32x8xf32>
    %600 = arith.truncf %599 : vector<32x8xf32> to vector<32x8xbf16>
    %c4_544 = arith.constant 4 : index
    %c0_545 = arith.constant 0 : index
    %c0_546 = arith.constant 0 : index
    %601 = vector.load %arg10[%c4_544, %c0_545, %c0_546] : memref<16x8x16xbf16, #tpu.memory_space<vmem>>, vector<1x8x16xbf16>
    %602 = vector.shape_cast %601 : vector<1x8x16xbf16> to vector<8x16xbf16>
    %cst_547 = arith.constant dense<0.000000e+00> : vector<32x16xf32>
    %603 = tpu.matmul %600, %602, %cst_547 {dimension_numbers = #tpu.dot_dimension_numbers<[1], [0], [0], [1], [0, 0, 1, 1], [], []>} : vector<32x8xbf16>, vector<8x16xbf16>, vector<32x16xf32> -> vector<32x16xf32>
    %c2_548 = arith.constant 2 : index
    %c0_549 = arith.constant 0 : index
    %604 = vector.load %arg15[%c2_548, %c0_549] : memref<56x8xf32, #tpu.memory_space<vmem>>, vector<32x8xf32>
    %605 = arith.truncf %604 : vector<32x8xf32> to vector<32x8xbf16>
    %c5_550 = arith.constant 5 : index
    %c0_551 = arith.constant 0 : index
    %c0_552 = arith.constant 0 : index
    %606 = vector.load %arg10[%c5_550, %c0_551, %c0_552] : memref<16x8x16xbf16, #tpu.memory_space<vmem>>, vector<1x8x16xbf16>
    %607 = vector.shape_cast %606 : vector<1x8x16xbf16> to vector<8x16xbf16>
    %cst_553 = arith.constant dense<0.000000e+00> : vector<32x16xf32>
    %608 = tpu.matmul %605, %607, %cst_553 {dimension_numbers = #tpu.dot_dimension_numbers<[1], [0], [0], [1], [0, 0, 1, 1], [], []>} : vector<32x8xbf16>, vector<8x16xbf16>, vector<32x16xf32> -> vector<32x16xf32>
    %609 = arith.addf %603, %608 : vector<32x16xf32>
    %c9_554 = arith.constant 9 : index
    %c0_555 = arith.constant 0 : index
    %610 = vector.load %arg15[%c9_554, %c0_555] : memref<56x8xf32, #tpu.memory_space<vmem>>, vector<32x8xf32>
    %611 = arith.truncf %610 : vector<32x8xf32> to vector<32x8xbf16>
    %c6_556 = arith.constant 6 : index
    %c0_557 = arith.constant 0 : index
    %c0_558 = arith.constant 0 : index
    %612 = vector.load %arg10[%c6_556, %c0_557, %c0_558] : memref<16x8x16xbf16, #tpu.memory_space<vmem>>, vector<1x8x16xbf16>
    %613 = vector.shape_cast %612 : vector<1x8x16xbf16> to vector<8x16xbf16>
    %cst_559 = arith.constant dense<0.000000e+00> : vector<32x16xf32>
    %614 = tpu.matmul %611, %613, %cst_559 {dimension_numbers = #tpu.dot_dimension_numbers<[1], [0], [0], [1], [0, 0, 1, 1], [], []>} : vector<32x8xbf16>, vector<8x16xbf16>, vector<32x16xf32> -> vector<32x16xf32>
    %615 = arith.addf %609, %614 : vector<32x16xf32>
    %c10_560 = arith.constant 10 : index
    %c0_561 = arith.constant 0 : index
    %616 = vector.load %arg15[%c10_560, %c0_561] : memref<56x8xf32, #tpu.memory_space<vmem>>, vector<32x8xf32>
    %617 = arith.truncf %616 : vector<32x8xf32> to vector<32x8xbf16>
    %c7_562 = arith.constant 7 : index
    %c0_563 = arith.constant 0 : index
    %c0_564 = arith.constant 0 : index
    %618 = vector.load %arg10[%c7_562, %c0_563, %c0_564] : memref<16x8x16xbf16, #tpu.memory_space<vmem>>, vector<1x8x16xbf16>
    %619 = vector.shape_cast %618 : vector<1x8x16xbf16> to vector<8x16xbf16>
    %cst_565 = arith.constant dense<0.000000e+00> : vector<32x16xf32>
    %620 = tpu.matmul %617, %619, %cst_565 {dimension_numbers = #tpu.dot_dimension_numbers<[1], [0], [0], [1], [0, 0, 1, 1], [], []>} : vector<32x8xbf16>, vector<8x16xbf16>, vector<32x16xf32> -> vector<32x16xf32>
    %621 = arith.addf %615, %620 : vector<32x16xf32>
    %c8_566 = arith.constant 8 : index
    %c0_567 = arith.constant 0 : index
    %622 = vector.load %arg15[%c8_566, %c0_567] : memref<56x8xf32, #tpu.memory_space<vmem>>, vector<32x8xf32>
    %623 = arith.truncf %622 : vector<32x8xf32> to vector<32x8xbf16>
    %c8_568 = arith.constant 8 : index
    %c0_569 = arith.constant 0 : index
    %c0_570 = arith.constant 0 : index
    %624 = vector.load %arg10[%c8_568, %c0_569, %c0_570] : memref<16x8x16xbf16, #tpu.memory_space<vmem>>, vector<1x8x16xbf16>
    %625 = vector.shape_cast %624 : vector<1x8x16xbf16> to vector<8x16xbf16>
    %cst_571 = arith.constant dense<0.000000e+00> : vector<32x16xf32>
    %626 = tpu.matmul %623, %625, %cst_571 {dimension_numbers = #tpu.dot_dimension_numbers<[1], [0], [0], [1], [0, 0, 1, 1], [], []>} : vector<32x8xbf16>, vector<8x16xbf16>, vector<32x16xf32> -> vector<32x16xf32>
    %c9_572 = arith.constant 9 : index
    %c0_573 = arith.constant 0 : index
    %627 = vector.load %arg15[%c9_572, %c0_573] : memref<56x8xf32, #tpu.memory_space<vmem>>, vector<32x8xf32>
    %628 = arith.truncf %627 : vector<32x8xf32> to vector<32x8xbf16>
    %c9_574 = arith.constant 9 : index
    %c0_575 = arith.constant 0 : index
    %c0_576 = arith.constant 0 : index
    %629 = vector.load %arg10[%c9_574, %c0_575, %c0_576] : memref<16x8x16xbf16, #tpu.memory_space<vmem>>, vector<1x8x16xbf16>
    %630 = vector.shape_cast %629 : vector<1x8x16xbf16> to vector<8x16xbf16>
    %cst_577 = arith.constant dense<0.000000e+00> : vector<32x16xf32>
    %631 = tpu.matmul %628, %630, %cst_577 {dimension_numbers = #tpu.dot_dimension_numbers<[1], [0], [0], [1], [0, 0, 1, 1], [], []>} : vector<32x8xbf16>, vector<8x16xbf16>, vector<32x16xf32> -> vector<32x16xf32>
    %632 = arith.addf %626, %631 : vector<32x16xf32>
    %c16_578 = arith.constant 16 : index
    %c0_579 = arith.constant 0 : index
    %633 = vector.load %arg15[%c16_578, %c0_579] : memref<56x8xf32, #tpu.memory_space<vmem>>, vector<32x8xf32>
    %634 = arith.truncf %633 : vector<32x8xf32> to vector<32x8xbf16>
    %c10_580 = arith.constant 10 : index
    %c0_581 = arith.constant 0 : index
    %c0_582 = arith.constant 0 : index
    %635 = vector.load %arg10[%c10_580, %c0_581, %c0_582] : memref<16x8x16xbf16, #tpu.memory_space<vmem>>, vector<1x8x16xbf16>
    %636 = vector.shape_cast %635 : vector<1x8x16xbf16> to vector<8x16xbf16>
    %cst_583 = arith.constant dense<0.000000e+00> : vector<32x16xf32>
    %637 = tpu.matmul %634, %636, %cst_583 {dimension_numbers = #tpu.dot_dimension_numbers<[1], [0], [0], [1], [0, 0, 1, 1], [], []>} : vector<32x8xbf16>, vector<8x16xbf16>, vector<32x16xf32> -> vector<32x16xf32>
    %638 = arith.addf %632, %637 : vector<32x16xf32>
    %c17_584 = arith.constant 17 : index
    %c0_585 = arith.constant 0 : index
    %639 = vector.load %arg15[%c17_584, %c0_585] : memref<56x8xf32, #tpu.memory_space<vmem>>, vector<32x8xf32>
    %640 = arith.truncf %639 : vector<32x8xf32> to vector<32x8xbf16>
    %c11_586 = arith.constant 11 : index
    %c0_587 = arith.constant 0 : index
    %c0_588 = arith.constant 0 : index
    %641 = vector.load %arg10[%c11_586, %c0_587, %c0_588] : memref<16x8x16xbf16, #tpu.memory_space<vmem>>, vector<1x8x16xbf16>
    %642 = vector.shape_cast %641 : vector<1x8x16xbf16> to vector<8x16xbf16>
    %cst_589 = arith.constant dense<0.000000e+00> : vector<32x16xf32>
    %643 = tpu.matmul %640, %642, %cst_589 {dimension_numbers = #tpu.dot_dimension_numbers<[1], [0], [0], [1], [0, 0, 1, 1], [], []>} : vector<32x8xbf16>, vector<8x16xbf16>, vector<32x16xf32> -> vector<32x16xf32>
    %644 = arith.addf %638, %643 : vector<32x16xf32>
    %c9_590 = arith.constant 9 : index
    %c0_591 = arith.constant 0 : index
    %645 = vector.load %arg15[%c9_590, %c0_591] : memref<56x8xf32, #tpu.memory_space<vmem>>, vector<32x8xf32>
    %646 = arith.truncf %645 : vector<32x8xf32> to vector<32x8xbf16>
    %c12_592 = arith.constant 12 : index
    %c0_593 = arith.constant 0 : index
    %c0_594 = arith.constant 0 : index
    %647 = vector.load %arg10[%c12_592, %c0_593, %c0_594] : memref<16x8x16xbf16, #tpu.memory_space<vmem>>, vector<1x8x16xbf16>
    %648 = vector.shape_cast %647 : vector<1x8x16xbf16> to vector<8x16xbf16>
    %cst_595 = arith.constant dense<0.000000e+00> : vector<32x16xf32>
    %649 = tpu.matmul %646, %648, %cst_595 {dimension_numbers = #tpu.dot_dimension_numbers<[1], [0], [0], [1], [0, 0, 1, 1], [], []>} : vector<32x8xbf16>, vector<8x16xbf16>, vector<32x16xf32> -> vector<32x16xf32>
    %c10_596 = arith.constant 10 : index
    %c0_597 = arith.constant 0 : index
    %650 = vector.load %arg15[%c10_596, %c0_597] : memref<56x8xf32, #tpu.memory_space<vmem>>, vector<32x8xf32>
    %651 = arith.truncf %650 : vector<32x8xf32> to vector<32x8xbf16>
    %c13_598 = arith.constant 13 : index
    %c0_599 = arith.constant 0 : index
    %c0_600 = arith.constant 0 : index
    %652 = vector.load %arg10[%c13_598, %c0_599, %c0_600] : memref<16x8x16xbf16, #tpu.memory_space<vmem>>, vector<1x8x16xbf16>
    %653 = vector.shape_cast %652 : vector<1x8x16xbf16> to vector<8x16xbf16>
    %cst_601 = arith.constant dense<0.000000e+00> : vector<32x16xf32>
    %654 = tpu.matmul %651, %653, %cst_601 {dimension_numbers = #tpu.dot_dimension_numbers<[1], [0], [0], [1], [0, 0, 1, 1], [], []>} : vector<32x8xbf16>, vector<8x16xbf16>, vector<32x16xf32> -> vector<32x16xf32>
    %655 = arith.addf %649, %654 : vector<32x16xf32>
    %c17_602 = arith.constant 17 : index
    %c0_603 = arith.constant 0 : index
    %656 = vector.load %arg15[%c17_602, %c0_603] : memref<56x8xf32, #tpu.memory_space<vmem>>, vector<32x8xf32>
    %657 = arith.truncf %656 : vector<32x8xf32> to vector<32x8xbf16>
    %c14_604 = arith.constant 14 : index
    %c0_605 = arith.constant 0 : index
    %c0_606 = arith.constant 0 : index
    %658 = vector.load %arg10[%c14_604, %c0_605, %c0_606] : memref<16x8x16xbf16, #tpu.memory_space<vmem>>, vector<1x8x16xbf16>
    %659 = vector.shape_cast %658 : vector<1x8x16xbf16> to vector<8x16xbf16>
    %cst_607 = arith.constant dense<0.000000e+00> : vector<32x16xf32>
    %660 = tpu.matmul %657, %659, %cst_607 {dimension_numbers = #tpu.dot_dimension_numbers<[1], [0], [0], [1], [0, 0, 1, 1], [], []>} : vector<32x8xbf16>, vector<8x16xbf16>, vector<32x16xf32> -> vector<32x16xf32>
    %661 = arith.addf %655, %660 : vector<32x16xf32>
    %c18_608 = arith.constant 18 : index
    %c0_609 = arith.constant 0 : index
    %662 = vector.load %arg15[%c18_608, %c0_609] : memref<56x8xf32, #tpu.memory_space<vmem>>, vector<32x8xf32>
    %663 = arith.truncf %662 : vector<32x8xf32> to vector<32x8xbf16>
    %c15_610 = arith.constant 15 : index
    %c0_611 = arith.constant 0 : index
    %c0_612 = arith.constant 0 : index
    %664 = vector.load %arg10[%c15_610, %c0_611, %c0_612] : memref<16x8x16xbf16, #tpu.memory_space<vmem>>, vector<1x8x16xbf16>
    %665 = vector.shape_cast %664 : vector<1x8x16xbf16> to vector<8x16xbf16>
    %cst_613 = arith.constant dense<0.000000e+00> : vector<32x16xf32>
    %666 = tpu.matmul %663, %665, %cst_613 {dimension_numbers = #tpu.dot_dimension_numbers<[1], [0], [0], [1], [0, 0, 1, 1], [], []>} : vector<32x8xbf16>, vector<8x16xbf16>, vector<32x16xf32> -> vector<32x16xf32>
    %667 = arith.addf %661, %666 : vector<32x16xf32>
    %668 = tpu.concatenate %598, %621, %644, %667 in 1 : vector<32x16xf32>, vector<32x16xf32>, vector<32x16xf32>, vector<32x16xf32> -> vector<32x64xf32>
    %c0_614 = arith.constant 0 : index
    %c0_615 = arith.constant 0 : index
    %669 = vector.load %arg11[%c0_614, %c0_615] : memref<1x64xf32, #tpu.memory_space<vmem>>, vector<1x64xf32>
    %670 = vector.broadcast %669 : vector<1x64xf32> to vector<32x64xf32>
    %671 = arith.addf %668, %670 : vector<32x64xf32>
    %cst_616 = arith.constant 0.000000e+00 : f32
    %672 = vector.broadcast %cst_616 : f32 to vector<32x64xf32>
    %673 = arith.maximumf %671, %672 : vector<32x64xf32>
    %c0_617 = arith.constant 0 : index
    %c0_618 = arith.constant 0 : index
    %c0_619 = arith.constant 0 : index
    %674 = vector.load %arg14[%c0_617, %c0_618, %c0_619] : memref<1x32x64xf32, #tpu.memory_space<vmem>>, vector<1x32x64xf32>
    %675 = vector.shape_cast %674 : vector<1x32x64xf32> to vector<32x64xf32>
    %676 = vector.shape_cast %673 : vector<32x64xf32> to vector<1x32x64xf32>
    tpu.vector_store %arg14[%c0_617, %c0_618, %c0_619], %676 {strides = array<i32>} : memref<1x32x64xf32, #tpu.memory_space<vmem>>, vector<1x32x64xf32>,
    return
  }
  func.func @transform_0(%arg0: i32) -> (i32, i32, i32) {
    %c0_i32 = arith.constant 0 : i32
    %c0_i32_0 = arith.constant 0 : i32
    %c0_i32_1 = arith.constant 0 : i32
    return %arg0, %c0_i32, %c0_i32_0 : i32, i32, i32
  }
  func.func @transform_1(%arg0: i32) -> (i32, i32, i32) {
    %c0_i32 = arith.constant 0 : i32
    %c0_i32_0 = arith.constant 0 : i32
    %c0_i32_1 = arith.constant 0 : i32
    return %arg0, %c0_i32, %c0_i32_0 : i32, i32, i32
  }
  func.func @transform_2(%arg0: i32) -> (i32, i32, i32) {
    %c0_i32 = arith.constant 0 : i32
    %c0_i32_0 = arith.constant 0 : i32
    %c0_i32_1 = arith.constant 0 : i32
    return %arg0, %c0_i32, %c0_i32_0 : i32, i32, i32
  }
  func.func @transform_3(%arg0: i32) -> (i32, i32) {
    %c0_i32 = arith.constant 0 : i32
    %c0_i32_0 = arith.constant 0 : i32
    %c0_i32_1 = arith.constant 0 : i32
    return %c0_i32, %c0_i32_0 : i32, i32
  }
  func.func @transform_4(%arg0: i32) -> (i32, i32, i32) {
    %c0_i32 = arith.constant 0 : i32
    %c0_i32_0 = arith.constant 0 : i32
    %c0_i32_1 = arith.constant 0 : i32
    %c0_i32_2 = arith.constant 0 : i32
    return %c0_i32, %c0_i32_0, %c0_i32_1 : i32, i32, i32
  }
  func.func @transform_5(%arg0: i32) -> (i32, i32, i32) {
    %c0_i32 = arith.constant 0 : i32
    %c0_i32_0 = arith.constant 0 : i32
    %c0_i32_1 = arith.constant 0 : i32
    %c0_i32_2 = arith.constant 0 : i32
    return %c0_i32, %c0_i32_0, %c0_i32_1 : i32, i32, i32
  }
  func.func @transform_6(%arg0: i32) -> (i32, i32) {
    %c0_i32 = arith.constant 0 : i32
    %c0_i32_0 = arith.constant 0 : i32
    %c0_i32_1 = arith.constant 0 : i32
    return %c0_i32, %c0_i32_0 : i32, i32
  }
  func.func @transform_7(%arg0: i32) -> (i32, i32, i32) {
    %c0_i32 = arith.constant 0 : i32
    %c0_i32_0 = arith.constant 0 : i32
    %c0_i32_1 = arith.constant 0 : i32
    %c0_i32_2 = arith.constant 0 : i32
    return %c0_i32, %c0_i32_0, %c0_i32_1 : i32, i32, i32
  }
  func.func @transform_8(%arg0: i32) -> (i32, i32) {
    %c0_i32 = arith.constant 0 : i32
    %c0_i32_0 = arith.constant 0 : i32
    %c0_i32_1 = arith.constant 0 : i32
    return %c0_i32, %c0_i32_0 : i32, i32
  }
  func.func @transform_9(%arg0: i32) -> (i32, i32, i32) {
    %c0_i32 = arith.constant 0 : i32
    %c0_i32_0 = arith.constant 0 : i32
    %c0_i32_1 = arith.constant 0 : i32
    %c0_i32_2 = arith.constant 0 : i32
    return %c0_i32, %c0_i32_0, %c0_i32_1 : i32, i32, i32
  }
  func.func @transform_10(%arg0: i32) -> (i32, i32) {
    %c0_i32 = arith.constant 0 : i32
    %c0_i32_0 = arith.constant 0 : i32
    %c0_i32_1 = arith.constant 0 : i32
    return %c0_i32, %c0_i32_0 : i32, i32
  }
  func.func @transform_11(%arg0: i32) -> (i32, i32, i32) {
    %c0_i32 = arith.constant 0 : i32
    %c0_i32_0 = arith.constant 0 : i32
    %c0_i32_1 = arith.constant 0 : i32
    return %arg0, %c0_i32, %c0_i32_0 : i32, i32, i32
  }
  func.func @transform_12(%arg0: i32) -> (i32, i32, i32) {
    %c0_i32 = arith.constant 0 : i32
    %c0_i32_0 = arith.constant 0 : i32
    %c0_i32_1 = arith.constant 0 : i32
    return %arg0, %c0_i32, %c0_i32_0 : i32, i32, i32
  }
  func.func @transform_13(%arg0: i32) -> (i32, i32, i32) {
    %c0_i32 = arith.constant 0 : i32
    %c0_i32_0 = arith.constant 0 : i32
    %c0_i32_1 = arith.constant 0 : i32
    return %arg0, %c0_i32, %c0_i32_0 : i32, i32, i32
  }
}

module attributes {stable_mosaic.version = 11 : i64} {
  func.func @kernel(%arg0: i32, %arg1: memref<1x104x16xf32, #tpu.memory_space<vmem>>, %arg2: memref<1x80x12xf32, #tpu.memory_space<vmem>>, %arg3: memref<16x16x3xbf16, #tpu.memory_space<vmem>>, %arg4: memref<1x12xf32, #tpu.memory_space<vmem>>, %arg5: memref<1x80x12xf32, #tpu.memory_space<vmem>>) attributes {dimension_semantics = [#tpu.dimension_semantics<parallel>], iteration_bounds = array<i64: 3>, scalar_prefetch = 0 : i64, scratch_operands = 0 : i64, tpu.core_type = #tpu.core_type<tc>, window_params = [{transform_indices = @transform_0, window_bounds = array<i64: 1, 104, 16>}, {transform_indices = @transform_1, window_bounds = array<i64: 1, 80, 12>}, {pipeline_mode = #tpu.pipeline_mode<synchronous>, transform_indices = @transform_2, window_bounds = array<i64: 16, 16, 3>}, {pipeline_mode = #tpu.pipeline_mode<synchronous>, transform_indices = @transform_3, window_bounds = array<i64: 1, 12>}, {transform_indices = @transform_4, window_bounds = array<i64: 1, 80, 12>}]} {
    %c0 = arith.constant 0 : index
    %c0_0 = arith.constant 0 : index
    %c0_1 = arith.constant 0 : index
    %0 = vector.load %arg1[%c0, %c0_0, %c0_1] : memref<1x104x16xf32, #tpu.memory_space<vmem>>, vector<1x80x16xf32>
    %1 = vector.shape_cast %0 : vector<1x80x16xf32> to vector<80x16xf32>
    %2 = arith.truncf %1 : vector<80x16xf32> to vector<80x16xbf16>
    %c0_2 = arith.constant 0 : index
    %c0_3 = arith.constant 0 : index
    %c0_4 = arith.constant 0 : index
    %3 = vector.load %arg3[%c0_2, %c0_3, %c0_4] : memref<16x16x3xbf16, #tpu.memory_space<vmem>>, vector<1x16x3xbf16>
    %4 = vector.shape_cast %3 : vector<1x16x3xbf16> to vector<16x3xbf16>
    %cst = arith.constant dense<0.000000e+00> : vector<80x3xf32>
    %5 = tpu.matmul %2, %4, %cst {dimension_numbers = #tpu.dot_dimension_numbers<[1], [0], [0], [1], [0, 0, 1, 1], [], []>} : vector<80x16xbf16>, vector<16x3xbf16>, vector<80x3xf32> -> vector<80x3xf32>
    %c0_5 = arith.constant 0 : index
    %c1 = arith.constant 1 : index
    %c0_6 = arith.constant 0 : index
    %6 = vector.load %arg1[%c0_5, %c1, %c0_6] : memref<1x104x16xf32, #tpu.memory_space<vmem>>, vector<1x80x16xf32>
    %7 = vector.shape_cast %6 : vector<1x80x16xf32> to vector<80x16xf32>
    %8 = arith.truncf %7 : vector<80x16xf32> to vector<80x16xbf16>
    %c1_7 = arith.constant 1 : index
    %c0_8 = arith.constant 0 : index
    %c0_9 = arith.constant 0 : index
    %9 = vector.load %arg3[%c1_7, %c0_8, %c0_9] : memref<16x16x3xbf16, #tpu.memory_space<vmem>>, vector<1x16x3xbf16>
    %10 = vector.shape_cast %9 : vector<1x16x3xbf16> to vector<16x3xbf16>
    %cst_10 = arith.constant dense<0.000000e+00> : vector<80x3xf32>
    %11 = tpu.matmul %8, %10, %cst_10 {dimension_numbers = #tpu.dot_dimension_numbers<[1], [0], [0], [1], [0, 0, 1, 1], [], []>} : vector<80x16xbf16>, vector<16x3xbf16>, vector<80x3xf32> -> vector<80x3xf32>
    %12 = arith.addf %5, %11 : vector<80x3xf32>
    %c0_11 = arith.constant 0 : index
    %c10 = arith.constant 10 : index
    %c0_12 = arith.constant 0 : index
    %13 = vector.load %arg1[%c0_11, %c10, %c0_12] : memref<1x104x16xf32, #tpu.memory_space<vmem>>, vector<1x80x16xf32>
    %14 = vector.shape_cast %13 : vector<1x80x16xf32> to vector<80x16xf32>
    %15 = arith.truncf %14 : vector<80x16xf32> to vector<80x16xbf16>
    %c2 = arith.constant 2 : index
    %c0_13 = arith.constant 0 : index
    %c0_14 = arith.constant 0 : index
    %16 = vector.load %arg3[%c2, %c0_13, %c0_14] : memref<16x16x3xbf16, #tpu.memory_space<vmem>>, vector<1x16x3xbf16>
    %17 = vector.shape_cast %16 : vector<1x16x3xbf16> to vector<16x3xbf16>
    %cst_15 = arith.constant dense<0.000000e+00> : vector<80x3xf32>
    %18 = tpu.matmul %15, %17, %cst_15 {dimension_numbers = #tpu.dot_dimension_numbers<[1], [0], [0], [1], [0, 0, 1, 1], [], []>} : vector<80x16xbf16>, vector<16x3xbf16>, vector<80x3xf32> -> vector<80x3xf32>
    %19 = arith.addf %12, %18 : vector<80x3xf32>
    %c0_16 = arith.constant 0 : index
    %c11 = arith.constant 11 : index
    %c0_17 = arith.constant 0 : index
    %20 = vector.load %arg1[%c0_16, %c11, %c0_17] : memref<1x104x16xf32, #tpu.memory_space<vmem>>, vector<1x80x16xf32>
    %21 = vector.shape_cast %20 : vector<1x80x16xf32> to vector<80x16xf32>
    %22 = arith.truncf %21 : vector<80x16xf32> to vector<80x16xbf16>
    %c3 = arith.constant 3 : index
    %c0_18 = arith.constant 0 : index
    %c0_19 = arith.constant 0 : index
    %23 = vector.load %arg3[%c3, %c0_18, %c0_19] : memref<16x16x3xbf16, #tpu.memory_space<vmem>>, vector<1x16x3xbf16>
    %24 = vector.shape_cast %23 : vector<1x16x3xbf16> to vector<16x3xbf16>
    %cst_20 = arith.constant dense<0.000000e+00> : vector<80x3xf32>
    %25 = tpu.matmul %22, %24, %cst_20 {dimension_numbers = #tpu.dot_dimension_numbers<[1], [0], [0], [1], [0, 0, 1, 1], [], []>} : vector<80x16xbf16>, vector<16x3xbf16>, vector<80x3xf32> -> vector<80x3xf32>
    %26 = arith.addf %19, %25 : vector<80x3xf32>
    %c0_21 = arith.constant 0 : index
    %c1_22 = arith.constant 1 : index
    %c0_23 = arith.constant 0 : index
    %27 = vector.load %arg1[%c0_21, %c1_22, %c0_23] : memref<1x104x16xf32, #tpu.memory_space<vmem>>, vector<1x80x16xf32>
    %28 = vector.shape_cast %27 : vector<1x80x16xf32> to vector<80x16xf32>
    %29 = arith.truncf %28 : vector<80x16xf32> to vector<80x16xbf16>
    %c4 = arith.constant 4 : index
    %c0_24 = arith.constant 0 : index
    %c0_25 = arith.constant 0 : index
    %30 = vector.load %arg3[%c4, %c0_24, %c0_25] : memref<16x16x3xbf16, #tpu.memory_space<vmem>>, vector<1x16x3xbf16>
    %31 = vector.shape_cast %30 : vector<1x16x3xbf16> to vector<16x3xbf16>
    %cst_26 = arith.constant dense<0.000000e+00> : vector<80x3xf32>
    %32 = tpu.matmul %29, %31, %cst_26 {dimension_numbers = #tpu.dot_dimension_numbers<[1], [0], [0], [1], [0, 0, 1, 1], [], []>} : vector<80x16xbf16>, vector<16x3xbf16>, vector<80x3xf32> -> vector<80x3xf32>
    %c0_27 = arith.constant 0 : index
    %c2_28 = arith.constant 2 : index
    %c0_29 = arith.constant 0 : index
    %33 = vector.load %arg1[%c0_27, %c2_28, %c0_29] : memref<1x104x16xf32, #tpu.memory_space<vmem>>, vector<1x80x16xf32>
    %34 = vector.shape_cast %33 : vector<1x80x16xf32> to vector<80x16xf32>
    %35 = arith.truncf %34 : vector<80x16xf32> to vector<80x16xbf16>
    %c5 = arith.constant 5 : index
    %c0_30 = arith.constant 0 : index
    %c0_31 = arith.constant 0 : index
    %36 = vector.load %arg3[%c5, %c0_30, %c0_31] : memref<16x16x3xbf16, #tpu.memory_space<vmem>>, vector<1x16x3xbf16>
    %37 = vector.shape_cast %36 : vector<1x16x3xbf16> to vector<16x3xbf16>
    %cst_32 = arith.constant dense<0.000000e+00> : vector<80x3xf32>
    %38 = tpu.matmul %35, %37, %cst_32 {dimension_numbers = #tpu.dot_dimension_numbers<[1], [0], [0], [1], [0, 0, 1, 1], [], []>} : vector<80x16xbf16>, vector<16x3xbf16>, vector<80x3xf32> -> vector<80x3xf32>
    %39 = arith.addf %32, %38 : vector<80x3xf32>
    %c0_33 = arith.constant 0 : index
    %c11_34 = arith.constant 11 : index
    %c0_35 = arith.constant 0 : index
    %40 = vector.load %arg1[%c0_33, %c11_34, %c0_35] : memref<1x104x16xf32, #tpu.memory_space<vmem>>, vector<1x80x16xf32>
    %41 = vector.shape_cast %40 : vector<1x80x16xf32> to vector<80x16xf32>
    %42 = arith.truncf %41 : vector<80x16xf32> to vector<80x16xbf16>
    %c6 = arith.constant 6 : index
    %c0_36 = arith.constant 0 : index
    %c0_37 = arith.constant 0 : index
    %43 = vector.load %arg3[%c6, %c0_36, %c0_37] : memref<16x16x3xbf16, #tpu.memory_space<vmem>>, vector<1x16x3xbf16>
    %44 = vector.shape_cast %43 : vector<1x16x3xbf16> to vector<16x3xbf16>
    %cst_38 = arith.constant dense<0.000000e+00> : vector<80x3xf32>
    %45 = tpu.matmul %42, %44, %cst_38 {dimension_numbers = #tpu.dot_dimension_numbers<[1], [0], [0], [1], [0, 0, 1, 1], [], []>} : vector<80x16xbf16>, vector<16x3xbf16>, vector<80x3xf32> -> vector<80x3xf32>
    %46 = arith.addf %39, %45 : vector<80x3xf32>
    %c0_39 = arith.constant 0 : index
    %c12 = arith.constant 12 : index
    %c0_40 = arith.constant 0 : index
    %47 = vector.load %arg1[%c0_39, %c12, %c0_40] : memref<1x104x16xf32, #tpu.memory_space<vmem>>, vector<1x80x16xf32>
    %48 = vector.shape_cast %47 : vector<1x80x16xf32> to vector<80x16xf32>
    %49 = arith.truncf %48 : vector<80x16xf32> to vector<80x16xbf16>
    %c7 = arith.constant 7 : index
    %c0_41 = arith.constant 0 : index
    %c0_42 = arith.constant 0 : index
    %50 = vector.load %arg3[%c7, %c0_41, %c0_42] : memref<16x16x3xbf16, #tpu.memory_space<vmem>>, vector<1x16x3xbf16>
    %51 = vector.shape_cast %50 : vector<1x16x3xbf16> to vector<16x3xbf16>
    %cst_43 = arith.constant dense<0.000000e+00> : vector<80x3xf32>
    %52 = tpu.matmul %49, %51, %cst_43 {dimension_numbers = #tpu.dot_dimension_numbers<[1], [0], [0], [1], [0, 0, 1, 1], [], []>} : vector<80x16xbf16>, vector<16x3xbf16>, vector<80x3xf32> -> vector<80x3xf32>
    %53 = arith.addf %46, %52 : vector<80x3xf32>
    %c0_44 = arith.constant 0 : index
    %c10_45 = arith.constant 10 : index
    %c0_46 = arith.constant 0 : index
    %54 = vector.load %arg1[%c0_44, %c10_45, %c0_46] : memref<1x104x16xf32, #tpu.memory_space<vmem>>, vector<1x80x16xf32>
    %55 = vector.shape_cast %54 : vector<1x80x16xf32> to vector<80x16xf32>
    %56 = arith.truncf %55 : vector<80x16xf32> to vector<80x16xbf16>
    %c8 = arith.constant 8 : index
    %c0_47 = arith.constant 0 : index
    %c0_48 = arith.constant 0 : index
    %57 = vector.load %arg3[%c8, %c0_47, %c0_48] : memref<16x16x3xbf16, #tpu.memory_space<vmem>>, vector<1x16x3xbf16>
    %58 = vector.shape_cast %57 : vector<1x16x3xbf16> to vector<16x3xbf16>
    %cst_49 = arith.constant dense<0.000000e+00> : vector<80x3xf32>
    %59 = tpu.matmul %56, %58, %cst_49 {dimension_numbers = #tpu.dot_dimension_numbers<[1], [0], [0], [1], [0, 0, 1, 1], [], []>} : vector<80x16xbf16>, vector<16x3xbf16>, vector<80x3xf32> -> vector<80x3xf32>
    %c0_50 = arith.constant 0 : index
    %c11_51 = arith.constant 11 : index
    %c0_52 = arith.constant 0 : index
    %60 = vector.load %arg1[%c0_50, %c11_51, %c0_52] : memref<1x104x16xf32, #tpu.memory_space<vmem>>, vector<1x80x16xf32>
    %61 = vector.shape_cast %60 : vector<1x80x16xf32> to vector<80x16xf32>
    %62 = arith.truncf %61 : vector<80x16xf32> to vector<80x16xbf16>
    %c9 = arith.constant 9 : index
    %c0_53 = arith.constant 0 : index
    %c0_54 = arith.constant 0 : index
    %63 = vector.load %arg3[%c9, %c0_53, %c0_54] : memref<16x16x3xbf16, #tpu.memory_space<vmem>>, vector<1x16x3xbf16>
    %64 = vector.shape_cast %63 : vector<1x16x3xbf16> to vector<16x3xbf16>
    %cst_55 = arith.constant dense<0.000000e+00> : vector<80x3xf32>
    %65 = tpu.matmul %62, %64, %cst_55 {dimension_numbers = #tpu.dot_dimension_numbers<[1], [0], [0], [1], [0, 0, 1, 1], [], []>} : vector<80x16xbf16>, vector<16x3xbf16>, vector<80x3xf32> -> vector<80x3xf32>
    %66 = arith.addf %59, %65 : vector<80x3xf32>
    %c0_56 = arith.constant 0 : index
    %c20 = arith.constant 20 : index
    %c0_57 = arith.constant 0 : index
    %67 = vector.load %arg1[%c0_56, %c20, %c0_57] : memref<1x104x16xf32, #tpu.memory_space<vmem>>, vector<1x80x16xf32>
    %68 = vector.shape_cast %67 : vector<1x80x16xf32> to vector<80x16xf32>
    %69 = arith.truncf %68 : vector<80x16xf32> to vector<80x16xbf16>
    %c10_58 = arith.constant 10 : index
    %c0_59 = arith.constant 0 : index
    %c0_60 = arith.constant 0 : index
    %70 = vector.load %arg3[%c10_58, %c0_59, %c0_60] : memref<16x16x3xbf16, #tpu.memory_space<vmem>>, vector<1x16x3xbf16>
    %71 = vector.shape_cast %70 : vector<1x16x3xbf16> to vector<16x3xbf16>
    %cst_61 = arith.constant dense<0.000000e+00> : vector<80x3xf32>
    %72 = tpu.matmul %69, %71, %cst_61 {dimension_numbers = #tpu.dot_dimension_numbers<[1], [0], [0], [1], [0, 0, 1, 1], [], []>} : vector<80x16xbf16>, vector<16x3xbf16>, vector<80x3xf32> -> vector<80x3xf32>
    %73 = arith.addf %66, %72 : vector<80x3xf32>
    %c0_62 = arith.constant 0 : index
    %c21 = arith.constant 21 : index
    %c0_63 = arith.constant 0 : index
    %74 = vector.load %arg1[%c0_62, %c21, %c0_63] : memref<1x104x16xf32, #tpu.memory_space<vmem>>, vector<1x80x16xf32>
    %75 = vector.shape_cast %74 : vector<1x80x16xf32> to vector<80x16xf32>
    %76 = arith.truncf %75 : vector<80x16xf32> to vector<80x16xbf16>
    %c11_64 = arith.constant 11 : index
    %c0_65 = arith.constant 0 : index
    %c0_66 = arith.constant 0 : index
    %77 = vector.load %arg3[%c11_64, %c0_65, %c0_66] : memref<16x16x3xbf16, #tpu.memory_space<vmem>>, vector<1x16x3xbf16>
    %78 = vector.shape_cast %77 : vector<1x16x3xbf16> to vector<16x3xbf16>
    %cst_67 = arith.constant dense<0.000000e+00> : vector<80x3xf32>
    %79 = tpu.matmul %76, %78, %cst_67 {dimension_numbers = #tpu.dot_dimension_numbers<[1], [0], [0], [1], [0, 0, 1, 1], [], []>} : vector<80x16xbf16>, vector<16x3xbf16>, vector<80x3xf32> -> vector<80x3xf32>
    %80 = arith.addf %73, %79 : vector<80x3xf32>
    %c0_68 = arith.constant 0 : index
    %c11_69 = arith.constant 11 : index
    %c0_70 = arith.constant 0 : index
    %81 = vector.load %arg1[%c0_68, %c11_69, %c0_70] : memref<1x104x16xf32, #tpu.memory_space<vmem>>, vector<1x80x16xf32>
    %82 = vector.shape_cast %81 : vector<1x80x16xf32> to vector<80x16xf32>
    %83 = arith.truncf %82 : vector<80x16xf32> to vector<80x16xbf16>
    %c12_71 = arith.constant 12 : index
    %c0_72 = arith.constant 0 : index
    %c0_73 = arith.constant 0 : index
    %84 = vector.load %arg3[%c12_71, %c0_72, %c0_73] : memref<16x16x3xbf16, #tpu.memory_space<vmem>>, vector<1x16x3xbf16>
    %85 = vector.shape_cast %84 : vector<1x16x3xbf16> to vector<16x3xbf16>
    %cst_74 = arith.constant dense<0.000000e+00> : vector<80x3xf32>
    %86 = tpu.matmul %83, %85, %cst_74 {dimension_numbers = #tpu.dot_dimension_numbers<[1], [0], [0], [1], [0, 0, 1, 1], [], []>} : vector<80x16xbf16>, vector<16x3xbf16>, vector<80x3xf32> -> vector<80x3xf32>
    %c0_75 = arith.constant 0 : index
    %c12_76 = arith.constant 12 : index
    %c0_77 = arith.constant 0 : index
    %87 = vector.load %arg1[%c0_75, %c12_76, %c0_77] : memref<1x104x16xf32, #tpu.memory_space<vmem>>, vector<1x80x16xf32>
    %88 = vector.shape_cast %87 : vector<1x80x16xf32> to vector<80x16xf32>
    %89 = arith.truncf %88 : vector<80x16xf32> to vector<80x16xbf16>
    %c13 = arith.constant 13 : index
    %c0_78 = arith.constant 0 : index
    %c0_79 = arith.constant 0 : index
    %90 = vector.load %arg3[%c13, %c0_78, %c0_79] : memref<16x16x3xbf16, #tpu.memory_space<vmem>>, vector<1x16x3xbf16>
    %91 = vector.shape_cast %90 : vector<1x16x3xbf16> to vector<16x3xbf16>
    %cst_80 = arith.constant dense<0.000000e+00> : vector<80x3xf32>
    %92 = tpu.matmul %89, %91, %cst_80 {dimension_numbers = #tpu.dot_dimension_numbers<[1], [0], [0], [1], [0, 0, 1, 1], [], []>} : vector<80x16xbf16>, vector<16x3xbf16>, vector<80x3xf32> -> vector<80x3xf32>
    %93 = arith.addf %86, %92 : vector<80x3xf32>
    %c0_81 = arith.constant 0 : index
    %c21_82 = arith.constant 21 : index
    %c0_83 = arith.constant 0 : index
    %94 = vector.load %arg1[%c0_81, %c21_82, %c0_83] : memref<1x104x16xf32, #tpu.memory_space<vmem>>, vector<1x80x16xf32>
    %95 = vector.shape_cast %94 : vector<1x80x16xf32> to vector<80x16xf32>
    %96 = arith.truncf %95 : vector<80x16xf32> to vector<80x16xbf16>
    %c14 = arith.constant 14 : index
    %c0_84 = arith.constant 0 : index
    %c0_85 = arith.constant 0 : index
    %97 = vector.load %arg3[%c14, %c0_84, %c0_85] : memref<16x16x3xbf16, #tpu.memory_space<vmem>>, vector<1x16x3xbf16>
    %98 = vector.shape_cast %97 : vector<1x16x3xbf16> to vector<16x3xbf16>
    %cst_86 = arith.constant dense<0.000000e+00> : vector<80x3xf32>
    %99 = tpu.matmul %96, %98, %cst_86 {dimension_numbers = #tpu.dot_dimension_numbers<[1], [0], [0], [1], [0, 0, 1, 1], [], []>} : vector<80x16xbf16>, vector<16x3xbf16>, vector<80x3xf32> -> vector<80x3xf32>
    %100 = arith.addf %93, %99 : vector<80x3xf32>
    %c0_87 = arith.constant 0 : index
    %c22 = arith.constant 22 : index
    %c0_88 = arith.constant 0 : index
    %101 = vector.load %arg1[%c0_87, %c22, %c0_88] : memref<1x104x16xf32, #tpu.memory_space<vmem>>, vector<1x80x16xf32>
    %102 = vector.shape_cast %101 : vector<1x80x16xf32> to vector<80x16xf32>
    %103 = arith.truncf %102 : vector<80x16xf32> to vector<80x16xbf16>
    %c15 = arith.constant 15 : index
    %c0_89 = arith.constant 0 : index
    %c0_90 = arith.constant 0 : index
    %104 = vector.load %arg3[%c15, %c0_89, %c0_90] : memref<16x16x3xbf16, #tpu.memory_space<vmem>>, vector<1x16x3xbf16>
    %105 = vector.shape_cast %104 : vector<1x16x3xbf16> to vector<16x3xbf16>
    %cst_91 = arith.constant dense<0.000000e+00> : vector<80x3xf32>
    %106 = tpu.matmul %103, %105, %cst_91 {dimension_numbers = #tpu.dot_dimension_numbers<[1], [0], [0], [1], [0, 0, 1, 1], [], []>} : vector<80x16xbf16>, vector<16x3xbf16>, vector<80x3xf32> -> vector<80x3xf32>
    %107 = arith.addf %100, %106 : vector<80x3xf32>
    %108 = tpu.concatenate %26, %53, %80, %107 in 1 : vector<80x3xf32>, vector<80x3xf32>, vector<80x3xf32>, vector<80x3xf32> -> vector<80x12xf32>
    %c0_92 = arith.constant 0 : index
    %c0_93 = arith.constant 0 : index
    %109 = vector.load %arg4[%c0_92, %c0_93] : memref<1x12xf32, #tpu.memory_space<vmem>>, vector<1x12xf32>
    %110 = vector.broadcast %109 : vector<1x12xf32> to vector<80x12xf32>
    %111 = arith.addf %108, %110 : vector<80x12xf32>
    %c0_94 = arith.constant 0 : index
    %c0_95 = arith.constant 0 : index
    %c0_96 = arith.constant 0 : index
    %112 = vector.load %arg2[%c0_94, %c0_95, %c0_96] : memref<1x80x12xf32, #tpu.memory_space<vmem>>, vector<1x80x12xf32>
    %113 = vector.shape_cast %112 : vector<1x80x12xf32> to vector<80x12xf32>
    %114 = arith.addf %111, %113 : vector<80x12xf32>
    %c0_97 = arith.constant 0 : index
    %c0_98 = arith.constant 0 : index
    %c0_99 = arith.constant 0 : index
    %115 = vector.load %arg5[%c0_97, %c0_98, %c0_99] : memref<1x80x12xf32, #tpu.memory_space<vmem>>, vector<1x80x12xf32>
    %116 = vector.shape_cast %115 : vector<1x80x12xf32> to vector<80x12xf32>
    %117 = vector.shape_cast %114 : vector<80x12xf32> to vector<1x80x12xf32>
    tpu.vector_store %arg5[%c0_97, %c0_98, %c0_99], %117 {strides = array<i32>} : memref<1x80x12xf32, #tpu.memory_space<vmem>>, vector<1x80x12xf32>,
    return
  }
  func.func @transform_0(%arg0: i32) -> (i32, i32, i32) {
    %c0_i32 = arith.constant 0 : i32
    %c0_i32_0 = arith.constant 0 : i32
    %c0_i32_1 = arith.constant 0 : i32
    return %arg0, %c0_i32, %c0_i32_0 : i32, i32, i32
  }
  func.func @transform_1(%arg0: i32) -> (i32, i32, i32) {
    %c0_i32 = arith.constant 0 : i32
    %c0_i32_0 = arith.constant 0 : i32
    %c0_i32_1 = arith.constant 0 : i32
    return %arg0, %c0_i32, %c0_i32_0 : i32, i32, i32
  }
  func.func @transform_2(%arg0: i32) -> (i32, i32, i32) {
    %c0_i32 = arith.constant 0 : i32
    %c0_i32_0 = arith.constant 0 : i32
    %c0_i32_1 = arith.constant 0 : i32
    %c0_i32_2 = arith.constant 0 : i32
    return %c0_i32, %c0_i32_0, %c0_i32_1 : i32, i32, i32
  }
  func.func @transform_3(%arg0: i32) -> (i32, i32) {
    %c0_i32 = arith.constant 0 : i32
    %c0_i32_0 = arith.constant 0 : i32
    %c0_i32_1 = arith.constant 0 : i32
    return %c0_i32, %c0_i32_0 : i32, i32
  }
  func.func @transform_4(%arg0: i32) -> (i32, i32, i32) {
    %c0_i32 = arith.constant 0 : i32
    %c0_i32_0 = arith.constant 0 : i32
    %c0_i32_1 = arith.constant 0 : i32
    return %arg0, %c0_i32, %c0_i32_0 : i32, i32, i32
  }
}

</mosaic_0001>

<bundles_post_ra>
// kernel: image_renderer_forward.9
= control target key start
LH: loop header
LB: loop body
LE: loop exit
PB: predicated region body
PF: predicated region fallthrough
CT: control target
= control target key end

     0   :  { %s3043_s15 = smov 0   ;;  %s3684_s0 = inlined_call_operand.vmem [shape: f32[3,104,16], index: 0, kind: input, shape index: {}]   ;;  %s3685_s1 = inlined_call_operand.vmem [shape: f32[3,80,12], index: 1, kind: input, shape index: {}, may-alias: {1,4}]   ;;  %s3686_s2 = inlined_call_operand.vmem [shape: bf16[16,16,3], index: 2, kind: input, shape index: {}]   ;;  %s3687_s3 = inlined_call_operand.vmem [shape: f32[1,12], index: 3, kind: input, shape index: {}]   ;;  %s3688_s4 = inlined_call_operand.vmem [shape: f32[3,80,12], index: 4, kind: output, shape index: {}, may-alias: {1,4}]  }
   0x1 LB: > { %s2149_s16 = sadd.s32 4294967295, %s3011_s15   ;;  %p2153_p0 = scmp.ge.s32.totalorder %s3011_s15, 1  ;;  %s3011_s15 = sphi %s3043_s15, %s14_s15  }
   0x2   : > { %p172_p1 = scmp.lt.s32.totalorder %s3011_s15, 4 }
   0x4   : > { %p173_p2 = pnand %p2153_p0, %p172_p1 }
   0x5   : > { %v2989_v0 = vld [vmem:[%s3686_s2 + $0x8] sm:$0xff] (!%p173_p2)   ;;  %v3013_v1 = vmov (!%p173_p2), 0.0   ;;  %vm3014_vm0 = vmmov (!%p173_p2), 0   ;;  %p203_p3 = scmp.lt.s32.totalorder (!%p173_p2), %s2149_s16, 2  ;;  %v2991_v3 = vld [vmem:[%s3686_s2] sm:$0xff] (!%p173_p2)   ;;  %vm260_vm1 = vcmask (!%p173_p2), 130048  }
   0x6   : > { %176 = sbr.rel (%p173_p2) target bundleno = 671 (0x29f), region = 36  ;;  %2382 = vmatprep.subr.bf16.mxu0 (!%p173_p2), %v3013_v1  ;;  %2470 = vmatprep.subr.bf16.mxu1 (!%p173_p2), %v3013_v1  ;;  %v2990_v2 = vld [vmem:[%s3686_s2 + $0x28] sm:$0xff] (!%p173_p2)   ;;  %v2992_v9 = vld [vmem:[%s3686_s2 + $0x20] sm:$0xff] (!%p173_p2)   ;;  %v2993_v42 = vld [vmem:[%s3686_s2 + $0x10] sm:$0xff] (!%p173_p2)   ;;  %s3015_s30 = smov (!%p173_p2), 3   ;;  %vm2001_vm2 = vcmask (!%p173_p2), 23552  }
   0x7   : > { %2383 = vmatpush3.bf16.msra.mxu0 (!%p173_p2), %v2989_v0  ;;  %2384 = vmatprep.mubr.msk.bf16.mxu0 (!%p173_p2), %vm3014_vm0, %v3013_v1  ;;  %v2994_v43 = vld [vmem:[%s3686_s2 + $0x30] sm:$0xff] (!%p173_p2)   ;;  %v2995_v58 = vld [vmem:[%s3686_s2 + $0x18] sm:$0xff] (!%p173_p2)   ;;  %s3017_s5 = smov (!%p173_p2), 9   ;;  %vm2012_vm3 = vcmask (!%p173_p2), 48128   ;;  %vm2023_vm4 = vcmask (!%p173_p2), 72704   ;;  %vm2071_vm5 = vcmask (!%p173_p2), 97280  }
   0x8   : > { %2471 = vmatpush3.bf16.msra.mxu1 (!%p173_p2), %v2990_v2  ;;  %2404 = vmatprep.subr.bf16.mxu0 (!%p173_p2), %v3013_v1  ;;  %v2996_v60 = vld [vmem:[%s3686_s2 + $0x38] sm:$0xff] (!%p173_p2)  }
   0x9   : > { %2472 = vmatprep.mubr.msk.bf16.mxu1 (!%p173_p2), %vm3014_vm0, %v3013_v1  ;;  %2492 = vmatprep.subr.bf16.mxu1 (!%p173_p2), %v3013_v1 }
   0xd   : > { %s3690_s16 = smov (!%p203_p3, %s2149_s16), 2 }
   0xe   : > { %s2974_s21 = smul.u32 104, %s3690_s16 }
   0xf   : > { %s2975_s6 = smul.u32 80, %s3690_s16 }
  0x10   : > { %s3071_s24 = scalar_lea.vmem %s3684_s0, %s2974_s21 }
  0x11   : > { %v236_v4 = vld [vmem:[%s3071_s24 + $0x1] sm:$0xff]  ;;  %v237_v5 = vld [vmem:[%s3071_s24 + $0x9] sm:$0xff]  ;;  %v692_v11 = vld [vmem:[%s3071_s24 + $0x12] sm:$0xff]  ;;  %s212_s9 = scalar_lea.vmem %s3685_s1, %s2975_s6  ;;  %s3607_s13 = scalar_lea.vmem %s3688_s4, %s2975_s6 }
  0x12   : > { %v690_v6 = vld [vmem:[%s3071_s24 + $0x2] sm:$0xff]  ;;  %v3079_v7 = vpack.c.bf16 %v237_v5, %v236_v4  ;;  %v691_v8 = vld [vmem:[%s3071_s24 + $0xa] sm:$0xff]  ;;  %v693_v13 = vld [vmem:[%s3071_s24 + $0x1a] sm:$0xff] }
  0x13   : > { %v700_v10 = vpack.c.bf16 %v691_v8, %v690_v6  ;;  %v238_v12 = vld [vmem:[%s3071_s24 + $0x11] sm:$0xff]  ;;  %v694_v14 = vld [vmem:[%s3071_s24 + $0x22] sm:$0xff]  ;;  %v3091_v15 = vpack.c.bf16 %v692_v11, %v691_v8  ;;  %v239_v16 = vld [vmem:[%s3071_s24 + $0x19] sm:$0xff]  ;;  %v701_v25 = vpack.c.bf16 %v693_v13, %v692_v11 }
  0x14   : > { %2385 = vmatmul.mubr.msk.bf16.vlgmr.msra.gmra.mrb[0].mxu0 %vm260_vm1, %v3079_v7  ;;  %v695_v17 = vld [vmem:[%s3071_s24 + $0x2a] sm:$0xff]  ;;  %v696_v18 = vld [vmem:[%s3071_s24 + $0x32] sm:$0xff]  ;;  %v3097_v19 = vpack.c.bf16 %v694_v14, %v693_v13  ;;  %v697_v21 = vld [vmem:[%s3071_s24 + $0x3a] sm:$0xff]  ;;  %v247_v23 = vpack.c.bf16 %v239_v16, %v238_v12 }
  0x15   : > { %2405 = vmatpush3.bf16.msra.mxu0 %v2991_v3  ;;  %2473 = vmatmul.mubr.msk.bf16.vlgmr.msra.gmra.mrb[0].mxu1 %vm260_vm1, %v700_v10  ;;  %v3101_v20 = vpack.c.bf16 %v696_v18, %v695_v17  ;;  %v698_v22 = vld [vmem:[%s3071_s24 + $0x42] sm:$0xff]  ;;  %v702_v29 = vpack.c.bf16 %v695_v17, %v694_v14  ;;  %v242_v30 = vld [vmem:[%s3071_s24 + $0x31] sm:$0xff]  ;;  %v243_v31 = vld [vmem:[%s3071_s24 + $0x39] sm:$0xff]  ;;  %v703_v33 = vpack.c.bf16 %v697_v21, %v696_v18 }
  0x16   : > { %2493 = vmatpush3.bf16.msra.mxu1 %v2992_v9  ;;  %2388 = vmatprep.mubr.msk.bf16.mxu0 %vm3014_vm0, %v3013_v1  ;;  %v3109_v24 = vpack.c.bf16 %v698_v22, %v697_v21  ;;  %v240_v26 = vld [vmem:[%s3071_s24 + $0x21] sm:$0xff]  ;;  %v241_v27 = vld [vmem:[%s3071_s24 + $0x29] sm:$0xff]  ;;  %v249_v32 = vpack.c.bf16 %v243_v31, %v242_v30  ;;  %v222_v45 = vld [vmem:[%s3071_s24 + $0x18] sm:$0xff] }
  0x17   : > { %2476 = vmatprep.mubr.msk.bf16.mxu1 %vm3014_vm0, %v3013_v1  ;;  %2426 = vmatprep.subr.bf16.mxu0 %v3013_v1  ;;  %v248_v28 = vpack.c.bf16 %v241_v27, %v240_v26  ;;  %v244_v34 = vld [vmem:[%s3071_s24 + $0x41] sm:$0xff]  ;;  %v245_v35 = vld [vmem:[%s3071_s24 + $0x49] sm:$0xff]  ;;  %v226_v51 = vld [vmem:[%s3071_s24 + $0x38] sm:$0xff] }
  0x18   : > { %2514 = vmatprep.subr.bf16.mxu1 %v3013_v1  ;;  %v3136_v36 = vld [vmem:[%s3071_s24 + $0x4a] sm:$0xff]  ;;  %v250_v37 = vpack.c.bf16 %v245_v35, %v244_v34  ;;  %v219_v39 = vld [vmem:[%s3071_s24] sm:$0xff]  ;;  %v566_v57 = vld [vmem:[%s3071_s24 + $0x13] sm:$0xff] }
  0x19   : > { %v704_v38 = vpack.c.bf16 %v3136_v36, %v698_v22  ;;  %v220_v40 = vld [vmem:[%s3071_s24 + $0x8] sm:$0xff]  ;;  %v221_v44 = vld [vmem:[%s3071_s24 + $0x10] sm:$0xff]  ;;  %v223_v47 = vld [vmem:[%s3071_s24 + $0x20] sm:$0xff] }
  0x1a   : > { %v229_v41 = vpack.c.bf16 %v220_v40, %v219_v39  ;;  %v230_v46 = vpack.c.bf16 %v222_v45, %v221_v44  ;;  %v224_v48 = vld [vmem:[%s3071_s24 + $0x28] sm:$0xff]  ;;  %v225_v50 = vld [vmem:[%s3071_s24 + $0x30] sm:$0xff]  ;;  %v227_v53 = vld [vmem:[%s3071_s24 + $0x40] sm:$0xff] }
  0x1b   : > { %v231_v49 = vpack.c.bf16 %v224_v48, %v223_v47  ;;  %v232_v52 = vpack.c.bf16 %v226_v51, %v225_v50  ;;  %v228_v54 = vld [vmem:[%s3071_s24 + $0x48] sm:$0xff]  ;;  %v567_v61 = vld [vmem:[%s3071_s24 + $0x1b] sm:$0xff]  ;;  %v570_v2 = vld [vmem:[%s3071_s24 + $0x33] sm:$0xff] }
  0x1c   : > { %2389 = vmatmul.mubr.msk.bf16.gmra.mrb[4].mxu0 %vm260_vm1, %v247_v23  ;;  %v233_v55 = vpack.c.bf16 %v228_v54, %v227_v53  ;;  %v565_v56 = vld [vmem:[%s3071_s24 + $0xb] sm:$0xff]  ;;  %v568_v62 = vld [vmem:[%s3071_s24 + $0x23] sm:$0xff]  ;;  %v571_v4 = vld [vmem:[%s3071_s24 + $0x3b] sm:$0xff] }
  0x1d   : > { %2477 = vmatmul.mubr.msk.bf16.gmra.mrb[4].mxu1 %vm260_vm1, %v701_v25  ;;  %2392 = vmatprep.mubr.msk.bf16.mxu0 %vm3014_vm0, %v3013_v1  ;;  %v3199_v59 = vpack.c.bf16 %v566_v57, %v565_v56  ;;  %v3216_v63 = vpack.c.bf16 %v568_v62, %v567_v61  ;;  %v569_v0 = vld [vmem:[%s3071_s24 + $0x2b] sm:$0xff]  ;;  %v572_v5 = vld [vmem:[%s3071_s24 + $0x43] sm:$0xff]  ;;  %v574_v9 = vld [vmem:[%s3071_s24 + $0x53] sm:$0xff] }
  0x1e   : > { %2480 = vmatprep.mubr.msk.bf16.mxu1 %vm3014_vm0, %v3013_v1  ;;  %v3228_v3 = vpack.c.bf16 %v570_v2, %v569_v0  ;;  %v3240_v6 = vpack.c.bf16 %v572_v5, %v571_v4  ;;  %v573_v8 = vld [vmem:[%s3071_s24 + $0x4b] sm:$0xff]  ;;  %v3268_v13 = vld [vmem:[%s3071_s24 + $0x14] sm:$0xff]  ;;  %v3283_v18 = vld [vmem:[%s3071_s24 + $0x1c] sm:$0xff] }
  0x1f   : > { %v3256_v11 = vpack.c.bf16 %v574_v9, %v573_v8  ;;  %v973_v12 = vld [vmem:[%s3071_s24 + $0xc] sm:$0xff]  ;;  %v3286_v21 = vld [vmem:[%s3071_s24 + $0x24] sm:$0xff]  ;;  %v3305_v25 = vld [vmem:[%s3071_s24 + $0x34] sm:$0xff] }
  0x20   : > { %v983_v14 = vpack.c.bf16 %v3268_v13, %v973_v12  ;;  %v2997_v16 = vld [vmem:[%s3686_s2 + $0x48] sm:$0xff]   ;;  %v984_v22 = vpack.c.bf16 %v3286_v21, %v3283_v18  ;;  %v3317_v27 = vld [vmem:[%s3071_s24 + $0x3c] sm:$0xff]  ;;  %v3335_v31 = vld [vmem:[%s3071_s24 + $0x54] sm:$0xff] }
  0x21   : > { %v2998_v17 = vld [vmem:[%s3686_s2 + $0x68] sm:$0xff]   ;;  %v3000_v34 = vld [vmem:[%s3686_s2 + $0x60] sm:$0xff]   ;;  %v3001_v35 = vld [vmem:[%s3686_s2 + $0x50] sm:$0xff]   ;;  %v1271_v45 = vpack.c.bf16 %v3317_v27, %v3305_v25 }
  0x22   : > { %v3332_v30 = vld [vmem:[%s3071_s24 + $0x4c] sm:$0xff]  ;;  %v1386_v44 = vld [vmem:[%s3071_s24 + $0x3d] sm:$0xff] }
  0x23   : > { %v1383_v39 = vld [vmem:[%s3071_s24 + $0x25] sm:$0xff]  ;;  %v1384_v40 = vld [vmem:[%s3071_s24 + $0x2d] sm:$0xff]  ;;  %v1268_v51 = vld [vmem:[%s3071_s24 + $0x5c] sm:$0xff] }
  0x24   : > { %2393 = vmatmul.mubr.msk.bf16.gmra.mrb[8].mxu0 %vm260_vm1, %v248_v28  ;;  %v1387_v47 = vld [vmem:[%s3071_s24 + $0x45] sm:$0xff]  ;;  %v1388_v48 = vld [vmem:[%s3071_s24 + $0x4d] sm:$0xff]  ;;  %v1390_v53 = vld [vmem:[%s3071_s24 + $0x5d] sm:$0xff]  ;;  %v1273_v54 = vpack.c.bf16 %v1268_v51, %v3335_v31 }
  0x25   : > { %2481 = vmatmul.mubr.msk.bf16.gmra.mrb[8].mxu1 %vm260_vm1, %v702_v29  ;;  %2396 = vmatprep.mubr.msk.bf16.mxu0 %vm3014_vm0, %v3013_v1  ;;  %v1394_v50 = vpack.c.bf16 %v1388_v48, %v1387_v47  ;;  %v1759_v56 = vld [vmem:[%s3071_s24 + $0x16] sm:$0xff]  ;;  %v1760_v57 = vld [vmem:[%s3071_s24 + $0x1e] sm:$0xff]  ;;  %v1765_v2 = vld [vmem:[%s3071_s24 + $0x46] sm:$0xff] }
  0x26   : > { %2484 = vmatprep.mubr.msk.bf16.mxu1 %vm3014_vm0, %v3013_v1  ;;  %v1763_v62 = vld [vmem:[%s3071_s24 + $0x36] sm:$0xff] }
  0x27   : > { %v1767_v5 = vld [vmem:[%s3071_s24 + $0x56] sm:$0xff] }
  0x2c   : > { %2397 = vmatmul.mubr.msk.bf16.gmra.mrb[12].mxu0 %vm260_vm1, %v249_v32 }
  0x2d   : > { %2485 = vmatmul.mubr.msk.bf16.gmra.mrb[12].mxu1 %vm260_vm1, %v703_v33  ;;  %2400 = vmatprep.mubr.msk.bf16.mxu0 %vm3014_vm0, %v3013_v1  ;;  %v2999_v33 = vld [vmem:[%s3686_s2 + $0x40] sm:$0xff]  }
  0x2e   : > { %2488 = vmatprep.mubr.msk.bf16.mxu1 %vm3014_vm0, %v3013_v1 }
  0x34   : > { %2401 = vmatmul.mubr.msk.bf16.gmra.mrb[16].mxu0 %vm260_vm1, %v250_v37 }
  0x35   : > { %2489 = vmatmul.mubr.msk.bf16.gmra.mrb[16].mxu1 %vm260_vm1, %v704_v38  ;;  %2406 = vmatprep.mubr.msk.bf16.mxu0 %vm3014_vm0, %v3013_v1  ;;  %v3004_v38 = vld [vmem:[%s3686_s2 + $0x78] sm:$0xff]  }
  0x36   : > { %2494 = vmatprep.mubr.msk.bf16.mxu1 %vm3014_vm0, %v3013_v1 }
  0x3c   : > { %2407 = vmatmul.mubr.msk.bf16.vlgmr.msra.gmra.mrb[0].mxu0 %vm260_vm1, %v229_v41 }
  0x3d   : > { %2427 = vmatpush3.bf16.msra.mxu0 %v2993_v42  ;;  %2495 = vmatmul.mubr.msk.bf16.vlgmr.msra.gmra.mrb[0].mxu1 %vm260_vm1, %v3079_v7  ;;  %v452_v7 = vld [vmem:[%s3071_s24 + $0x52] sm:$0xff]  ;;  %v1392_v42 = vpack.c.bf16 %v1384_v40, %v1383_v39 }
  0x3e   : > { %2515 = vmatpush3.bf16.msra.mxu1 %v2994_v43  ;;  %2410 = vmatprep.mubr.msk.bf16.mxu0 %vm3014_vm0, %v3013_v1  ;;  %v3254_v10 = vpack.c.bf16 %v452_v7, %v3136_v36  ;;  %v3002_v36 = vld [vmem:[%s3686_s2 + $0x70] sm:$0xff]  }
  0x3f   : > { %2498 = vmatprep.mubr.msk.bf16.mxu1 %vm3014_vm0, %v3013_v1  ;;  %2448 = vmatprep.subr.bf16.mxu0 %v3013_v1  ;;  %v1385_v43 = vld [vmem:[%s3071_s24 + $0x35] sm:$0xff] }
  0x40   : > { %2536 = vmatprep.subr.bf16.mxu1 %v3013_v1 }
  0x44   : > { %2411 = vmatmul.mubr.msk.bf16.gmra.mrb[4].mxu0 %vm260_vm1, %v230_v46  ;;  %v1393_v46 = vpack.c.bf16 %v1386_v44, %v1385_v43 }
  0x45   : > { %2499 = vmatmul.mubr.msk.bf16.gmra.mrb[4].mxu1 %vm260_vm1, %v247_v23  ;;  %2414 = vmatprep.mubr.msk.bf16.mxu0 %vm3014_vm0, %v3013_v1  ;;  %v3302_v23 = vld [vmem:[%s3071_s24 + $0x2c] sm:$0xff] }
  0x46   : > { %2502 = vmatprep.mubr.msk.bf16.mxu1 %vm3014_vm0, %v3013_v1  ;;  %v985_v26 = vpack.c.bf16 %v3305_v25, %v3302_v23  ;;  %v1270_v41 = vpack.c.bf16 %v3302_v23, %v3286_v21 }
  0x4c   : > { %2415 = vmatmul.mubr.msk.bf16.gmra.mrb[8].mxu0 %vm260_vm1, %v231_v49 }
  0x4d   : > { %2503 = vmatmul.mubr.msk.bf16.gmra.mrb[8].mxu1 %vm260_vm1, %v248_v28  ;;  %2418 = vmatprep.mubr.msk.bf16.mxu0 %vm3014_vm0, %v3013_v1  ;;  %v3320_v28 = vld [vmem:[%s3071_s24 + $0x44] sm:$0xff] }
  0x4e   : > { %2506 = vmatprep.mubr.msk.bf16.mxu1 %vm3014_vm0, %v3013_v1  ;;  %v986_v29 = vpack.c.bf16 %v3320_v28, %v3317_v27  ;;  %v1272_v49 = vpack.c.bf16 %v3332_v30, %v3320_v28 }
  0x54   : > { %2419 = vmatmul.mubr.msk.bf16.gmra.mrb[12].mxu0 %vm260_vm1, %v232_v52  ;;  %v1389_v52 = vld [vmem:[%s3071_s24 + $0x55] sm:$0xff] }
  0x55   : > { %2507 = vmatmul.mubr.msk.bf16.gmra.mrb[12].mxu1 %vm260_vm1, %v249_v32  ;;  %2422 = vmatprep.mubr.msk.bf16.mxu0 %vm3014_vm0, %v3013_v1  ;;  %v987_v32 = vpack.c.bf16 %v3335_v31, %v3332_v30 }
  0x56   : > { %2510 = vmatprep.mubr.msk.bf16.mxu1 %vm3014_vm0, %v3013_v1 }
  0x5c   : > { %2423 = vmatmul.mubr.msk.bf16.gmra.mrb[16].mxu0 %vm260_vm1, %v233_v55  ;;  %v1395_v55 = vpack.c.bf16 %v1390_v53, %v1389_v52 }
  0x5d   : > { %2511 = vmatmul.mubr.msk.bf16.gmra.mrb[16].mxu1 %vm260_vm1, %v250_v37  ;;  %2428 = vmatprep.mubr.msk.bf16.mxu0 %vm3014_vm0, %v3013_v1 }
  0x5e   : > { %2516 = vmatprep.mubr.msk.bf16.mxu1 %vm3014_vm0, %v3013_v1 }
  0x64   : > { %2429 = vmatmul.mubr.msk.bf16.vlgmr.msra.gmra.mrb[0].mxu0 %vm260_vm1, %v3091_v15 }
  0x65   : > { %2449 = vmatpush3.bf16.msra.mxu0 %v2995_v58  ;;  %2517 = vmatmul.mubr.msk.bf16.vlgmr.msra.gmra.mrb[0].mxu1 %vm260_vm1, %v3199_v59  ;;  %v1769_v58 = vpack.c.bf16 %v1760_v57, %v1759_v56 }
  0x66   : > { %2537 = vmatpush3.bf16.msra.mxu1 %v2996_v60  ;;  %2432 = vmatprep.mubr.msk.bf16.mxu0 %vm3014_vm0, %v3013_v1  ;;  %v1762_v60 = vld [vmem:[%s3071_s24 + $0x2e] sm:$0xff] }
  0x67   : > { %2520 = vmatprep.mubr.msk.bf16.mxu1 %vm3014_vm0, %v3013_v1  ;;  %2558 = vmatprep.subr.bf16.mxu0 %v3013_v1 }
  0x68   : > { %2646 = vmatprep.subr.bf16.mxu1 %v3013_v1 }
  0x6c   : > { %2433 = vmatmul.mubr.msk.bf16.gmra.mrb[4].mxu0 %vm260_vm1, %v3097_v19 }
  0x6d   : > { %2521 = vmatmul.mubr.msk.bf16.gmra.mrb[4].mxu1 %vm260_vm1, %v3216_v63  ;;  %2436 = vmatprep.mubr.msk.bf16.mxu0 %vm3014_vm0, %v3013_v1 }
  0x6e   : > { %2524 = vmatprep.mubr.msk.bf16.mxu1 %vm3014_vm0, %v3013_v1 }
  0x74   : > { %2437 = vmatmul.mubr.msk.bf16.gmra.mrb[8].mxu0 %vm260_vm1, %v3101_v20 }
  0x75   : > { %2525 = vmatmul.mubr.msk.bf16.gmra.mrb[8].mxu1 %vm260_vm1, %v3228_v3  ;;  %2440 = vmatprep.mubr.msk.bf16.mxu0 %vm3014_vm0, %v3013_v1 }
  0x76   : > { %2528 = vmatprep.mubr.msk.bf16.mxu1 %vm3014_vm0, %v3013_v1 }
  0x7c   : > { %2441 = vmatmul.mubr.msk.bf16.gmra.mrb[12].mxu0 %vm260_vm1, %v3109_v24 }
  0x7d   : > { %2529 = vmatmul.mubr.msk.bf16.gmra.mrb[12].mxu1 %vm260_vm1, %v3240_v6  ;;  %2444 = vmatprep.mubr.msk.bf16.mxu0 %vm3014_vm0, %v3013_v1 }
  0x7e   : > { %2532 = vmatprep.mubr.msk.bf16.mxu1 %vm3014_vm0, %v3013_v1 }
  0x84   : > { %2445 = vmatmul.mubr.msk.bf16.gmra.mrb[16].mxu0 %vm260_vm1, %v3254_v10 }
  0x85   : > { %2533 = vmatmul.mubr.msk.bf16.gmra.mrb[16].mxu1 %vm260_vm1, %v3256_v11  ;;  %2450 = vmatprep.mubr.msk.bf16.mxu0 %vm3014_vm0, %v3013_v1 }
  0x86   : > { %2538 = vmatprep.mubr.msk.bf16.mxu1 %vm3014_vm0, %v3013_v1 }
  0x8c   : > { %2451 = vmatmul.mubr.msk.bf16.vlgmr.msra.gmra.mrb[0].mxu0 %vm260_vm1, %v3199_v59 }
  0x8d   : > { %2539 = vmatmul.mubr.msk.bf16.vlgmr.msra.gmra.mrb[0].mxu1 %vm260_vm1, %v983_v14  ;;  %2559 = vmatpush3.bf16.msra.mxu0 %v2997_v16 }
  0x8e   : > { %2647 = vmatpush3.bf16.msra.mxu1 %v2998_v17  ;;  %2454 = vmatprep.mubr.msk.bf16.mxu0 %vm3014_vm0, %v3013_v1 }
  0x8f   : > { %2542 = vmatprep.mubr.msk.bf16.mxu1 %vm3014_vm0, %v3013_v1  ;;  %2580 = vmatprep.subr.bf16.mxu0 %v3013_v1 }
  0x90   : > { %2668 = vmatprep.subr.bf16.mxu1 %v3013_v1 }
  0x94   : > { %2455 = vmatmul.mubr.msk.bf16.gmra.mrb[4].mxu0 %vm260_vm1, %v3216_v63 }
  0x95   : > { %2543 = vmatmul.mubr.msk.bf16.gmra.mrb[4].mxu1 %vm260_vm1, %v984_v22  ;;  %2458 = vmatprep.mubr.msk.bf16.mxu0 %vm3014_vm0, %v3013_v1 }
  0x96   : > { %2546 = vmatprep.mubr.msk.bf16.mxu1 %vm3014_vm0, %v3013_v1 }
  0x9c   : > { %2459 = vmatmul.mubr.msk.bf16.gmra.mrb[8].mxu0 %vm260_vm1, %v3228_v3 }
  0x9d   : > { %2547 = vmatmul.mubr.msk.bf16.gmra.mrb[8].mxu1 %vm260_vm1, %v985_v26  ;;  %2462 = vmatprep.mubr.msk.bf16.mxu0 %vm3014_vm0, %v3013_v1 }
  0x9e   : > { %2550 = vmatprep.mubr.msk.bf16.mxu1 %vm3014_vm0, %v3013_v1 }
  0xa4   : > { %2463 = vmatmul.mubr.msk.bf16.gmra.mrb[12].mxu0 %vm260_vm1, %v3240_v6 }
  0xa5   : > { %2551 = vmatmul.mubr.msk.bf16.gmra.mrb[12].mxu1 %vm260_vm1, %v986_v29  ;;  %2466 = vmatprep.mubr.msk.bf16.mxu0 %vm3014_vm0, %v3013_v1 }
  0xa6   : > { %2554 = vmatprep.mubr.msk.bf16.mxu1 %vm3014_vm0, %v3013_v1 }
  0xac   : > { %2467 = vmatmul.mubr.msk.bf16.gmra.mrb[16].mxu0 %vm260_vm1, %v3256_v11 }
  0xad   : > { %2555 = vmatmul.mubr.msk.bf16.gmra.mrb[16].mxu1 %vm260_vm1, %v987_v32  ;;  %2560 = vmatprep.mubr.msk.bf16.mxu0 %vm3014_vm0, %v3013_v1 }
  0xae   : > { %2648 = vmatprep.mubr.msk.bf16.mxu1 %vm3014_vm0, %v3013_v1 }
  0xb4   : > { %2561 = vmatmul.mubr.msk.bf16.vlgmr.msra.gmra.mrb[20].mxu0 %vm260_vm1, %v3199_v59 }
  0xb5   : > { %2581 = vmatpush3.bf16.msra.mxu0 %v2999_v33  ;;  %2649 = vmatmul.mubr.msk.bf16.vlgmr.msra.gmra.mrb[20].mxu1 %vm260_vm1, %v983_v14 }
  0xb6   : > { %2669 = vmatpush3.bf16.msra.mxu1 %v3000_v34  ;;  %2564 = vmatprep.mubr.msk.bf16.mxu0 %vm3014_vm0, %v3013_v1 }
  0xb7   : > { %2652 = vmatprep.mubr.msk.bf16.mxu1 %vm3014_vm0, %v3013_v1  ;;  %2602 = vmatprep.subr.bf16.mxu0 %v3013_v1 }
  0xb8   : > { %2690 = vmatprep.subr.bf16.mxu1 %v3013_v1 }
  0xbc   : > { %2565 = vmatmul.mubr.msk.bf16.gmra.mrb[24].mxu0 %vm260_vm1, %v3216_v63 }
  0xbd   : > { %2653 = vmatmul.mubr.msk.bf16.gmra.mrb[24].mxu1 %vm260_vm1, %v984_v22  ;;  %2568 = vmatprep.mubr.msk.bf16.mxu0 %vm3014_vm0, %v3013_v1 }
  0xbe   : > { %2656 = vmatprep.mubr.msk.bf16.mxu1 %vm3014_vm0, %v3013_v1 }
  0xc4   : > { %2569 = vmatmul.mubr.msk.bf16.gmra.mrb[28].mxu0 %vm260_vm1, %v3228_v3 }
  0xc5   : > { %2657 = vmatmul.mubr.msk.bf16.gmra.mrb[28].mxu1 %vm260_vm1, %v985_v26  ;;  %2572 = vmatprep.mubr.msk.bf16.mxu0 %vm3014_vm0, %v3013_v1 }
  0xc6   : > { %2660 = vmatprep.mubr.msk.bf16.mxu1 %vm3014_vm0, %v3013_v1 }
  0xcc   : > { %2573 = vmatmul.mubr.msk.bf16.gmra.mrb[32].mxu0 %vm260_vm1, %v3240_v6 }
  0xcd   : > { %2661 = vmatmul.mubr.msk.bf16.gmra.mrb[32].mxu1 %vm260_vm1, %v986_v29  ;;  %2576 = vmatprep.mubr.msk.bf16.mxu0 %vm3014_vm0, %v3013_v1 }
  0xce   : > { %2664 = vmatprep.mubr.msk.bf16.mxu1 %vm3014_vm0, %v3013_v1 }
  0xd4   : > { %2577 = vmatmul.mubr.msk.bf16.gmra.mrb[36].mxu0 %vm260_vm1, %v3256_v11 }
  0xd5   : > { %2665 = vmatmul.mubr.msk.bf16.gmra.mrb[36].mxu1 %vm260_vm1, %v987_v32  ;;  %2582 = vmatprep.mubr.msk.bf16.mxu0 %vm3014_vm0, %v3013_v1 }
  0xd6   : > { %2670 = vmatprep.mubr.msk.bf16.mxu1 %vm3014_vm0, %v3013_v1 }
  0xdc   : > { %2583 = vmatmul.mubr.msk.bf16.vlgmr.msra.gmra.mrb[20].mxu0 %vm260_vm1, %v3091_v15  ;;  %v1381_v15 = vld [vmem:[%s3071_s24 + $0x15] sm:$0xff] }
  0xdd   : > { %2603 = vmatpush3.bf16.msra.mxu0 %v3001_v35  ;;  %2671 = vmatmul.mubr.msk.bf16.vlgmr.msra.gmra.mrb[20].mxu1 %vm260_vm1, %v3199_v59  ;;  %v1761_v59 = vld [vmem:[%s3071_s24 + $0x26] sm:$0xff] }
  0xde   : > { %2691 = vmatpush3.bf16.msra.mxu1 %v3002_v36  ;;  %2586 = vmatprep.mubr.msk.bf16.mxu0 %vm3014_vm0, %v3013_v1  ;;  %v1770_v61 = vpack.c.bf16 %v1762_v60, %v1761_v59 }
  0xdf   : > { %2674 = vmatprep.mubr.msk.bf16.mxu1 %vm3014_vm0, %v3013_v1  ;;  %2624 = vmatprep.subr.bf16.mxu0 %v3013_v1 }
  0xe0   : > { %2712 = vmatprep.subr.bf16.mxu1 %v3013_v1 }
  0xe4   : > { %2587 = vmatmul.mubr.msk.bf16.gmra.mrb[24].mxu0 %vm260_vm1, %v3097_v19  ;;  %v1382_v19 = vld [vmem:[%s3071_s24 + $0x1d] sm:$0xff] }
  0xe5   : > { %2675 = vmatmul.mubr.msk.bf16.gmra.mrb[24].mxu1 %vm260_vm1, %v3216_v63  ;;  %2590 = vmatprep.mubr.msk.bf16.mxu0 %vm3014_vm0, %v3013_v1  ;;  %v1391_v37 = vpack.c.bf16 %v1382_v19, %v1381_v15  ;;  %v1764_v63 = vld [vmem:[%s3071_s24 + $0x3e] sm:$0xff] }
  0xe6   : > { %2678 = vmatprep.mubr.msk.bf16.mxu1 %vm3014_vm0, %v3013_v1  ;;  %v1771_v0 = vpack.c.bf16 %v1764_v63, %v1763_v62 }
  0xec   : > { %2591 = vmatmul.mubr.msk.bf16.gmra.mrb[28].mxu0 %vm260_vm1, %v3101_v20  ;;  %v1269_v20 = vpack.c.bf16 %v3283_v18, %v3268_v13 }
  0xed   : > { %2679 = vmatmul.mubr.msk.bf16.gmra.mrb[28].mxu1 %vm260_vm1, %v3228_v3  ;;  %2594 = vmatprep.mubr.msk.bf16.mxu0 %vm3014_vm0, %v3013_v1  ;;  %v1766_v3 = vld [vmem:[%s3071_s24 + $0x4e] sm:$0xff] }
  0xee   : > { %2682 = vmatprep.mubr.msk.bf16.mxu1 %vm3014_vm0, %v3013_v1  ;;  %v1772_v4 = vpack.c.bf16 %v1766_v3, %v1765_v2 }
  0xf4   : > { %2595 = vmatmul.mubr.msk.bf16.gmra.mrb[32].mxu0 %vm260_vm1, %v3109_v24  ;;  %v3003_v24 = vld [vmem:[%s3686_s2 + $0x58] sm:$0xff]  }
  0xf5   : > { %2683 = vmatmul.mubr.msk.bf16.gmra.mrb[32].mxu1 %vm260_vm1, %v3240_v6  ;;  %2598 = vmatprep.mubr.msk.bf16.mxu0 %vm3014_vm0, %v3013_v1  ;;  %v1768_v6 = vld [vmem:[%s3071_s24 + $0x5e] sm:$0xff]  ;;  %s3016_s24 = smov 6  }
  0xf6   : > { %2686 = vmatprep.mubr.msk.bf16.mxu1 %vm3014_vm0, %v3013_v1  ;;  %v1773_v7 = vpack.c.bf16 %v1768_v6, %v1767_v5 }
  0xfc   : > { %2599 = vmatmul.mubr.msk.bf16.gmra.mrb[36].mxu0 %vm260_vm1, %v3254_v10 }
  0xfd   : > { %2687 = vmatmul.mubr.msk.bf16.gmra.mrb[36].mxu1 %vm260_vm1, %v3256_v11  ;;  %2604 = vmatprep.mubr.msk.bf16.mxu0 %vm3014_vm0, %v3013_v1 }
  0xfe   : > { %2692 = vmatprep.mubr.msk.bf16.mxu1 %vm3014_vm0, %v3013_v1 }
 0x104   : > { %2605 = vmatmul.mubr.msk.bf16.vlgmr.msra.gmra.mrb[20].mxu0 %vm260_vm1, %v1269_v20 }
 0x105   : > { %2625 = vmatpush3.bf16.msra.mxu0 %v3003_v24  ;;  %2693 = vmatmul.mubr.msk.bf16.vlgmr.msra.gmra.mrb[20].mxu1 %vm260_vm1, %v1391_v37 }
 0x106   : > { %2713 = vmatpush3.bf16.msra.mxu1 %v3004_v38  ;;  %2608 = vmatprep.mubr.msk.bf16.mxu0 %vm3014_vm0, %v3013_v1 }
 0x107   : > { %2696 = vmatprep.mubr.msk.bf16.mxu1 %vm3014_vm0, %v3013_v1 }
 0x10c   : > { %2609 = vmatmul.mubr.msk.bf16.gmra.mrb[24].mxu0 %vm260_vm1, %v1270_v41 }
 0x10d   : > { %2697 = vmatmul.mubr.msk.bf16.gmra.mrb[24].mxu1 %vm260_vm1, %v1392_v42  ;;  %2612 = vmatprep.mubr.msk.bf16.mxu0 %vm3014_vm0, %v3013_v1 }
 0x10e   : > { %2700 = vmatprep.mubr.msk.bf16.mxu1 %vm3014_vm0, %v3013_v1 }
 0x114   : > { %2613 = vmatmul.mubr.msk.bf16.gmra.mrb[28].mxu0 %vm260_vm1, %v1271_v45 }
 0x115   : > { %2701 = vmatmul.mubr.msk.bf16.gmra.mrb[28].mxu1 %vm260_vm1, %v1393_v46  ;;  %2616 = vmatprep.mubr.msk.bf16.mxu0 %vm3014_vm0, %v3013_v1 }
 0x116   : > { %2704 = vmatprep.mubr.msk.bf16.mxu1 %vm3014_vm0, %v3013_v1 }
 0x11c   : > { %2617 = vmatmul.mubr.msk.bf16.gmra.mrb[32].mxu0 %vm260_vm1, %v1272_v49 }
 0x11d   : > { %2705 = vmatmul.mubr.msk.bf16.gmra.mrb[32].mxu1 %vm260_vm1, %v1394_v50  ;;  %2620 = vmatprep.mubr.msk.bf16.mxu0 %vm3014_vm0, %v3013_v1 }
 0x11e   : > { %2708 = vmatprep.mubr.msk.bf16.mxu1 %vm3014_vm0, %v3013_v1 }
 0x124   : > { %2621 = vmatmul.mubr.msk.bf16.gmra.mrb[36].mxu0 %vm260_vm1, %v1273_v54 }
 0x125   : > { %2709 = vmatmul.mubr.msk.bf16.gmra.mrb[36].mxu1 %vm260_vm1, %v1395_v55  ;;  %2626 = vmatprep.mubr.msk.bf16.mxu0 %vm3014_vm0, %v3013_v1 }
 0x126   : > { %2714 = vmatprep.mubr.msk.bf16.mxu1 %vm3014_vm0, %v3013_v1 }
 0x12c   : > { %2627 = vmatmul.mubr.msk.bf16.vlgmr.msra.gmra.mrb[20].mxu0 %vm260_vm1, %v1391_v37 }
 0x12d   : > { %2715 = vmatmul.mubr.msk.bf16.vlgmr.msra.gmra.mrb[20].mxu1 %vm260_vm1, %v1769_v58  ;;  %2630 = vmatprep.mubr.msk.bf16.mxu0 %vm3014_vm0, %v3013_v1 }
 0x12e   : > { %2718 = vmatprep.mubr.msk.bf16.mxu1 %vm3014_vm0, %v3013_v1 }
 0x134   : > { %2631 = vmatmul.mubr.msk.bf16.gmra.mrb[24].mxu0 %vm260_vm1, %v1392_v42 }
 0x135   : > { %2719 = vmatmul.mubr.msk.bf16.gmra.mrb[24].mxu1 %vm260_vm1, %v1770_v61  ;;  %2634 = vmatprep.mubr.msk.bf16.mxu0 %vm3014_vm0, %v3013_v1 }
 0x136   : > { %2722 = vmatprep.mubr.msk.bf16.mxu1 %vm3014_vm0, %v3013_v1 }
 0x13c   : > { %2635 = vmatmul.mubr.msk.bf16.gmra.mrb[28].mxu0 %vm260_vm1, %v1393_v46 }
 0x13d   : > { %2723 = vmatmul.mubr.msk.bf16.gmra.mrb[28].mxu1 %vm260_vm1, %v1771_v0  ;;  %2638 = vmatprep.mubr.msk.bf16.mxu0 %vm3014_vm0, %v3013_v1 }
 0x13e   : > { %2726 = vmatprep.mubr.msk.bf16.mxu1 %vm3014_vm0, %v3013_v1 }
 0x144   : > { %2639 = vmatmul.mubr.msk.bf16.gmra.mrb[32].mxu0 %vm260_vm1, %v1394_v50 }
 0x145   : > { %2727 = vmatmul.mubr.msk.bf16.gmra.mrb[32].mxu1 %vm260_vm1, %v1772_v4  ;;  %2642 = vmatprep.mubr.msk.bf16.mxu0 %vm3014_vm0, %v3013_v1 }
 0x146   : > { %2730 = vmatprep.mubr.msk.bf16.mxu1 %vm3014_vm0, %v3013_v1 }
 0x14c   : > { %2643 = vmatmul.mubr.msk.bf16.gmra.mrb[36].mxu0 %vm260_vm1, %v1395_v55 }
 0x14d   : > { %2731 = vmatmul.mubr.msk.bf16.gmra.mrb[36].mxu1 %vm260_vm1, %v1773_v7 }
 0x15f   : > { %v3529_v8 = vpop.f32.mrb[0].mxu0 }
 0x160   : > { %v1046_v9 = vpop.f32.mrb[0].mxu1  ;;  %v2452_v10 = vpop.f32.mrb[1].mxu0 }
 0x161   : > { %1891 = vrot.lane.b32.xlu0 %v1046_v9, %s3015_s30  ;;  %v2540_v11 = vpop.f32.mrb[1].mxu1  ;;  %v3532_v12 = vpop.f32.mrb[2].mxu0 }
 0x162   : > { %v1049_v13 = vpop.f32.mrb[2].mxu1  ;;  %v2453_v14 = vpop.f32.mrb[3].mxu0 }
 0x163   : > { %v2541_v1 = vpop.f32.mrb[3].mxu1 }
 0x165   : > { %1893 = vrot.lane.b32.xlu0 %v1049_v13, %s3015_s30 }
 0x167   : > { %v3535_v16 = vpop.f32.mrb[4].mxu0 }
 0x168   : > { %v1054_v17 = vpop.f32.mrb[4].mxu1  ;;  %v2456_v18 = vpop.f32.mrb[5].mxu0 }
 0x169   : > { %1895 = vrot.lane.b32.xlu1 %v1054_v17, %s3015_s30  ;;  %v2544_v21 = vpop.f32.mrb[5].mxu1  ;;  %v3538_v22 = vpop.f32.mrb[6].mxu0 }
 0x16a   : > { %v1057_v23 = vpop.f32.mrb[6].mxu1  ;;  %v2457_v25 = vpop.f32.mrb[7].mxu0 }
 0x16b   : > { %v2545_v26 = vpop.f32.mrb[7].mxu1 }
 0x16d   : > { %1897 = vrot.lane.b32.xlu1 %v1057_v23, %s3015_s30 }
 0x16f   : > { %v3541_v27 = vpop.f32.mrb[8].mxu0 }
 0x170   : > { %v1062_v28 = vpop.f32.mrb[8].mxu1  ;;  %v2460_v29 = vpop.f32.mrb[9].mxu0 }
 0x171   : > { %1899 = vrot.lane.b32.xlu0 %v1062_v28, %s3015_s30  ;;  %v2548_v30 = vpop.f32.mrb[9].mxu1  ;;  %v3544_v31 = vpop.f32.mrb[10].mxu0 }
 0x172   : > { %v1065_v32 = vpop.f32.mrb[10].mxu1  ;;  %v2461_v33 = vpop.f32.mrb[11].mxu0 }
 0x173   : > { %1901 = vrot.lane.b32.xlu1 %v1065_v32, %s3015_s30  ;;  %v2549_v34 = vpop.f32.mrb[11].mxu1 }
 0x177   : > { %v3547_v35 = vpop.f32.mrb[12].mxu0 }
 0x178   : > { %v1070_v36 = vpop.f32.mrb[12].mxu1  ;;  %v2464_v15 = vpop.f32.mrb[13].mxu0 }
 0x179   : > { %1903 = vrot.lane.b32.xlu0 %v1070_v36, %s3015_s30  ;;  %v2552_v19 = vpop.f32.mrb[13].mxu1  ;;  %v3550_v20 = vpop.f32.mrb[14].mxu0 }
 0x17a   : > { %v1073_v24 = vpop.f32.mrb[14].mxu1  ;;  %v2465_v37 = vpop.f32.mrb[15].mxu0 }
 0x17b   : > { %1905 = vrot.lane.b32.xlu1 %v1073_v24, %s3015_s30  ;;  %v2553_v38 = vpop.f32.mrb[15].mxu1 }
 0x17f   : > { %v3553_v39 = vpop.f32.mrb[16].mxu0 }
 0x180   : > { %v1078_v40 = vpop.f32.mrb[16].mxu1  ;;  %v2468_v41 = vpop.f32.mrb[17].mxu0 }
 0x181   : > { %1907 = vrot.lane.b32.xlu0 %v1078_v40, %s3015_s30  ;;  %v2556_v42 = vpop.f32.mrb[17].mxu1  ;;  %v3556_v43 = vpop.f32.mrb[18].mxu0 }
 0x182   : > { %v1081_v44 = vpop.f32.mrb[18].mxu1  ;;  %v2469_v45 = vpop.f32.mrb[19].mxu0 }
 0x183   : > { %1909 = vrot.lane.b32.xlu1 %v1081_v44, %s3015_s30  ;;  %v2557_v46 = vpop.f32.mrb[19].mxu1 }
 0x184   : > { %v3596_v46 = vld [vmem:[%s3687_s3] ss:$0 sm:$0xff] }
 0x1d3   : > { %v1892_v33 = vpop.permute.xlu0 %1891 }
 0x1d4   : > { %v2002_v45 = vsel %vm2001_vm2, %v3529_v8, %v1892_v33 }
 0x1d7   : > { %v1894_v36 = vpop.permute.xlu0 %1893 }
 0x1db   : > { %v1896_v34 = vpop.permute.xlu1 %1895 }
 0x1df   : > { %v1898_v15 = vpop.permute.xlu1 %1897 }
 0x1e3   : > { %v1900_v19 = vpop.permute.xlu0 %1899 }
 0x1e5   : > { %v1902_v24 = vpop.permute.xlu1 %1901 }
 0x1eb   : > { %v3579_v37 = vpop.permute.xlu0 %1903 }
 0x1ed   : > { %v3581_v38 = vpop.permute.xlu1 %1905 }
 0x1f3   : > { %v3583_v40 = vpop.permute.xlu0 %1907 }
 0x1f5   : > { %v3586_v41 = vpop.permute.xlu1 %1909 }
 0x1ff   : > { %v1454_v47 = vpop.f32.mrb[20].mxu0 }
 0x200   : > { %v1832_v48 = vpop.f32.mrb[20].mxu1  ;;  %1931 = vrot.lane.b32.xlu0 %v1454_v47, %s3016_s24  ;;  %v2628_v49 = vpop.f32.mrb[21].mxu0 }
 0x201   : > { %v2716_v50 = vpop.f32.mrb[21].mxu1  ;;  %v1457_v51 = vpop.f32.mrb[22].mxu0 }
 0x202   : > { %v1835_v52 = vpop.f32.mrb[22].mxu1  ;;  %1933 = vrot.lane.b32.xlu1 %v1457_v51, %s3016_s24  ;;  %v2629_v53 = vpop.f32.mrb[23].mxu0  ;;  %v2003_v50 = vsel %vm2001_vm2, %v3532_v12, %v1894_v36 }
 0x203   : > { %v2717_v54 = vpop.f32.mrb[23].mxu1  ;;  %v2053_v53 = vld [vmem:[%s212_s9 + $0x10] sm:$0xff] }
 0x204   : > { %1971 = vrot.lane.b32.xlu0 %v1832_v48, %s3017_s5  ;;  %v2051_v48 = vld [vmem:[%s212_s9] sm:$0xff]  ;;  %v2054_v54 = vld [vmem:[%s212_s9 + $0x18] sm:$0xff] }
 0x206   : > { %1973 = vrot.lane.b32.xlu1 %v1835_v52, %s3017_s5  ;;  %v2052_v52 = vld [vmem:[%s212_s9 + $0x8] sm:$0xff] }
 0x207   : > { %v1462_v55 = vpop.f32.mrb[24].mxu0 }
 0x208   : > { %v1840_v56 = vpop.f32.mrb[24].mxu1  ;;  %1935 = vrot.lane.b32.xlu0 %v1462_v55, %s3016_s24  ;;  %v2632_v57 = vpop.f32.mrb[25].mxu0 }
 0x209   : > { %v2720_v58 = vpop.f32.mrb[25].mxu1  ;;  %v1465_v59 = vpop.f32.mrb[26].mxu0  ;;  %v2055_v57 = vld [vmem:[%s212_s9 + $0x20] sm:$0xff] }
 0x20a   : > { %v1843_v60 = vpop.f32.mrb[26].mxu1  ;;  %1937 = vrot.lane.b32.xlu1 %v1465_v59, %s3016_s24  ;;  %v2633_v61 = vpop.f32.mrb[27].mxu0  ;;  %v2056_v58 = vld [vmem:[%s212_s9 + $0x28] sm:$0xff]  ;;  %v2057_v59 = vld [vmem:[%s212_s9 + $0x30] sm:$0xff] }
 0x20b   : > { %v2721_v62 = vpop.f32.mrb[27].mxu1  ;;  %v3610_v61 = vld [vmem:[%s212_s9 + $0x40] sm:$0xff] }
 0x20c   : > { %1975 = vrot.lane.b32.xlu0 %v1840_v56, %s3017_s5  ;;  %v3612_v62 = vld [vmem:[%s212_s9 + $0x48] sm:$0xff] }
 0x20e   : > { %1977 = vrot.lane.b32.xlu1 %v1843_v60, %s3017_s5  ;;  %v2058_v60 = vld [vmem:[%s212_s9 + $0x38] sm:$0xff] }
 0x20f   : > { %v1470_v63 = vpop.f32.mrb[28].mxu0 }
 0x210   : > { %v1848_v0 = vpop.f32.mrb[28].mxu1  ;;  %1939 = vrot.lane.b32.xlu0 %v1470_v63, %s3016_s24  ;;  %v2636_v2 = vpop.f32.mrb[29].mxu0 }
 0x211   : > { %v2724_v3 = vpop.f32.mrb[29].mxu1  ;;  %v1473_v4 = vpop.f32.mrb[30].mxu0 }
 0x212   : > { %v1851_v5 = vpop.f32.mrb[30].mxu1  ;;  %1941 = vrot.lane.b32.xlu1 %v1473_v4, %s3016_s24  ;;  %v2637_v6 = vpop.f32.mrb[31].mxu0 }
 0x213   : > { %v2725_v7 = vpop.f32.mrb[31].mxu1 }
 0x214   : > { %1979 = vrot.lane.b32.xlu0 %v1848_v0, %s3017_s5 }
 0x216   : > { %1981 = vrot.lane.b32.xlu1 %v1851_v5, %s3017_s5  ;;  %v2004_v5 = vsel %vm2001_vm2, %v3535_v16, %v1896_v34 }
 0x217   : > { %v1478_v9 = vpop.f32.mrb[32].mxu0 }
 0x218   : > { %v1856_v10 = vpop.f32.mrb[32].mxu1  ;;  %1943 = vrot.lane.b32.xlu0 %v1478_v9, %s3016_s24  ;;  %v2640_v11 = vpop.f32.mrb[33].mxu0  ;;  %v2005_v9 = vsel %vm2001_vm2, %v3538_v22, %v1898_v15  ;;  %v2006_v22 = vsel %vm2001_vm2, %v3541_v27, %v1900_v19 }
 0x219   : > { %v2728_v13 = vpop.f32.mrb[33].mxu1  ;;  %v1481_v14 = vpop.f32.mrb[34].mxu0 }
 0x21a   : > { %v1859_v1 = vpop.f32.mrb[34].mxu1  ;;  %1945 = vrot.lane.b32.xlu1 %v1481_v14, %s3016_s24  ;;  %v2641_v17 = vpop.f32.mrb[35].mxu0 }
 0x21b   : > { %v2729_v18 = vpop.f32.mrb[35].mxu1 }
 0x21c   : > { %1983 = vrot.lane.b32.xlu0 %v1856_v10, %s3017_s5 }
 0x21e   : > { %1985 = vrot.lane.b32.xlu1 %v1859_v1, %s3017_s5 }
 0x21f   : > { %v1486_v21 = vpop.f32.mrb[36].mxu0 }
 0x220   : > { %v1864_v23 = vpop.f32.mrb[36].mxu1  ;;  %1947 = vrot.lane.b32.xlu0 %v1486_v21, %s3016_s24  ;;  %v2644_v25 = vpop.f32.mrb[37].mxu0 }
 0x221   : > { %v2732_v26 = vpop.f32.mrb[37].mxu1  ;;  %v1489_v28 = vpop.f32.mrb[38].mxu0 }
 0x222   : > { %v1867_v29 = vpop.f32.mrb[38].mxu1  ;;  %1949 = vrot.lane.b32.xlu1 %v1489_v28, %s3016_s24  ;;  %v2645_v30 = vpop.f32.mrb[39].mxu0  ;;  %v2007_v28 = vsel %vm2001_vm2, %v3544_v31, %v1902_v24  ;;  %v2008_v31 = vsel %vm2001_vm2, %v3547_v35, %v3579_v37 }
 0x223   : > { %v2733_v32 = vpop.f32.mrb[39].mxu1 }
 0x224   : > { %1987 = vrot.lane.b32.xlu0 %v1864_v23, %s3017_s5 }
 0x226   : > { %1989 = vrot.lane.b32.xlu1 %v1867_v29, %s3017_s5 }
 0x272   : > { %v1932_v42 = vpop.permute.xlu0 %1931 }
 0x273   : > { %v2013_v47 = vsel %vm2012_vm3, %v2002_v45, %v1932_v42  ;;  %v2009_v45 = vsel %vm2001_vm2, %v3550_v20, %v3581_v38  ;;  %v2010_v20 = vsel %vm2001_vm2, %v3553_v39, %v3583_v40 }
 0x274   : > { %v1934_v44 = vpop.permute.xlu1 %1933 }
 0x275   : > { %v2014_v55 = vsel %vm2012_vm3, %v2003_v50, %v1934_v44 }
 0x276   : > { %v1972_v49 = vpop.permute.xlu0 %1971 }
 0x277   : > { %v2024_v51 = vsel %vm2023_vm4, %v2013_v47, %v1972_v49 }
 0x278   : > { %v2041_v8 = vadd.f32 %v3596_v46, %v2024_v51  ;;  %v1974_v56 = vpop.permute.xlu1 %1973 }
 0x279   : > { %v2025_v12 = vsel %vm2023_vm4, %v2014_v55, %v1974_v56 }
 0x27a   : > { %v2061_v63 = vadd.f32 %v2051_v48, %v2041_v8  ;;  %v2042_v0 = vadd.f32 %v3596_v46, %v2025_v12  ;;  %v1936_v2 = vpop.permute.xlu0 %1935  ;;  %v2011_v8 = vsel %vm2001_vm2, %v3556_v43, %v3586_v41 }
 0x27b   : > { %v2015_v6 = vsel %vm2012_vm3, %v2004_v5, %v1936_v2 }
 0x27c   : > { %v2062_v3 = vadd.f32 %v2052_v52, %v2042_v0  ;;  %v1938_v4 = vpop.permute.xlu1 %1937  ;;  %2072 = vst.msk [vmem:[%s3607_s13] sm:$0xff] %vm2071_vm5, %v2061_v63 }
 0x27d   : > { %v2016_v11 = vsel %vm2012_vm3, %v2005_v9, %v1938_v4 }
 0x27e   : > { %v1976_v7 = vpop.permute.xlu0 %1975  ;;  %2073 = vst.msk [vmem:[%s3607_s13 + $0x8] sm:$0xff] %vm2071_vm5, %v2062_v3 }
 0x27f   : > { %v2026_v10 = vsel %vm2023_vm4, %v2015_v6, %v1976_v7 }
 0x280   : > { %v2043_v13 = vadd.f32 %v3596_v46, %v2026_v10  ;;  %v1978_v14 = vpop.permute.xlu1 %1977 }
 0x281   : > { %v2027_v1 = vsel %vm2023_vm4, %v2016_v11, %v1978_v14 }
 0x282   : > { %v2063_v17 = vadd.f32 %v2053_v53, %v2043_v13  ;;  %v2044_v16 = vadd.f32 %v3596_v46, %v2027_v1  ;;  %v1940_v18 = vpop.permute.xlu0 %1939 }
 0x283   : > { %v2017_v25 = vsel %vm2012_vm3, %v2006_v22, %v1940_v18 }
 0x284   : > { %v2064_v21 = vadd.f32 %v2054_v54, %v2044_v16  ;;  %v1942_v23 = vpop.permute.xlu1 %1941  ;;  %2074 = vst.msk [vmem:[%s3607_s13 + $0x10] sm:$0xff] %vm2071_vm5, %v2063_v17 }
 0x285   : > { %v2018_v30 = vsel %vm2012_vm3, %v2007_v28, %v1942_v23 }
 0x286   : > { %v1980_v26 = vpop.permute.xlu0 %1979  ;;  %2075 = vst.msk [vmem:[%s3607_s13 + $0x18] sm:$0xff] %vm2071_vm5, %v2064_v21 }
 0x287   : > { %v2028_v29 = vsel %vm2023_vm4, %v2017_v25, %v1980_v26 }
 0x288   : > { %v2045_v32 = vadd.f32 %v3596_v46, %v2028_v29  ;;  %v1982_v33 = vpop.permute.xlu1 %1981 }
 0x289   : > { %v2029_v34 = vsel %vm2023_vm4, %v2018_v30, %v1982_v33 }
 0x28a   : > { %v2065_v36 = vadd.f32 %v2055_v57, %v2045_v32  ;;  %v2046_v27 = vadd.f32 %v3596_v46, %v2029_v34  ;;  %v1944_v15 = vpop.permute.xlu0 %1943 }
 0x28b   : > { %v2019_v24 = vsel %vm2012_vm3, %v2008_v31, %v1944_v15 }
 0x28c   : > { %v2066_v19 = vadd.f32 %v2056_v58, %v2046_v27  ;;  %v1946_v42 = vpop.permute.xlu1 %1945  ;;  %2076 = vst.msk [vmem:[%s3607_s13 + $0x20] sm:$0xff] %vm2071_vm5, %v2065_v36 }
 0x28d   : > { %v2020_v48 = vsel %vm2012_vm3, %v2009_v45, %v1946_v42 }
 0x28e   : > { %v1984_v44 = vpop.permute.xlu0 %1983  ;;  %2077 = vst.msk [vmem:[%s3607_s13 + $0x28] sm:$0xff] %vm2071_vm5, %v2066_v19 }
 0x28f   : > { %v2030_v47 = vsel %vm2023_vm4, %v2019_v24, %v1984_v44 }
 0x290   : > { %v2047_v49 = vadd.f32 %v3596_v46, %v2030_v47  ;;  %v1986_v50 = vpop.permute.xlu1 %1985 }
 0x291   : > { %v2031_v51 = vsel %vm2023_vm4, %v2020_v48, %v1986_v50 }
 0x292   : > { %v2067_v35 = vadd.f32 %v2057_v59, %v2047_v49  ;;  %v2048_v37 = vadd.f32 %v3596_v46, %v2031_v51  ;;  %v1948_v52 = vpop.permute.xlu0 %1947 }
 0x293   : > { %v2021_v38 = vsel %vm2012_vm3, %v2010_v20, %v1948_v52 }
 0x294   : > { %v2068_v53 = vadd.f32 %v2058_v60, %v2048_v37  ;;  %v1950_v54 = vpop.permute.xlu1 %1949  ;;  %2078 = vst.msk [vmem:[%s3607_s13 + $0x30] sm:$0xff] %vm2071_vm5, %v2067_v35 }
 0x295   : > { %v2022_v57 = vsel %vm2012_vm3, %v2011_v8, %v1950_v54 }
 0x296   : > { %v1988_v55 = vpop.permute.xlu0 %1987  ;;  %2079 = vst.msk [vmem:[%s3607_s13 + $0x38] sm:$0xff] %vm2071_vm5, %v2068_v53 }
 0x297   : > { %v2032_v56 = vsel %vm2023_vm4, %v2021_v38, %v1988_v55 }
 0x298   : > { %v2049_v58 = vadd.f32 %v3596_v46, %v2032_v56  ;;  %v1990_v59 = vpop.permute.xlu1 %1989 }
 0x299   : > { %v2033_v12 = vsel %vm2023_vm4, %v2022_v57, %v1990_v59 }
 0x29a   : > { %v2069_v39 = vadd.f32 %v3610_v61, %v2049_v58  ;;  %v2050_v40 = vadd.f32 %v3596_v46, %v2033_v12 }
 0x29c   : > { %2080 = vst.msk [vmem:[%s3607_s13 + $0x40] sm:$0xff] %vm2071_vm5, %v2069_v39  ;;  %v2070_v60 = vadd.f32 %v3612_v62, %v2050_v40 }
 0x29e   : > { %2081 = vst.msk [vmem:[%s3607_s13 + $0x48] sm:$0xff] %vm2071_vm5, %v2070_v60 }
 0x29f PF: > { %s14_s15 = sadd.s32 1, %s3011_s15  }
 0x2a0   : > { %p11_p4 = scmp.ge.s32.totalorder %s14_s15, 5  }
 0x2a2   :  { %13 = sbr.rel (!%p11_p4) target bundleno = 1 (0x1), region = 84 }

// kernel: image_renderer_forward.14
= control target key start
LH: loop header
LB: loop body
LE: loop exit
PB: predicated region body
PF: predicated region fallthrough
CT: control target
= control target key end

     0   :  { %s11077_s0 = inlined_call_operand.vmem [shape: f32[3,72,19], index: 0, kind: input, shape index: {}]   ;;  %s11078_s1 = inlined_call_operand.vmem [shape: f32[3,72,8], index: 1, kind: input, shape index: {}]   ;;  %s11079_s2 = inlined_call_operand.vmem [shape: f32[3,32,8], index: 2, kind: input, shape index: {}]   ;;  %s11080_s3 = inlined_call_operand.vmem [shape: f32[32,1], index: 3, kind: input, shape index: {}]   ;;  %s11081_s4 = inlined_call_operand.vmem [shape: bf16[25,19,32], index: 4, kind: input, shape index: {}]   ;;  %s11082_s5 = inlined_call_operand.vmem [shape: bf16[25,8,32], index: 5, kind: input, shape index: {}]   ;;  %s11083_s6 = inlined_call_operand.vmem [shape: f32[1,32], index: 6, kind: input, shape index: {}]   ;;  %s11084_s7 = inlined_call_operand.vmem [shape: bf16[25,8,8], index: 7, kind: input, shape index: {}]   ;;  %s11085_s8 = inlined_call_operand.vmem [shape: f32[1,8], index: 8, kind: input, shape index: {}]   ;;  %s11086_s9 = inlined_call_operand.vmem [shape: bf16[16,8,16], index: 9, kind: input, shape index: {}]   ;;  %s11087_s10 = inlined_call_operand.vmem [shape: f32[1,64], index: 10, kind: input, shape index: {}]   ;;  %s11088_s11 = inlined_call_operand.hbm [shape: f32[3,72,8], index: 11, kind: output, shape index: {0}]   ;;  %s11089_s12 = inlined_call_operand.hbm [shape: f32[3,32,8], index: 12, kind: output, shape index: {1}]   ;;  %s11090_s13 = inlined_call_operand.vmem [shape: f32[3,32,64], index: 13, kind: output, shape index: {2}]  }
   0x1   :  { %11099 = sst [smem:[#allocation11_spill]] %s11077_s0 }
   0x2   :  { %11100 = sst [smem:[#allocation12_spill]] %s11078_s1 }
   0x3   :  { %11101 = sst [smem:[#allocation13_spill]] %s11079_s2 }
   0x4   :  { %11102 = sst [smem:[#allocation14_spill]] %s11080_s3 }
   0x5   :  { %19 = vsyncpa [#allocation4], 0 }
   0x6   :  { %21 = vsyncpa [#allocation4 + $0x1], 0 }
   0x7   :  { %22 = vsyncpa [#allocation6], 0 }
   0x8   :  { %24 = vsyncpa [#allocation6 + $0x1], 0  ;;  %s9441_s25 = smov 0   ;;  %s9443_s26 = smov 0  }
   0x9   :  { %s9445_s27 = smov 0   ;;  %s9447_s28 = smov 0  }
   0xa LB: > { %11103 = sst [smem:[#allocation9_spill]] %s9352_s27  ;;  %s9462_s29 = sadd.s32 4294967295, %s9356_s28   ;;  %s9356_s28 = sphi %s9447_s28, %s11120_s28   ;;  %s9352_s27 = sphi %s9445_s27, %s11117_s27   ;;  %s9348_s26 = sphi %s9443_s26, %s11119_s26   ;;  %s9344_s25 = sphi %s9441_s25, %s11118_s25  }
   0xb   : > { %s7426_s30 = sadd.s32 4294967294, %s9356_s28   ;;  %s9466_s14 = sadd.s32 1, %s9356_s28  }
   0xc   : > { %s283_s15 = sadd.s32 1, %s9352_s27  ;;  %s280_s16 = ssub.s32 %s9356_s28, %s9466_s14 }
   0xd   : > { %p293_p0 = scmp.ne.s32.totalorder %s9352_s27, %s9348_s26  ;;  %p281_p1 = scmp.eq.s32.totalorder %s280_s16, 0 }
   0xe   : > { %p294_p2 = scmp.eq.s32.totalorder %s9462_s29, 2  ;;  %p299_p3 = scmp.ne.s32.totalorder %s9348_s26, %s9344_s25 }
   0xf   : > { %p300_p4 = scmp.eq.s32.totalorder %s7426_s30, 2  ;;  %p7429_p7 = scmp.ge.s32.totalorder %s9356_s28, 1 }
  0x10   : > { %s9477_s17 = scalar_select %p281_p1, %s9352_s27, %s283_s15  }
  0x11   : > { %p9479_p5 = por %p294_p2, %p293_p0  ;;  %p9483_p6 = por %p300_p4, %p299_p3 }
  0x12   : > { %11104 = sst [smem:[#allocation10_spill]] %s9477_s17  ;;  %p418_p8 = scmp.lt.s32.totalorder %s9356_s28, 4 }
  0x14   : > { %p419_p9 = pnand %p7429_p7, %p418_p8 }
  0x15   : > { %vm530_vm0 = vcmask (!%p419_p9), 1043456   ;;  %v7456_v0 = vld [vmem:[%s11082_s5 + $0x8] sm:$0xf] (!%p419_p9)  ;;  %p482_p10 = scmp.lt.s32.totalorder (!%p419_p9), %s9462_s29, 2  ;;  %v9180_v1 = vld [vmem:[%s11081_s4 + $0x18] sm:$0xff] (!%p419_p9)   ;;  %vm599_vm1 = vcmask (!%p419_p9), 1040384  }
  0x16   : > { %422 = sbr.rel (%p419_p9) target bundleno = 2395 (0x95b), region = 64  ;;  %9056 = vmatprep.subr.msk.bf16.mxu0 (!%p419_p9), %vm530_vm0, %v7456_v0  ;;  %v827_v2 = vsel (!%p419_p9), %vm530_vm0, %v7456_v0, 0  ;;  %vm600_vm2 = vcmask (!%p419_p9), 1041408   ;;  %v9358_v3 = vmov (!%p419_p9), 65535   ;;  %s11107_s0 = sld [smem:[#allocation11_spill]] (!%p419_p9)  ;;  %vm523_vm3 = vcmask (!%p419_p9), 64512  }
  0x17   : > { %8147 = vmatpush3.bf16.msra.mxu0 (!%p419_p9), %v827_v2  ;;  %v601_v4 = vsel (!%p419_p9), %vm599_vm1, 4294967295, %v9358_v3  ;;  %v9181_v5 = vld [vmem:[%s11081_s4 + $0x20] ss:$0 sps:$4 sm:$0x33] (!%p419_p9)   ;;  %s11108_s1 = sld [smem:[#allocation12_spill]] (!%p419_p9)  ;;  %vm592_vm4 = vcmask (!%p419_p9), 154624  }
  0x18   : > { %8152 = vmatprep.subr.bf16.mxu0 (!%p419_p9), %v9180_v1  ;;  %v9515_v6 = vsel (!%p419_p9), %vm600_vm2, %v601_v4, 0  ;;  %v7466_v20 = vld [vmem:[%s11082_s5 + $0xc] sm:$0xf] (!%p419_p9)  ;;  %v9182_v29 = vld [vmem:[%s11081_s4 + $0x24] sm:$0xff] (!%p419_p9)   ;;  %v7476_v39 = vld [vmem:[%s11082_s5 + $0x10] sm:$0xf] (!%p419_p9) }
  0x19   : > { %v894_v16 = vand.u32 (!%p419_p9), %v9181_v5, %v9515_v6  ;;  %v974_v28 = vsel (!%p419_p9), %vm530_vm0, %v7466_v20, 0  ;;  %v9183_v31 = vld [vmem:[%s11081_s4 + $0x2c] ss:$0 sps:$4 sm:$0x33] (!%p419_p9)   ;;  %v1121_v44 = vsel (!%p419_p9), %vm530_vm0, %v7476_v39, 0  ;;  %v9184_v47 = vld [vmem:[%s11081_s4 + $0x30] sm:$0xff] (!%p419_p9)  }
  0x1a   : > { %v1041_v38 = vand.u32 (!%p419_p9), %v9183_v31, %v9515_v6  ;;  %v9185_v50 = vld [vmem:[%s11081_s4 + $0x38] ss:$0 sps:$4 sm:$0x33] (!%p419_p9)   ;;  %v7486_v58 = vld [vmem:[%s11082_s5 + $0x14] sm:$0xf] (!%p419_p9)  ;;  %v9186_v3 = vld [vmem:[%s11081_s4 + $0x3c] sm:$0xff] (!%p419_p9)  }
  0x1b   : > { %v1188_v57 = vand.u32 (!%p419_p9), %v9185_v50, %v9515_v6  ;;  %v1268_v2 = vsel (!%p419_p9), %vm530_vm0, %v7486_v58, 0  ;;  %v9187_v5 = vld [vmem:[%s11081_s4 + $0x44] ss:$0 sps:$4 sm:$0x33] (!%p419_p9)   ;;  %s11109_s2 = sld [smem:[#allocation13_spill]] (!%p419_p9)  ;;  %s11095_s15 = smov (!%p419_p9), 8  }
  0x1c   : > { %s11110_s3 = sld [smem:[#allocation14_spill]] (!%p419_p9)  ;;  %s9363_s23 = smov (!%p419_p9), 112  }
  0x1d   : > { %s9499_s24 = scalar_select %p482_p10, %s9462_s29, 2 }
  0x1e   : > { %s9366_s20 = smov 32  }
  0x1f   : > { %s9121_s30 = smul.u32 72, %s9499_s24 }
  0x21   : > { %s9508_s22 = scalar_lea.vmem %s11107_s0, %s9121_s30  ;;  %s9513_s27 = scalar_lea.vmem %s11108_s1, %s9121_s30 }
  0x22   : > { %v808_v7 = vld [vmem:[%s9513_s27 + $0x2] sm:$0xff]  ;;  %v9519_v8 = vld [vmem:[%s9513_s27 + $0xa] sm:$0xff]  ;;  %v9522_v9 = vld [vmem:[%s9513_s27 + $0x12] sm:$0xff]  ;;  %s9359_s30 = smov 104  }
  0x23   : > { %v812_v10 = vpack.c.bf16 %v9519_v8, %v808_v7  ;;  %v9526_v11 = vld [vmem:[%s9513_s27 + $0x1a] sm:$0xff]  ;;  %v802_v12 = vld [vmem:[%s9508_s22 + $0x2] sm:$0xff]  ;;  %v9530_v13 = vld [vmem:[%s9508_s22 + $0xa] sm:$0xff]  ;;  %v1547_v14 = vpack.c.bf16 %v9522_v9, %v9519_v8 }
  0x24   : > { %v9536_v15 = vpack.c.bf16 %v9526_v11, %v9522_v9  ;;  %v806_v17 = vpack.c.bf16 %v9530_v13, %v802_v12  ;;  %v9541_v18 = vld [vmem:[%s9508_s22 + $0x12] sm:$0xff]  ;;  %v9559_v23 = vld [vmem:[%s9508_s22 + $0x1a] sm:$0xff]  ;;  %v955_v25 = vld [vmem:[%s9513_s27 + $0x3] sm:$0xff] }
  0x25   : > { %8148 = vmatprep.mubr.msk.bf16.mxu0 %vm523_vm3, %v812_v10  ;;  %v1541_v19 = vpack.c.bf16 %v9541_v18, %v9530_v13  ;;  %v9553_v21 = vld [vmem:[%s9513_s27 + $0xb] sm:$0xff]  ;;  %v9556_v22 = vld [vmem:[%s9513_s27 + $0x13] sm:$0xff]  ;;  %v9567_v26 = vpack.c.bf16 %v9559_v23, %v9541_v18  ;;  %v9578_v30 = vld [vmem:[%s9513_s27 + $0x1b] sm:$0xff] }
  0x26   : > { %8149 = vmatmul.mubr.msk.bf16.vlgmr.msra.gmra.mrb[0].mxu0 %vm523_vm3, %v9536_v15  ;;  %v1694_v24 = vpack.c.bf16 %v9556_v22, %v9553_v21  ;;  %v959_v27 = vpack.c.bf16 %v9553_v21, %v955_v25  ;;  %v949_v32 = vld [vmem:[%s9508_s22 + $0x3] sm:$0xff]  ;;  %v9585_v33 = vld [vmem:[%s9508_s22 + $0xb] sm:$0xff]  ;;  %v9588_v34 = vld [vmem:[%s9508_s22 + $0x13] sm:$0xff]  ;;  %v9592_v35 = vpack.c.bf16 %v9578_v30, %v9556_v22  ;;  %v1335_v25 = vand.u32 %v9187_v5, %v9515_v6 }
  0x27   : > { %8153 = vmatpush3.bf16.msra.mxu0 %v9180_v1  ;;  %8156 = vmatprep.mubr.msk.bf16.mxu0 %vm592_vm4, %v806_v17  ;;  %v953_v36 = vpack.c.bf16 %v9585_v33, %v949_v32  ;;  %v1688_v37 = vpack.c.bf16 %v9588_v34, %v9585_v33  ;;  %v9605_v40 = vld [vmem:[%s9513_s27 + $0xc] sm:$0xff]  ;;  %v9608_v41 = vld [vmem:[%s9513_s27 + $0x14] sm:$0xff]  ;;  %v1102_v45 = vld [vmem:[%s9513_s27 + $0x4] sm:$0xff] }
  0x28   : > { %8154 = vmatprep.subr.bf16.mxu0 %v894_v16  ;;  %v9611_v42 = vld [vmem:[%s9508_s22 + $0x1b] sm:$0xff]  ;;  %v1841_v43 = vpack.c.bf16 %v9608_v41, %v9605_v40  ;;  %v1106_v48 = vpack.c.bf16 %v9605_v40, %v1102_v45  ;;  %v1096_v51 = vld [vmem:[%s9508_s22 + $0x4] sm:$0xff]  ;;  %v9637_v52 = vld [vmem:[%s9508_s22 + $0xc] sm:$0xff] }
  0x29   : > { %v9620_v46 = vpack.c.bf16 %v9611_v42, %v9588_v34  ;;  %v9630_v49 = vld [vmem:[%s9513_s27 + $0x1c] sm:$0xff]  ;;  %v9644_v54 = vld [vmem:[%s9508_s22 + $0x14] sm:$0xff]  ;;  %v1100_v55 = vpack.c.bf16 %v9637_v52, %v1096_v51  ;;  %v9665_v63 = vld [vmem:[%s9513_s27 + $0x8] sm:$0xff] }
  0x2a   : > { %v9641_v53 = vpack.c.bf16 %v9630_v49, %v9608_v41  ;;  %v1835_v56 = vpack.c.bf16 %v9644_v54, %v9637_v52  ;;  %v1250_v59 = vld [vmem:[%s9513_s27 + $0x10] sm:$0xff]  ;;  %v1251_v60 = vld [vmem:[%s9513_s27 + $0x18] sm:$0xff]  ;;  %v9680_v4 = vld [vmem:[%s9513_s27 + $0x20] sm:$0xff] }
  0x2b   : > { %8155 = vmatpush3.bf16.msra.mxu0 %v894_v16  ;;  %v9659_v61 = vld [vmem:[%s9508_s22 + $0x1c] sm:$0xff]  ;;  %v9661_v62 = vpack.c.bf16 %v1251_v60, %v1250_v59  ;;  %v1253_v1 = vpack.c.bf16 %v1250_v59, %v9665_v63  ;;  %v1243_v7 = vld [vmem:[%s9508_s22 + $0x8] sm:$0xff]  ;;  %v9687_v10 = vld [vmem:[%s9508_s22 + $0x10] sm:$0xff]  ;;  %v9690_v12 = vpack.c.bf16 %v9680_v4, %v1251_v60 }
  0x2c   : > { %9057 = vmatprep.subr.msk.bf16.mxu0 %vm530_vm0, %v7466_v20  ;;  %v9669_v0 = vpack.c.bf16 %v9659_v61, %v9644_v54  ;;  %v9693_v16 = vld [vmem:[%s9508_s22 + $0x18] sm:$0xff]  ;;  %v1247_v17 = vpack.c.bf16 %v9687_v10, %v1243_v7  ;;  %v9729_v45 = vld [vmem:[%s9513_s27 + $0x21] sm:$0xff]  ;;  %v9194_v33 = vld [vmem:[%s11081_s4 + $0x6c] sm:$0xff]  }
  0x2d   : > { %v1982_v20 = vpack.c.bf16 %v9693_v16, %v9687_v10  ;;  %v9711_v31 = vld [vmem:[%s9513_s27 + $0x11] sm:$0xff]  ;;  %v9751_v59 = vld [vmem:[%s9508_s22 + $0x19] sm:$0xff]  ;;  %v9754_v60 = vld [vmem:[%s9508_s22 + $0x21] sm:$0xff] }
  0x2e   : > { %v9736_v50 = vld [vmem:[%s9508_s22 + $0x11] sm:$0xff]  ;;  %v9772_v5 = vld [vmem:[%s9513_s27 + $0x22] sm:$0xff]  ;;  %v9191_v7 = vld [vmem:[%s11081_s4 + $0x5c] ss:$0 sps:$4 sm:$0x33]  }
  0x2f   : > { %v7516_v8 = vld [vmem:[%s11082_s5 + $0x20] sm:$0xf]  ;;  %v7526_v21 = vld [vmem:[%s11082_s5 + $0x24] sm:$0xf]  ;;  %v7536_v40 = vld [vmem:[%s11082_s5 + $0x28] sm:$0xf] }
  0x30   : > { %v9792_v9 = vld [vmem:[%s9508_s22 + $0x22] sm:$0xff]  ;;  %v9196_v52 = vld [vmem:[%s11081_s4 + $0x78] sm:$0xff]  }
  0x31   : > { %v9192_v13 = vld [vmem:[%s11081_s4 + $0x60] sm:$0xff]   ;;  %v9884_v54 = vld [vmem:[%s9513_s27 + $0x28] sm:$0xff] }
  0x32   : > { %8157 = vmatmul.mubr.msk.bf16.vlgmr.msra.gmra.mrb[0].mxu0 %vm592_vm4, %v9567_v26  ;;  %v9810_v18 = vld [vmem:[%s9513_s27 + $0x23] sm:$0xff] }
  0x33   : > { %8161 = vmatpush3.bf16.msra.mxu0 %v974_v28  ;;  %8162 = vmatprep.mubr.msk.bf16.mxu0 %vm523_vm3, %v959_v27  ;;  %v7496_v27 = vld [vmem:[%s11082_s5 + $0x18] sm:$0xf]  ;;  %v9706_v28 = vld [vmem:[%s9508_s22 + $0x20] sm:$0xff] }
  0x34   : > { %8166 = vmatprep.subr.bf16.mxu0 %v9182_v29  ;;  %v9715_v32 = vpack.c.bf16 %v9706_v28, %v9693_v16  ;;  %v9830_v22 = vld [vmem:[%s9508_s22 + $0x23] sm:$0xff] }
  0x35   : > { %v9848_v34 = vld [vmem:[%s9513_s27 + $0x24] sm:$0xff] }
  0x36   : > { %v9868_v41 = vld [vmem:[%s9508_s22 + $0x24] sm:$0xff] }
  0x37   : > { %v9198_v16 = vld [vmem:[%s11081_s4 + $0x84] sm:$0xff]  }
  0x3e   : > { %8163 = vmatmul.mubr.msk.bf16.vlgmr.msra.gmra.mrb[0].mxu0 %vm523_vm3, %v9592_v35 }
  0x3f   : > { %8167 = vmatpush3.bf16.msra.mxu0 %v9182_v29  ;;  %8170 = vmatprep.mubr.msk.bf16.mxu0 %vm592_vm4, %v953_v36  ;;  %v1396_v29 = vld [vmem:[%s9513_s27 + $0x9] sm:$0xff] }
  0x40   : > { %8168 = vmatprep.subr.bf16.mxu0 %v1041_v38  ;;  %v1400_v36 = vpack.c.bf16 %v9711_v31, %v1396_v29 }
  0x43   : > { %8169 = vmatpush3.bf16.msra.mxu0 %v1041_v38  ;;  %v1415_v38 = vsel %vm530_vm0, %v7496_v27, 0 }
  0x44   : > { %9058 = vmatprep.subr.msk.bf16.mxu0 %vm530_vm0, %v7476_v39  ;;  %v9188_v39 = vld [vmem:[%s11081_s4 + $0x48] sm:$0xff]  }
  0x4a   : > { %8171 = vmatmul.mubr.msk.bf16.vlgmr.msra.gmra.mrb[0].mxu0 %vm592_vm4, %v9620_v46 }
  0x4b   : > { %8175 = vmatpush3.bf16.msra.mxu0 %v1121_v44  ;;  %8176 = vmatprep.mubr.msk.bf16.mxu0 %vm523_vm3, %v1106_v48  ;;  %v9726_v44 = vld [vmem:[%s9513_s27 + $0x19] sm:$0xff]  ;;  %v1390_v48 = vld [vmem:[%s9508_s22 + $0x9] sm:$0xff] }
  0x4c   : > { %8180 = vmatprep.subr.bf16.mxu0 %v9184_v47  ;;  %v9740_v51 = vpack.c.bf16 %v9729_v45, %v9726_v44 }
  0x56   : > { %8177 = vmatmul.mubr.msk.bf16.vlgmr.msra.gmra.mrb[0].mxu0 %vm523_vm3, %v9641_v53 }
  0x57   : > { %8181 = vmatpush3.bf16.msra.mxu0 %v9184_v47  ;;  %8184 = vmatprep.mubr.msk.bf16.mxu0 %vm592_vm4, %v1100_v55  ;;  %v9189_v47 = vld [vmem:[%s11081_s4 + $0x50] ss:$0 sps:$4 sm:$0x33]   ;;  %v1394_v55 = vpack.c.bf16 %v9736_v50, %v1390_v48 }
  0x58   : > { %8182 = vmatprep.subr.bf16.mxu0 %v1188_v57 }
  0x5b   : > { %8183 = vmatpush3.bf16.msra.mxu0 %v1188_v57  ;;  %v1482_v57 = vand.u32 %v9189_v47, %v9515_v6  ;;  %v2135_v47 = vpack.c.bf16 %v9726_v44, %v9711_v31  ;;  %v2129_v44 = vpack.c.bf16 %v9751_v59, %v9736_v50 }
  0x5c   : > { %9059 = vmatprep.subr.msk.bf16.mxu0 %vm530_vm0, %v7486_v58  ;;  %v7506_v58 = vld [vmem:[%s11082_s5 + $0x1c] sm:$0xf] }
  0x62   : > { %8185 = vmatmul.mubr.msk.bf16.vlgmr.msra.gmra.mrb[0].mxu0 %vm592_vm4, %v9669_v0 }
  0x63   : > { %8189 = vmatpush3.bf16.msra.mxu0 %v1268_v2  ;;  %8190 = vmatprep.mubr.msk.bf16.mxu0 %vm523_vm3, %v1253_v1  ;;  %v9759_v1 = vpack.c.bf16 %v9754_v60, %v9751_v59  ;;  %v1562_v2 = vsel %vm530_vm0, %v7506_v58, 0  ;;  %v9956_v59 = vld [vmem:[%s9513_s27 + $0x2a] sm:$0xff] }
  0x64   : > { %8194 = vmatprep.subr.bf16.mxu0 %v9186_v3 }
  0x6e   : > { %8191 = vmatmul.mubr.msk.bf16.vlgmr.msra.gmra.mrb[0].mxu0 %vm523_vm3, %v9690_v12 }
  0x6f   : > { %8195 = vmatpush3.bf16.msra.mxu0 %v9186_v3  ;;  %8198 = vmatprep.mubr.msk.bf16.mxu0 %vm592_vm4, %v1247_v17  ;;  %v9190_v3 = vld [vmem:[%s11081_s4 + $0x54] sm:$0xff]   ;;  %v9779_v17 = vpack.c.bf16 %v9772_v5, %v9526_v11  ;;  %v9797_v11 = vpack.c.bf16 %v9792_v9, %v9559_v23  ;;  %v9817_v23 = vpack.c.bf16 %v9810_v18, %v9578_v30  ;;  %v1856_v30 = vsel %vm530_vm0, %v7526_v21, 0 }
  0x70   : > { %8196 = vmatprep.subr.bf16.mxu0 %v1335_v25 }
  0x73   : > { %8197 = vmatpush3.bf16.msra.mxu0 %v1335_v25  ;;  %v1629_v25 = vand.u32 %v9191_v7, %v9515_v6  ;;  %v9974_v7 = vld [vmem:[%s9508_s22 + $0x2a] sm:$0xff] }
  0x74   : > { %9060 = vmatprep.subr.msk.bf16.mxu0 %vm530_vm0, %v7496_v27 }
  0x7a   : > { %8199 = vmatmul.mubr.msk.bf16.vlgmr.msra.gmra.mrb[0].mxu0 %vm592_vm4, %v9715_v32 }
  0x7b   : > { %8203 = vmatpush3.bf16.msra.mxu0 %v1415_v38  ;;  %8204 = vmatprep.mubr.msk.bf16.mxu0 %vm523_vm3, %v1400_v36  ;;  %v7546_v38 = vld [vmem:[%s11082_s5 + $0x2c] sm:$0xf] }
  0x7c   : > { %8208 = vmatprep.subr.bf16.mxu0 %v9188_v39  ;;  %v2150_v10 = vsel %vm530_vm0, %v7546_v38, 0 }
  0x86   : > { %8205 = vmatmul.mubr.msk.bf16.vlgmr.msra.gmra.mrb[0].mxu0 %vm523_vm3, %v9740_v51 }
  0x87   : > { %8209 = vmatpush3.bf16.msra.mxu0 %v9188_v39  ;;  %8212 = vmatprep.mubr.msk.bf16.mxu0 %vm592_vm4, %v1394_v55  ;;  %v7556_v55 = vld [vmem:[%s11082_s5 + $0x30] sm:$0xf] }
  0x88   : > { %8210 = vmatprep.subr.bf16.mxu0 %v1482_v57 }
  0x8b   : > { %8211 = vmatpush3.bf16.msra.mxu0 %v1482_v57  ;;  %v2297_v57 = vsel %vm530_vm0, %v7556_v55, 0 }
  0x8c   : > { %9061 = vmatprep.subr.msk.bf16.mxu0 %vm530_vm0, %v7506_v58  ;;  %v9200_v58 = vld [vmem:[%s11081_s4 + $0x90] sm:$0xff]  }
  0x92   : > { %8213 = vmatmul.mubr.msk.bf16.vlgmr.msra.gmra.mrb[0].mxu0 %vm592_vm4, %v9759_v1 }
  0x93   : > { %8217 = vmatpush3.bf16.msra.mxu0 %v1562_v2  ;;  %8218 = vmatprep.mubr.msk.bf16.mxu0 %vm523_vm3, %v1547_v14  ;;  %v1709_v14 = vsel %vm530_vm0, %v7516_v8, 0  ;;  %v9963_v2 = vpack.c.bf16 %v9956_v59, %v9772_v5  ;;  %v9979_v5 = vpack.c.bf16 %v9974_v7, %v9792_v9  ;;  %v9203_v9 = vld [vmem:[%s11081_s4 + $0xa4] ss:$0 sps:$4 sm:$0x33]  }
  0x94   : > { %8222 = vmatprep.subr.bf16.mxu0 %v9190_v3 }
  0x9e   : > { %8219 = vmatmul.mubr.msk.bf16.vlgmr.msra.gmra.mrb[0].mxu0 %vm523_vm3, %v9779_v17 }
  0x9f   : > { %8223 = vmatpush3.bf16.msra.mxu0 %v9190_v3  ;;  %8226 = vmatprep.mubr.msk.bf16.mxu0 %vm592_vm4, %v1541_v19  ;;  %v9193_v19 = vld [vmem:[%s11081_s4 + $0x68] ss:$0 sps:$4 sm:$0x33]  }
  0xa0   : > { %8224 = vmatprep.subr.bf16.mxu0 %v1629_v25  ;;  %v1776_v27 = vand.u32 %v9193_v19, %v9515_v6  ;;  %v10008_v19 = vld [vmem:[%s9508_s22 + $0x2b] sm:$0xff] }
  0xa3   : > { %8225 = vmatpush3.bf16.msra.mxu0 %v1629_v25 }
  0xa4   : > { %9062 = vmatprep.subr.msk.bf16.mxu0 %vm530_vm0, %v7516_v8  ;;  %v9990_v8 = vld [vmem:[%s9513_s27 + $0x2b] sm:$0xff] }
  0xaa   : > { %8227 = vmatmul.mubr.msk.bf16.vlgmr.msra.gmra.mrb[0].mxu0 %vm592_vm4, %v9797_v11 }
  0xab   : > { %8231 = vmatpush3.bf16.msra.mxu0 %v1709_v14  ;;  %8232 = vmatprep.mubr.msk.bf16.mxu0 %vm523_vm3, %v1694_v24  ;;  %v9835_v24 = vpack.c.bf16 %v9830_v22, %v9611_v42  ;;  %v9855_v42 = vpack.c.bf16 %v9848_v34, %v9630_v49  ;;  %v2003_v49 = vsel %vm530_vm0, %v7536_v40, 0  ;;  %v9997_v14 = vpack.c.bf16 %v9990_v8, %v9810_v18 }
  0xac   : > { %8236 = vmatprep.subr.bf16.mxu0 %v9192_v13  ;;  %v10013_v18 = vpack.c.bf16 %v10008_v19, %v9830_v22  ;;  %v9205_v22 = vld [vmem:[%s11081_s4 + $0xb0] ss:$0 sps:$4 sm:$0x33]  }
  0xb6   : > { %8233 = vmatmul.mubr.msk.bf16.vlgmr.msra.gmra.mrb[0].mxu0 %vm523_vm3, %v9817_v23 }
  0xb7   : > { %8237 = vmatpush3.bf16.msra.mxu0 %v9192_v13  ;;  %8240 = vmatprep.mubr.msk.bf16.mxu0 %vm592_vm4, %v1688_v37  ;;  %v9195_v37 = vld [vmem:[%s11081_s4 + $0x74] ss:$0 sps:$4 sm:$0x33]   ;;  %v2511_v13 = vand.u32 %v9203_v9, %v9515_v6 }
  0xb8   : > { %8238 = vmatprep.subr.bf16.mxu0 %v1776_v27  ;;  %v1923_v29 = vand.u32 %v9195_v37, %v9515_v6  ;;  %v10042_v37 = vld [vmem:[%s9508_s22 + $0x2c] sm:$0xff] }
  0xbb   : > { %8239 = vmatpush3.bf16.msra.mxu0 %v1776_v27 }
  0xbc   : > { %9063 = vmatprep.subr.msk.bf16.mxu0 %vm530_vm0, %v7526_v21  ;;  %v10024_v21 = vld [vmem:[%s9513_s27 + $0x2c] sm:$0xff] }
  0xc2   : > { %8241 = vmatmul.mubr.msk.bf16.vlgmr.msra.gmra.mrb[0].mxu0 %vm592_vm4, %v9835_v24 }
  0xc3   : > { %8245 = vmatpush3.bf16.msra.mxu0 %v1856_v30  ;;  %8246 = vmatprep.mubr.msk.bf16.mxu0 %vm523_vm3, %v1841_v43  ;;  %v9873_v43 = vpack.c.bf16 %v9868_v41, %v9659_v61  ;;  %v9891_v61 = vpack.c.bf16 %v9884_v54, %v9680_v4  ;;  %v9904_v4 = vld [vmem:[%s9508_s22 + $0x28] sm:$0xff]  ;;  %v10031_v30 = vpack.c.bf16 %v10024_v21, %v9848_v34 }
  0xc4   : > { %8250 = vmatprep.subr.bf16.mxu0 %v9194_v33  ;;  %v9909_v39 = vpack.c.bf16 %v9904_v4, %v9706_v28  ;;  %v9199_v28 = vld [vmem:[%s11081_s4 + $0x8c] ss:$0 sps:$4 sm:$0x33]   ;;  %v10047_v34 = vpack.c.bf16 %v10042_v37, %v9868_v41  ;;  %v9207_v41 = vld [vmem:[%s11081_s4 + $0xbc] ss:$0 sps:$4 sm:$0x33]  }
  0xc5   : > { %v2217_v48 = vand.u32 %v9199_v28, %v9515_v6 }
  0xce   : > { %8247 = vmatmul.mubr.msk.bf16.vlgmr.msra.gmra.mrb[0].mxu0 %vm523_vm3, %v9855_v42 }
  0xcf   : > { %8251 = vmatpush3.bf16.msra.mxu0 %v9194_v33  ;;  %8254 = vmatprep.mubr.msk.bf16.mxu0 %vm592_vm4, %v1835_v56  ;;  %v9197_v56 = vld [vmem:[%s11081_s4 + $0x80] ss:$0 sps:$4 sm:$0x33]   ;;  %v2658_v33 = vand.u32 %v9205_v22, %v9515_v6  ;;  %v662_v22 = vld [vmem:[%s9513_s27 + $0x9] sm:$0xff] }
  0xd0   : > { %8252 = vmatprep.subr.bf16.mxu0 %v1923_v29  ;;  %v2070_v36 = vand.u32 %v9197_v56, %v9515_v6  ;;  %v10073_v56 = vld [vmem:[%s9508_s22 + $0x30] sm:$0xff] }
  0xd3   : > { %8253 = vmatpush3.bf16.msra.mxu0 %v1923_v29 }
  0xd4   : > { %9064 = vmatprep.subr.msk.bf16.mxu0 %vm530_vm0, %v7536_v40  ;;  %v10058_v40 = vld [vmem:[%s9513_s27 + $0x30] sm:$0xff] }
  0xda   : > { %8255 = vmatmul.mubr.msk.bf16.vlgmr.msra.gmra.mrb[0].mxu0 %vm592_vm4, %v9873_v43 }
  0xdb   : > { %8259 = vmatpush3.bf16.msra.mxu0 %v2003_v49  ;;  %8260 = vmatprep.mubr.msk.bf16.mxu0 %vm523_vm3, %v9661_v62  ;;  %v2724_v49 = vpack.c.bf16 %v10058_v40, %v9884_v54  ;;  %v2718_v54 = vpack.c.bf16 %v10073_v56, %v9904_v4  ;;  %v9209_v4 = vld [vmem:[%s11081_s4 + $0xc8] ss:$0 sps:$4 sm:$0x33]  }
  0xdc   : > { %8264 = vmatprep.subr.bf16.mxu0 %v9196_v52  ;;  %v2952_v28 = vand.u32 %v9209_v4, %v9515_v6  ;;  %v658_v4 = vld [vmem:[%s9508_s22 + $0x19] sm:$0xff] }
  0xe6   : > { %8261 = vmatmul.mubr.msk.bf16.vlgmr.msra.gmra.mrb[0].mxu0 %vm523_vm3, %v9891_v61 }
  0xe7   : > { %8265 = vmatpush3.bf16.msra.mxu0 %v9196_v52  ;;  %8268 = vmatprep.mubr.msk.bf16.mxu0 %vm592_vm4, %v1982_v20  ;;  %v9921_v20 = vld [vmem:[%s9513_s27 + $0x29] sm:$0xff]  ;;  %v2805_v52 = vand.u32 %v9207_v41, %v9515_v6 }
  0xe8   : > { %8266 = vmatprep.subr.bf16.mxu0 %v2070_v36  ;;  %v9928_v31 = vpack.c.bf16 %v9921_v20, %v9729_v45  ;;  %v9940_v45 = vld [vmem:[%s9508_s22 + $0x29] sm:$0xff] }
  0xe9   : > { %v9945_v50 = vpack.c.bf16 %v9940_v45, %v9754_v60  ;;  %v9201_v60 = vld [vmem:[%s11081_s4 + $0x98] ss:$0 sps:$4 sm:$0x33]  }
  0xea   : > { %v2364_v3 = vand.u32 %v9201_v60, %v9515_v6  ;;  %v509_v60 = vld [vmem:[%s9508_s22 + $0x10] sm:$0xff] }
  0xeb   : > { %8267 = vmatpush3.bf16.msra.mxu0 %v2070_v36 }
  0xec   : > { %9065 = vmatprep.subr.msk.bf16.mxu0 %vm530_vm0, %v7546_v38  ;;  %v10086_v38 = vld [vmem:[%s9513_s27 + $0x31] sm:$0xff] }
  0xf2   : > { %8269 = vmatmul.mubr.msk.bf16.vlgmr.msra.gmra.mrb[0].mxu0 %vm592_vm4, %v9909_v39 }
  0xf3   : > { %8273 = vmatpush3.bf16.msra.mxu0 %v2150_v10  ;;  %8274 = vmatprep.mubr.msk.bf16.mxu0 %vm523_vm3, %v2135_v47  ;;  %v522_v47 = vld [vmem:[%s11082_s5] sm:$0xf] }
  0xf4   : > { %8278 = vmatprep.subr.bf16.mxu0 %v9198_v16  ;;  %9054 = vmatprep.subr.msk.bf16.mxu1 %vm530_vm0, %v522_v47  ;;  %v532_v10 = vsel %vm530_vm0, %v522_v47, 0  ;;  %v657_v47 = vld [vmem:[%s9508_s22 + $0x11] sm:$0xff] }
  0xf5   : > { %8119 = vmatpush3.bf16.msra.mxu1 %v532_v10 }
  0xfe   : > { %8275 = vmatmul.mubr.msk.bf16.vlgmr.msra.gmra.mrb[0].mxu0 %vm523_vm3, %v9928_v31 }
  0xff   : > { %8279 = vmatpush3.bf16.msra.mxu0 %v9198_v16  ;;  %8282 = vmatprep.mubr.msk.bf16.mxu0 %vm592_vm4, %v2129_v44  ;;  %v513_v16 = vld [vmem:[%s9513_s27] sm:$0xff] }
 0x100   : > { %8280 = vmatprep.subr.bf16.mxu0 %v2217_v48  ;;  %v517_v44 = vpack.c.bf16 %v9665_v63, %v513_v16  ;;  %v9220_v63 = vld [vmem:[%s11081_s4] sm:$0xff]   ;;  %v9212_v16 = vld [vmem:[%s11081_s4 + $0xd8] sm:$0xff]  }
 0x101   : > { %8124 = vmatprep.subr.bf16.mxu1 %v9220_v63 }
 0x102   : > { %8120 = vmatprep.mubr.msk.bf16.mxu1 %vm523_vm3, %v517_v44  ;;  %v9213_v44 = vld [vmem:[%s11081_s4 + $0xe0] ss:$0 sps:$4 sm:$0x33]  }
 0x103   : > { %8281 = vmatpush3.bf16.msra.mxu0 %v2217_v48  ;;  %8121 = vmatmul.mubr.msk.bf16.vlgmr.msra.gmra.mrb[0].mxu1 %vm523_vm3, %v9661_v62  ;;  %v10114_v48 = vld [vmem:[%s9508_s22 + $0x31] sm:$0xff] }
 0x104   : > { %9066 = vmatprep.subr.msk.bf16.mxu0 %vm530_vm0, %v7556_v55  ;;  %v507_v55 = vld [vmem:[%s9508_s22] sm:$0xff]  ;;  %8125 = vmatpush3.bf16.msra.mxu1 %v9220_v63  ;;  %v3246_v63 = vand.u32 %v9213_v44, %v9515_v6 }
 0x10a   : > { %8283 = vmatmul.mubr.msk.bf16.vlgmr.msra.gmra.mrb[0].mxu0 %vm592_vm4, %v9945_v50 }
 0x10b   : > { %8287 = vmatpush3.bf16.msra.mxu0 %v2297_v57  ;;  %8288 = vmatprep.mubr.msk.bf16.mxu0 %vm523_vm3, %v9536_v15  ;;  %v7566_v15 = vld [vmem:[%s11082_s5 + $0x34] sm:$0xf]  ;;  %v508_v57 = vld [vmem:[%s9508_s22 + $0x8] sm:$0xff] }
 0x10c   : > { %8292 = vmatprep.subr.bf16.mxu0 %v9200_v58  ;;  %v2444_v25 = vsel %vm530_vm0, %v7566_v15, 0  ;;  %v511_v62 = vpack.c.bf16 %v508_v57, %v507_v55  ;;  %v10217_v57 = vld [vmem:[%s9513_s27 + $0x34] sm:$0xff] }
 0x10e   : > { %8128 = vmatprep.mubr.msk.bf16.mxu1 %vm592_vm4, %v511_v62  ;;  %v3312_v62 = vpack.c.bf16 %v10217_v57, %v10024_v21 }
 0x116   : > { %8289 = vmatmul.mubr.msk.bf16.vlgmr.msra.gmra.mrb[0].mxu0 %vm523_vm3, %v9963_v2 }
 0x117   : > { %8293 = vmatpush3.bf16.msra.mxu0 %v9200_v58  ;;  %8296 = vmatprep.mubr.msk.bf16.mxu0 %vm592_vm4, %v9567_v26  ;;  %v9202_v26 = vld [vmem:[%s11081_s4 + $0x9c] sm:$0xff]  }
 0x118   : > { %8294 = vmatprep.subr.bf16.mxu0 %v2364_v3 }
 0x11b   : > { %8295 = vmatpush3.bf16.msra.mxu0 %v2364_v3  ;;  %v510_v3 = vld [vmem:[%s9508_s22 + $0x18] sm:$0xff] }
 0x11c   : > { %9067 = vmatprep.subr.msk.bf16.mxu0 %vm530_vm0, %v7566_v15  ;;  %v2865_v15 = vpack.c.bf16 %v10114_v48, %v9940_v45  ;;  %v512_v9 = vpack.c.bf16 %v510_v3, %v509_v60  ;;  %v10137_v45 = vld [vmem:[%s9513_s27 + $0x32] sm:$0xff] }
 0x11d   : > { %v10232_v60 = vld [vmem:[%s9508_s22 + $0x34] sm:$0xff] }
 0x11e   : > { %v3306_v21 = vpack.c.bf16 %v10232_v60, %v10042_v37 }
 0x122   : > { %8297 = vmatmul.mubr.msk.bf16.vlgmr.msra.gmra.mrb[0].mxu0 %vm592_vm4, %v9979_v5 }
 0x123   : > { %8301 = vmatpush3.bf16.msra.mxu0 %v2444_v25  ;;  %8302 = vmatprep.mubr.msk.bf16.mxu0 %vm523_vm3, %v9592_v35  ;;  %v7576_v35 = vld [vmem:[%s11082_s5 + $0x38] sm:$0xf] }
 0x124   : > { %8306 = vmatprep.subr.bf16.mxu0 %v9202_v26  ;;  %v2591_v27 = vsel %vm530_vm0, %v7576_v35, 0 }
 0x12e   : > { %8303 = vmatmul.mubr.msk.bf16.vlgmr.msra.gmra.mrb[0].mxu0 %vm523_vm3, %v9997_v14 }
 0x12f   : > { %8307 = vmatpush3.bf16.msra.mxu0 %v9202_v26  ;;  %8310 = vmatprep.mubr.msk.bf16.mxu0 %vm592_vm4, %v9620_v46  ;;  %v9204_v46 = vld [vmem:[%s11081_s4 + $0xa8] sm:$0xff]  }
 0x130   : > { %8308 = vmatprep.subr.bf16.mxu0 %v2511_v13  ;;  %v9210_v26 = vld [vmem:[%s11081_s4 + $0xcc] sm:$0xff]  }
 0x133   : > { %8309 = vmatpush3.bf16.msra.mxu0 %v2511_v13  ;;  %v7446_v13 = vld [vmem:[%s11082_s5 + $0x4] sm:$0xf] }
 0x134   : > { %9068 = vmatprep.subr.msk.bf16.mxu0 %vm530_vm0, %v7576_v35  ;;  %v9211_v35 = vld [vmem:[%s11081_s4 + $0xd4] ss:$0 sps:$4 sm:$0x33]  }
 0x13a   : > { %8311 = vmatmul.mubr.msk.bf16.vlgmr.msra.gmra.mrb[0].mxu0 %vm592_vm4, %v10013_v18 }
 0x13b   : > { %8315 = vmatpush3.bf16.msra.mxu0 %v2591_v27  ;;  %8316 = vmatprep.mubr.msk.bf16.mxu0 %vm523_vm3, %v9641_v53  ;;  %v7586_v53 = vld [vmem:[%s11082_s5 + $0x3c] sm:$0xf]  ;;  %v680_v27 = vsel %vm530_vm0, %v7446_v13, 0 }
 0x13c   : > { %8320 = vmatprep.subr.bf16.mxu0 %v9204_v46  ;;  %v2738_v29 = vsel %vm530_vm0, %v7586_v53, 0 }
 0x146   : > { %8317 = vmatmul.mubr.msk.bf16.vlgmr.msra.gmra.mrb[0].mxu0 %vm523_vm3, %v10031_v30 }
 0x147   : > { %8321 = vmatpush3.bf16.msra.mxu0 %v9204_v46  ;;  %8324 = vmatprep.mubr.msk.bf16.mxu0 %vm592_vm4, %v9669_v0  ;;  %v9206_v0 = vld [vmem:[%s11081_s4 + $0xb4] sm:$0xff]   ;;  %v661_v46 = vld [vmem:[%s9513_s27 + $0x1] sm:$0xff] }
 0x148   : > { %8322 = vmatprep.subr.bf16.mxu0 %v2658_v33 }
 0x14b   : > { %8323 = vmatpush3.bf16.msra.mxu0 %v2658_v33  ;;  %v663_v33 = vld [vmem:[%s9513_s27 + $0x11] sm:$0xff] }
 0x14c   : > { %9069 = vmatprep.subr.msk.bf16.mxu0 %vm530_vm0, %v7586_v53  ;;  %v3099_v53 = vand.u32 %v9211_v35, %v9515_v6  ;;  %v9218_v35 = vld [vmem:[%s11081_s4 + $0xfc] sm:$0xff]  }
 0x152   : > { %8325 = vmatmul.mubr.msk.bf16.vlgmr.msra.gmra.mrb[0].mxu0 %vm592_vm4, %v10047_v34 }
 0x153   : > { %8329 = vmatpush3.bf16.msra.mxu0 %v2738_v29  ;;  %8330 = vmatprep.mubr.msk.bf16.mxu0 %vm523_vm3, %v9690_v12  ;;  %v7596_v12 = vld [vmem:[%s11082_s5 + $0x40] sm:$0xf]  ;;  %v665_v29 = vpack.c.bf16 %v662_v22, %v661_v46 }
 0x154   : > { %8334 = vmatprep.subr.bf16.mxu0 %v9206_v0  ;;  %v2885_v36 = vsel %vm530_vm0, %v7596_v12, 0  ;;  %v3598_v46 = vld [vmem:[%s9508_s22 + $0x39] sm:$0xff] }
 0x15e   : > { %8331 = vmatmul.mubr.msk.bf16.vlgmr.msra.gmra.mrb[0].mxu0 %vm523_vm3, %v2724_v49  ;;  %v9224_v49 = vld [vmem:[%s11081_s4 + $0xc] sm:$0xff]  }
 0x15f   : > { %8335 = vmatpush3.bf16.msra.mxu0 %v9206_v0  ;;  %8338 = vmatprep.mubr.msk.bf16.mxu0 %vm592_vm4, %v9715_v32  ;;  %v9208_v32 = vld [vmem:[%s11081_s4 + $0xc0] sm:$0xff]  }
 0x160   : > { %8336 = vmatprep.subr.bf16.mxu0 %v2805_v52  ;;  %v664_v0 = vld [vmem:[%s9513_s27 + $0x19] sm:$0xff] }
 0x161   : > { %v666_v41 = vpack.c.bf16 %v664_v0, %v663_v33  ;;  %v9222_v33 = vld [vmem:[%s11081_s4 + $0x108] sm:$0xff]   ;;  %v3745_v0 = vld [vmem:[%s9508_s22 + $0x3a] sm:$0xff] }
 0x163   : > { %8337 = vmatpush3.bf16.msra.mxu0 %v2805_v52  ;;  %v10166_v52 = vld [vmem:[%s9508_s22 + $0x32] sm:$0xff] }
 0x164   : > { %9070 = vmatprep.subr.msk.bf16.mxu0 %vm530_vm0, %v7596_v12  ;;  %v655_v12 = vld [vmem:[%s9508_s22 + $0x1] sm:$0xff]  ;;  %v3012_v10 = vpack.c.bf16 %v10166_v52, %v9974_v7  ;;  %v10189_v7 = vld [vmem:[%s9513_s27 + $0x33] sm:$0xff] }
 0x16a   : > { %8339 = vmatmul.mubr.msk.bf16.vlgmr.msra.gmra.mrb[0].mxu0 %vm592_vm4, %v2718_v54  ;;  %v656_v54 = vld [vmem:[%s9508_s22 + $0x9] sm:$0xff] }
 0x16b   : > { %8343 = vmatpush3.bf16.msra.mxu0 %v2885_v36  ;;  %8344 = vmatprep.mubr.msk.bf16.mxu0 %vm523_vm3, %v9740_v51  ;;  %v2871_v51 = vpack.c.bf16 %v10086_v38, %v9921_v20  ;;  %v7606_v20 = vld [vmem:[%s11082_s5 + $0x44] sm:$0xf]  ;;  %v659_v36 = vpack.c.bf16 %v656_v54, %v655_v12  ;;  %v3892_v12 = vld [vmem:[%s9508_s22 + $0x3b] sm:$0xff] }
 0x16c   : > { %8348 = vmatprep.subr.bf16.mxu0 %v9208_v32  ;;  %v3032_v25 = vsel %vm530_vm0, %v7606_v20, 0 }
 0x176   : > { %8345 = vmatmul.mubr.msk.bf16.vlgmr.msra.gmra.mrb[0].mxu0 %vm523_vm3, %v2871_v51 }
 0x177   : > { %8349 = vmatpush3.bf16.msra.mxu0 %v9208_v32  ;;  %8352 = vmatprep.mubr.msk.bf16.mxu0 %vm592_vm4, %v9759_v1  ;;  %v9221_v1 = vld [vmem:[%s11081_s4 + $0x8] ss:$0 sps:$4 sm:$0x33]  }
 0x178   : > { %8350 = vmatprep.subr.bf16.mxu0 %v2952_v28  ;;  %v604_v58 = vand.u32 %v9221_v1, %v9515_v6  ;;  %v10204_v1 = vld [vmem:[%s9508_s22 + $0x33] sm:$0xff] }
 0x179   : > { %v3894_v54 = vpack.c.bf16 %v3892_v12, %v10204_v1 }
 0x17a   : > { %8126 = vmatprep.subr.bf16.mxu1 %v604_v58 }
 0x17b   : > { %8351 = vmatpush3.bf16.msra.mxu0 %v2952_v28  ;;  %8127 = vmatpush3.bf16.msra.mxu1 %v604_v58  ;;  %v660_v28 = vpack.c.bf16 %v658_v4, %v657_v47  ;;  %v9229_v47 = vld [vmem:[%s11081_s4 + $0x128] ss:$0 sps:$4 sm:$0x33]  }
 0x17c   : > { %9071 = vmatprep.subr.msk.bf16.mxu0 %vm530_vm0, %v7606_v20  ;;  %9055 = vmatprep.subr.msk.bf16.mxu1 %vm530_vm0, %v7446_v13  ;;  %v3165_v20 = vpack.c.bf16 %v10189_v7, %v9990_v8  ;;  %v3159_v8 = vpack.c.bf16 %v10204_v1, %v10008_v19  ;;  %v9215_v19 = vld [vmem:[%s11081_s4 + $0xec] ss:$0 sps:$4 sm:$0x33]  }
 0x17d   : > { %v3393_v58 = vand.u32 %v9215_v19, %v9515_v6 }
 0x17e   : > { %8129 = vmatmul.mubr.msk.bf16.vlgmr.msra.gmra.mrb[0].mxu1 %vm592_vm4, %v512_v9  ;;  %v3451_v9 = vld [vmem:[%s9508_s22 + $0x38] sm:$0xff] }
 0x17f   : > { %8133 = vmatpush3.bf16.msra.mxu1 %v680_v27  ;;  %8134 = vmatprep.mubr.msk.bf16.mxu1 %vm523_vm3, %v665_v29  ;;  %v9219_v27 = vld [vmem:[%s11081_s4 + $0x104] ss:$0 sps:$4 sm:$0x33]  }
 0x180   : > { %8138 = vmatprep.subr.bf16.mxu1 %v9224_v49 }
 0x182   : > { %8353 = vmatmul.mubr.msk.bf16.vlgmr.msra.gmra.mrb[0].mxu0 %vm592_vm4, %v2865_v15  ;;  %v3457_v15 = vld [vmem:[%s9513_s27 + $0x38] sm:$0xff] }
 0x183   : > { %8357 = vmatpush3.bf16.msra.mxu0 %v3032_v25  ;;  %8358 = vmatprep.mubr.msk.bf16.mxu0 %vm523_vm3, %v9779_v17  ;;  %v3018_v17 = vpack.c.bf16 %v10137_v45, %v9956_v59  ;;  %v7616_v59 = vld [vmem:[%s11082_s5 + $0x48] sm:$0xf]  ;;  %v9217_v25 = vld [vmem:[%s11081_s4 + $0xf8] ss:$0 sps:$4 sm:$0x33]   ;;  %v3459_v37 = vpack.c.bf16 %v3457_v15, %v10058_v40  ;;  %v3453_v40 = vpack.c.bf16 %v3451_v9, %v10073_v56 }
 0x184   : > { %8362 = vmatprep.subr.bf16.mxu0 %v9210_v26  ;;  %v3179_v51 = vsel %vm530_vm0, %v7616_v59, 0 }
 0x18a   : > { %8135 = vmatmul.mubr.msk.bf16.vlgmr.msra.gmra.mrb[0].mxu1 %vm523_vm3, %v666_v41 }
 0x18b   : > { %8139 = vmatpush3.bf16.msra.mxu1 %v9224_v49  ;;  %8142 = vmatprep.mubr.msk.bf16.mxu1 %vm592_vm4, %v659_v36  ;;  %v9227_v49 = vld [vmem:[%s11081_s4 + $0x11c] ss:$0 sps:$4 sm:$0x33]  }
 0x18e   : > { %8359 = vmatmul.mubr.msk.bf16.vlgmr.msra.gmra.mrb[0].mxu0 %vm523_vm3, %v3018_v17  ;;  %v3687_v17 = vand.u32 %v9219_v27, %v9515_v6 }
 0x18f   : > { %8363 = vmatpush3.bf16.msra.mxu0 %v9210_v26  ;;  %8366 = vmatprep.mubr.msk.bf16.mxu0 %vm592_vm4, %v9797_v11  ;;  %v9225_v11 = vld [vmem:[%s11081_s4 + $0x14] ss:$0 sps:$4 sm:$0x33]   ;;  %v3540_v26 = vand.u32 %v9217_v25, %v9515_v6 }
 0x190   : > { %8364 = vmatprep.subr.bf16.mxu0 %v3099_v53  ;;  %v747_v32 = vand.u32 %v9225_v11, %v9515_v6  ;;  %v3981_v11 = vand.u32 %v9227_v49, %v9515_v6 }
 0x192   : > { %8140 = vmatprep.subr.bf16.mxu1 %v747_v32 }
 0x193   : > { %8365 = vmatpush3.bf16.msra.mxu0 %v3099_v53  ;;  %8141 = vmatpush3.bf16.msra.mxu1 %v747_v32  ;;  %v9223_v53 = vld [vmem:[%s11081_s4 + $0x110] ss:$0 sps:$4 sm:$0x33]   ;;  %v9228_v32 = vld [vmem:[%s11081_s4 + $0x120] sm:$0xff]  }
 0x194   : > { %9072 = vmatprep.subr.msk.bf16.mxu0 %vm530_vm0, %v7616_v59  ;;  %v3834_v29 = vand.u32 %v9223_v53, %v9515_v6  ;;  %v9226_v59 = vld [vmem:[%s11081_s4 + $0x114] sm:$0xff]  }
 0x196   : > { %8143 = vmatmul.mubr.msk.bf16.vlgmr.msra.gmra.mrb[0].mxu1 %vm592_vm4, %v660_v28 }
 0x19a   : > { %8367 = vmatmul.mubr.msk.bf16.vlgmr.msra.gmra.mrb[0].mxu0 %vm592_vm4, %v3012_v10  ;;  %v4128_v10 = vand.u32 %v9229_v47, %v9515_v6  ;;  %v7683_v6 = vld [vmem:[%s11083_s6] ss:$0 sm:$0xff] }
 0x19b   : > { %8371 = vmatpush3.bf16.msra.mxu0 %v3179_v51  ;;  %8372 = vmatprep.mubr.msk.bf16.mxu0 %vm523_vm3, %v9817_v23  ;;  %v7626_v23 = vld [vmem:[%s11082_s5 + $0x4c] sm:$0xf]  ;;  %v4039_v51 = vld [vmem:[%s9508_s22 + $0x3c] sm:$0xff]  ;;  %s11092_s22 = sshll.u32 %s9499_s24, 5 }
 0x19c   : > { %8376 = vmatprep.subr.bf16.mxu0 %v9212_v16  ;;  %v3326_v55 = vsel %vm530_vm0, %v7626_v23, 0  ;;  %s10353_s17 = scalar_lea.vmem %s11109_s2, %s11092_s22 }
 0x19d   : > { %v4223_v15 = vld [vmem:[%s10353_s17 + $0x8] sm:$0xff] }
 0x1a6   : > { %8373 = vmatmul.mubr.msk.bf16.vlgmr.msra.gmra.mrb[0].mxu0 %vm523_vm3, %v3165_v20 }
 0x1a7   : > { %8377 = vmatpush3.bf16.msra.mxu0 %v9212_v16  ;;  %8380 = vmatprep.mubr.msk.bf16.mxu0 %vm592_vm4, %v9835_v24  ;;  %v9214_v24 = vld [vmem:[%s11081_s4 + $0xe4] sm:$0xff]  }
 0x1a8   : > { %8378 = vmatprep.subr.bf16.mxu0 %v3246_v63 }
 0x1ab   : > { %8379 = vmatpush3.bf16.msra.mxu0 %v3246_v63 }
 0x1ac   : > { %9073 = vmatprep.subr.msk.bf16.mxu0 %vm530_vm0, %v7626_v23 }
 0x1b2   : > { %8381 = vmatmul.mubr.msk.bf16.vlgmr.msra.gmra.mrb[0].mxu0 %vm592_vm4, %v3159_v8 }
 0x1b3   : > { %8385 = vmatpush3.bf16.msra.mxu0 %v3326_v55  ;;  %8386 = vmatprep.mubr.msk.bf16.mxu0 %vm523_vm3, %v9855_v42  ;;  %v7636_v42 = vld [vmem:[%s11082_s5 + $0x50] sm:$0xf] }
 0x1b4   : > { %8390 = vmatprep.subr.bf16.mxu0 %v9214_v24  ;;  %v3473_v3 = vsel %vm530_vm0, %v7636_v42, 0 }
 0x1be   : > { %8387 = vmatmul.mubr.msk.bf16.vlgmr.msra.gmra.mrb[0].mxu0 %vm523_vm3, %v3312_v62 }
 0x1bf   : > { %8391 = vmatpush3.bf16.msra.mxu0 %v9214_v24  ;;  %8394 = vmatprep.mubr.msk.bf16.mxu0 %vm592_vm4, %v9873_v43  ;;  %v9216_v43 = vld [vmem:[%s11081_s4 + $0xf0] sm:$0xff]  }
 0x1c0   : > { %8392 = vmatprep.subr.bf16.mxu0 %v3393_v58 }
 0x1c3   : > { %8393 = vmatpush3.bf16.msra.mxu0 %v3393_v58 }
 0x1c4   : > { %9074 = vmatprep.subr.msk.bf16.mxu0 %vm530_vm0, %v7636_v42 }
 0x1ca   : > { %8395 = vmatmul.mubr.msk.bf16.vlgmr.msra.gmra.mrb[0].mxu0 %vm592_vm4, %v3306_v21  ;;  %v4222_v21 = vld [vmem:[%s10353_s17] sm:$0xff] }
 0x1cb   : > { %8399 = vmatpush3.bf16.msra.mxu0 %v3473_v3  ;;  %8400 = vmatprep.mubr.msk.bf16.mxu0 %vm523_vm3, %v9891_v61  ;;  %v7646_v61 = vld [vmem:[%s11082_s5 + $0x54] sm:$0xf]  ;;  %v9360_v3 = vmov 0  }
 0x1cc   : > { %8404 = vmatprep.subr.bf16.mxu0 %v9216_v43  ;;  %v3620_v13 = vsel %vm530_vm0, %v7646_v61, 0  ;;  %9179 = vset.pattern.permute.xlu1 %v9360_v3 }
 0x1cd   : > { %9178 = vset.pattern.permute.xlu0 %v9360_v3 }
 0x1d6   : > { %8401 = vmatmul.mubr.msk.bf16.vlgmr.msra.gmra.mrb[0].mxu0 %vm523_vm3, %v3459_v37 }
 0x1d7   : > { %8405 = vmatpush3.bf16.msra.mxu0 %v9216_v43  ;;  %8408 = vmatprep.mubr.msk.bf16.mxu0 %vm592_vm4, %v9909_v39  ;;  %v3604_v39 = vld [vmem:[%s9513_s27 + $0x39] sm:$0xff] }
 0x1d8   : > { %8406 = vmatprep.subr.bf16.mxu0 %v3540_v26  ;;  %v3606_v56 = vpack.c.bf16 %v3604_v39, %v10086_v38  ;;  %v3600_v38 = vpack.c.bf16 %v3598_v46, %v10114_v48 }
 0x1db   : > { %8407 = vmatpush3.bf16.msra.mxu0 %v3540_v26 }
 0x1dc   : > { %9075 = vmatprep.subr.msk.bf16.mxu0 %vm530_vm0, %v7646_v61 }
 0x1e2   : > { %8409 = vmatmul.mubr.msk.bf16.vlgmr.msra.gmra.mrb[0].mxu0 %vm592_vm4, %v3453_v40 }
 0x1e3   : > { %8413 = vmatpush3.bf16.msra.mxu0 %v3620_v13  ;;  %8414 = vmatprep.mubr.msk.bf16.mxu0 %vm523_vm3, %v9928_v31  ;;  %v7656_v31 = vld [vmem:[%s11082_s5 + $0x58] sm:$0xf] }
 0x1e4   : > { %8418 = vmatprep.subr.bf16.mxu0 %v9218_v35  ;;  %v3767_v22 = vsel %vm530_vm0, %v7656_v31, 0 }
 0x1ee   : > { %8415 = vmatmul.mubr.msk.bf16.vlgmr.msra.gmra.mrb[0].mxu0 %vm523_vm3, %v3606_v56 }
 0x1ef   : > { %8419 = vmatpush3.bf16.msra.mxu0 %v9218_v35  ;;  %8422 = vmatprep.mubr.msk.bf16.mxu0 %vm592_vm4, %v9945_v50  ;;  %v3751_v50 = vld [vmem:[%s9513_s27 + $0x3a] sm:$0xff] }
 0x1f0   : > { %8420 = vmatprep.subr.bf16.mxu0 %v3687_v17  ;;  %v3753_v48 = vpack.c.bf16 %v3751_v50, %v10137_v45  ;;  %v3747_v45 = vpack.c.bf16 %v3745_v0, %v10166_v52 }
 0x1f3   : > { %8421 = vmatpush3.bf16.msra.mxu0 %v3687_v17 }
 0x1f4   : > { %9076 = vmatprep.subr.msk.bf16.mxu0 %vm530_vm0, %v7656_v31  ;;  %v4224_v31 = vld [vmem:[%s10353_s17 + $0x10] sm:$0xff] }
 0x1fa   : > { %8423 = vmatmul.mubr.msk.bf16.vlgmr.msra.gmra.mrb[0].mxu0 %vm592_vm4, %v3600_v38 }
 0x1fb   : > { %8427 = vmatpush3.bf16.msra.mxu0 %v3767_v22  ;;  %8428 = vmatprep.mubr.msk.bf16.mxu0 %vm523_vm3, %v9963_v2  ;;  %v7666_v2 = vld [vmem:[%s11082_s5 + $0x5c] sm:$0xf] }
 0x1fc   : > { %8432 = vmatprep.subr.bf16.mxu0 %v9222_v33  ;;  %v3914_v41 = vsel %vm530_vm0, %v7666_v2, 0 }
 0x206   : > { %8429 = vmatmul.mubr.msk.bf16.vlgmr.msra.gmra.mrb[0].mxu0 %vm523_vm3, %v3753_v48 }
 0x207   : > { %8433 = vmatpush3.bf16.msra.mxu0 %v9222_v33  ;;  %8436 = vmatprep.mubr.msk.bf16.mxu0 %vm592_vm4, %v9979_v5  ;;  %v3898_v5 = vld [vmem:[%s9513_s27 + $0x3b] sm:$0xff] }
 0x208   : > { %8434 = vmatprep.subr.bf16.mxu0 %v3834_v29  ;;  %v3900_v52 = vpack.c.bf16 %v3898_v5, %v10189_v7 }
 0x20b   : > { %8435 = vmatpush3.bf16.msra.mxu0 %v3834_v29  ;;  %v504_v29 = vld [vmem:[%s11110_s3 + $0x8] sm:$0xff] }
 0x20c   : > { %9077 = vmatprep.subr.msk.bf16.mxu0 %vm530_vm0, %v7666_v2  ;;  %v503_v2 = vld [vmem:[%s11110_s3] sm:$0xff] }
 0x212   : > { %8437 = vmatmul.mubr.msk.bf16.vlgmr.msra.gmra.mrb[0].mxu0 %vm592_vm4, %v3747_v45 }
 0x213   : > { %8441 = vmatpush3.bf16.msra.mxu0 %v3914_v41  ;;  %8442 = vmatprep.mubr.msk.bf16.mxu0 %vm523_vm3, %v9997_v14  ;;  %v7676_v14 = vld [vmem:[%s11082_s5 + $0x60] sm:$0xf] }
 0x214   : > { %8446 = vmatprep.subr.bf16.mxu0 %v9226_v59  ;;  %v4061_v36 = vsel %vm530_vm0, %v7676_v14, 0 }
 0x21e   : > { %8443 = vmatmul.mubr.msk.bf16.vlgmr.msra.gmra.mrb[0].mxu0 %vm523_vm3, %v3900_v52 }
 0x21f   : > { %8447 = vmatpush3.bf16.msra.mxu0 %v9226_v59  ;;  %8450 = vmatprep.mubr.msk.bf16.mxu0 %vm592_vm4, %v10013_v18  ;;  %v4045_v18 = vld [vmem:[%s9513_s27 + $0x3c] sm:$0xff] }
 0x220   : > { %8448 = vmatprep.subr.bf16.mxu0 %v3981_v11  ;;  %v4047_v4 = vpack.c.bf16 %v4045_v18, %v10217_v57 }
 0x223   : > { %8449 = vmatpush3.bf16.msra.mxu0 %v3981_v11 }
 0x224   : > { %9078 = vmatprep.subr.msk.bf16.mxu0 %vm530_vm0, %v7676_v14 }
 0x22a   : > { %8451 = vmatmul.mubr.msk.bf16.vlgmr.msra.gmra.mrb[0].mxu0 %vm592_vm4, %v3894_v54 }
 0x22b   : > { %8455 = vmatpush3.bf16.msra.mxu0 %v4061_v36  ;;  %8456 = vmatprep.mubr.msk.bf16.mxu0 %vm523_vm3, %v10031_v30  ;;  %v4041_v30 = vpack.c.bf16 %v4039_v51, %v10232_v60 }
 0x22c   : > { %8460 = vmatprep.subr.bf16.mxu0 %v9228_v32 }
 0x236   : > { %8457 = vmatmul.mubr.msk.bf16.vlgmr.msra.gmra.mrb[0].mxu0 %vm523_vm3, %v4047_v4 }
 0x237   : > { %8461 = vmatpush3.bf16.msra.mxu0 %v9228_v32  ;;  %8464 = vmatprep.mubr.msk.bf16.mxu0 %vm592_vm4, %v10047_v34 }
 0x238   : > { %8462 = vmatprep.subr.bf16.mxu0 %v4128_v10 }
 0x23b   : > { %8463 = vmatpush3.bf16.msra.mxu0 %v4128_v10  ;;  %v4225_v10 = vld [vmem:[%s10353_s17 + $0x18] sm:$0xff]  ;;  %s10415_s17 = sand.u32 1, %s9348_s26  }
 0x23c   : > { %s9120_s16 = smul.u32 72, %s10415_s17  ;;  %s7430_s21 = sshll.u32 %s10415_s17, 5 }
 0x23e   : > { %s10420_s27 = scalar_lea.vmem [#allocation3], %s9120_s16  ;;  %s10524_s16 = scalar_lea.vmem [#allocation5], %s7430_s21 }
 0x23f   : > { %s11097_s21 = smov 48  }
 0x242   : > { %8465 = vmatmul.mubr.msk.bf16.vlgmr.msra.gmra.mrb[0].mxu0 %vm592_vm4, %v4041_v30 }
 0x269   : > { %v8144_v16 = vpop.f32.mrb[0].mxu1 }
 0x26a   : > { %v783_v28 = vpop.f32.mrb[1].mxu1 }
 0x26b   : > { %v8145_v7 = vpop.f32.mrb[2].mxu1 }
 0x26c   : > { %v786_v44 = vpop.f32.mrb[3].mxu1 }
 0x315   : > { %v8466_v20 = vpop.f32.mrb[0].mxu0 }
 0x316   : > { %v8714_v63 = vadd.f32 %v8466_v20, %v8144_v16  ;;  %v4164_v34 = vpop.f32.mrb[1].mxu0  ;;  %v505_v16 = vld [vmem:[%s11110_s3 + $0x10] sm:$0xff]  ;;  %v9362_v20 = vmov 0.0  }
 0x317   : > { %v8715_v23 = vadd.f32 %v4164_v34, %v783_v28  ;;  %v8467_v1 = vpop.f32.mrb[2].mxu0  ;;  %6143 = vst.msk [vmem:[#allocation2] sm:$0xff] %vm523_vm3, %v9362_v20  ;;  %6144 = vst.msk [vmem:[#allocation2 + $0x8] sm:$0xff] %vm523_vm3, %v9362_v20 }
 0x318   : > { %v4192_v8 = vadd.f32 %v8714_v63, %v7683_v6  ;;  %v8716_v55 = vadd.f32 %v8467_v1, %v8145_v7  ;;  %v4167_v24 = vpop.f32.mrb[3].mxu0  ;;  %6145 = vst.msk [vmem:[#allocation2 + $0x10] sm:$0xff] %vm523_vm3, %v9362_v20  ;;  %6146 = vst.msk [vmem:[#allocation2 + $0x18] sm:$0xff] %vm523_vm3, %v9362_v20  ;;  %v7688_v63 = vld [vmem:[%s11084_s7 + $0x4] sm:$0xf] }
 0x319   : > { %v4190_v57 = vadd.f32 %v8715_v23, %v7683_v6  ;;  %v8717_v19 = vadd.f32 %v4167_v24, %v786_v44  ;;  %6147 = vst.msk [vmem:[#allocation2 + $0x20] sm:$0xff] %vm523_vm3, %v9362_v20  ;;  %6148 = vst.msk [vmem:[#allocation2 + $0x28] sm:$0xff] %vm523_vm3, %v9362_v20  ;;  %9079 = vmatprep.subr.msk.bf16.mxu1 %vm530_vm0, %v7688_v63  ;;  %v4405_v34 = vsel %vm530_vm0, %v7688_v63, 0 }
 0x31a   : > { %9230 = vtanh.f32 %v4192_v8  ;;  %v4193_v62 = vadd.f32 %v8716_v55, %v7683_v6  ;;  %v7686_v26 = vmul.f32 -1.442695, %v4192_v8  ;;  %6149 = vst.msk [vmem:[#allocation2 + $0x30] sm:$0xff] %vm523_vm3, %v9362_v20  ;;  %4356 = vst.msk [vmem:[%s10420_s27 + $0x10] sm:$0xff] %vm523_vm3, %v9362_v20  ;;  %8469 = vmatpush3.bf16.msra.mxu1 %v4405_v34 }
 0x31b   : > { %9232 = vtanh.f32 %v4190_v57  ;;  %v4191_v58 = vadd.f32 %v8717_v19, %v7683_v6  ;;  %v7684_v25 = vmul.f32 -1.442695, %v4190_v57  ;;  %4357 = vst.msk [vmem:[%s10420_s27 + $0x18] sm:$0xff] %vm523_vm3, %v9362_v20  ;;  %4354 = vst.msk [vmem:[%s10420_s27] sm:$0xff] %vm523_vm3, %v9362_v20 }
 0x31c   : > { %v7687_v0 = vmul.f32 -1.442695, %v4193_v62  ;;  %4355 = vst.msk [vmem:[%s10420_s27 + $0x8] sm:$0xff] %vm523_vm3, %v9362_v20  ;;  %4358 = vst.msk [vmem:[%s10420_s27 + $0x20] sm:$0xff] %vm523_vm3, %v9362_v20 }
 0x31d   : > { %9234 = vtanh.f32 %v4191_v58  ;;  %v7685_v37 = vmul.f32 -1.442695, %v4191_v58  ;;  %4359 = vst.msk [vmem:[%s10420_s27 + $0x28] sm:$0xff] %vm523_vm3, %v9362_v20  ;;  %4360 = vst.msk [vmem:[%s10420_s27 + $0x30] sm:$0xff] %vm523_vm3, %v9362_v20 }
 0x31e   : > { %9236 = vpow2.f32 %v7684_v25  ;;  %4361 = vst.msk [vmem:[%s10420_s27 + $0x38] sm:$0xff] %vm523_vm3, %v9362_v20  ;;  %4362 = vst.msk [vmem:[%s10420_s27 + $0x40] sm:$0xff] %vm523_vm3, %v9362_v20  ;;  %v4389_v25 = vld [vmem:[%s11084_s7] sm:$0xf] }
 0x31f   : > { %9238 = vpow2.f32 %v7685_v37  ;;  %9080 = vmatprep.subr.msk.bf16.mxu1 %vm530_vm0, %v4389_v25 }
 0x320   : > { %9240 = vpow2.f32 %v7686_v26 }
 0x323   : > { %v4390_v55 = vld [vmem:[%s10420_s27 + $0x1] sm:$0xff]  ;;  %v10450_v24 = vld [vmem:[%s10420_s27 + $0x9] sm:$0xff] }
 0x324   : > { %v9231_v42 = vpop.eup %9230  ;;  %v4394_v19 = vpack.c.bf16 %v10450_v24, %v4390_v55 }
 0x325   : > { %v9233_v60 = vpop.eup %9232  ;;  %4254 = vrot.lane.b32.xlu1 %v9231_v42, %s9359_s30  ;;  %v506_v42 = vld [vmem:[%s11110_s3 + $0x18] sm:$0xff] }
 0x326   : > { %4250 = vrot.lane.b32.xlu0 %v9233_v60, %s9359_s30  ;;  %8470 = vmatprep.mubr.msk.bf16.mxu1 %vm523_vm3, %v4394_v19 }
 0x327   : > { %v9235_v43 = vpop.eup %9234 }
 0x328   : > { %v9237_v61 = vpop.eup %9236 }
 0x329   : > { %4230 = vrot.lane.b32.xlu1 %v4222_v21, %s11095_s15  ;;  %v4206_v9 = vadd.f32 1.0, %v9237_v61  ;;  %v9239_v40 = vpop.eup %9238 }
 0x32a   : > { %4252 = vrot.lane.b32.xlu0 %v9235_v43, %s9359_s30  ;;  %v9241_v13 = vpop.eup %9240  ;;  %v4207_v35 = vadd.f32 1.0, %v9239_v40 }
 0x32b   : > { %9242 = vrcp.f32 %v4206_v9  ;;  %v4208_v39 = vadd.f32 1.0, %v9241_v13 }
 0x32c   : > { %9244 = vrcp.f32 %v4207_v35 }
 0x32d   : > { %9246 = vrcp.f32 %v4208_v39  ;;  %v4383_v39 = vld [vmem:[%s10420_s27] sm:$0xff] }
 0x32e   : > { %4232 = vrot.lane.b32.xlu0 %v4223_v15, %s11095_s15  ;;  %9248 = vtanh.f32 %v4193_v62 }
 0x32f   : > { %9250 = vpow2.f32 %v7687_v0 }
 0x335   : > { %v10362_v27 = vpop.eup %9242 }
 0x336   : > { %v10367_v46 = vpop.eup %9244 }
 0x337   : > { %v10371_v50 = vpop.eup %9246 }
 0x338   : > { %v9249_v48 = vpop.eup %9248 }
 0x339   : > { %v9251_v52 = vpop.eup %9250 }
 0x33a   : > { %v4209_v54 = vadd.f32 1.0, %v9251_v52 }
 0x397   : > { %v4255_v38 = vpop.permute.xlu1 %4254 }
 0x398   : > { %v4251_v56 = vpop.permute.xlu0 %4250  ;;  %v4264_v53 = vmul.f32 %v10371_v50, %v4255_v38  ;;  %v4463_v38 = vsel %vm530_vm0, %v4389_v25, 0 }
 0x399   : > { %v4262_v17 = vmul.f32 %v10362_v27, %v4251_v56 }
 0x39b   : > { %4270 = vrot.lane.b32.xlu1 %v4262_v17, %s11095_s15  ;;  %v4231_v45 = vpop.permute.xlu1 %4230 }
 0x39c   : > { %v4253_v22 = vpop.permute.xlu0 %4252  ;;  %v4242_v41 = vmul.f32 %v10362_v27, %v4231_v45 }
 0x39d   : > { %v4263_v33 = vmul.f32 %v10367_v46, %v4253_v22 }
 0x39f   : > { %4234 = vrot.lane.b32.xlu1 %v4224_v31, %s11095_s15  ;;  %4272 = vrot.lane.b32.xlu0 %v4263_v33, %s11095_s15 }
 0x3a0   : > { %v4233_v49 = vpop.permute.xlu0 %4232 }
 0x3a1   : > { %v4243_v14 = vmul.f32 %v10367_v46, %v4233_v49  ;;  %v4515_v49 = vld [vmem:[%s10420_s27 + $0xa] sm:$0xff] }
 0x3a3   : > { %4274 = vrot.lane.b32.xlu1 %v4264_v53, %s11095_s15  ;;  %4256 = vrot.lane.b32.xlu0 %v9249_v48, %s9359_s30  ;;  %s11093_s30 = smov 120  }
 0x3a7   : > { %4337 = vperm.xlu1 %9179, %v504_v29   ;;  %4332 = vperm.xlu0 %9178, %v503_v2  }
 0x40d   : > { %v4271_v59 = vpop.permute.xlu1 %4270 }
 0x40e   : > { %v10384_v5 = vadd.f32 %v4271_v59, %v4242_v41  ;;  %v4514_v41 = vld [vmem:[%s10420_s27 + $0x2] sm:$0xff] }
 0x410   : > { %9252 = vtanh.f32 %v10384_v5 }
 0x411   : > { %v4235_v11 = vpop.permute.xlu1 %4234  ;;  %v4273_v12 = vpop.permute.xlu0 %4272 }
 0x412   : > { %v10388_v36 = vadd.f32 %v4273_v12, %v4243_v14  ;;  %v4244_v18 = vmul.f32 %v10371_v50, %v4235_v11  ;;  %v4518_v11 = vpack.c.bf16 %v4515_v49, %v4514_v41  ;;  %v7723_v41 = vld [vmem:[%s11084_s7 + $0x30] sm:$0xf] }
 0x414   : > { %9254 = vtanh.f32 %v10388_v36 }
 0x415   : > { %v4275_v32 = vpop.permute.xlu1 %4274  ;;  %9256 = vrcp.f32 %v4209_v54  ;;  %v4257_v30 = vpop.permute.xlu0 %4256  ;;  %v7696_v54 = vld [vmem:[%s11084_s7 + $0xc] sm:$0xf] }
 0x416   : > { %v10392_v4 = vadd.f32 %v4275_v32, %v4244_v18  ;;  %v4584_v18 = vld [vmem:[%s10420_s27 + $0x3] sm:$0xff] }
 0x418   : > { %9258 = vtanh.f32 %v10392_v4 }
 0x41a   : > { %v9253_v47 = vpop.eup %9252 }
 0x41b   : > { %4294 = vrot.lane.b32.xlu1 %v9253_v47, %s11095_s15 }
 0x41e   : > { %v9255_v51 = vpop.eup %9254 }
 0x41f   : > { %4236 = vrot.lane.b32.xlu1 %v4225_v10, %s11095_s15  ;;  %4296 = vrot.lane.b32.xlu0 %v9255_v51, %s11095_s15  ;;  %v10402_v28 = vpop.eup %9256  ;;  %v4599_v51 = vsel %vm530_vm0, %v7696_v54, 0 }
 0x420   : > { %v4265_v7 = vmul.f32 %v10402_v28, %v4257_v30 }
 0x422   : > { %v9259_v44 = vpop.eup %9258 }
 0x423   : > { %4342 = vperm.xlu1 %9179, %v505_v16   ;;  %4276 = vrot.lane.b32.xlu0 %v4265_v7, %s11095_s15  ;;  %v7699_v16 = vld [vmem:[%s11084_s7 + $0x10] sm:$0xf]  ;;  %v4654_v7 = vld [vmem:[%s10420_s27 + $0x4] sm:$0xff] }
 0x424   : > { %v4669_v63 = vsel %vm530_vm0, %v7699_v16, 0 }
 0x426   : > { %v10418_v6 = vpop.permute.xlu1 %4337  ;;  %v10445_v1 = vpop.permute.xlu0 %4332 }
 0x427   : > { %4298 = vrot.lane.b32.xlu0 %v9259_v44, %s11095_s15 }
 0x48d   : > { %v4295_v23 = vpop.permute.xlu1 %4294 }
 0x48e   : > { %v4306_v8 = vmul.f32 %v10362_v27, %v4295_v23  ;;  %v10484_v27 = vld [vmem:[%s10420_s27 + $0x8] sm:$0xff]  ;;  %v7702_v23 = vld [vmem:[%s11084_s7 + $0x14] sm:$0xf] }
 0x48f   : > { %v4387_v31 = vpack.c.bf16 %v10484_v27, %v4383_v39  ;;  %v7714_v39 = vld [vmem:[%s11084_s7 + $0x24] sm:$0xf] }
 0x490   : > { %v4350_v57 = vmul.f32 %v10445_v1, %v4306_v8 }
 0x491   : > { %v4237_v62 = vpop.permute.xlu1 %4236  ;;  %v4297_v58 = vpop.permute.xlu0 %4296 }
 0x492   : > { %4367 = vrot.lane.b32.xlu1 %v4350_v57, %s9363_s23  ;;  %v4307_v60 = vmul.f32 %v10367_v46, %v4297_v58  ;;  %v4245_v21 = vmul.f32 %v10402_v28, %v4237_v62  ;;  %v4739_v57 = vsel %vm530_vm0, %v7702_v23, 0  ;;  %v7705_v62 = vld [vmem:[%s11084_s7 + $0x18] sm:$0xf] }
 0x494   : > { %v4351_v3 = vmul.f32 %v10418_v6, %v4307_v60  ;;  %v4809_v60 = vsel %vm530_vm0, %v7705_v62, 0 }
 0x495   : > { %v4277_v43 = vpop.permute.xlu0 %4276 }
 0x496   : > { %4347 = vperm.xlu1 %9179, %v506_v42   ;;  %v10462_v15 = vadd.f32 %v4277_v43, %v4245_v21  ;;  %4369 = vrot.lane.b32.xlu0 %v4351_v3, %s9363_s23  ;;  %v7708_v3 = vld [vmem:[%s11084_s7 + $0x1c] sm:$0xf] }
 0x498   : > { %9260 = vtanh.f32 %v10462_v15 }
 0x499   : > { %v4299_v37 = vpop.permute.xlu0 %4298 }
 0x49a   : > { %v4308_v26 = vmul.f32 %v10371_v50, %v4299_v37  ;;  %v7693_v50 = vld [vmem:[%s11084_s7 + $0x8] sm:$0xf]  ;;  %v4879_v37 = vsel %vm530_vm0, %v7708_v3, 0 }
 0x49b   : > { %v4529_v12 = vsel %vm530_vm0, %v7693_v50, 0 }
 0x4a2   : > { %v10471_v61 = vpop.permute.xlu1 %4342  ;;  %v9261_v40 = vpop.eup %9260 }
 0x4a3   : > { %v4352_v9 = vmul.f32 %v10471_v61, %v4308_v26  ;;  %4300 = vrot.lane.b32.xlu0 %v9261_v40, %s11095_s15  ;;  %s9122_s15 = smul.u32 1152, %s9462_s29 }
 0x4a5   : > { %4371 = vrot.lane.b32.xlu1 %v4352_v9, %s9363_s23  ;;  %s10954_s0 = scalar_lea.hbm %s11088_s11, %s9122_s15 }
 0x4a9   : > { %4314 = vrot.lane.b32.xlu1 %v10384_v5, %s11093_s30 }
 0x504   : > { %v4368_v13 = vpop.permute.xlu1 %4367 }
 0x505   : > { %4379 = vst.msk [vmem:[%s10420_s27 + $0x12] sm:$0xff] %vm523_vm3, %v4368_v13 }
 0x508   : > { %v4370_v35 = vpop.permute.xlu0 %4369 }
 0x509   : > { %4380 = vst.msk [vmem:[%s10420_s27 + $0x1a] sm:$0xff] %vm523_vm3, %v4370_v35 }
 0x50c   : > { %v10487_v56 = vld [vmem:[%s10420_s27 + $0x11] sm:$0xff] }
 0x50d   : > { %v10499_v22 = vld [vmem:[%s10420_s27 + $0xc] sm:$0xff]  ;;  %v4798_v21 = vpack.c.bf16 %v10487_v56, %v10450_v24  ;;  %v7711_v24 = vld [vmem:[%s11084_s7 + $0x20] sm:$0xf] }
 0x50e   : > { %v4385_v52 = vld [vmem:[%s10420_s27 + $0x10] sm:$0xff]  ;;  %v4658_v34 = vpack.c.bf16 %v10499_v22, %v4654_v7  ;;  %v4949_v13 = vsel %vm530_vm0, %v7711_v24, 0 }
 0x50f   : > { %v4585_v47 = vld [vmem:[%s10420_s27 + $0xb] sm:$0xff]  ;;  %v4728_v19 = vpack.c.bf16 %v4385_v52, %v10484_v27 }
 0x510   : > { %v10490_v17 = vld [vmem:[%s10420_s27 + $0x19] sm:$0xff]  ;;  %v4588_v30 = vpack.c.bf16 %v4585_v47, %v4584_v18 }
 0x511   : > { %v10495_v46 = vpack.c.bf16 %v10490_v17, %v10487_v56  ;;  %v10502_v33 = vld [vmem:[%s10420_s27 + $0x14] sm:$0xff] }
 0x512   : > { %v5008_v53 = vpack.c.bf16 %v10502_v33, %v10499_v22  ;;  %v4386_v59 = vld [vmem:[%s10420_s27 + $0x18] sm:$0xff] }
 0x513   : > { %8471 = vmatmul.mubr.msk.bf16.vlgmr.msra.gmra.mrb[4].mxu1 %vm523_vm3, %v10495_v46  ;;  %v10529_v14 = vpack.c.bf16 %v4386_v59, %v4385_v52  ;;  %v4517_v32 = vld [vmem:[%s10420_s27 + $0x1a] sm:$0xff]  ;;  %v4516_v10 = vld [vmem:[%s10420_s27 + $0x12] sm:$0xff] }
 0x514   : > { %8475 = vmatpush3.bf16.msra.mxu1 %v4463_v38  ;;  %8476 = vmatprep.mubr.msk.bf16.mxu1 %vm523_vm3, %v4387_v31  ;;  %v4586_v44 = vld [vmem:[%s10420_s27 + $0x13] sm:$0xff]  ;;  %v4868_v26 = vpack.c.bf16 %v4516_v10, %v4515_v49  ;;  %v5019_v38 = vsel %vm530_vm0, %v7714_v39, 0  ;;  %v5229_v49 = vsel %vm530_vm0, %v7723_v41, 0 }
 0x515   : > { %v10511_v48 = vpop.permute.xlu1 %4347  ;;  %v4301_v29 = vpop.permute.xlu0 %4300  ;;  %9081 = vmatprep.subr.msk.bf16.mxu1 %vm530_vm0, %v7693_v50  ;;  %v4938_v35 = vpack.c.bf16 %v4586_v44, %v4585_v47  ;;  %v7717_v50 = vld [vmem:[%s11084_s7 + $0x28] sm:$0xf]  ;;  %v7726_v52 = vld [vmem:[%s11084_s7 + $0x34] sm:$0xf]  ;;  %v7732_v47 = vld [vmem:[%s11084_s7 + $0x3c] sm:$0xf] }
 0x516   : > { %v4309_v2 = vmul.f32 %v10402_v28, %v4301_v29 }
 0x518   : > { %v4353_v45 = vmul.f32 %v10511_v48, %v4309_v2 }
 0x519   : > { %v4372_v0 = vpop.permute.xlu1 %4371 }
 0x51a   : > { %4381 = vst.msk [vmem:[%s10420_s27 + $0x22] sm:$0xff] %vm523_vm3, %v4372_v0  ;;  %4373 = vrot.lane.b32.xlu0 %v4353_v45, %s9363_s23  ;;  %v5089_v0 = vsel %vm530_vm0, %v7717_v50, 0  ;;  %v7720_v45 = vld [vmem:[%s11084_s7 + $0x2c] sm:$0xf]  ;;  %s9365_s23 = smov 16  }
 0x51d   : > { %v4315_v5 = vpop.permute.xlu1 %4314 }
 0x51e   : > { %4326 = vst.msk [vmem:[%s10524_s16] sm:$0xff] %vm523_vm3, %v4315_v5  ;;  %4316 = vrot.lane.b32.xlu0 %v10388_v36, %s11093_s30  ;;  %v10545_v36 = vpack.c.bf16 %v4517_v32, %v4516_v10  ;;  %s7264_s30 = sshll.u32 %s10420_s27, 4  ;;  %s10956_s30 = int_to_ptr.vmem [resolvable:$true] %s7264_s30 }
 0x51f   : > { %8477 = vmatmul.mubr.msk.bf16.vlgmr.msra.gmra.mrb[4].mxu1 %vm523_vm3, %v10529_v14 }
 0x520   : > { %8481 = vmatpush3.bf16.msra.mxu1 %v4529_v12  ;;  %8482 = vmatprep.mubr.msk.bf16.mxu1 %vm523_vm3, %v4518_v11  ;;  %v7729_v12 = vld [vmem:[%s11084_s7 + $0x38] sm:$0xf] }
 0x521   : > { %9082 = vmatprep.subr.msk.bf16.mxu1 %vm530_vm0, %v7696_v54  ;;  %v4587_v28 = vld [vmem:[%s10420_s27 + $0x1b] sm:$0xff]  ;;  %v5369_v18 = vsel %vm530_vm0, %v7729_v12, 0 }
 0x522   : > { %v10558_v20 = vpack.c.bf16 %v4587_v28, %v4586_v44  ;;  %v4657_v8 = vld [vmem:[%s10420_s27 + $0x1c] sm:$0xff]  ;;  %v7738_v44 = vld [vmem:[%s11084_s7 + $0x44] sm:$0xf] }
 0x523   : > { %v10571_v55 = vpack.c.bf16 %v4657_v8, %v10502_v33  ;;  %v4727_v58 = vld [vmem:[%s10420_s27 + $0x20] sm:$0xff] }
 0x524   : > { %v10583_v42 = vpack.c.bf16 %v4727_v58, %v4386_v59  ;;  %v4797_v43 = vld [vmem:[%s10420_s27 + $0x21] sm:$0xff] }
 0x525   : > { %v10597_v25 = vpack.c.bf16 %v4797_v43, %v10490_v17  ;;  %v4867_v9 = vld [vmem:[%s10420_s27 + $0x22] sm:$0xff] }
 0x526   : > { %v10608_v40 = vpack.c.bf16 %v4867_v9, %v4517_v32 }
 0x52b   : > { %8483 = vmatmul.mubr.msk.bf16.vlgmr.msra.gmra.mrb[4].mxu1 %vm523_vm3, %v10545_v36 }
 0x52c   : > { %8488 = vmatprep.mubr.msk.bf16.mxu1 %vm523_vm3, %v4588_v30  ;;  %8487 = vmatpush3.bf16.msra.mxu1 %v4599_v51  ;;  %v5439_v51 = vsel %vm530_vm0, %v7732_v47, 0  ;;  %v7735_v30 = vld [vmem:[%s11084_s7 + $0x40] sm:$0xf] }
 0x52d   : > { %9083 = vmatprep.subr.msk.bf16.mxu1 %vm530_vm0, %v7699_v16  ;;  %v5509_v7 = vsel %vm530_vm0, %v7735_v30, 0 }
 0x537   : > { %8489 = vmatmul.mubr.msk.bf16.vlgmr.msra.gmra.mrb[4].mxu1 %vm523_vm3, %v10558_v20 }
 0x538   : > { %8494 = vmatprep.mubr.msk.bf16.mxu1 %vm523_vm3, %v4658_v34  ;;  %8493 = vmatpush3.bf16.msra.mxu1 %v4669_v63  ;;  %v5579_v34 = vsel %vm530_vm0, %v7738_v44, 0 }
 0x539   : > { %9084 = vmatprep.subr.msk.bf16.mxu1 %vm530_vm0, %v7702_v23  ;;  %v7741_v23 = vld [vmem:[%s11084_s7 + $0x48] sm:$0xf] }
 0x543   : > { %8495 = vmatmul.mubr.msk.bf16.vlgmr.msra.gmra.mrb[4].mxu1 %vm523_vm3, %v10571_v55 }
 0x544   : > { %8500 = vmatprep.mubr.msk.bf16.mxu1 %vm523_vm3, %v4728_v19  ;;  %8499 = vmatpush3.bf16.msra.mxu1 %v4739_v57  ;;  %v5649_v57 = vsel %vm530_vm0, %v7741_v23, 0  ;;  %v7744_v19 = vld [vmem:[%s11084_s7 + $0x4c] sm:$0xf] }
 0x545   : > { %9085 = vmatprep.subr.msk.bf16.mxu1 %vm530_vm0, %v7705_v62  ;;  %v5637_v62 = vld [vmem:[%s10420_s27 + $0x33] sm:$0xff] }
 0x54f   : > { %8501 = vmatmul.mubr.msk.bf16.vlgmr.msra.gmra.mrb[4].mxu1 %vm523_vm3, %v10583_v42 }
 0x550   : > { %8506 = vmatprep.mubr.msk.bf16.mxu1 %vm523_vm3, %v4798_v21  ;;  %8505 = vmatpush3.bf16.msra.mxu1 %v4809_v60  ;;  %v7747_v60 = vld [vmem:[%s11084_s7 + $0x50] sm:$0xf] }
 0x551   : > { %9086 = vmatprep.subr.msk.bf16.mxu1 %vm530_vm0, %v7708_v3  ;;  %v5707_v21 = vld [vmem:[%s10420_s27 + $0x34] sm:$0xff] }
 0x55b   : > { %8507 = vmatmul.mubr.msk.bf16.vlgmr.msra.gmra.mrb[4].mxu1 %vm523_vm3, %v10597_v25 }
 0x55c   : > { %8512 = vmatprep.mubr.msk.bf16.mxu1 %vm523_vm3, %v4868_v26  ;;  %8511 = vmatpush3.bf16.msra.mxu1 %v4879_v37  ;;  %v5777_v37 = vld [vmem:[%s10420_s27 + $0x38] sm:$0xff] }
 0x55d   : > { %9087 = vmatprep.subr.msk.bf16.mxu1 %vm530_vm0, %v7711_v24 }
 0x567   : > { %8513 = vmatmul.mubr.msk.bf16.vlgmr.msra.gmra.mrb[4].mxu1 %vm523_vm3, %v10608_v40 }
 0x568   : > { %8518 = vmatprep.mubr.msk.bf16.mxu1 %vm523_vm3, %v4938_v35  ;;  %8517 = vmatpush3.bf16.msra.mxu1 %v4949_v13 }
 0x569   : > { %9088 = vmatprep.subr.msk.bf16.mxu1 %vm530_vm0, %v7714_v39  ;;  %v7756_v39 = vld [vmem:[%s11084_s7 + $0x5c] sm:$0xf] }
 0x58c   : > { %v4374_v27 = vpop.permute.xlu0 %4373 }
 0x58d   : > { %4382 = vst.msk [vmem:[%s10420_s27 + $0x2a] sm:$0xff] %vm523_vm3, %v4374_v27  ;;  %v5917_v27 = vld [vmem:[%s10420_s27 + $0x3a] sm:$0xff] }
 0x590   : > { %v4317_v56 = vpop.permute.xlu0 %4316 }
 0x591   : > { %4327 = vst.msk [vmem:[%s10524_s16 + $0x8] sm:$0xff] %vm523_vm3, %v4317_v56 }
 0x594   : > { %v4937_v17 = vld [vmem:[%s10420_s27 + $0x23] sm:$0xff]  ;;  %v5287_v54 = vld [vmem:[%s10420_s27 + $0x2b] sm:$0xff] }
 0x595   : > { %v10623_v31 = vpack.c.bf16 %v4937_v17, %v4587_v28  ;;  %v5007_v29 = vld [vmem:[%s10420_s27 + $0x24] sm:$0xff]  ;;  %v10685_v32 = vpack.c.bf16 %v5287_v54, %v4937_v17  ;;  %v5357_v10 = vld [vmem:[%s10420_s27 + $0x2c] sm:$0xff]  ;;  %v5999_v17 = vsel %vm530_vm0, %v7756_v39, 0 }
 0x596   : > { %v10637_v2 = vpack.c.bf16 %v5007_v29, %v4657_v8  ;;  %v5077_v22 = vld [vmem:[%s10420_s27 + $0x28] sm:$0xff]  ;;  %v5427_v16 = vld [vmem:[%s10420_s27 + $0x30] sm:$0xff]  ;;  %v5709_v3 = vpack.c.bf16 %v5707_v21, %v5357_v10 }
 0x597   : > { %8519 = vmatmul.mubr.msk.bf16.vlgmr.msra.gmra.mrb[4].mxu1 %vm523_vm3, %v10623_v31  ;;  %v10649_v33 = vpack.c.bf16 %v5077_v22, %v4727_v58  ;;  %v5147_v59 = vld [vmem:[%s10420_s27 + $0x29] sm:$0xff]  ;;  %v5429_v28 = vpack.c.bf16 %v5427_v16, %v5077_v22  ;;  %v5567_v8 = vld [vmem:[%s10420_s27 + $0x32] sm:$0xff]  ;;  %v5639_v58 = vpack.c.bf16 %v5637_v62, %v5287_v54  ;;  %v5779_v26 = vpack.c.bf16 %v5777_v37, %v5427_v16 }
 0x598   : > { %8523 = vmatpush3.bf16.msra.mxu1 %v5019_v38  ;;  %8524 = vmatprep.mubr.msk.bf16.mxu1 %vm523_vm3, %v5008_v53  ;;  %v5159_v53 = vsel %vm530_vm0, %v7720_v45, 0  ;;  %v10661_v5 = vpack.c.bf16 %v5147_v59, %v4797_v43  ;;  %v5789_v43 = vsel %vm530_vm0, %v7747_v60, 0  ;;  %v5919_v56 = vpack.c.bf16 %v5917_v27, %v5567_v8  ;;  %v5987_v38 = vld [vmem:[%s10420_s27 + $0x3b] sm:$0xff] }
 0x599   : > { %9089 = vmatprep.subr.msk.bf16.mxu1 %vm530_vm0, %v7717_v50  ;;  %v5989_v50 = vpack.c.bf16 %v5987_v38, %v5637_v62  ;;  %v7780_v27 = vld [vmem:[%s11086_s9 + $0x18] sm:$0xf] }
 0x5a3   : > { %8525 = vmatmul.mubr.msk.bf16.vlgmr.msra.gmra.mrb[4].mxu1 %vm523_vm3, %v10637_v2 }
 0x5a4   : > { %8529 = vmatpush3.bf16.msra.mxu1 %v5089_v0  ;;  %8530 = vmatprep.mubr.msk.bf16.mxu1 %vm523_vm3, %v10529_v14  ;;  %v5299_v14 = vsel %vm530_vm0, %v7726_v52, 0 }
 0x5a5   : > { %9090 = vmatprep.subr.msk.bf16.mxu1 %vm530_vm0, %v7720_v45  ;;  %v7763_v45 = vld [vmem:[%s11086_s9 + $0x4] sm:$0xf] }
 0x5a6   : > { %v6176_v22 = vsel %vm530_vm0, %v7763_v45, 0 }
 0x5af   : > { %8531 = vmatmul.mubr.msk.bf16.vlgmr.msra.gmra.mrb[4].mxu1 %vm523_vm3, %v10649_v33 }
 0x5b0   : > { %8535 = vmatpush3.bf16.msra.mxu1 %v5159_v53  ;;  %8536 = vmatprep.mubr.msk.bf16.mxu1 %vm523_vm3, %v10495_v46  ;;  %v5217_v46 = vld [vmem:[%s10420_s27 + $0x2a] sm:$0xff]  ;;  %v7762_v53 = vld [vmem:[%s11085_s8] ss:$0 sm:$0xff] }
 0x5b1   : > { %9091 = vmatprep.subr.msk.bf16.mxu1 %vm530_vm0, %v7723_v41  ;;  %v10673_v11 = vpack.c.bf16 %v5217_v46, %v4867_v9  ;;  %v7753_v9 = vld [vmem:[%s11084_s7 + $0x58] sm:$0xf] }
 0x5b2   : > { %v5929_v35 = vsel %vm530_vm0, %v7753_v9, 0 }
 0x5bb   : > { %8537 = vmatmul.mubr.msk.bf16.vlgmr.msra.gmra.mrb[4].mxu1 %vm523_vm3, %v10661_v5 }
 0x5bc   : > { %8541 = vmatpush3.bf16.msra.mxu1 %v5229_v49  ;;  %8542 = vmatprep.mubr.msk.bf16.mxu1 %vm523_vm3, %v10545_v36  ;;  %v10697_v36 = vpack.c.bf16 %v5357_v10, %v5007_v29 }
 0x5bd   : > { %9092 = vmatprep.subr.msk.bf16.mxu1 %vm530_vm0, %v7726_v52 }
 0x5c7   : > { %8543 = vmatmul.mubr.msk.bf16.vlgmr.msra.gmra.mrb[4].mxu1 %vm523_vm3, %v10673_v11 }
 0x5c8   : > { %8547 = vmatpush3.bf16.msra.mxu1 %v5299_v14  ;;  %8548 = vmatprep.mubr.msk.bf16.mxu1 %vm523_vm3, %v10558_v20  ;;  %v5497_v20 = vld [vmem:[%s10420_s27 + $0x31] sm:$0xff] }
 0x5c9   : > { %9093 = vmatprep.subr.msk.bf16.mxu1 %vm530_vm0, %v7729_v12  ;;  %v5499_v63 = vpack.c.bf16 %v5497_v20, %v5147_v59 }
 0x5d3   : > { %8549 = vmatmul.mubr.msk.bf16.vlgmr.msra.gmra.mrb[4].mxu1 %vm523_vm3, %v10685_v32 }
 0x5d4   : > { %8553 = vmatpush3.bf16.msra.mxu1 %v5369_v18  ;;  %8554 = vmatprep.mubr.msk.bf16.mxu1 %vm523_vm3, %v10571_v55  ;;  %v5569_v55 = vpack.c.bf16 %v5567_v8, %v5217_v46 }
 0x5d5   : > { %9094 = vmatprep.subr.msk.bf16.mxu1 %vm530_vm0, %v7732_v47 }
 0x5df   : > { %8555 = vmatmul.mubr.msk.bf16.vlgmr.msra.gmra.mrb[4].mxu1 %vm523_vm3, %v10697_v36 }
 0x5e0   : > { %8559 = vmatpush3.bf16.msra.mxu1 %v5439_v51  ;;  %8560 = vmatprep.mubr.msk.bf16.mxu1 %vm523_vm3, %v10583_v42  ;;  %v5719_v42 = vsel %vm530_vm0, %v7744_v19, 0 }
 0x5e1   : > { %9095 = vmatprep.subr.msk.bf16.mxu1 %vm530_vm0, %v7735_v30  ;;  %v6161_v30 = vld [vmem:[#allocation2 + $0x1] sm:$0xff] }
 0x5eb   : > { %8561 = vmatmul.mubr.msk.bf16.vlgmr.msra.gmra.mrb[4].mxu1 %vm523_vm3, %v5429_v28 }
 0x5ec   : > { %8565 = vmatpush3.bf16.msra.mxu1 %v5509_v7  ;;  %8566 = vmatprep.mubr.msk.bf16.mxu1 %vm523_vm3, %v10597_v25  ;;  %v7750_v25 = vld [vmem:[%s11084_s7 + $0x54] sm:$0xf] }
 0x5ed   : > { %9096 = vmatprep.subr.msk.bf16.mxu1 %vm530_vm0, %v7738_v44  ;;  %v5859_v24 = vsel %vm530_vm0, %v7750_v25, 0 }
 0x5f7   : > { %8567 = vmatmul.mubr.msk.bf16.vlgmr.msra.gmra.mrb[4].mxu1 %vm523_vm3, %v5499_v63 }
 0x5f8   : > { %8571 = vmatpush3.bf16.msra.mxu1 %v5579_v34  ;;  %8572 = vmatprep.mubr.msk.bf16.mxu1 %vm523_vm3, %v10608_v40  ;;  %v5847_v40 = vld [vmem:[%s10420_s27 + $0x39] sm:$0xff] }
 0x5f9   : > { %9097 = vmatprep.subr.msk.bf16.mxu1 %vm530_vm0, %v7741_v23  ;;  %v5849_v13 = vpack.c.bf16 %v5847_v40, %v5497_v20 }
 0x603   : > { %8573 = vmatmul.mubr.msk.bf16.vlgmr.msra.gmra.mrb[4].mxu1 %vm523_vm3, %v5569_v55 }
 0x604   : > { %8577 = vmatpush3.bf16.msra.mxu1 %v5649_v57  ;;  %8578 = vmatprep.mubr.msk.bf16.mxu1 %vm523_vm3, %v10623_v31  ;;  %v7759_v31 = vld [vmem:[%s11084_s7 + $0x60] sm:$0xf] }
 0x605   : > { %9098 = vmatprep.subr.msk.bf16.mxu1 %vm530_vm0, %v7744_v19  ;;  %v6069_v29 = vsel %vm530_vm0, %v7759_v31, 0  ;;  %v7771_v19 = vld [vmem:[%s11086_s9 + $0xc] sm:$0xf] }
 0x60f   : > { %8579 = vmatmul.mubr.msk.bf16.vlgmr.msra.gmra.mrb[4].mxu1 %vm523_vm3, %v5639_v58 }
 0x610   : > { %8583 = vmatpush3.bf16.msra.mxu1 %v5719_v42  ;;  %8584 = vmatprep.mubr.msk.bf16.mxu1 %vm523_vm3, %v10637_v2  ;;  %v6057_v2 = vld [vmem:[%s10420_s27 + $0x3c] sm:$0xff]  ;;  %v6370_v42 = vsel %vm530_vm0, %v7771_v19, 0  ;;  %s9368_s27 = smov [#allocation3]  }
 0x611   : > { %9099 = vmatprep.subr.msk.bf16.mxu1 %vm530_vm0, %v7747_v60  ;;  %v6059_v0 = vpack.c.bf16 %v6057_v2, %v5707_v21  ;;  %v7775_v21 = vld [vmem:[%s11086_s9 + $0x14] sm:$0xf] }
 0x612   : > { %v6442_v37 = vsel %vm530_vm0, %v7775_v21, 0 }
 0x61b   : > { %8585 = vmatmul.mubr.msk.bf16.vlgmr.msra.gmra.mrb[4].mxu1 %vm523_vm3, %v5709_v3 }
 0x61c   : > { %8589 = vmatpush3.bf16.msra.mxu1 %v5789_v43  ;;  %8590 = vmatprep.mubr.msk.bf16.mxu1 %vm523_vm3, %v10649_v33  ;;  %v6160_v33 = vld [vmem:[%s11086_s9] sm:$0xf] }
 0x61d   : > { %9100 = vmatprep.subr.msk.bf16.mxu1 %vm530_vm0, %v7750_v25 }
 0x627   : > { %8591 = vmatmul.mubr.msk.bf16.vlgmr.msra.gmra.mrb[4].mxu1 %vm523_vm3, %v5779_v26 }
 0x628   : > { %8595 = vmatpush3.bf16.msra.mxu1 %v5859_v24  ;;  %8596 = vmatprep.mubr.msk.bf16.mxu1 %vm523_vm3, %v10661_v5 }
 0x629   : > { %9101 = vmatprep.subr.msk.bf16.mxu1 %vm530_vm0, %v7753_v9  ;;  %v7774_v9 = vld [vmem:[%s11086_s9 + $0x10] sm:$0xf] }
 0x633   : > { %8597 = vmatmul.mubr.msk.bf16.vlgmr.msra.gmra.mrb[4].mxu1 %vm523_vm3, %v5849_v13 }
 0x634   : > { %8601 = vmatpush3.bf16.msra.mxu1 %v5929_v35  ;;  %8602 = vmatprep.mubr.msk.bf16.mxu1 %vm523_vm3, %v10673_v11 }
 0x635   : > { %9102 = vmatprep.subr.msk.bf16.mxu1 %vm530_vm0, %v7756_v39  ;;  %v6494_v39 = vsel %vm530_vm0, %v7774_v9, 0 }
 0x63f   : > { %8603 = vmatmul.mubr.msk.bf16.vlgmr.msra.gmra.mrb[4].mxu1 %vm523_vm3, %v5919_v56  ;;  %v6548_v56 = vsel %vm530_vm0, %v7780_v27, 0 }
 0x640   : > { %8607 = vmatpush3.bf16.msra.mxu1 %v5999_v17  ;;  %8608 = vmatprep.mubr.msk.bf16.mxu1 %vm523_vm3, %v10685_v32  ;;  %v7783_v17 = vld [vmem:[%s11086_s9 + $0x1c] sm:$0xf] }
 0x641   : > { %9103 = vmatprep.subr.msk.bf16.mxu1 %vm530_vm0, %v7759_v31  ;;  %v6618_v31 = vsel %vm530_vm0, %v7783_v17, 0 }
 0x64b   : > { %8609 = vmatmul.mubr.msk.bf16.vlgmr.msra.gmra.mrb[4].mxu1 %vm523_vm3, %v5989_v50  ;;  %v7787_v50 = vld [vmem:[%s11086_s9 + $0x24] sm:$0xf] }
 0x64c   : > { %8613 = vmatpush3.bf16.msra.mxu1 %v6069_v29  ;;  %8614 = vmatprep.mubr.msk.bf16.mxu1 %vm523_vm3, %v10697_v36 }
 0x64d   : > { %9104 = vmatprep.subr.msk.bf16.mxu1 %vm530_vm0, %v7763_v45  ;;  %v7786_v45 = vld [vmem:[%s11086_s9 + $0x20] sm:$0xf] }
 0x657   : > { %8615 = vmatmul.mubr.msk.bf16.vlgmr.msra.gmra.mrb[4].mxu1 %vm523_vm3, %v6059_v0  ;;  %v6678_v0 = vsel %vm530_vm0, %v7787_v50, 0 }
 0x658   : > { %8619 = vmatpush3.bf16.msra.mxu1 %v6176_v22  ;;  %v6730_v22 = vsel %vm530_vm0, %v7786_v45, 0 }
 0x659   : > { %9105 = vmatprep.subr.msk.bf16.mxu1 %vm530_vm0, %v6160_v33 }
 0x72a   : > { %v8616_v41 = vpop.f32.mrb[4].mxu1 }
 0x72b   : > { %v6133_v59 = vadd.f32 %v8616_v41, %v7762_v53  ;;  %v6105_v5 = vpop.f32.mrb[5].mxu1  ;;  %v7795_v41 = vld [vmem:[%s11086_s9 + $0x2c] sm:$0xf] }
 0x72c   : > { %v6131_v49 = vadd.f32 %v7762_v53, %v6105_v5  ;;  %v8617_v52 = vpop.f32.mrb[6].mxu1 }
 0x72d   : > { %v6137_v46 = vmax.f32 %v6133_v59, 0.0  ;;  %v6134_v11 = vadd.f32 %v8617_v52, %v7762_v53  ;;  %v6108_v14 = vpop.f32.mrb[7].mxu1  ;;  %v7799_v52 = vld [vmem:[%s11086_s9 + $0x34] sm:$0xf] }
 0x72e   : > { %v6135_v12 = vmax.f32 %v6131_v49, 0.0  ;;  %v6132_v54 = vadd.f32 %v7762_v53, %v6108_v14  ;;  %v6866_v49 = vsel %vm530_vm0, %v7795_v41, 0  ;;  %v6926_v14 = vsel %vm530_vm0, %v7799_v52, 0 }
 0x72f   : > { %v6141_v32 = vmul.f32 %v6137_v46, %v10471_v61  ;;  %v6138_v18 = vmax.f32 %v6134_v11, 0.0  ;;  %v6154_v61 = vld [vmem:[#allocation2] sm:$0xff]  ;;  %v6854_v46 = vld [vmem:[#allocation2 + $0x29] sm:$0xff] }
 0x730   : > { %v6139_v47 = vmul.f32 %v6135_v12, %v10445_v1  ;;  %v6136_v10 = vmax.f32 %v6132_v54, 0.0  ;;  %v7798_v12 = vld [vmem:[%s11086_s9 + $0x30] sm:$0xf] }
 0x731   : > { %6152 = vst.msk [vmem:[#allocation2 + $0x19] sm:$0xff] %vm523_vm3, %v6141_v32  ;;  %v6142_v36 = vmul.f32 %v6138_v18, %v10511_v48  ;;  %v6234_v48 = vsel %vm530_vm0, %v6160_v33, 0  ;;  %v7792_v33 = vld [vmem:[%s11086_s9 + $0x28] sm:$0xf]  ;;  %v6978_v54 = vsel %vm530_vm0, %v7798_v12, 0 }
 0x732   : > { %6150 = vst.msk [vmem:[#allocation2 + $0x9] sm:$0xff] %vm523_vm3, %v6139_v47  ;;  %v6140_v51 = vmul.f32 %v6136_v10, %v10418_v6  ;;  %v7768_v6 = vld [vmem:[%s11086_s9 + $0x8] sm:$0xf]  ;;  %v6796_v53 = vsel %vm530_vm0, %v7792_v33, 0  ;;  %v7804_v32 = vld [vmem:[%s11086_s9 + $0x38] sm:$0xf] }
 0x733   : > { %6153 = vst.msk [vmem:[#allocation2 + $0x21] sm:$0xff] %vm523_vm3, %v6142_v36  ;;  %v6300_v55 = vsel %vm530_vm0, %v7768_v6, 0  ;;  %v7032_v18 = vsel %vm530_vm0, %v7804_v32, 0  ;;  %v7807_v47 = vld [vmem:[%s11086_s9 + $0x3c] sm:$0xf]  ;;  %v7090_v36 = vld [vmem:[#allocation2 + $0x2a] sm:$0xff] }
 0x734   : > { %6151 = vst.msk [vmem:[#allocation2 + $0x11] sm:$0xff] %vm523_vm3, %v6140_v51  ;;  %v7102_v10 = vsel %vm530_vm0, %v7807_v47, 0 }
 0x738   : > { %v6164_v1 = vld [vmem:[#allocation2 + $0x19] sm:$0xff] }
 0x739   : > { %v6162_v16 = vld [vmem:[#allocation2 + $0x9] sm:$0xff] }
 0x73a   : > { %v6165_v28 = vpack.c.bf16 %v6162_v16, %v6161_v30  ;;  %v6155_v7 = vld [vmem:[#allocation2 + $0x8] sm:$0xff]  ;;  %v10828_v62 = vld [vmem:[#allocation2 + $0x20] sm:$0xff] }
 0x73b   : > { %v6163_v44 = vld [vmem:[#allocation2 + $0x11] sm:$0xff]  ;;  %v6158_v63 = vpack.c.bf16 %v6155_v7, %v6154_v61  ;;  %v6358_v3 = vld [vmem:[#allocation2 + $0x21] sm:$0xff] }
 0x73c   : > { %8620 = vmatprep.mubr.msk.bf16.mxu1 %vm523_vm3, %v6165_v28  ;;  %v10808_v20 = vpack.c.bf16 %v6164_v1, %v6163_v44  ;;  %v6156_v34 = vld [vmem:[#allocation2 + $0x10] sm:$0xff]  ;;  %v6157_v23 = vld [vmem:[#allocation2 + $0x18] sm:$0xff]  ;;  %v10832_v60 = vpack.c.bf16 %v6163_v44, %v6162_v16  ;;  %v10841_v25 = vpack.c.bf16 %v6358_v3, %v6164_v1  ;;  %v6427_v26 = vld [vmem:[#allocation2 + $0x2] sm:$0xff]  ;;  %v6856_v11 = vpack.c.bf16 %v6854_v46, %v6358_v3 }
 0x73d   : > { %v10818_v8 = vpack.c.bf16 %v6157_v23, %v6156_v34  ;;  %v6289_v57 = vpack.c.bf16 %v6156_v34, %v6155_v7  ;;  %v6290_v58 = vpack.c.bf16 %v10828_v62, %v6157_v23  ;;  %v6428_v43 = vld [vmem:[#allocation2 + $0xa] sm:$0xff]  ;;  %v6429_v40 = vld [vmem:[#allocation2 + $0x12] sm:$0xff]  ;;  %v6430_v13 = vld [vmem:[#allocation2 + $0x1a] sm:$0xff] }
 0x73e   : > { %8621 = vmatmul.mubr.msk.bf16.vlgmr.msra.gmra.mrb[8].mxu1 %vm523_vm3, %v10808_v20  ;;  %v6431_v24 = vpack.c.bf16 %v6428_v43, %v6427_v26  ;;  %v10851_v35 = vpack.c.bf16 %v6430_v13, %v6429_v40  ;;  %v6607_v38 = vpack.c.bf16 %v6429_v40, %v6428_v43  ;;  %v6606_v29 = vld [vmem:[#allocation2 + $0x22] sm:$0xff] }
 0x73f   : > { %8625 = vmatpush3.bf16.msra.mxu1 %v6234_v48  ;;  %8626 = vmatprep.mubr.msk.bf16.mxu1 %vm523_vm3, %v6158_v63  ;;  %v6608_v2 = vpack.c.bf16 %v6606_v29, %v6430_v13  ;;  %v6784_v59 = vld [vmem:[#allocation2 + $0x28] sm:$0xff]  ;;  %v7092_v51 = vpack.c.bf16 %v7090_v36, %v6606_v29 }
 0x740   : > { %9106 = vmatprep.subr.msk.bf16.mxu1 %vm530_vm0, %v7768_v6  ;;  %v6786_v5 = vpack.c.bf16 %v6784_v59, %v10828_v62 }
 0x74a   : > { %8627 = vmatmul.mubr.msk.bf16.vlgmr.msra.gmra.mrb[8].mxu1 %vm523_vm3, %v10818_v8 }
 0x74b   : > { %8631 = vmatpush3.bf16.msra.mxu1 %v6300_v55  ;;  %8632 = vmatprep.mubr.msk.bf16.mxu1 %vm523_vm3, %v6289_v57 }
 0x74c   : > { %9107 = vmatprep.subr.msk.bf16.mxu1 %vm530_vm0, %v7771_v19 }
 0x756   : > { %8633 = vmatmul.mubr.msk.bf16.vlgmr.msra.gmra.mrb[8].mxu1 %vm523_vm3, %v6290_v58 }
 0x757   : > { %8637 = vmatpush3.bf16.msra.mxu1 %v6370_v42  ;;  %8638 = vmatprep.mubr.msk.bf16.mxu1 %vm523_vm3, %v10832_v60 }
 0x758   : > { %9108 = vmatprep.subr.msk.bf16.mxu1 %vm530_vm0, %v7775_v21 }
 0x762   : > { %8639 = vmatmul.mubr.msk.bf16.vlgmr.msra.gmra.mrb[8].mxu1 %vm523_vm3, %v10841_v25 }
 0x763   : > { %8643 = vmatpush3.bf16.msra.mxu1 %v6442_v37  ;;  %8644 = vmatprep.mubr.msk.bf16.mxu1 %vm523_vm3, %v6431_v24 }
 0x764   : > { %9109 = vmatprep.subr.msk.bf16.mxu1 %vm530_vm0, %v7774_v9 }
 0x76a   : > { %8645 = vmatmul.mubr.msk.bf16.vlgmr.msra.gmra.mrb[12].mxu1 %vm523_vm3, %v10851_v35 }
 0x76b   : > { %8649 = vmatpush3.bf16.msra.mxu1 %v6494_v39  ;;  %8650 = vmatprep.mubr.msk.bf16.mxu1 %vm523_vm3, %v6165_v28 }
 0x76c   : > { %9110 = vmatprep.subr.msk.bf16.mxu1 %vm530_vm0, %v7780_v27 }
 0x776   : > { %8651 = vmatmul.mubr.msk.bf16.vlgmr.msra.gmra.mrb[12].mxu1 %vm523_vm3, %v10808_v20 }
 0x777   : > { %8655 = vmatpush3.bf16.msra.mxu1 %v6548_v56  ;;  %8656 = vmatprep.mubr.msk.bf16.mxu1 %vm523_vm3, %v10832_v60 }
 0x778   : > { %9111 = vmatprep.subr.msk.bf16.mxu1 %vm530_vm0, %v7783_v17 }
 0x782   : > { %8657 = vmatmul.mubr.msk.bf16.vlgmr.msra.gmra.mrb[12].mxu1 %vm523_vm3, %v10841_v25 }
 0x783   : > { %8661 = vmatpush3.bf16.msra.mxu1 %v6618_v31  ;;  %8662 = vmatprep.mubr.msk.bf16.mxu1 %vm523_vm3, %v6607_v38 }
 0x784   : > { %9112 = vmatprep.subr.msk.bf16.mxu1 %vm530_vm0, %v7787_v50 }
 0x78e   : > { %8663 = vmatmul.mubr.msk.bf16.vlgmr.msra.gmra.mrb[12].mxu1 %vm523_vm3, %v6608_v2 }
 0x78f   : > { %8667 = vmatpush3.bf16.msra.mxu1 %v6678_v0  ;;  %8668 = vmatprep.mubr.msk.bf16.mxu1 %vm523_vm3, %v10832_v60 }
 0x790   : > { %9113 = vmatprep.subr.msk.bf16.mxu1 %vm530_vm0, %v7786_v45 }
 0x796   : > { %8669 = vmatmul.mubr.msk.bf16.vlgmr.msra.gmra.mrb[16].mxu1 %vm523_vm3, %v10841_v25 }
 0x797   : > { %8673 = vmatpush3.bf16.msra.mxu1 %v6730_v22  ;;  %8674 = vmatprep.mubr.msk.bf16.mxu1 %vm523_vm3, %v6289_v57 }
 0x798   : > { %9114 = vmatprep.subr.msk.bf16.mxu1 %vm530_vm0, %v7792_v33 }
 0x7a2   : > { %8675 = vmatmul.mubr.msk.bf16.vlgmr.msra.gmra.mrb[16].mxu1 %vm523_vm3, %v6290_v58 }
 0x7a3   : > { %8679 = vmatpush3.bf16.msra.mxu1 %v6796_v53  ;;  %8680 = vmatprep.mubr.msk.bf16.mxu1 %vm523_vm3, %v10818_v8 }
 0x7a4   : > { %9115 = vmatprep.subr.msk.bf16.mxu1 %vm530_vm0, %v7795_v41 }
 0x7ae   : > { %8681 = vmatmul.mubr.msk.bf16.vlgmr.msra.gmra.mrb[16].mxu1 %vm523_vm3, %v6786_v5 }
 0x7af   : > { %8685 = vmatpush3.bf16.msra.mxu1 %v6866_v49  ;;  %8686 = vmatprep.mubr.msk.bf16.mxu1 %vm523_vm3, %v10808_v20 }
 0x7b0   : > { %9116 = vmatprep.subr.msk.bf16.mxu1 %vm530_vm0, %v7799_v52 }
 0x7ba   : > { %8687 = vmatmul.mubr.msk.bf16.vlgmr.msra.gmra.mrb[16].mxu1 %vm523_vm3, %v6856_v11 }
 0x7bb   : > { %8691 = vmatpush3.bf16.msra.mxu1 %v6926_v14  ;;  %8692 = vmatprep.mubr.msk.bf16.mxu1 %vm523_vm3, %v6607_v38 }
 0x7bc   : > { %9117 = vmatprep.subr.msk.bf16.mxu1 %vm530_vm0, %v7798_v12 }
 0x7c2   : > { %8693 = vmatmul.mubr.msk.bf16.vlgmr.msra.gmra.mrb[20].mxu1 %vm523_vm3, %v6608_v2 }
 0x7c3   : > { %8697 = vmatpush3.bf16.msra.mxu1 %v6978_v54  ;;  %8698 = vmatprep.mubr.msk.bf16.mxu1 %vm523_vm3, %v10832_v60 }
 0x7c4   : > { %9118 = vmatprep.subr.msk.bf16.mxu1 %vm530_vm0, %v7804_v32 }
 0x7ce   : > { %8699 = vmatmul.mubr.msk.bf16.vlgmr.msra.gmra.mrb[20].mxu1 %vm523_vm3, %v10841_v25 }
 0x7cf   : > { %8703 = vmatpush3.bf16.msra.mxu1 %v7032_v18  ;;  %8704 = vmatprep.mubr.msk.bf16.mxu1 %vm523_vm3, %v10808_v20 }
 0x7d0   : > { %9119 = vmatprep.subr.msk.bf16.mxu1 %vm530_vm0, %v7807_v47 }
 0x7da   : > { %8705 = vmatmul.mubr.msk.bf16.vlgmr.msra.gmra.mrb[20].mxu1 %vm523_vm3, %v6856_v11 }
 0x7db   : > { %8709 = vmatpush3.bf16.msra.mxu1 %v7102_v10  ;;  %8710 = vmatprep.mubr.msk.bf16.mxu1 %vm523_vm3, %v10851_v35 }
 0x7e6   : > { %8711 = vmatmul.mubr.msk.bf16.vlgmr.msra.gmra.mrb[20].mxu1 %vm523_vm3, %v7092_v51 }
 0x835   : > { %v10940_v30 = vpop.f32.mrb[8].mxu1 }
 0x836   : > { %v10942_v16 = vpop.f32.mrb[9].mxu1 }
 0x837   : > { %v10944_v28 = vpop.f32.mrb[10].mxu1 }
 0x838   : > { %v10946_v61 = vpop.f32.mrb[11].mxu1 }
 0x861   : > { %v8664_v7 = vpop.f32.mrb[12].mxu1 }
 0x862   : > { %7165 = vrot.lane.b32.xlu1 %v8664_v7, %s9365_s23  ;;  %v6654_v44 = vpop.f32.mrb[13].mxu1 }
 0x863   : > { %v8665_v1 = vpop.f32.mrb[14].mxu1 }
 0x864   : > { %7167 = vrot.lane.b32.xlu0 %v8665_v1, %s9365_s23  ;;  %v6657_v20 = vpop.f32.mrb[15].mxu1 }
 0x866   : > { %7161 = vrot.lane.b32.xlu1 %v6654_v44, %s9365_s23 }
 0x868   : > { %7163 = vrot.lane.b32.xlu0 %v6657_v20, %s9365_s23 }
 0x88d   : > { %v8688_v48 = vpop.f32.mrb[16].mxu1 }
 0x88e   : > { %7181 = vrot.lane.b32.xlu1 %v8688_v48, %s9366_s20  ;;  %v6902_v63 = vpop.f32.mrb[17].mxu1 }
 0x88f   : > { %v8689_v6 = vpop.f32.mrb[18].mxu1 }
 0x890   : > { %7183 = vrot.lane.b32.xlu0 %v8689_v6, %s9366_s20  ;;  %v6905_v34 = vpop.f32.mrb[19].mxu1 }
 0x892   : > { %7177 = vrot.lane.b32.xlu1 %v6902_v63, %s9366_s20 }
 0x894   : > { %7179 = vrot.lane.b32.xlu0 %v6905_v34, %s9366_s20  ;;  %s9262_s20 = scalar_lea.vmem %s10956_s30, 1152 }
 0x895   : > { %p9263_p11 = scmp.ne.s32.totalorder %s10956_s30, %s9262_s20 }
 0x897   : > { %p9264_p12 = pnand %p9263_p11, %p9479_p5 }
 0x899   : > { %p9265_p13 = pneg %p9264_p12 }
 0x8b9   : > { %v8712_v23 = vpop.f32.mrb[20].mxu1 }
 0x8ba   : > { %7197 = vrot.lane.b32.xlu1 %v8712_v23, %s11097_s21  ;;  %v7138_v8 = vpop.f32.mrb[21].mxu1  ;;  %s9266_s21 = sshll.u32 %s9368_s27, 4  ;;  %s9267_s21 = int_to_ptr.vmem [resolvable:$false] %s9266_s21 }
 0x8bb   : > { %v8713_v55 = vpop.f32.mrb[22].mxu1  ;;  %s9268_s2 = scalar_lea.vmem %s9267_s21, 2304  ;;  %p9269_p0 = scmp.lt.s32.totalorder %s10956_s30, %s9267_s21 }
 0x8bc   : > { %p9270_p1 = scmp.lt.s32.totalorder %s9268_s2, %s9262_s20 }
 0x8be   : > { %p9271_p2 = por %p9270_p1, %p9269_p0 }
 0x8c0   : > { %p9272_p3 = pnand %p9271_p2, %p9265_p13 }
 0x8c2   : > { %9275 = shalt.err (!%p9272_p3)
}
 0x8c3   : > { %s9276_s15 = scalar_lea.hbm %s10954_s0, 1152  ;;  %s9280_s27 = scalar_lea.hbm %s11088_s11, 3456 }
 0x8c4   : > { %p9277_p4 = scmp.ne.s32.totalorder %s10954_s0, %s9276_s15  ;;  %p9281_p9 = scmp.lt.u32.totalorder %s10954_s0, %s11088_s11 }
 0x8c5   : > { %p9282_p10 = scmp.lt.u32.totalorder %s9280_s27, %s9276_s15  ;;  %p9284_p12 = scmp.lt.u32.totalorder %s9276_s15, %s10954_s0 }
 0x8c6   : > { %p9278_p7 = pnand %p9277_p4, %p9479_p5 }
 0x8c7   : > { %p9283_p11 = por %p9282_p10, %p9281_p9 }
 0x8c8   : > { %p9279_p8 = pneg %p9278_p7 }
 0x8c9   : > { %p9285_p13 = por %p9284_p12, %p9283_p11 }
 0x8cb   : > { %p9286_p0 = pnand %p9285_p13, %p9279_p8 }
 0x8cd   : > { %9289 = shalt.err (!%p9286_p0)
}
 0x8ce   : > { %s9369_s2 = smov 128   ;;  %s11111_s20 = smov 8   ;;  %v7141_v57 = vpop.f32.mrb[23].mxu1  ;;  %vm7205_vm5 = vcmask 130048   ;;  %vm7210_vm6 = vcmask 261120   ;;  %vm7215_vm7 = vcmask 392192  }
 0x8cf   : > { %s11112_s3 = scalar_lea.sflag [#allocation4], %s10415_s17  ;;  %s11113_s22 = smov 48   ;;  %vm7235_vm8 = vcmask 523264  }
 0x8d0   : > { %9123 = dma.vmem_to_hbm [thread:$0]  (%p9479_p5), %s10956_s30, 1152, %s10954_s0, %s11112_s3, %s9369_s2, %s9369_s2, %s11111_s20  }
 0x8d1   : > { %7199 = vrot.lane.b32.xlu0 %v8713_v55, %s11113_s22  ;;  %7193 = vrot.lane.b32.xlu1 %v7138_v8, %s11113_s22  ;;  %s11114_s1 = smov 120   ;;  %s11115_s30 = sshll.u32 %s9499_s24, 5 }
 0x8d2   : > { %s501_s27 = scalar_lea.vmem %s11090_s13, %s11115_s30  ;;  %s7280_s21 = sshll.u32 %s10524_s16, 4  ;;  %s11019_s21 = int_to_ptr.vmem [resolvable:$true] %s7280_s21 }
 0x8d3   : > { %s7819_s24 = sshll.u32 %s9462_s29, 9  ;;  %s7246_s29 = scalar_lea.sflag [#allocation6], %s10415_s17 }
 0x8d4   : > { %v7166_v19 = vpop.permute.xlu1 %7165  ;;  %s11027_s0 = scalar_lea.hbm %s11089_s12, %s7819_s24  ;;  %s9290_s3 = scalar_lea.vmem %s11019_s21, 512 }
 0x8d5   : > { %7195 = vrot.lane.b32.xlu0 %v7141_v57, %s11113_s22  ;;  %4318 = vrot.lane.b32.xlu1 %v10392_v4, %s11114_s1  ;;  %v7208_v25 = vsel %vm7205_vm5, %v10940_v30, %v7166_v19  ;;  %v7810_v4 = vld [vmem:[%s11087_s10] ss:$0 sm:$0xff]  ;;  %p9291_p1 = scmp.ne.s32.totalorder %s11019_s21, %s9290_s3  ;;  %s9370_s30 = smov [#allocation5]  }
 0x8d6   : > { %v7168_v62 = vpop.permute.xlu0 %7167  ;;  %s9294_s15 = sshll.u32 %s9370_s30, 4  ;;  %s9295_s15 = int_to_ptr.vmem [resolvable:$false] %s9294_s15 }
 0x8d7   : > { %v7209_v26 = vsel %vm7205_vm5, %v10944_v28, %v7168_v62  ;;  %p9292_p2 = pnand %p9291_p1, %p9479_p5  ;;  %s9296_s23 = scalar_lea.vmem %s9295_s15, 1024 }
 0x8d8   : > { %v7162_v58 = vpop.permute.xlu1 %7161  ;;  %p9297_p4 = scmp.lt.s32.totalorder %s11019_s21, %s9295_s15  ;;  %p9298_p7 = scmp.lt.s32.totalorder %s9296_s23, %s9290_s3 }
 0x8d9   : > { %4320 = vrot.lane.b32.xlu0 %v10462_v15, %s11114_s1  ;;  %v7206_v35 = vsel %vm7205_vm5, %v10942_v16, %v7162_v58  ;;  %p9293_p3 = pneg %p9292_p2 }
 0x8da   : > { %v7164_v42 = vpop.permute.xlu0 %7163  ;;  %p9299_p8 = por %p9298_p7, %p9297_p4 }
 0x8db   : > { %v7207_v38 = vsel %vm7205_vm5, %v10946_v61, %v7164_v42 }
 0x8dc   : > { %p9300_p9 = pnand %p9299_p8, %p9293_p3 }
 0x900   : > { %v7182_v60 = vpop.permute.xlu1 %7181 }
 0x901   : > { %v7213_v15 = vsel %vm7210_vm6, %v7208_v25, %v7182_v60 }
 0x902   : > { %v7184_v21 = vpop.permute.xlu0 %7183 }
 0x903   : > { %v7214_v9 = vsel %vm7210_vm6, %v7209_v26, %v7184_v21 }
 0x904   : > { %v7178_v3 = vpop.permute.xlu1 %7177 }
 0x905   : > { %v7211_v27 = vsel %vm7210_vm6, %v7206_v35, %v7178_v3 }
 0x906   : > { %v7180_v43 = vpop.permute.xlu0 %7179 }
 0x907   : > { %v7212_v29 = vsel %vm7210_vm6, %v7207_v38, %v7180_v43 }
 0x92c   : > { %v7198_v37 = vpop.permute.xlu1 %7197 }
 0x92d   : > { %v7218_v24 = vsel %vm7215_vm7, %v7213_v15, %v7198_v37 }
 0x92e   : > { %v7229_v40 = vadd.f32 %v7810_v4, %v7218_v24 }
 0x930   : > { %v7233_v56 = vmax.f32 %v7229_v40, 0.0 }
 0x932   : > { %7238 = vst.msk [vmem:[%s501_s27 + $0x10] sm:$0xff] %vm7235_vm8, %v7233_v56 }
 0x943   : > { %v7200_v13 = vpop.permute.xlu0 %7199  ;;  %v7194_v31 = vpop.permute.xlu1 %7193 }
 0x944   : > { %v7219_v39 = vsel %vm7215_vm7, %v7214_v9, %v7200_v13  ;;  %v7216_v50 = vsel %vm7215_vm7, %v7211_v27, %v7194_v31 }
 0x945   : > { %v7230_v17 = vadd.f32 %v7810_v4, %v7219_v39  ;;  %v7227_v0 = vadd.f32 %v7810_v4, %v7216_v50 }
 0x947   : > { %v7234_v2 = vmax.f32 %v7230_v17, 0.0  ;;  %v7196_v45 = vpop.permute.xlu0 %7195  ;;  %v7231_v33 = vmax.f32 %v7227_v0, 0.0  ;;  %v4319_v41 = vpop.permute.xlu1 %4318 }
 0x948   : > { %v7217_v22 = vsel %vm7215_vm7, %v7212_v29, %v7196_v45  ;;  %4328 = vst.msk [vmem:[%s10524_s16 + $0x10] sm:$0xff] %vm523_vm3, %v4319_v41 }
 0x949   : > { %7239 = vst.msk [vmem:[%s501_s27 + $0x18] sm:$0xff] %vm7235_vm8, %v7234_v2  ;;  %v7228_v53 = vadd.f32 %v7810_v4, %v7217_v22  ;;  %7236 = vst.msk [vmem:[%s501_s27] sm:$0xff] %vm7235_vm8, %v7231_v33 }
 0x94b   : > { %v7232_v59 = vmax.f32 %v7228_v53, 0.0  ;;  %v4321_v5 = vpop.permute.xlu0 %4320 }
 0x94c   : > { %4329 = vst.msk [vmem:[%s10524_s16 + $0x18] sm:$0xff] %vm523_vm3, %v4321_v5 }
 0x94d   : > { %7237 = vst.msk [vmem:[%s501_s27 + $0x8] sm:$0xff] %vm7235_vm8, %v7232_v59 }
 0x94e   : > { %9303 = shalt.err (!%p9300_p9)
}
 0x94f   : > { %s9304_s16 = scalar_lea.hbm %s11027_s0, 512  ;;  %s9308_s22 = scalar_lea.hbm %s11089_s12, 1536 }
 0x950   : > { %p9305_p10 = scmp.ne.s32.totalorder %s11027_s0, %s9304_s16  ;;  %p9309_p13 = scmp.lt.u32.totalorder %s11027_s0, %s11089_s12 }
 0x951   : > { %p9310_p0 = scmp.lt.u32.totalorder %s9308_s22, %s9304_s16  ;;  %p9312_p2 = scmp.lt.u32.totalorder %s9304_s16, %s11027_s0 }
 0x952   : > { %p9306_p11 = pnand %p9305_p10, %p9479_p5 }
 0x953   : > { %p9311_p1 = por %p9310_p0, %p9309_p13 }
 0x954   : > { %p9307_p12 = pneg %p9306_p11 }
 0x955   : > { %p9313_p3 = por %p9312_p2, %p9311_p1 }
 0x957   : > { %p9314_p4 = pnand %p9313_p3, %p9307_p12 }
 0x959   : > { %9317 = shalt.err (!%p9314_p4)
}
 0x95a   : > { %9124 = dma.vmem_to_hbm [thread:$0]  (%p9479_p5), %s11019_s21, 512, %s11027_s0, %s7246_s29, %s9369_s2, %s9369_s2, %s11111_s20  }
 0x95b PF: > { %p9134_p7 = scmp.ge.s32.totalorder %s9356_s28, 2  ;;  %s7298_s3 = sand.u32 1, %s9344_s25  }
 0x95c   : > { %s7299_s15 = scalar_lea.sflag [#allocation4], %s7298_s3 }
 0x95d   : > { %p9128_p8 = pnand %p9134_p7, %p9483_p6 }
 0x95f   : > { %9335 = dma.done.wait (!%p9128_p8), %s7299_s15, 1152  }
 0x960   : > { %9337 = vsyncadd (!%p9128_p8), %s7299_s15, 4294966144  ;;  %s7308_s18 = scalar_lea.sflag [#allocation6], %s7298_s3 }
 0x961   : > { %9339 = dma.done.wait (!%p9128_p8), %s7308_s18, 512  }
 0x962   : > { %9341 = vsyncadd (!%p9128_p8), %s7308_s18, 4294966784  ;;  %s11116_s17 = sld [smem:[#allocation9_spill]]  ;;  %s11117_s27 = sld [smem:[#allocation10_spill]] }
 0x963   : > { %p27_p5 = scmp.ge.s32.totalorder %s9466_s14, 5   ;;  %s11118_s25 = smov %s9348_s26 }
 0x964   : > { %s11120_s28 = smov %s9466_s14 }
 0x965   :  { %29 = sbr.rel (!%p27_p5) target bundleno = 10 (0xa), region = 221 }
 0x968   : > { %s11119_s26 = smov %s11116_s17 }
 0x96c   :  { %7321 = vsyncpa [#allocation4], 1 }
 0x96d   :  { %7323 = vsyncpa [#allocation4 + $0x1], 1 }
 0x96e   :  { %7324 = vsyncpa [#allocation6], 1 }
 0x96f   :  { %7326 = vsyncpa [#allocation6 + $0x1], 1 }

// kernel: image_renderer_forward.8
= control target key start
LH: loop header
LB: loop body
LE: loop exit
PB: predicated region body
PF: predicated region fallthrough
CT: control target
= control target key end

     0   :  { %s9273_s25 = smov 0   ;;  %s10762_s0 = inlined_call_operand.vmem [shape: f32[3,72,19], index: 0, kind: input, shape index: {}]   ;;  %s10763_s1 = inlined_call_operand.vmem [shape: f32[3,72,8], index: 1, kind: input, shape index: {}]   ;;  %s10764_s2 = inlined_call_operand.vmem [shape: f32[3,32,8], index: 2, kind: input, shape index: {}]   ;;  %s10765_s3 = inlined_call_operand.vmem [shape: f32[32,1], index: 3, kind: input, shape index: {}]   ;;  %s10766_s4 = inlined_call_operand.vmem [shape: bf16[25,19,32], index: 4, kind: input, shape index: {}]   ;;  %s10767_s5 = inlined_call_operand.vmem [shape: bf16[25,8,32], index: 5, kind: input, shape index: {}]   ;;  %s10768_s6 = inlined_call_operand.vmem [shape: f32[1,32], index: 6, kind: input, shape index: {}]   ;;  %s10769_s7 = inlined_call_operand.vmem [shape: bf16[25,8,8], index: 7, kind: input, shape index: {}]   ;;  %s10770_s8 = inlined_call_operand.vmem [shape: f32[1,8], index: 8, kind: input, shape index: {}]   ;;  %s10771_s9 = inlined_call_operand.vmem [shape: bf16[16,8,16], index: 9, kind: input, shape index: {}]   ;;  %s10772_s10 = inlined_call_operand.vmem [shape: f32[1,64], index: 10, kind: input, shape index: {}]   ;;  %s10773_s11 = inlined_call_operand.vmem [shape: f32[3,72,8], index: 11, kind: output, shape index: {0}]   ;;  %s10774_s12 = inlined_call_operand.vmem [shape: f32[3,32,8], index: 12, kind: output, shape index: {1}]   ;;  %s10775_s13 = inlined_call_operand.vmem [shape: f32[3,32,64], index: 13, kind: output, shape index: {2}]  }
   0x1 LB: > { %s7389_s26 = sadd.s32 4294967295, %s9191_s25   ;;  %p7393_p0 = scmp.ge.s32.totalorder %s9191_s25, 1  ;;  %s9191_s25 = sphi %s9273_s25, %s24_s25  }
   0x2   : > { %p412_p1 = scmp.lt.s32.totalorder %s9191_s25, 4 }
   0x4   : > { %p413_p2 = pnand %p7393_p0, %p412_p1 }
   0x5   : > { %vm534_vm0 = vcmask (!%p413_p2), 1043456   ;;  %v7422_v0 = vld [vmem:[%s10767_s5 + $0x8] sm:$0xf] (!%p413_p2)  ;;  %p476_p3 = scmp.lt.s32.totalorder (!%p413_p2), %s7389_s26, 2  ;;  %v9103_v1 = vld [vmem:[%s10766_s4 + $0x18] sm:$0xff] (!%p413_p2)   ;;  %vm603_vm1 = vcmask (!%p413_p2), 1040384  }
   0x6   : > { %416 = sbr.rel (%p413_p2) target bundleno = 2347 (0x92b), region = 64  ;;  %9018 = vmatprep.subr.msk.bf16.mxu0 (!%p413_p2), %vm534_vm0, %v7422_v0  ;;  %v831_v2 = vsel (!%p413_p2), %vm534_vm0, %v7422_v0, 0  ;;  %vm604_vm2 = vcmask (!%p413_p2), 1041408   ;;  %v9193_v3 = vmov (!%p413_p2), 65535   ;;  %vm527_vm3 = vcmask (!%p413_p2), 64512   ;;  %v9105_v29 = vld [vmem:[%s10766_s4 + $0x24] sm:$0xff] (!%p413_p2)  }
   0x7   : > { %8109 = vmatpush3.bf16.msra.mxu0 (!%p413_p2), %v831_v2  ;;  %v605_v4 = vsel (!%p413_p2), %vm603_vm1, 4294967295, %v9193_v3  ;;  %v9104_v5 = vld [vmem:[%s10766_s4 + $0x20] ss:$0 sps:$4 sm:$0x33] (!%p413_p2)   ;;  %vm596_vm4 = vcmask (!%p413_p2), 154624   ;;  %v9107_v47 = vld [vmem:[%s10766_s4 + $0x30] sm:$0xff] (!%p413_p2)  }
   0x8   : > { %8114 = vmatprep.subr.bf16.mxu0 (!%p413_p2), %v9103_v1  ;;  %v9303_v6 = vsel (!%p413_p2), %vm604_vm2, %v605_v4, 0  ;;  %v7432_v20 = vld [vmem:[%s10767_s5 + $0xc] sm:$0xf] (!%p413_p2)  ;;  %v7442_v39 = vld [vmem:[%s10767_s5 + $0x10] sm:$0xf] (!%p413_p2)  ;;  %v9109_v3 = vld [vmem:[%s10766_s4 + $0x3c] sm:$0xff] (!%p413_p2)  }
   0x9   : > { %v898_v16 = vand.u32 (!%p413_p2), %v9104_v5, %v9303_v6  ;;  %v978_v28 = vsel (!%p413_p2), %vm534_vm0, %v7432_v20, 0  ;;  %v9106_v31 = vld [vmem:[%s10766_s4 + $0x2c] ss:$0 sps:$4 sm:$0x33] (!%p413_p2)   ;;  %v1125_v44 = vsel (!%p413_p2), %vm534_vm0, %v7442_v39, 0  ;;  %s9194_s29 = smov (!%p413_p2), 104  }
   0xa   : > { %v1045_v38 = vand.u32 (!%p413_p2), %v9106_v31, %v9303_v6  ;;  %v9108_v50 = vld [vmem:[%s10766_s4 + $0x38] ss:$0 sps:$4 sm:$0x33] (!%p413_p2)   ;;  %v7452_v58 = vld [vmem:[%s10767_s5 + $0x14] sm:$0xf] (!%p413_p2)  ;;  %s9198_s27 = smov (!%p413_p2), 112  }
   0xb   : > { %v1192_v57 = vand.u32 (!%p413_p2), %v9108_v50, %v9303_v6  ;;  %v1272_v2 = vsel (!%p413_p2), %vm534_vm0, %v7452_v58, 0  ;;  %v9110_v5 = vld [vmem:[%s10766_s4 + $0x44] ss:$0 sps:$4 sm:$0x33] (!%p413_p2)   ;;  %s9199_s24 = smov (!%p413_p2), 16   ;;  %vm7209_vm5 = vcmask (!%p413_p2), 130048  }
   0xc   : > { %vm7214_vm6 = vcmask (!%p413_p2), 261120   ;;  %vm7219_vm7 = vcmask (!%p413_p2), 392192   ;;  %vm7239_vm8 = vcmask (!%p413_p2), 523264  }
   0xd   : > { %s10777_s26 = smov (!%p476_p3, %s7389_s26), 2 }
   0xe   : > { %s9292_s14 = smul.u32 72, %s10777_s26 }
  0x10   : > { %s9301_s19 = scalar_lea.vmem %s10763_s1, %s9292_s14  ;;  %s9316_s22 = scalar_lea.vmem %s10762_s0, %s9292_s14 }
  0x11   : > { %v812_v7 = vld [vmem:[%s9301_s19 + $0x2] sm:$0xff]  ;;  %v9307_v8 = vld [vmem:[%s9301_s19 + $0xa] sm:$0xff]  ;;  %v9310_v9 = vld [vmem:[%s9301_s19 + $0x12] sm:$0xff]  ;;  %s10203_s23 = scalar_lea.vmem %s10773_s11, %s9292_s14 }
  0x12   : > { %v816_v10 = vpack.c.bf16 %v9307_v8, %v812_v7  ;;  %v9320_v11 = vld [vmem:[%s9301_s19 + $0x1a] sm:$0xff]  ;;  %v806_v12 = vld [vmem:[%s9316_s22 + $0x2] sm:$0xff]  ;;  %v9324_v13 = vld [vmem:[%s9316_s22 + $0xa] sm:$0xff]  ;;  %v1551_v14 = vpack.c.bf16 %v9310_v9, %v9307_v8 }
  0x13   : > { %v9330_v15 = vpack.c.bf16 %v9320_v11, %v9310_v9  ;;  %v810_v17 = vpack.c.bf16 %v9324_v13, %v806_v12  ;;  %v9335_v18 = vld [vmem:[%s9316_s22 + $0x12] sm:$0xff]  ;;  %v9353_v23 = vld [vmem:[%s9316_s22 + $0x1a] sm:$0xff]  ;;  %v959_v25 = vld [vmem:[%s9301_s19 + $0x3] sm:$0xff] }
  0x14   : > { %8110 = vmatprep.mubr.msk.bf16.mxu0 %vm527_vm3, %v816_v10  ;;  %v1545_v19 = vpack.c.bf16 %v9335_v18, %v9324_v13  ;;  %v9347_v21 = vld [vmem:[%s9301_s19 + $0xb] sm:$0xff]  ;;  %v9350_v22 = vld [vmem:[%s9301_s19 + $0x13] sm:$0xff]  ;;  %v9361_v26 = vpack.c.bf16 %v9353_v23, %v9335_v18  ;;  %v9372_v30 = vld [vmem:[%s9301_s19 + $0x1b] sm:$0xff] }
  0x15   : > { %8111 = vmatmul.mubr.msk.bf16.vlgmr.msra.gmra.mrb[0].mxu0 %vm527_vm3, %v9330_v15  ;;  %v1698_v24 = vpack.c.bf16 %v9350_v22, %v9347_v21  ;;  %v963_v27 = vpack.c.bf16 %v9347_v21, %v959_v25  ;;  %v953_v32 = vld [vmem:[%s9316_s22 + $0x3] sm:$0xff]  ;;  %v9379_v33 = vld [vmem:[%s9316_s22 + $0xb] sm:$0xff]  ;;  %v9382_v34 = vld [vmem:[%s9316_s22 + $0x13] sm:$0xff]  ;;  %v9386_v35 = vpack.c.bf16 %v9372_v30, %v9350_v22  ;;  %v1339_v25 = vand.u32 %v9110_v5, %v9303_v6 }
  0x16   : > { %8115 = vmatpush3.bf16.msra.mxu0 %v9103_v1  ;;  %8118 = vmatprep.mubr.msk.bf16.mxu0 %vm596_vm4, %v810_v17  ;;  %v957_v36 = vpack.c.bf16 %v9379_v33, %v953_v32  ;;  %v1692_v37 = vpack.c.bf16 %v9382_v34, %v9379_v33  ;;  %v9399_v40 = vld [vmem:[%s9301_s19 + $0xc] sm:$0xff]  ;;  %v9402_v41 = vld [vmem:[%s9301_s19 + $0x14] sm:$0xff]  ;;  %v1106_v45 = vld [vmem:[%s9301_s19 + $0x4] sm:$0xff] }
  0x17   : > { %8116 = vmatprep.subr.bf16.mxu0 %v898_v16  ;;  %v9405_v42 = vld [vmem:[%s9316_s22 + $0x1b] sm:$0xff]  ;;  %v1845_v43 = vpack.c.bf16 %v9402_v41, %v9399_v40  ;;  %v1110_v48 = vpack.c.bf16 %v9399_v40, %v1106_v45  ;;  %v1100_v51 = vld [vmem:[%s9316_s22 + $0x4] sm:$0xff]  ;;  %v9431_v52 = vld [vmem:[%s9316_s22 + $0xc] sm:$0xff] }
  0x18   : > { %v9414_v46 = vpack.c.bf16 %v9405_v42, %v9382_v34  ;;  %v9424_v49 = vld [vmem:[%s9301_s19 + $0x1c] sm:$0xff]  ;;  %v9438_v54 = vld [vmem:[%s9316_s22 + $0x14] sm:$0xff]  ;;  %v1104_v55 = vpack.c.bf16 %v9431_v52, %v1100_v51  ;;  %v9459_v63 = vld [vmem:[%s9301_s19 + $0x8] sm:$0xff] }
  0x19   : > { %v9435_v53 = vpack.c.bf16 %v9424_v49, %v9402_v41  ;;  %v1839_v56 = vpack.c.bf16 %v9438_v54, %v9431_v52  ;;  %v1254_v59 = vld [vmem:[%s9301_s19 + $0x10] sm:$0xff]  ;;  %v1255_v60 = vld [vmem:[%s9301_s19 + $0x18] sm:$0xff]  ;;  %v9474_v4 = vld [vmem:[%s9301_s19 + $0x20] sm:$0xff] }
  0x1a   : > { %8117 = vmatpush3.bf16.msra.mxu0 %v898_v16  ;;  %v9453_v61 = vld [vmem:[%s9316_s22 + $0x1c] sm:$0xff]  ;;  %v9455_v62 = vpack.c.bf16 %v1255_v60, %v1254_v59  ;;  %v1257_v1 = vpack.c.bf16 %v1254_v59, %v9459_v63  ;;  %v1247_v7 = vld [vmem:[%s9316_s22 + $0x8] sm:$0xff]  ;;  %v9481_v10 = vld [vmem:[%s9316_s22 + $0x10] sm:$0xff]  ;;  %v9484_v12 = vpack.c.bf16 %v9474_v4, %v1255_v60 }
  0x1b   : > { %9019 = vmatprep.subr.msk.bf16.mxu0 %vm534_vm0, %v7432_v20  ;;  %v9463_v0 = vpack.c.bf16 %v9453_v61, %v9438_v54  ;;  %v9487_v16 = vld [vmem:[%s9316_s22 + $0x18] sm:$0xff]  ;;  %v1251_v17 = vpack.c.bf16 %v9481_v10, %v1247_v7  ;;  %v9523_v45 = vld [vmem:[%s9301_s19 + $0x21] sm:$0xff]  ;;  %v9117_v33 = vld [vmem:[%s10766_s4 + $0x6c] sm:$0xff]  }
  0x1c   : > { %v1986_v20 = vpack.c.bf16 %v9487_v16, %v9481_v10  ;;  %v9505_v31 = vld [vmem:[%s9301_s19 + $0x11] sm:$0xff]  ;;  %v9545_v59 = vld [vmem:[%s9316_s22 + $0x19] sm:$0xff]  ;;  %v9548_v60 = vld [vmem:[%s9316_s22 + $0x21] sm:$0xff] }
  0x1d   : > { %v9530_v50 = vld [vmem:[%s9316_s22 + $0x11] sm:$0xff]  ;;  %v9566_v5 = vld [vmem:[%s9301_s19 + $0x22] sm:$0xff]  ;;  %v9114_v7 = vld [vmem:[%s10766_s4 + $0x5c] ss:$0 sps:$4 sm:$0x33]  }
  0x1e   : > { %v7482_v8 = vld [vmem:[%s10767_s5 + $0x20] sm:$0xf]  ;;  %v7492_v21 = vld [vmem:[%s10767_s5 + $0x24] sm:$0xf]  ;;  %v7502_v40 = vld [vmem:[%s10767_s5 + $0x28] sm:$0xf] }
  0x1f   : > { %v9586_v9 = vld [vmem:[%s9316_s22 + $0x22] sm:$0xff]  ;;  %v9119_v52 = vld [vmem:[%s10766_s4 + $0x78] sm:$0xff]  }
  0x20   : > { %v9115_v13 = vld [vmem:[%s10766_s4 + $0x60] sm:$0xff]   ;;  %v9678_v54 = vld [vmem:[%s9301_s19 + $0x28] sm:$0xff] }
  0x21   : > { %8119 = vmatmul.mubr.msk.bf16.vlgmr.msra.gmra.mrb[0].mxu0 %vm596_vm4, %v9361_v26  ;;  %v9604_v18 = vld [vmem:[%s9301_s19 + $0x23] sm:$0xff] }
  0x22   : > { %8123 = vmatpush3.bf16.msra.mxu0 %v978_v28  ;;  %8124 = vmatprep.mubr.msk.bf16.mxu0 %vm527_vm3, %v963_v27  ;;  %v7462_v27 = vld [vmem:[%s10767_s5 + $0x18] sm:$0xf]  ;;  %v9500_v28 = vld [vmem:[%s9316_s22 + $0x20] sm:$0xff] }
  0x23   : > { %8128 = vmatprep.subr.bf16.mxu0 %v9105_v29  ;;  %v9509_v32 = vpack.c.bf16 %v9500_v28, %v9487_v16  ;;  %v9624_v22 = vld [vmem:[%s9316_s22 + $0x23] sm:$0xff] }
  0x24   : > { %v9642_v34 = vld [vmem:[%s9301_s19 + $0x24] sm:$0xff] }
  0x25   : > { %v9662_v41 = vld [vmem:[%s9316_s22 + $0x24] sm:$0xff] }
  0x26   : > { %v9121_v16 = vld [vmem:[%s10766_s4 + $0x84] sm:$0xff]  }
  0x2d   : > { %8125 = vmatmul.mubr.msk.bf16.vlgmr.msra.gmra.mrb[0].mxu0 %vm527_vm3, %v9386_v35 }
  0x2e   : > { %8129 = vmatpush3.bf16.msra.mxu0 %v9105_v29  ;;  %8132 = vmatprep.mubr.msk.bf16.mxu0 %vm596_vm4, %v957_v36  ;;  %v1400_v29 = vld [vmem:[%s9301_s19 + $0x9] sm:$0xff] }
  0x2f   : > { %8130 = vmatprep.subr.bf16.mxu0 %v1045_v38  ;;  %v1404_v36 = vpack.c.bf16 %v9505_v31, %v1400_v29 }
  0x32   : > { %8131 = vmatpush3.bf16.msra.mxu0 %v1045_v38  ;;  %v1419_v38 = vsel %vm534_vm0, %v7462_v27, 0 }
  0x33   : > { %9020 = vmatprep.subr.msk.bf16.mxu0 %vm534_vm0, %v7442_v39  ;;  %v9111_v39 = vld [vmem:[%s10766_s4 + $0x48] sm:$0xff]  }
  0x39   : > { %8133 = vmatmul.mubr.msk.bf16.vlgmr.msra.gmra.mrb[0].mxu0 %vm596_vm4, %v9414_v46 }
  0x3a   : > { %8137 = vmatpush3.bf16.msra.mxu0 %v1125_v44  ;;  %8138 = vmatprep.mubr.msk.bf16.mxu0 %vm527_vm3, %v1110_v48  ;;  %v9520_v44 = vld [vmem:[%s9301_s19 + $0x19] sm:$0xff]  ;;  %v1394_v48 = vld [vmem:[%s9316_s22 + $0x9] sm:$0xff] }
  0x3b   : > { %8142 = vmatprep.subr.bf16.mxu0 %v9107_v47  ;;  %v9534_v51 = vpack.c.bf16 %v9523_v45, %v9520_v44 }
  0x45   : > { %8139 = vmatmul.mubr.msk.bf16.vlgmr.msra.gmra.mrb[0].mxu0 %vm527_vm3, %v9435_v53 }
  0x46   : > { %8143 = vmatpush3.bf16.msra.mxu0 %v9107_v47  ;;  %8146 = vmatprep.mubr.msk.bf16.mxu0 %vm596_vm4, %v1104_v55  ;;  %v9112_v47 = vld [vmem:[%s10766_s4 + $0x50] ss:$0 sps:$4 sm:$0x33]   ;;  %v1398_v55 = vpack.c.bf16 %v9530_v50, %v1394_v48 }
  0x47   : > { %8144 = vmatprep.subr.bf16.mxu0 %v1192_v57 }
  0x4a   : > { %8145 = vmatpush3.bf16.msra.mxu0 %v1192_v57  ;;  %v1486_v57 = vand.u32 %v9112_v47, %v9303_v6  ;;  %v2139_v47 = vpack.c.bf16 %v9520_v44, %v9505_v31  ;;  %v2133_v44 = vpack.c.bf16 %v9545_v59, %v9530_v50 }
  0x4b   : > { %9021 = vmatprep.subr.msk.bf16.mxu0 %vm534_vm0, %v7452_v58  ;;  %v7472_v58 = vld [vmem:[%s10767_s5 + $0x1c] sm:$0xf] }
  0x51   : > { %8147 = vmatmul.mubr.msk.bf16.vlgmr.msra.gmra.mrb[0].mxu0 %vm596_vm4, %v9463_v0 }
  0x52   : > { %8151 = vmatpush3.bf16.msra.mxu0 %v1272_v2  ;;  %8152 = vmatprep.mubr.msk.bf16.mxu0 %vm527_vm3, %v1257_v1  ;;  %v9553_v1 = vpack.c.bf16 %v9548_v60, %v9545_v59  ;;  %v1566_v2 = vsel %vm534_vm0, %v7472_v58, 0  ;;  %v9750_v59 = vld [vmem:[%s9301_s19 + $0x2a] sm:$0xff] }
  0x53   : > { %8156 = vmatprep.subr.bf16.mxu0 %v9109_v3 }
  0x5d   : > { %8153 = vmatmul.mubr.msk.bf16.vlgmr.msra.gmra.mrb[0].mxu0 %vm527_vm3, %v9484_v12 }
  0x5e   : > { %8157 = vmatpush3.bf16.msra.mxu0 %v9109_v3  ;;  %8160 = vmatprep.mubr.msk.bf16.mxu0 %vm596_vm4, %v1251_v17  ;;  %v9113_v3 = vld [vmem:[%s10766_s4 + $0x54] sm:$0xff]   ;;  %v9573_v17 = vpack.c.bf16 %v9566_v5, %v9320_v11  ;;  %v9591_v11 = vpack.c.bf16 %v9586_v9, %v9353_v23  ;;  %v9611_v23 = vpack.c.bf16 %v9604_v18, %v9372_v30  ;;  %v1860_v30 = vsel %vm534_vm0, %v7492_v21, 0 }
  0x5f   : > { %8158 = vmatprep.subr.bf16.mxu0 %v1339_v25 }
  0x62   : > { %8159 = vmatpush3.bf16.msra.mxu0 %v1339_v25  ;;  %v1633_v25 = vand.u32 %v9114_v7, %v9303_v6  ;;  %v9768_v7 = vld [vmem:[%s9316_s22 + $0x2a] sm:$0xff] }
  0x63   : > { %9022 = vmatprep.subr.msk.bf16.mxu0 %vm534_vm0, %v7462_v27 }
  0x69   : > { %8161 = vmatmul.mubr.msk.bf16.vlgmr.msra.gmra.mrb[0].mxu0 %vm596_vm4, %v9509_v32 }
  0x6a   : > { %8165 = vmatpush3.bf16.msra.mxu0 %v1419_v38  ;;  %8166 = vmatprep.mubr.msk.bf16.mxu0 %vm527_vm3, %v1404_v36  ;;  %v7512_v38 = vld [vmem:[%s10767_s5 + $0x2c] sm:$0xf] }
  0x6b   : > { %8170 = vmatprep.subr.bf16.mxu0 %v9111_v39  ;;  %v2154_v10 = vsel %vm534_vm0, %v7512_v38, 0 }
  0x75   : > { %8167 = vmatmul.mubr.msk.bf16.vlgmr.msra.gmra.mrb[0].mxu0 %vm527_vm3, %v9534_v51 }
  0x76   : > { %8171 = vmatpush3.bf16.msra.mxu0 %v9111_v39  ;;  %8174 = vmatprep.mubr.msk.bf16.mxu0 %vm596_vm4, %v1398_v55  ;;  %v7522_v55 = vld [vmem:[%s10767_s5 + $0x30] sm:$0xf] }
  0x77   : > { %8172 = vmatprep.subr.bf16.mxu0 %v1486_v57 }
  0x7a   : > { %8173 = vmatpush3.bf16.msra.mxu0 %v1486_v57  ;;  %v2301_v57 = vsel %vm534_vm0, %v7522_v55, 0 }
  0x7b   : > { %9023 = vmatprep.subr.msk.bf16.mxu0 %vm534_vm0, %v7472_v58  ;;  %v9123_v58 = vld [vmem:[%s10766_s4 + $0x90] sm:$0xff]  }
  0x81   : > { %8175 = vmatmul.mubr.msk.bf16.vlgmr.msra.gmra.mrb[0].mxu0 %vm596_vm4, %v9553_v1 }
  0x82   : > { %8179 = vmatpush3.bf16.msra.mxu0 %v1566_v2  ;;  %8180 = vmatprep.mubr.msk.bf16.mxu0 %vm527_vm3, %v1551_v14  ;;  %v1713_v14 = vsel %vm534_vm0, %v7482_v8, 0  ;;  %v9757_v2 = vpack.c.bf16 %v9750_v59, %v9566_v5  ;;  %v9773_v5 = vpack.c.bf16 %v9768_v7, %v9586_v9  ;;  %v9126_v9 = vld [vmem:[%s10766_s4 + $0xa4] ss:$0 sps:$4 sm:$0x33]  }
  0x83   : > { %8184 = vmatprep.subr.bf16.mxu0 %v9113_v3 }
  0x8d   : > { %8181 = vmatmul.mubr.msk.bf16.vlgmr.msra.gmra.mrb[0].mxu0 %vm527_vm3, %v9573_v17 }
  0x8e   : > { %8185 = vmatpush3.bf16.msra.mxu0 %v9113_v3  ;;  %8188 = vmatprep.mubr.msk.bf16.mxu0 %vm596_vm4, %v1545_v19  ;;  %v9116_v19 = vld [vmem:[%s10766_s4 + $0x68] ss:$0 sps:$4 sm:$0x33]  }
  0x8f   : > { %8186 = vmatprep.subr.bf16.mxu0 %v1633_v25  ;;  %v1780_v27 = vand.u32 %v9116_v19, %v9303_v6  ;;  %v9802_v19 = vld [vmem:[%s9316_s22 + $0x2b] sm:$0xff] }
  0x92   : > { %8187 = vmatpush3.bf16.msra.mxu0 %v1633_v25 }
  0x93   : > { %9024 = vmatprep.subr.msk.bf16.mxu0 %vm534_vm0, %v7482_v8  ;;  %v9784_v8 = vld [vmem:[%s9301_s19 + $0x2b] sm:$0xff] }
  0x99   : > { %8189 = vmatmul.mubr.msk.bf16.vlgmr.msra.gmra.mrb[0].mxu0 %vm596_vm4, %v9591_v11 }
  0x9a   : > { %8193 = vmatpush3.bf16.msra.mxu0 %v1713_v14  ;;  %8194 = vmatprep.mubr.msk.bf16.mxu0 %vm527_vm3, %v1698_v24  ;;  %v9629_v24 = vpack.c.bf16 %v9624_v22, %v9405_v42  ;;  %v9649_v42 = vpack.c.bf16 %v9642_v34, %v9424_v49  ;;  %v2007_v49 = vsel %vm534_vm0, %v7502_v40, 0  ;;  %v9791_v14 = vpack.c.bf16 %v9784_v8, %v9604_v18 }
  0x9b   : > { %8198 = vmatprep.subr.bf16.mxu0 %v9115_v13  ;;  %v9807_v18 = vpack.c.bf16 %v9802_v19, %v9624_v22  ;;  %v9128_v22 = vld [vmem:[%s10766_s4 + $0xb0] ss:$0 sps:$4 sm:$0x33]  }
  0xa5   : > { %8195 = vmatmul.mubr.msk.bf16.vlgmr.msra.gmra.mrb[0].mxu0 %vm527_vm3, %v9611_v23 }
  0xa6   : > { %8199 = vmatpush3.bf16.msra.mxu0 %v9115_v13  ;;  %8202 = vmatprep.mubr.msk.bf16.mxu0 %vm596_vm4, %v1692_v37  ;;  %v9118_v37 = vld [vmem:[%s10766_s4 + $0x74] ss:$0 sps:$4 sm:$0x33]   ;;  %v2515_v13 = vand.u32 %v9126_v9, %v9303_v6 }
  0xa7   : > { %8200 = vmatprep.subr.bf16.mxu0 %v1780_v27  ;;  %v1927_v29 = vand.u32 %v9118_v37, %v9303_v6  ;;  %v9836_v37 = vld [vmem:[%s9316_s22 + $0x2c] sm:$0xff] }
  0xaa   : > { %8201 = vmatpush3.bf16.msra.mxu0 %v1780_v27 }
  0xab   : > { %9025 = vmatprep.subr.msk.bf16.mxu0 %vm534_vm0, %v7492_v21  ;;  %v9818_v21 = vld [vmem:[%s9301_s19 + $0x2c] sm:$0xff] }
  0xb1   : > { %8203 = vmatmul.mubr.msk.bf16.vlgmr.msra.gmra.mrb[0].mxu0 %vm596_vm4, %v9629_v24 }
  0xb2   : > { %8207 = vmatpush3.bf16.msra.mxu0 %v1860_v30  ;;  %8208 = vmatprep.mubr.msk.bf16.mxu0 %vm527_vm3, %v1845_v43  ;;  %v9667_v43 = vpack.c.bf16 %v9662_v41, %v9453_v61  ;;  %v9685_v61 = vpack.c.bf16 %v9678_v54, %v9474_v4  ;;  %v9698_v4 = vld [vmem:[%s9316_s22 + $0x28] sm:$0xff]  ;;  %v9825_v30 = vpack.c.bf16 %v9818_v21, %v9642_v34 }
  0xb3   : > { %8212 = vmatprep.subr.bf16.mxu0 %v9117_v33  ;;  %v9703_v39 = vpack.c.bf16 %v9698_v4, %v9500_v28  ;;  %v9122_v28 = vld [vmem:[%s10766_s4 + $0x8c] ss:$0 sps:$4 sm:$0x33]   ;;  %v9841_v34 = vpack.c.bf16 %v9836_v37, %v9662_v41  ;;  %v9130_v41 = vld [vmem:[%s10766_s4 + $0xbc] ss:$0 sps:$4 sm:$0x33]  }
  0xb4   : > { %v2221_v48 = vand.u32 %v9122_v28, %v9303_v6 }
  0xbd   : > { %8209 = vmatmul.mubr.msk.bf16.vlgmr.msra.gmra.mrb[0].mxu0 %vm527_vm3, %v9649_v42 }
  0xbe   : > { %8213 = vmatpush3.bf16.msra.mxu0 %v9117_v33  ;;  %8216 = vmatprep.mubr.msk.bf16.mxu0 %vm596_vm4, %v1839_v56  ;;  %v9120_v56 = vld [vmem:[%s10766_s4 + $0x80] ss:$0 sps:$4 sm:$0x33]   ;;  %v2662_v33 = vand.u32 %v9128_v22, %v9303_v6  ;;  %v666_v22 = vld [vmem:[%s9301_s19 + $0x9] sm:$0xff] }
  0xbf   : > { %8214 = vmatprep.subr.bf16.mxu0 %v1927_v29  ;;  %v2074_v36 = vand.u32 %v9120_v56, %v9303_v6  ;;  %v9867_v56 = vld [vmem:[%s9316_s22 + $0x30] sm:$0xff] }
  0xc2   : > { %8215 = vmatpush3.bf16.msra.mxu0 %v1927_v29 }
  0xc3   : > { %9026 = vmatprep.subr.msk.bf16.mxu0 %vm534_vm0, %v7502_v40  ;;  %v9852_v40 = vld [vmem:[%s9301_s19 + $0x30] sm:$0xff] }
  0xc9   : > { %8217 = vmatmul.mubr.msk.bf16.vlgmr.msra.gmra.mrb[0].mxu0 %vm596_vm4, %v9667_v43 }
  0xca   : > { %8221 = vmatpush3.bf16.msra.mxu0 %v2007_v49  ;;  %8222 = vmatprep.mubr.msk.bf16.mxu0 %vm527_vm3, %v9455_v62  ;;  %v2728_v49 = vpack.c.bf16 %v9852_v40, %v9678_v54  ;;  %v2722_v54 = vpack.c.bf16 %v9867_v56, %v9698_v4  ;;  %v9132_v4 = vld [vmem:[%s10766_s4 + $0xc8] ss:$0 sps:$4 sm:$0x33]  }
  0xcb   : > { %8226 = vmatprep.subr.bf16.mxu0 %v9119_v52  ;;  %v2956_v28 = vand.u32 %v9132_v4, %v9303_v6  ;;  %v662_v4 = vld [vmem:[%s9316_s22 + $0x19] sm:$0xff] }
  0xd5   : > { %8223 = vmatmul.mubr.msk.bf16.vlgmr.msra.gmra.mrb[0].mxu0 %vm527_vm3, %v9685_v61 }
  0xd6   : > { %8227 = vmatpush3.bf16.msra.mxu0 %v9119_v52  ;;  %8230 = vmatprep.mubr.msk.bf16.mxu0 %vm596_vm4, %v1986_v20  ;;  %v9715_v20 = vld [vmem:[%s9301_s19 + $0x29] sm:$0xff]  ;;  %v2809_v52 = vand.u32 %v9130_v41, %v9303_v6 }
  0xd7   : > { %8228 = vmatprep.subr.bf16.mxu0 %v2074_v36  ;;  %v9722_v31 = vpack.c.bf16 %v9715_v20, %v9523_v45  ;;  %v9734_v45 = vld [vmem:[%s9316_s22 + $0x29] sm:$0xff] }
  0xd8   : > { %v9739_v50 = vpack.c.bf16 %v9734_v45, %v9548_v60  ;;  %v9124_v60 = vld [vmem:[%s10766_s4 + $0x98] ss:$0 sps:$4 sm:$0x33]  }
  0xd9   : > { %v2368_v3 = vand.u32 %v9124_v60, %v9303_v6  ;;  %v513_v60 = vld [vmem:[%s9316_s22 + $0x10] sm:$0xff] }
  0xda   : > { %8229 = vmatpush3.bf16.msra.mxu0 %v2074_v36 }
  0xdb   : > { %9027 = vmatprep.subr.msk.bf16.mxu0 %vm534_vm0, %v7512_v38  ;;  %v9880_v38 = vld [vmem:[%s9301_s19 + $0x31] sm:$0xff] }
  0xe1   : > { %8231 = vmatmul.mubr.msk.bf16.vlgmr.msra.gmra.mrb[0].mxu0 %vm596_vm4, %v9703_v39 }
  0xe2   : > { %8235 = vmatpush3.bf16.msra.mxu0 %v2154_v10  ;;  %8236 = vmatprep.mubr.msk.bf16.mxu0 %vm527_vm3, %v2139_v47  ;;  %v526_v47 = vld [vmem:[%s10767_s5] sm:$0xf] }
  0xe3   : > { %8240 = vmatprep.subr.bf16.mxu0 %v9121_v16  ;;  %9016 = vmatprep.subr.msk.bf16.mxu1 %vm534_vm0, %v526_v47  ;;  %v536_v10 = vsel %vm534_vm0, %v526_v47, 0  ;;  %v661_v47 = vld [vmem:[%s9316_s22 + $0x11] sm:$0xff] }
  0xe4   : > { %8081 = vmatpush3.bf16.msra.mxu1 %v536_v10 }
  0xed   : > { %8237 = vmatmul.mubr.msk.bf16.vlgmr.msra.gmra.mrb[0].mxu0 %vm527_vm3, %v9722_v31 }
  0xee   : > { %8241 = vmatpush3.bf16.msra.mxu0 %v9121_v16  ;;  %8244 = vmatprep.mubr.msk.bf16.mxu0 %vm596_vm4, %v2133_v44  ;;  %v517_v16 = vld [vmem:[%s9301_s19] sm:$0xff] }
  0xef   : > { %8242 = vmatprep.subr.bf16.mxu0 %v2221_v48  ;;  %v521_v44 = vpack.c.bf16 %v9459_v63, %v517_v16  ;;  %v9143_v63 = vld [vmem:[%s10766_s4] sm:$0xff]   ;;  %v9135_v16 = vld [vmem:[%s10766_s4 + $0xd8] sm:$0xff]  }
  0xf0   : > { %8086 = vmatprep.subr.bf16.mxu1 %v9143_v63 }
  0xf1   : > { %8082 = vmatprep.mubr.msk.bf16.mxu1 %vm527_vm3, %v521_v44  ;;  %v9136_v44 = vld [vmem:[%s10766_s4 + $0xe0] ss:$0 sps:$4 sm:$0x33]  }
  0xf2   : > { %8243 = vmatpush3.bf16.msra.mxu0 %v2221_v48  ;;  %8083 = vmatmul.mubr.msk.bf16.vlgmr.msra.gmra.mrb[0].mxu1 %vm527_vm3, %v9455_v62  ;;  %v9908_v48 = vld [vmem:[%s9316_s22 + $0x31] sm:$0xff] }
  0xf3   : > { %9028 = vmatprep.subr.msk.bf16.mxu0 %vm534_vm0, %v7522_v55  ;;  %v511_v55 = vld [vmem:[%s9316_s22] sm:$0xff]  ;;  %8087 = vmatpush3.bf16.msra.mxu1 %v9143_v63  ;;  %v3250_v63 = vand.u32 %v9136_v44, %v9303_v6 }
  0xf9   : > { %8245 = vmatmul.mubr.msk.bf16.vlgmr.msra.gmra.mrb[0].mxu0 %vm596_vm4, %v9739_v50 }
  0xfa   : > { %8249 = vmatpush3.bf16.msra.mxu0 %v2301_v57  ;;  %8250 = vmatprep.mubr.msk.bf16.mxu0 %vm527_vm3, %v9330_v15  ;;  %v7532_v15 = vld [vmem:[%s10767_s5 + $0x34] sm:$0xf]  ;;  %v512_v57 = vld [vmem:[%s9316_s22 + $0x8] sm:$0xff] }
  0xfb   : > { %8254 = vmatprep.subr.bf16.mxu0 %v9123_v58  ;;  %v2448_v25 = vsel %vm534_vm0, %v7532_v15, 0  ;;  %v515_v62 = vpack.c.bf16 %v512_v57, %v511_v55  ;;  %v10011_v57 = vld [vmem:[%s9301_s19 + $0x34] sm:$0xff] }
  0xfd   : > { %8090 = vmatprep.mubr.msk.bf16.mxu1 %vm596_vm4, %v515_v62  ;;  %v3316_v62 = vpack.c.bf16 %v10011_v57, %v9818_v21 }
 0x105   : > { %8251 = vmatmul.mubr.msk.bf16.vlgmr.msra.gmra.mrb[0].mxu0 %vm527_vm3, %v9757_v2 }
 0x106   : > { %8255 = vmatpush3.bf16.msra.mxu0 %v9123_v58  ;;  %8258 = vmatprep.mubr.msk.bf16.mxu0 %vm596_vm4, %v9361_v26  ;;  %v9125_v26 = vld [vmem:[%s10766_s4 + $0x9c] sm:$0xff]  }
 0x107   : > { %8256 = vmatprep.subr.bf16.mxu0 %v2368_v3 }
 0x10a   : > { %8257 = vmatpush3.bf16.msra.mxu0 %v2368_v3  ;;  %v514_v3 = vld [vmem:[%s9316_s22 + $0x18] sm:$0xff] }
 0x10b   : > { %9029 = vmatprep.subr.msk.bf16.mxu0 %vm534_vm0, %v7532_v15  ;;  %v2869_v15 = vpack.c.bf16 %v9908_v48, %v9734_v45  ;;  %v516_v9 = vpack.c.bf16 %v514_v3, %v513_v60  ;;  %v9931_v45 = vld [vmem:[%s9301_s19 + $0x32] sm:$0xff] }
 0x10c   : > { %v10026_v60 = vld [vmem:[%s9316_s22 + $0x34] sm:$0xff] }
 0x10d   : > { %v3310_v21 = vpack.c.bf16 %v10026_v60, %v9836_v37 }
 0x111   : > { %8259 = vmatmul.mubr.msk.bf16.vlgmr.msra.gmra.mrb[0].mxu0 %vm596_vm4, %v9773_v5 }
 0x112   : > { %8263 = vmatpush3.bf16.msra.mxu0 %v2448_v25  ;;  %8264 = vmatprep.mubr.msk.bf16.mxu0 %vm527_vm3, %v9386_v35  ;;  %v7542_v35 = vld [vmem:[%s10767_s5 + $0x38] sm:$0xf] }
 0x113   : > { %8268 = vmatprep.subr.bf16.mxu0 %v9125_v26  ;;  %v2595_v27 = vsel %vm534_vm0, %v7542_v35, 0 }
 0x11d   : > { %8265 = vmatmul.mubr.msk.bf16.vlgmr.msra.gmra.mrb[0].mxu0 %vm527_vm3, %v9791_v14 }
 0x11e   : > { %8269 = vmatpush3.bf16.msra.mxu0 %v9125_v26  ;;  %8272 = vmatprep.mubr.msk.bf16.mxu0 %vm596_vm4, %v9414_v46  ;;  %v9127_v46 = vld [vmem:[%s10766_s4 + $0xa8] sm:$0xff]  }
 0x11f   : > { %8270 = vmatprep.subr.bf16.mxu0 %v2515_v13  ;;  %v9133_v26 = vld [vmem:[%s10766_s4 + $0xcc] sm:$0xff]  }
 0x122   : > { %8271 = vmatpush3.bf16.msra.mxu0 %v2515_v13  ;;  %v7412_v13 = vld [vmem:[%s10767_s5 + $0x4] sm:$0xf] }
 0x123   : > { %9030 = vmatprep.subr.msk.bf16.mxu0 %vm534_vm0, %v7542_v35  ;;  %v9134_v35 = vld [vmem:[%s10766_s4 + $0xd4] ss:$0 sps:$4 sm:$0x33]  }
 0x129   : > { %8273 = vmatmul.mubr.msk.bf16.vlgmr.msra.gmra.mrb[0].mxu0 %vm596_vm4, %v9807_v18 }
 0x12a   : > { %8277 = vmatpush3.bf16.msra.mxu0 %v2595_v27  ;;  %8278 = vmatprep.mubr.msk.bf16.mxu0 %vm527_vm3, %v9435_v53  ;;  %v7552_v53 = vld [vmem:[%s10767_s5 + $0x3c] sm:$0xf]  ;;  %v684_v27 = vsel %vm534_vm0, %v7412_v13, 0 }
 0x12b   : > { %8282 = vmatprep.subr.bf16.mxu0 %v9127_v46  ;;  %v2742_v29 = vsel %vm534_vm0, %v7552_v53, 0 }
 0x135   : > { %8279 = vmatmul.mubr.msk.bf16.vlgmr.msra.gmra.mrb[0].mxu0 %vm527_vm3, %v9825_v30 }
 0x136   : > { %8283 = vmatpush3.bf16.msra.mxu0 %v9127_v46  ;;  %8286 = vmatprep.mubr.msk.bf16.mxu0 %vm596_vm4, %v9463_v0  ;;  %v9129_v0 = vld [vmem:[%s10766_s4 + $0xb4] sm:$0xff]   ;;  %v665_v46 = vld [vmem:[%s9301_s19 + $0x1] sm:$0xff] }
 0x137   : > { %8284 = vmatprep.subr.bf16.mxu0 %v2662_v33 }
 0x13a   : > { %8285 = vmatpush3.bf16.msra.mxu0 %v2662_v33  ;;  %v667_v33 = vld [vmem:[%s9301_s19 + $0x11] sm:$0xff] }
 0x13b   : > { %9031 = vmatprep.subr.msk.bf16.mxu0 %vm534_vm0, %v7552_v53  ;;  %v3103_v53 = vand.u32 %v9134_v35, %v9303_v6  ;;  %v9141_v35 = vld [vmem:[%s10766_s4 + $0xfc] sm:$0xff]  }
 0x141   : > { %8287 = vmatmul.mubr.msk.bf16.vlgmr.msra.gmra.mrb[0].mxu0 %vm596_vm4, %v9841_v34 }
 0x142   : > { %8291 = vmatpush3.bf16.msra.mxu0 %v2742_v29  ;;  %8292 = vmatprep.mubr.msk.bf16.mxu0 %vm527_vm3, %v9484_v12  ;;  %v7562_v12 = vld [vmem:[%s10767_s5 + $0x40] sm:$0xf]  ;;  %v669_v29 = vpack.c.bf16 %v666_v22, %v665_v46 }
 0x143   : > { %8296 = vmatprep.subr.bf16.mxu0 %v9129_v0  ;;  %v2889_v36 = vsel %vm534_vm0, %v7562_v12, 0  ;;  %v3602_v46 = vld [vmem:[%s9316_s22 + $0x39] sm:$0xff] }
 0x14d   : > { %8293 = vmatmul.mubr.msk.bf16.vlgmr.msra.gmra.mrb[0].mxu0 %vm527_vm3, %v2728_v49  ;;  %v9147_v49 = vld [vmem:[%s10766_s4 + $0xc] sm:$0xff]  }
 0x14e   : > { %8297 = vmatpush3.bf16.msra.mxu0 %v9129_v0  ;;  %8300 = vmatprep.mubr.msk.bf16.mxu0 %vm596_vm4, %v9509_v32  ;;  %v9131_v32 = vld [vmem:[%s10766_s4 + $0xc0] sm:$0xff]  }
 0x14f   : > { %8298 = vmatprep.subr.bf16.mxu0 %v2809_v52  ;;  %v668_v0 = vld [vmem:[%s9301_s19 + $0x19] sm:$0xff] }
 0x150   : > { %v670_v41 = vpack.c.bf16 %v668_v0, %v667_v33  ;;  %v9145_v33 = vld [vmem:[%s10766_s4 + $0x108] sm:$0xff]   ;;  %v3749_v0 = vld [vmem:[%s9316_s22 + $0x3a] sm:$0xff] }
 0x152   : > { %8299 = vmatpush3.bf16.msra.mxu0 %v2809_v52  ;;  %v9960_v52 = vld [vmem:[%s9316_s22 + $0x32] sm:$0xff] }
 0x153   : > { %9032 = vmatprep.subr.msk.bf16.mxu0 %vm534_vm0, %v7562_v12  ;;  %v659_v12 = vld [vmem:[%s9316_s22 + $0x1] sm:$0xff]  ;;  %v3016_v10 = vpack.c.bf16 %v9960_v52, %v9768_v7  ;;  %v9983_v7 = vld [vmem:[%s9301_s19 + $0x33] sm:$0xff] }
 0x159   : > { %8301 = vmatmul.mubr.msk.bf16.vlgmr.msra.gmra.mrb[0].mxu0 %vm596_vm4, %v2722_v54  ;;  %v660_v54 = vld [vmem:[%s9316_s22 + $0x9] sm:$0xff] }
 0x15a   : > { %8305 = vmatpush3.bf16.msra.mxu0 %v2889_v36  ;;  %8306 = vmatprep.mubr.msk.bf16.mxu0 %vm527_vm3, %v9534_v51  ;;  %v2875_v51 = vpack.c.bf16 %v9880_v38, %v9715_v20  ;;  %v7572_v20 = vld [vmem:[%s10767_s5 + $0x44] sm:$0xf]  ;;  %v663_v36 = vpack.c.bf16 %v660_v54, %v659_v12  ;;  %v3896_v12 = vld [vmem:[%s9316_s22 + $0x3b] sm:$0xff] }
 0x15b   : > { %8310 = vmatprep.subr.bf16.mxu0 %v9131_v32  ;;  %v3036_v25 = vsel %vm534_vm0, %v7572_v20, 0 }
 0x165   : > { %8307 = vmatmul.mubr.msk.bf16.vlgmr.msra.gmra.mrb[0].mxu0 %vm527_vm3, %v2875_v51 }
 0x166   : > { %8311 = vmatpush3.bf16.msra.mxu0 %v9131_v32  ;;  %8314 = vmatprep.mubr.msk.bf16.mxu0 %vm596_vm4, %v9553_v1  ;;  %v9144_v1 = vld [vmem:[%s10766_s4 + $0x8] ss:$0 sps:$4 sm:$0x33]  }
 0x167   : > { %8312 = vmatprep.subr.bf16.mxu0 %v2956_v28  ;;  %v608_v58 = vand.u32 %v9144_v1, %v9303_v6  ;;  %v9998_v1 = vld [vmem:[%s9316_s22 + $0x33] sm:$0xff] }
 0x168   : > { %v3898_v54 = vpack.c.bf16 %v3896_v12, %v9998_v1 }
 0x169   : > { %8088 = vmatprep.subr.bf16.mxu1 %v608_v58 }
 0x16a   : > { %8313 = vmatpush3.bf16.msra.mxu0 %v2956_v28  ;;  %8089 = vmatpush3.bf16.msra.mxu1 %v608_v58  ;;  %v664_v28 = vpack.c.bf16 %v662_v4, %v661_v47  ;;  %v9152_v47 = vld [vmem:[%s10766_s4 + $0x128] ss:$0 sps:$4 sm:$0x33]  }
 0x16b   : > { %9033 = vmatprep.subr.msk.bf16.mxu0 %vm534_vm0, %v7572_v20  ;;  %9017 = vmatprep.subr.msk.bf16.mxu1 %vm534_vm0, %v7412_v13  ;;  %v3169_v20 = vpack.c.bf16 %v9983_v7, %v9784_v8  ;;  %v3163_v8 = vpack.c.bf16 %v9998_v1, %v9802_v19  ;;  %v9138_v19 = vld [vmem:[%s10766_s4 + $0xec] ss:$0 sps:$4 sm:$0x33]  }
 0x16c   : > { %v3397_v58 = vand.u32 %v9138_v19, %v9303_v6 }
 0x16d   : > { %8091 = vmatmul.mubr.msk.bf16.vlgmr.msra.gmra.mrb[0].mxu1 %vm596_vm4, %v516_v9  ;;  %v3455_v9 = vld [vmem:[%s9316_s22 + $0x38] sm:$0xff] }
 0x16e   : > { %8095 = vmatpush3.bf16.msra.mxu1 %v684_v27  ;;  %8096 = vmatprep.mubr.msk.bf16.mxu1 %vm527_vm3, %v669_v29  ;;  %v9142_v27 = vld [vmem:[%s10766_s4 + $0x104] ss:$0 sps:$4 sm:$0x33]  }
 0x16f   : > { %8100 = vmatprep.subr.bf16.mxu1 %v9147_v49 }
 0x171   : > { %8315 = vmatmul.mubr.msk.bf16.vlgmr.msra.gmra.mrb[0].mxu0 %vm596_vm4, %v2869_v15  ;;  %v3461_v15 = vld [vmem:[%s9301_s19 + $0x38] sm:$0xff] }
 0x172   : > { %8319 = vmatpush3.bf16.msra.mxu0 %v3036_v25  ;;  %8320 = vmatprep.mubr.msk.bf16.mxu0 %vm527_vm3, %v9573_v17  ;;  %v3022_v17 = vpack.c.bf16 %v9931_v45, %v9750_v59  ;;  %v7582_v59 = vld [vmem:[%s10767_s5 + $0x48] sm:$0xf]  ;;  %v9140_v25 = vld [vmem:[%s10766_s4 + $0xf8] ss:$0 sps:$4 sm:$0x33]   ;;  %v3463_v37 = vpack.c.bf16 %v3461_v15, %v9852_v40  ;;  %v3457_v40 = vpack.c.bf16 %v3455_v9, %v9867_v56 }
 0x173   : > { %8324 = vmatprep.subr.bf16.mxu0 %v9133_v26  ;;  %v3183_v51 = vsel %vm534_vm0, %v7582_v59, 0 }
 0x179   : > { %8097 = vmatmul.mubr.msk.bf16.vlgmr.msra.gmra.mrb[0].mxu1 %vm527_vm3, %v670_v41 }
 0x17a   : > { %8101 = vmatpush3.bf16.msra.mxu1 %v9147_v49  ;;  %8104 = vmatprep.mubr.msk.bf16.mxu1 %vm596_vm4, %v663_v36  ;;  %v9150_v49 = vld [vmem:[%s10766_s4 + $0x11c] ss:$0 sps:$4 sm:$0x33]  }
 0x17d   : > { %8321 = vmatmul.mubr.msk.bf16.vlgmr.msra.gmra.mrb[0].mxu0 %vm527_vm3, %v3022_v17  ;;  %v3691_v17 = vand.u32 %v9142_v27, %v9303_v6 }
 0x17e   : > { %8325 = vmatpush3.bf16.msra.mxu0 %v9133_v26  ;;  %8328 = vmatprep.mubr.msk.bf16.mxu0 %vm596_vm4, %v9591_v11  ;;  %v9148_v11 = vld [vmem:[%s10766_s4 + $0x14] ss:$0 sps:$4 sm:$0x33]   ;;  %v3544_v26 = vand.u32 %v9140_v25, %v9303_v6 }
 0x17f   : > { %8326 = vmatprep.subr.bf16.mxu0 %v3103_v53  ;;  %v751_v32 = vand.u32 %v9148_v11, %v9303_v6  ;;  %v3985_v11 = vand.u32 %v9150_v49, %v9303_v6 }
 0x181   : > { %8102 = vmatprep.subr.bf16.mxu1 %v751_v32 }
 0x182   : > { %8327 = vmatpush3.bf16.msra.mxu0 %v3103_v53  ;;  %8103 = vmatpush3.bf16.msra.mxu1 %v751_v32  ;;  %v9146_v53 = vld [vmem:[%s10766_s4 + $0x110] ss:$0 sps:$4 sm:$0x33]   ;;  %v9151_v32 = vld [vmem:[%s10766_s4 + $0x120] sm:$0xff]  }
 0x183   : > { %9034 = vmatprep.subr.msk.bf16.mxu0 %vm534_vm0, %v7582_v59  ;;  %v3838_v29 = vand.u32 %v9146_v53, %v9303_v6  ;;  %v9149_v59 = vld [vmem:[%s10766_s4 + $0x114] sm:$0xff]  }
 0x185   : > { %8105 = vmatmul.mubr.msk.bf16.vlgmr.msra.gmra.mrb[0].mxu1 %vm596_vm4, %v664_v28 }
 0x189   : > { %8329 = vmatmul.mubr.msk.bf16.vlgmr.msra.gmra.mrb[0].mxu0 %vm596_vm4, %v3016_v10  ;;  %v4132_v10 = vand.u32 %v9152_v47, %v9303_v6  ;;  %v7649_v6 = vld [vmem:[%s10768_s6] ss:$0 sm:$0xff] }
 0x18a   : > { %8333 = vmatpush3.bf16.msra.mxu0 %v3183_v51  ;;  %8334 = vmatprep.mubr.msk.bf16.mxu0 %vm527_vm3, %v9611_v23  ;;  %v7592_v23 = vld [vmem:[%s10767_s5 + $0x4c] sm:$0xf]  ;;  %v4043_v51 = vld [vmem:[%s9316_s22 + $0x3c] sm:$0xff]  ;;  %s10142_s22 = sshll.u32 %s10777_s26, 5  ;;  %s9196_s26 = smov 8  }
 0x18b   : > { %8338 = vmatprep.subr.bf16.mxu0 %v9135_v16  ;;  %v3330_v55 = vsel %vm534_vm0, %v7592_v23, 0  ;;  %s10148_s28 = scalar_lea.vmem %s10764_s2, %s10142_s22  ;;  %s505_s16 = scalar_lea.vmem %s10775_s13, %s10142_s22 }
 0x18c   : > { %v4227_v15 = vld [vmem:[%s10148_s28 + $0x8] sm:$0xff]  ;;  %s500_s20 = scalar_lea.vmem %s10774_s12, %s10142_s22 }
 0x195   : > { %8335 = vmatmul.mubr.msk.bf16.vlgmr.msra.gmra.mrb[0].mxu0 %vm527_vm3, %v3169_v20 }
 0x196   : > { %8339 = vmatpush3.bf16.msra.mxu0 %v9135_v16  ;;  %8342 = vmatprep.mubr.msk.bf16.mxu0 %vm596_vm4, %v9629_v24  ;;  %v9137_v24 = vld [vmem:[%s10766_s4 + $0xe4] sm:$0xff]  }
 0x197   : > { %8340 = vmatprep.subr.bf16.mxu0 %v3250_v63 }
 0x19a   : > { %8341 = vmatpush3.bf16.msra.mxu0 %v3250_v63 }
 0x19b   : > { %9035 = vmatprep.subr.msk.bf16.mxu0 %vm534_vm0, %v7592_v23 }
 0x1a1   : > { %8343 = vmatmul.mubr.msk.bf16.vlgmr.msra.gmra.mrb[0].mxu0 %vm596_vm4, %v3163_v8 }
 0x1a2   : > { %8347 = vmatpush3.bf16.msra.mxu0 %v3330_v55  ;;  %8348 = vmatprep.mubr.msk.bf16.mxu0 %vm527_vm3, %v9649_v42  ;;  %v7602_v42 = vld [vmem:[%s10767_s5 + $0x50] sm:$0xf] }
 0x1a3   : > { %8352 = vmatprep.subr.bf16.mxu0 %v9137_v24  ;;  %v3477_v3 = vsel %vm534_vm0, %v7602_v42, 0 }
 0x1ad   : > { %8349 = vmatmul.mubr.msk.bf16.vlgmr.msra.gmra.mrb[0].mxu0 %vm527_vm3, %v3316_v62 }
 0x1ae   : > { %8353 = vmatpush3.bf16.msra.mxu0 %v9137_v24  ;;  %8356 = vmatprep.mubr.msk.bf16.mxu0 %vm596_vm4, %v9667_v43  ;;  %v9139_v43 = vld [vmem:[%s10766_s4 + $0xf0] sm:$0xff]  }
 0x1af   : > { %8354 = vmatprep.subr.bf16.mxu0 %v3397_v58 }
 0x1b2   : > { %8355 = vmatpush3.bf16.msra.mxu0 %v3397_v58 }
 0x1b3   : > { %9036 = vmatprep.subr.msk.bf16.mxu0 %vm534_vm0, %v7602_v42 }
 0x1b9   : > { %8357 = vmatmul.mubr.msk.bf16.vlgmr.msra.gmra.mrb[0].mxu0 %vm596_vm4, %v3310_v21  ;;  %v4226_v21 = vld [vmem:[%s10148_s28] sm:$0xff] }
 0x1ba   : > { %8361 = vmatpush3.bf16.msra.mxu0 %v3477_v3  ;;  %8362 = vmatprep.mubr.msk.bf16.mxu0 %vm527_vm3, %v9685_v61  ;;  %v7612_v61 = vld [vmem:[%s10767_s5 + $0x54] sm:$0xf]  ;;  %v9195_v3 = vmov 0  }
 0x1bb   : > { %8366 = vmatprep.subr.bf16.mxu0 %v9139_v43  ;;  %v3624_v13 = vsel %vm534_vm0, %v7612_v61, 0  ;;  %9102 = vset.pattern.permute.xlu1 %v9195_v3 }
 0x1bc   : > { %9101 = vset.pattern.permute.xlu0 %v9195_v3 }
 0x1c5   : > { %8363 = vmatmul.mubr.msk.bf16.vlgmr.msra.gmra.mrb[0].mxu0 %vm527_vm3, %v3463_v37 }
 0x1c6   : > { %8367 = vmatpush3.bf16.msra.mxu0 %v9139_v43  ;;  %8370 = vmatprep.mubr.msk.bf16.mxu0 %vm596_vm4, %v9703_v39  ;;  %v3608_v39 = vld [vmem:[%s9301_s19 + $0x39] sm:$0xff] }
 0x1c7   : > { %8368 = vmatprep.subr.bf16.mxu0 %v3544_v26  ;;  %v3610_v56 = vpack.c.bf16 %v3608_v39, %v9880_v38  ;;  %v3604_v38 = vpack.c.bf16 %v3602_v46, %v9908_v48 }
 0x1ca   : > { %8369 = vmatpush3.bf16.msra.mxu0 %v3544_v26 }
 0x1cb   : > { %9037 = vmatprep.subr.msk.bf16.mxu0 %vm534_vm0, %v7612_v61 }
 0x1d1   : > { %8371 = vmatmul.mubr.msk.bf16.vlgmr.msra.gmra.mrb[0].mxu0 %vm596_vm4, %v3457_v40 }
 0x1d2   : > { %8375 = vmatpush3.bf16.msra.mxu0 %v3624_v13  ;;  %8376 = vmatprep.mubr.msk.bf16.mxu0 %vm527_vm3, %v9722_v31  ;;  %v7622_v31 = vld [vmem:[%s10767_s5 + $0x58] sm:$0xf] }
 0x1d3   : > { %8380 = vmatprep.subr.bf16.mxu0 %v9141_v35  ;;  %v3771_v22 = vsel %vm534_vm0, %v7622_v31, 0 }
 0x1dd   : > { %8377 = vmatmul.mubr.msk.bf16.vlgmr.msra.gmra.mrb[0].mxu0 %vm527_vm3, %v3610_v56 }
 0x1de   : > { %8381 = vmatpush3.bf16.msra.mxu0 %v9141_v35  ;;  %8384 = vmatprep.mubr.msk.bf16.mxu0 %vm596_vm4, %v9739_v50  ;;  %v3755_v50 = vld [vmem:[%s9301_s19 + $0x3a] sm:$0xff] }
 0x1df   : > { %8382 = vmatprep.subr.bf16.mxu0 %v3691_v17  ;;  %v3757_v48 = vpack.c.bf16 %v3755_v50, %v9931_v45  ;;  %v3751_v45 = vpack.c.bf16 %v3749_v0, %v9960_v52 }
 0x1e2   : > { %8383 = vmatpush3.bf16.msra.mxu0 %v3691_v17 }
 0x1e3   : > { %9038 = vmatprep.subr.msk.bf16.mxu0 %vm534_vm0, %v7622_v31  ;;  %v4228_v31 = vld [vmem:[%s10148_s28 + $0x10] sm:$0xff] }
 0x1e9   : > { %8385 = vmatmul.mubr.msk.bf16.vlgmr.msra.gmra.mrb[0].mxu0 %vm596_vm4, %v3604_v38 }
 0x1ea   : > { %8389 = vmatpush3.bf16.msra.mxu0 %v3771_v22  ;;  %8390 = vmatprep.mubr.msk.bf16.mxu0 %vm527_vm3, %v9757_v2  ;;  %v7632_v2 = vld [vmem:[%s10767_s5 + $0x5c] sm:$0xf] }
 0x1eb   : > { %8394 = vmatprep.subr.bf16.mxu0 %v9145_v33  ;;  %v3918_v41 = vsel %vm534_vm0, %v7632_v2, 0 }
 0x1f5   : > { %8391 = vmatmul.mubr.msk.bf16.vlgmr.msra.gmra.mrb[0].mxu0 %vm527_vm3, %v3757_v48 }
 0x1f6   : > { %8395 = vmatpush3.bf16.msra.mxu0 %v9145_v33  ;;  %8398 = vmatprep.mubr.msk.bf16.mxu0 %vm596_vm4, %v9773_v5  ;;  %v3902_v5 = vld [vmem:[%s9301_s19 + $0x3b] sm:$0xff] }
 0x1f7   : > { %8396 = vmatprep.subr.bf16.mxu0 %v3838_v29  ;;  %v3904_v52 = vpack.c.bf16 %v3902_v5, %v9983_v7 }
 0x1fa   : > { %8397 = vmatpush3.bf16.msra.mxu0 %v3838_v29  ;;  %v508_v29 = vld [vmem:[%s10765_s3 + $0x8] sm:$0xff] }
 0x1fb   : > { %9039 = vmatprep.subr.msk.bf16.mxu0 %vm534_vm0, %v7632_v2  ;;  %v507_v2 = vld [vmem:[%s10765_s3] sm:$0xff] }
 0x201   : > { %8399 = vmatmul.mubr.msk.bf16.vlgmr.msra.gmra.mrb[0].mxu0 %vm596_vm4, %v3751_v45 }
 0x202   : > { %8403 = vmatpush3.bf16.msra.mxu0 %v3918_v41  ;;  %8404 = vmatprep.mubr.msk.bf16.mxu0 %vm527_vm3, %v9791_v14  ;;  %v7642_v14 = vld [vmem:[%s10767_s5 + $0x60] sm:$0xf] }
 0x203   : > { %8408 = vmatprep.subr.bf16.mxu0 %v9149_v59  ;;  %v4065_v36 = vsel %vm534_vm0, %v7642_v14, 0 }
 0x20d   : > { %8405 = vmatmul.mubr.msk.bf16.vlgmr.msra.gmra.mrb[0].mxu0 %vm527_vm3, %v3904_v52 }
 0x20e   : > { %8409 = vmatpush3.bf16.msra.mxu0 %v9149_v59  ;;  %8412 = vmatprep.mubr.msk.bf16.mxu0 %vm596_vm4, %v9807_v18  ;;  %v4049_v18 = vld [vmem:[%s9301_s19 + $0x3c] sm:$0xff] }
 0x20f   : > { %8410 = vmatprep.subr.bf16.mxu0 %v3985_v11  ;;  %v4051_v4 = vpack.c.bf16 %v4049_v18, %v10011_v57 }
 0x212   : > { %8411 = vmatpush3.bf16.msra.mxu0 %v3985_v11 }
 0x213   : > { %9040 = vmatprep.subr.msk.bf16.mxu0 %vm534_vm0, %v7642_v14 }
 0x219   : > { %8413 = vmatmul.mubr.msk.bf16.vlgmr.msra.gmra.mrb[0].mxu0 %vm596_vm4, %v3898_v54 }
 0x21a   : > { %8417 = vmatpush3.bf16.msra.mxu0 %v4065_v36  ;;  %8418 = vmatprep.mubr.msk.bf16.mxu0 %vm527_vm3, %v9825_v30  ;;  %v4045_v30 = vpack.c.bf16 %v4043_v51, %v10026_v60 }
 0x21b   : > { %8422 = vmatprep.subr.bf16.mxu0 %v9151_v32 }
 0x225   : > { %8419 = vmatmul.mubr.msk.bf16.vlgmr.msra.gmra.mrb[0].mxu0 %vm527_vm3, %v4051_v4 }
 0x226   : > { %8423 = vmatpush3.bf16.msra.mxu0 %v9151_v32  ;;  %8426 = vmatprep.mubr.msk.bf16.mxu0 %vm596_vm4, %v9841_v34 }
 0x227   : > { %8424 = vmatprep.subr.bf16.mxu0 %v4132_v10 }
 0x22a   : > { %8425 = vmatpush3.bf16.msra.mxu0 %v4132_v10  ;;  %v4229_v10 = vld [vmem:[%s10148_s28 + $0x18] sm:$0xff]  ;;  %s9202_s28 = smov 120  }
 0x231   : > { %8427 = vmatmul.mubr.msk.bf16.vlgmr.msra.gmra.mrb[0].mxu0 %vm596_vm4, %v4045_v30 }
 0x258   : > { %v8106_v16 = vpop.f32.mrb[0].mxu1 }
 0x259   : > { %v787_v28 = vpop.f32.mrb[1].mxu1 }
 0x25a   : > { %v8107_v7 = vpop.f32.mrb[2].mxu1 }
 0x25b   : > { %v790_v44 = vpop.f32.mrb[3].mxu1 }
 0x304   : > { %v8428_v20 = vpop.f32.mrb[0].mxu0 }
 0x305   : > { %v8676_v63 = vadd.f32 %v8428_v20, %v8106_v16  ;;  %v4168_v23 = vpop.f32.mrb[1].mxu0  ;;  %v509_v16 = vld [vmem:[%s10765_s3 + $0x10] sm:$0xff] }
 0x306   : > { %v8677_v34 = vadd.f32 %v4168_v23, %v787_v28  ;;  %v8429_v1 = vpop.f32.mrb[2].mxu0 }
 0x307   : > { %v4196_v8 = vadd.f32 %v8676_v63, %v7649_v6  ;;  %v8678_v55 = vadd.f32 %v8429_v1, %v8107_v7  ;;  %v4171_v24 = vpop.f32.mrb[3].mxu0  ;;  %v7654_v63 = vld [vmem:[%s10769_s7 + $0x4] sm:$0xf] }
 0x308   : > { %v4194_v57 = vadd.f32 %v8677_v34, %v7649_v6  ;;  %v8679_v19 = vadd.f32 %v4171_v24, %v790_v44  ;;  %v9197_v44 = vmov 0.0   ;;  %9041 = vmatprep.subr.msk.bf16.mxu1 %vm534_vm0, %v7654_v63  ;;  %v4409_v1 = vsel %vm534_vm0, %v7654_v63, 0 }
 0x309   : > { %9153 = vtanh.f32 %v4196_v8  ;;  %v4197_v62 = vadd.f32 %v8678_v55, %v7649_v6  ;;  %v7652_v26 = vmul.f32 -1.442695, %v4196_v8  ;;  %4360 = vst.msk [vmem:[%s10203_s23 + $0x10] sm:$0xff] %vm527_vm3, %v9197_v44  ;;  %4361 = vst.msk [vmem:[%s10203_s23 + $0x18] sm:$0xff] %vm527_vm3, %v9197_v44  ;;  %8431 = vmatpush3.bf16.msra.mxu1 %v4409_v1 }
 0x30a   : > { %9155 = vtanh.f32 %v4194_v57  ;;  %v4195_v58 = vadd.f32 %v8679_v19, %v7649_v6  ;;  %v7650_v25 = vmul.f32 -1.442695, %v4194_v57  ;;  %4358 = vst.msk [vmem:[%s10203_s23] sm:$0xff] %vm527_vm3, %v9197_v44  ;;  %4359 = vst.msk [vmem:[%s10203_s23 + $0x8] sm:$0xff] %vm527_vm3, %v9197_v44 }
 0x30b   : > { %v7653_v0 = vmul.f32 -1.442695, %v4197_v62  ;;  %4362 = vst.msk [vmem:[%s10203_s23 + $0x20] sm:$0xff] %vm527_vm3, %v9197_v44  ;;  %4363 = vst.msk [vmem:[%s10203_s23 + $0x28] sm:$0xff] %vm527_vm3, %v9197_v44 }
 0x30c   : > { %9157 = vtanh.f32 %v4195_v58  ;;  %v7651_v37 = vmul.f32 -1.442695, %v4195_v58  ;;  %4364 = vst.msk [vmem:[%s10203_s23 + $0x30] sm:$0xff] %vm527_vm3, %v9197_v44  ;;  %4365 = vst.msk [vmem:[%s10203_s23 + $0x38] sm:$0xff] %vm527_vm3, %v9197_v44 }
 0x30d   : > { %9159 = vpow2.f32 %v7650_v25  ;;  %4366 = vst.msk [vmem:[%s10203_s23 + $0x40] sm:$0xff] %vm527_vm3, %v9197_v44  ;;  %6147 = vst.msk [vmem:[#allocation2] sm:$0xff] %vm527_vm3, %v9197_v44  ;;  %v4393_v25 = vld [vmem:[%s10769_s7] sm:$0xf] }
 0x30e   : > { %9161 = vpow2.f32 %v7651_v37  ;;  %6148 = vst.msk [vmem:[#allocation2 + $0x8] sm:$0xff] %vm527_vm3, %v9197_v44  ;;  %6149 = vst.msk [vmem:[#allocation2 + $0x10] sm:$0xff] %vm527_vm3, %v9197_v44  ;;  %9042 = vmatprep.subr.msk.bf16.mxu1 %vm534_vm0, %v4393_v25 }
 0x30f   : > { %9163 = vpow2.f32 %v7652_v26  ;;  %6150 = vst.msk [vmem:[#allocation2 + $0x18] sm:$0xff] %vm527_vm3, %v9197_v44  ;;  %6151 = vst.msk [vmem:[#allocation2 + $0x20] sm:$0xff] %vm527_vm3, %v9197_v44 }
 0x310   : > { %6152 = vst.msk [vmem:[#allocation2 + $0x28] sm:$0xff] %vm527_vm3, %v9197_v44  ;;  %6153 = vst.msk [vmem:[#allocation2 + $0x30] sm:$0xff] %vm527_vm3, %v9197_v44 }
 0x311   : > { %v4394_v23 = vld [vmem:[%s10203_s23 + $0x1] sm:$0xff]  ;;  %v10240_v34 = vld [vmem:[%s10203_s23 + $0x9] sm:$0xff] }
 0x312   : > { %v4398_v8 = vpack.c.bf16 %v10240_v34, %v4394_v23  ;;  %v4658_v44 = vld [vmem:[%s10203_s23 + $0x4] sm:$0xff] }
 0x313   : > { %v9154_v42 = vpop.eup %9153 }
 0x314   : > { %v9156_v60 = vpop.eup %9155  ;;  %4258 = vrot.lane.b32.xlu1 %v9154_v42, %s9194_s29  ;;  %8432 = vmatprep.mubr.msk.bf16.mxu1 %vm527_vm3, %v4398_v8  ;;  %v510_v42 = vld [vmem:[%s10765_s3 + $0x18] sm:$0xff]  ;;  %v7668_v8 = vld [vmem:[%s10769_s7 + $0x14] sm:$0xf] }
 0x315   : > { %4254 = vrot.lane.b32.xlu0 %v9156_v60, %s9194_s29 }
 0x316   : > { %v9158_v43 = vpop.eup %9157 }
 0x317   : > { %v9160_v61 = vpop.eup %9159 }
 0x318   : > { %4234 = vrot.lane.b32.xlu1 %v4226_v21, %s9196_s26  ;;  %v4210_v9 = vadd.f32 1.0, %v9160_v61  ;;  %v9162_v40 = vpop.eup %9161 }
 0x319   : > { %4256 = vrot.lane.b32.xlu0 %v9158_v43, %s9194_s29  ;;  %v9164_v13 = vpop.eup %9163  ;;  %v4211_v35 = vadd.f32 1.0, %v9162_v40 }
 0x31a   : > { %9165 = vrcp.f32 %v4210_v9  ;;  %v4212_v39 = vadd.f32 1.0, %v9164_v13 }
 0x31b   : > { %9167 = vrcp.f32 %v4211_v35 }
 0x31c   : > { %9169 = vrcp.f32 %v4212_v39  ;;  %v4387_v39 = vld [vmem:[%s10203_s23] sm:$0xff] }
 0x31d   : > { %4236 = vrot.lane.b32.xlu0 %v4227_v15, %s9196_s26  ;;  %9171 = vtanh.f32 %v4197_v62 }
 0x31e   : > { %9173 = vpow2.f32 %v7653_v0 }
 0x324   : > { %v10157_v27 = vpop.eup %9165 }
 0x325   : > { %v10162_v46 = vpop.eup %9167 }
 0x326   : > { %v10166_v50 = vpop.eup %9169 }
 0x327   : > { %v9172_v48 = vpop.eup %9171 }
 0x328   : > { %v9174_v52 = vpop.eup %9173 }
 0x329   : > { %v4213_v54 = vadd.f32 1.0, %v9174_v52 }
 0x386   : > { %v4259_v38 = vpop.permute.xlu1 %4258 }
 0x387   : > { %v4255_v56 = vpop.permute.xlu0 %4254  ;;  %v4268_v53 = vmul.f32 %v10166_v50, %v4259_v38  ;;  %v4467_v38 = vsel %vm534_vm0, %v4393_v25, 0 }
 0x388   : > { %v4266_v17 = vmul.f32 %v10157_v27, %v4255_v56 }
 0x38a   : > { %4274 = vrot.lane.b32.xlu1 %v4266_v17, %s9196_s26  ;;  %v4235_v45 = vpop.permute.xlu1 %4234 }
 0x38b   : > { %v4257_v22 = vpop.permute.xlu0 %4256  ;;  %v4246_v41 = vmul.f32 %v10157_v27, %v4235_v45 }
 0x38c   : > { %v4267_v33 = vmul.f32 %v10162_v46, %v4257_v22 }
 0x38e   : > { %4238 = vrot.lane.b32.xlu1 %v4228_v31, %s9196_s26  ;;  %4276 = vrot.lane.b32.xlu0 %v4267_v33, %s9196_s26 }
 0x38f   : > { %v4237_v49 = vpop.permute.xlu0 %4236 }
 0x390   : > { %v4247_v14 = vmul.f32 %v10162_v46, %v4237_v49  ;;  %v4519_v49 = vld [vmem:[%s10203_s23 + $0xa] sm:$0xff] }
 0x392   : > { %4278 = vrot.lane.b32.xlu1 %v4268_v53, %s9196_s26  ;;  %4260 = vrot.lane.b32.xlu0 %v9172_v48, %s9194_s29 }
 0x396   : > { %4341 = vperm.xlu1 %9102, %v508_v29   ;;  %4336 = vperm.xlu0 %9101, %v507_v2  }
 0x3fc   : > { %v4275_v59 = vpop.permute.xlu1 %4274 }
 0x3fd   : > { %v10179_v5 = vadd.f32 %v4275_v59, %v4246_v41  ;;  %v4518_v41 = vld [vmem:[%s10203_s23 + $0x2] sm:$0xff] }
 0x3ff   : > { %9175 = vtanh.f32 %v10179_v5 }
 0x400   : > { %v4239_v11 = vpop.permute.xlu1 %4238  ;;  %v4277_v12 = vpop.permute.xlu0 %4276 }
 0x401   : > { %v10183_v36 = vadd.f32 %v4277_v12, %v4247_v14  ;;  %v4248_v18 = vmul.f32 %v10166_v50, %v4239_v11  ;;  %v4522_v11 = vpack.c.bf16 %v4519_v49, %v4518_v41  ;;  %v7689_v41 = vld [vmem:[%s10769_s7 + $0x30] sm:$0xf] }
 0x403   : > { %9177 = vtanh.f32 %v10183_v36 }
 0x404   : > { %v4279_v32 = vpop.permute.xlu1 %4278  ;;  %9179 = vrcp.f32 %v4213_v54  ;;  %v4261_v30 = vpop.permute.xlu0 %4260  ;;  %v7662_v54 = vld [vmem:[%s10769_s7 + $0xc] sm:$0xf] }
 0x405   : > { %v10187_v4 = vadd.f32 %v4279_v32, %v4248_v18  ;;  %v4588_v18 = vld [vmem:[%s10203_s23 + $0x3] sm:$0xff] }
 0x407   : > { %9181 = vtanh.f32 %v10187_v4 }
 0x409   : > { %v9176_v47 = vpop.eup %9175 }
 0x40a   : > { %4298 = vrot.lane.b32.xlu1 %v9176_v47, %s9196_s26 }
 0x40d   : > { %v9178_v51 = vpop.eup %9177 }
 0x40e   : > { %4240 = vrot.lane.b32.xlu1 %v4229_v10, %s9196_s26  ;;  %4300 = vrot.lane.b32.xlu0 %v9178_v51, %s9196_s26  ;;  %v10197_v28 = vpop.eup %9179 }
 0x40f   : > { %v4269_v7 = vmul.f32 %v10197_v28, %v4261_v30  ;;  %v4603_v30 = vsel %vm534_vm0, %v7662_v54, 0 }
 0x411   : > { %v9182_v20 = vpop.eup %9181 }
 0x412   : > { %4346 = vperm.xlu1 %9102, %v509_v16   ;;  %4280 = vrot.lane.b32.xlu0 %v4269_v7, %s9196_s26 }
 0x415   : > { %v10233_v6 = vpop.permute.xlu1 %4341  ;;  %v10245_v24 = vpop.permute.xlu0 %4336 }
 0x416   : > { %4302 = vrot.lane.b32.xlu0 %v9182_v20, %s9196_s26 }
 0x47c   : > { %v4299_v55 = vpop.permute.xlu1 %4298 }
 0x47d   : > { %v4310_v57 = vmul.f32 %v10157_v27, %v4299_v55  ;;  %v10277_v27 = vld [vmem:[%s10203_s23 + $0x8] sm:$0xff] }
 0x47e   : > { %v4391_v31 = vpack.c.bf16 %v10277_v27, %v4387_v39 }
 0x47f   : > { %v4354_v19 = vmul.f32 %v10245_v24, %v4310_v57 }
 0x480   : > { %v4241_v62 = vpop.permute.xlu1 %4240  ;;  %v4301_v58 = vpop.permute.xlu0 %4300 }
 0x481   : > { %4371 = vrot.lane.b32.xlu1 %v4354_v19, %s9198_s27  ;;  %v4311_v60 = vmul.f32 %v10162_v46, %v4301_v58  ;;  %v4249_v21 = vmul.f32 %v10197_v28, %v4241_v62  ;;  %v4743_v19 = vsel %vm534_vm0, %v7668_v8, 0  ;;  %v7671_v58 = vld [vmem:[%s10769_s7 + $0x18] sm:$0xf] }
 0x483   : > { %v4355_v3 = vmul.f32 %v10233_v6, %v4311_v60 }
 0x484   : > { %v4281_v43 = vpop.permute.xlu0 %4280 }
 0x485   : > { %4351 = vperm.xlu1 %9102, %v510_v42   ;;  %v10257_v15 = vadd.f32 %v4281_v43, %v4249_v21  ;;  %4373 = vrot.lane.b32.xlu0 %v4355_v3, %s9198_s27  ;;  %v4813_v21 = vsel %vm534_vm0, %v7671_v58, 0  ;;  %v7674_v43 = vld [vmem:[%s10769_s7 + $0x1c] sm:$0xf] }
 0x487   : > { %9183 = vtanh.f32 %v10257_v15 }
 0x488   : > { %v4303_v37 = vpop.permute.xlu0 %4302 }
 0x489   : > { %v4312_v26 = vmul.f32 %v10166_v50, %v4303_v37  ;;  %v7659_v50 = vld [vmem:[%s10769_s7 + $0x8] sm:$0xf] }
 0x48a   : > { %v4533_v12 = vsel %vm534_vm0, %v7659_v50, 0 }
 0x491   : > { %v10266_v61 = vpop.permute.xlu1 %4346  ;;  %v9184_v40 = vpop.eup %9183 }
 0x492   : > { %v4356_v9 = vmul.f32 %v10266_v61, %v4312_v26  ;;  %4304 = vrot.lane.b32.xlu0 %v9184_v40, %s9196_s26  ;;  %v4883_v26 = vsel %vm534_vm0, %v7674_v43, 0 }
 0x494   : > { %4375 = vrot.lane.b32.xlu1 %v4356_v9, %s9198_s27 }
 0x4f3   : > { %v4372_v13 = vpop.permute.xlu1 %4371 }
 0x4f4   : > { %4383 = vst.msk [vmem:[%s10203_s23 + $0x12] sm:$0xff] %vm527_vm3, %v4372_v13 }
 0x4f7   : > { %v4374_v35 = vpop.permute.xlu0 %4373 }
 0x4f8   : > { %4384 = vst.msk [vmem:[%s10203_s23 + $0x1a] sm:$0xff] %vm527_vm3, %v4374_v35 }
 0x4fb   : > { %v10280_v56 = vld [vmem:[%s10203_s23 + $0x11] sm:$0xff] }
 0x4fc   : > { %v10292_v22 = vld [vmem:[%s10203_s23 + $0xc] sm:$0xff]  ;;  %v4802_v3 = vpack.c.bf16 %v10280_v56, %v10240_v34  ;;  %v7677_v34 = vld [vmem:[%s10769_s7 + $0x20] sm:$0xf] }
 0x4fd   : > { %v4389_v52 = vld [vmem:[%s10203_s23 + $0x10] sm:$0xff]  ;;  %v4662_v1 = vpack.c.bf16 %v10292_v22, %v4658_v44  ;;  %v4953_v35 = vsel %vm534_vm0, %v7677_v34, 0 }
 0x4fe   : > { %v4589_v47 = vld [vmem:[%s10203_s23 + $0xb] sm:$0xff]  ;;  %v4732_v62 = vpack.c.bf16 %v4389_v52, %v10277_v27  ;;  %v7680_v27 = vld [vmem:[%s10769_s7 + $0x24] sm:$0xf] }
 0x4ff   : > { %v10283_v17 = vld [vmem:[%s10203_s23 + $0x19] sm:$0xff]  ;;  %v4592_v16 = vpack.c.bf16 %v4589_v47, %v4588_v18 }
 0x500   : > { %v10288_v46 = vpack.c.bf16 %v10283_v17, %v10280_v56  ;;  %v10295_v33 = vld [vmem:[%s10203_s23 + $0x14] sm:$0xff] }
 0x501   : > { %v5012_v53 = vpack.c.bf16 %v10295_v33, %v10292_v22  ;;  %v4390_v59 = vld [vmem:[%s10203_s23 + $0x18] sm:$0xff] }
 0x502   : > { %8433 = vmatmul.mubr.msk.bf16.vlgmr.msra.gmra.mrb[4].mxu1 %vm527_vm3, %v10288_v46  ;;  %v10317_v14 = vpack.c.bf16 %v4390_v59, %v4389_v52  ;;  %v4521_v32 = vld [vmem:[%s10203_s23 + $0x1a] sm:$0xff]  ;;  %v4520_v10 = vld [vmem:[%s10203_s23 + $0x12] sm:$0xff]  ;;  %v5233_v52 = vsel %vm534_vm0, %v7689_v41, 0 }
 0x503   : > { %8437 = vmatpush3.bf16.msra.mxu1 %v4467_v38  ;;  %8438 = vmatprep.mubr.msk.bf16.mxu1 %vm527_vm3, %v4391_v31  ;;  %v10331_v51 = vpack.c.bf16 %v4521_v32, %v4520_v10  ;;  %v4590_v20 = vld [vmem:[%s10203_s23 + $0x13] sm:$0xff]  ;;  %v4872_v9 = vpack.c.bf16 %v4520_v10, %v4519_v49  ;;  %v5023_v38 = vsel %vm534_vm0, %v7680_v27, 0  ;;  %v7698_v10 = vld [vmem:[%s10769_s7 + $0x3c] sm:$0xf] }
 0x504   : > { %v10304_v48 = vpop.permute.xlu1 %4351  ;;  %v4305_v29 = vpop.permute.xlu0 %4304  ;;  %9043 = vmatprep.subr.msk.bf16.mxu1 %vm534_vm0, %v7659_v50  ;;  %v4942_v39 = vpack.c.bf16 %v4590_v20, %v4589_v47  ;;  %v7683_v50 = vld [vmem:[%s10769_s7 + $0x28] sm:$0xf] }
 0x505   : > { %v4313_v2 = vmul.f32 %v10197_v28, %v4305_v29  ;;  %v7665_v28 = vld [vmem:[%s10769_s7 + $0x10] sm:$0xf] }
 0x506   : > { %v4673_v23 = vsel %vm534_vm0, %v7665_v28, 0 }
 0x507   : > { %v4357_v45 = vmul.f32 %v10304_v48, %v4313_v2 }
 0x508   : > { %v4376_v0 = vpop.permute.xlu1 %4375 }
 0x509   : > { %4385 = vst.msk [vmem:[%s10203_s23 + $0x22] sm:$0xff] %vm527_vm3, %v4376_v0  ;;  %4377 = vrot.lane.b32.xlu0 %v4357_v45, %s9198_s27  ;;  %v5093_v0 = vsel %vm534_vm0, %v7683_v50, 0  ;;  %v7686_v45 = vld [vmem:[%s10769_s7 + $0x2c] sm:$0xf]  ;;  %s9201_s27 = smov 48  }
 0x50e   : > { %8439 = vmatmul.mubr.msk.bf16.vlgmr.msra.gmra.mrb[4].mxu1 %vm527_vm3, %v10317_v14 }
 0x50f   : > { %8443 = vmatpush3.bf16.msra.mxu1 %v4533_v12  ;;  %8444 = vmatprep.mubr.msk.bf16.mxu1 %vm527_vm3, %v4522_v11  ;;  %v7692_v11 = vld [vmem:[%s10769_s7 + $0x34] sm:$0xf] }
 0x510   : > { %9044 = vmatprep.subr.msk.bf16.mxu1 %vm534_vm0, %v7662_v54  ;;  %v4591_v7 = vld [vmem:[%s10203_s23 + $0x1b] sm:$0xff]  ;;  %v5303_v12 = vsel %vm534_vm0, %v7692_v11, 0 }
 0x511   : > { %v10344_v63 = vpack.c.bf16 %v4591_v7, %v4590_v20  ;;  %v4661_v55 = vld [vmem:[%s10203_s23 + $0x1c] sm:$0xff]  ;;  %v7695_v54 = vld [vmem:[%s10769_s7 + $0x38] sm:$0xf] }
 0x512   : > { %v10357_v57 = vpack.c.bf16 %v4661_v55, %v10295_v33  ;;  %v4731_v42 = vld [vmem:[%s10203_s23 + $0x20] sm:$0xff]  ;;  %v5373_v47 = vsel %vm534_vm0, %v7695_v54, 0 }
 0x513   : > { %v10369_v60 = vpack.c.bf16 %v4731_v42, %v4390_v59  ;;  %v4801_v25 = vld [vmem:[%s10203_s23 + $0x21] sm:$0xff] }
 0x514   : > { %v10383_v37 = vpack.c.bf16 %v4801_v25, %v10283_v17  ;;  %v4871_v40 = vld [vmem:[%s10203_s23 + $0x22] sm:$0xff] }
 0x515   : > { %v10394_v13 = vpack.c.bf16 %v4871_v40, %v4521_v32 }
 0x51a   : > { %8445 = vmatmul.mubr.msk.bf16.vlgmr.msra.gmra.mrb[4].mxu1 %vm527_vm3, %v10331_v51 }
 0x51b   : > { %8450 = vmatprep.mubr.msk.bf16.mxu1 %vm527_vm3, %v4592_v16  ;;  %8449 = vmatpush3.bf16.msra.mxu1 %v4603_v30  ;;  %v5443_v16 = vsel %vm534_vm0, %v7698_v10, 0 }
 0x51c   : > { %9045 = vmatprep.subr.msk.bf16.mxu1 %vm534_vm0, %v7665_v28  ;;  %v7701_v28 = vld [vmem:[%s10769_s7 + $0x40] sm:$0xf] }
 0x51d   : > { %v5513_v20 = vsel %vm534_vm0, %v7701_v28, 0 }
 0x526   : > { %8451 = vmatmul.mubr.msk.bf16.vlgmr.msra.gmra.mrb[4].mxu1 %vm527_vm3, %v10344_v63 }
 0x527   : > { %8456 = vmatprep.mubr.msk.bf16.mxu1 %vm527_vm3, %v4662_v1  ;;  %8455 = vmatpush3.bf16.msra.mxu1 %v4673_v23 }
 0x528   : > { %9046 = vmatprep.subr.msk.bf16.mxu1 %vm534_vm0, %v7668_v8 }
 0x532   : > { %8457 = vmatmul.mubr.msk.bf16.vlgmr.msra.gmra.mrb[4].mxu1 %vm527_vm3, %v10357_v57 }
 0x533   : > { %8462 = vmatprep.mubr.msk.bf16.mxu1 %vm527_vm3, %v4732_v62  ;;  %8461 = vmatpush3.bf16.msra.mxu1 %v4743_v19 }
 0x534   : > { %9047 = vmatprep.subr.msk.bf16.mxu1 %vm534_vm0, %v7671_v58  ;;  %v7710_v58 = vld [vmem:[%s10769_s7 + $0x4c] sm:$0xf] }
 0x53e   : > { %8463 = vmatmul.mubr.msk.bf16.vlgmr.msra.gmra.mrb[4].mxu1 %vm527_vm3, %v10369_v60 }
 0x53f   : > { %8468 = vmatprep.mubr.msk.bf16.mxu1 %vm527_vm3, %v4802_v3  ;;  %8467 = vmatpush3.bf16.msra.mxu1 %v4813_v21  ;;  %v5723_v21 = vsel %vm534_vm0, %v7710_v58, 0  ;;  %v7713_v3 = vld [vmem:[%s10769_s7 + $0x50] sm:$0xf] }
 0x540   : > { %9048 = vmatprep.subr.msk.bf16.mxu1 %vm534_vm0, %v7674_v43  ;;  %v5711_v43 = vld [vmem:[%s10203_s23 + $0x34] sm:$0xff] }
 0x54a   : > { %8469 = vmatmul.mubr.msk.bf16.vlgmr.msra.gmra.mrb[4].mxu1 %vm527_vm3, %v10383_v37 }
 0x54b   : > { %8474 = vmatprep.mubr.msk.bf16.mxu1 %vm527_vm3, %v4872_v9  ;;  %8473 = vmatpush3.bf16.msra.mxu1 %v4883_v26  ;;  %v7716_v26 = vld [vmem:[%s10769_s7 + $0x54] sm:$0xf]  ;;  %v5781_v9 = vld [vmem:[%s10203_s23 + $0x38] sm:$0xff] }
 0x54c   : > { %9049 = vmatprep.subr.msk.bf16.mxu1 %vm534_vm0, %v7677_v34 }
 0x556   : > { %8475 = vmatmul.mubr.msk.bf16.vlgmr.msra.gmra.mrb[4].mxu1 %vm527_vm3, %v10394_v13 }
 0x557   : > { %8480 = vmatprep.mubr.msk.bf16.mxu1 %vm527_vm3, %v4942_v39  ;;  %8479 = vmatpush3.bf16.msra.mxu1 %v4953_v35  ;;  %v5851_v35 = vld [vmem:[%s10203_s23 + $0x39] sm:$0xff] }
 0x558   : > { %9050 = vmatprep.subr.msk.bf16.mxu1 %vm534_vm0, %v7680_v27 }
 0x57b   : > { %v4378_v56 = vpop.permute.xlu0 %4377 }
 0x57c   : > { %4386 = vst.msk [vmem:[%s10203_s23 + $0x2a] sm:$0xff] %vm527_vm3, %v4378_v56  ;;  %v7722_v56 = vld [vmem:[%s10769_s7 + $0x5c] sm:$0xf] }
 0x583   : > { %v4941_v17 = vld [vmem:[%s10203_s23 + $0x23] sm:$0xff]  ;;  %v5291_v32 = vld [vmem:[%s10203_s23 + $0x2b] sm:$0xff] }
 0x584   : > { %v10407_v31 = vpack.c.bf16 %v4941_v17, %v4591_v7  ;;  %v5011_v29 = vld [vmem:[%s10203_s23 + $0x24] sm:$0xff]  ;;  %v10469_v18 = vpack.c.bf16 %v5291_v32, %v4941_v17  ;;  %v5431_v7 = vld [vmem:[%s10203_s23 + $0x30] sm:$0xff]  ;;  %v5921_v17 = vld [vmem:[%s10203_s23 + $0x3a] sm:$0xff] }
 0x585   : > { %v10421_v2 = vpack.c.bf16 %v5011_v29, %v4661_v55  ;;  %v5081_v22 = vld [vmem:[%s10203_s23 + $0x28] sm:$0xff]  ;;  %v5501_v23 = vld [vmem:[%s10203_s23 + $0x31] sm:$0xff]  ;;  %v5783_v34 = vpack.c.bf16 %v5781_v9, %v5431_v7 }
 0x586   : > { %8481 = vmatmul.mubr.msk.bf16.vlgmr.msra.gmra.mrb[4].mxu1 %vm527_vm3, %v10407_v31  ;;  %v10433_v33 = vpack.c.bf16 %v5081_v22, %v4731_v42  ;;  %v5151_v59 = vld [vmem:[%s10203_s23 + $0x29] sm:$0xff]  ;;  %v5433_v44 = vpack.c.bf16 %v5431_v7, %v5081_v22  ;;  %v5641_v42 = vld [vmem:[%s10203_s23 + $0x33] sm:$0xff]  ;;  %v5853_v39 = vpack.c.bf16 %v5851_v35, %v5501_v23 }
 0x587   : > { %8485 = vmatpush3.bf16.msra.mxu1 %v5023_v38  ;;  %8486 = vmatprep.mubr.msk.bf16.mxu1 %vm527_vm3, %v5012_v53  ;;  %v5163_v53 = vsel %vm534_vm0, %v7686_v45, 0  ;;  %v10445_v49 = vpack.c.bf16 %v5151_v59, %v4801_v25  ;;  %v5503_v1 = vpack.c.bf16 %v5501_v23, %v5151_v59  ;;  %v7707_v55 = vld [vmem:[%s10769_s7 + $0x48] sm:$0xf]  ;;  %v6003_v38 = vsel %vm534_vm0, %v7722_v56, 0  ;;  %v7728_v59 = vld [vmem:[%s10770_s8] ss:$0 sm:$0xff] }
 0x588   : > { %9051 = vmatprep.subr.msk.bf16.mxu1 %vm534_vm0, %v7683_v50  ;;  %v5653_v62 = vsel %vm534_vm0, %v7707_v55, 0  ;;  %v7725_v50 = vld [vmem:[%s10769_s7 + $0x60] sm:$0xf] }
 0x592   : > { %8487 = vmatmul.mubr.msk.bf16.vlgmr.msra.gmra.mrb[4].mxu1 %vm527_vm3, %v10421_v2 }
 0x593   : > { %8491 = vmatpush3.bf16.msra.mxu1 %v5093_v0  ;;  %8492 = vmatprep.mubr.msk.bf16.mxu1 %vm527_vm3, %v10317_v14  ;;  %v6073_v0 = vsel %vm534_vm0, %v7725_v50, 0 }
 0x594   : > { %9052 = vmatprep.subr.msk.bf16.mxu1 %vm534_vm0, %v7686_v45  ;;  %v6061_v45 = vld [vmem:[%s10203_s23 + $0x3c] sm:$0xff] }
 0x595   : > { %v6063_v22 = vpack.c.bf16 %v6061_v45, %v5711_v43  ;;  %v7753_v45 = vld [vmem:[%s10771_s9 + $0x24] sm:$0xf] }
 0x59e   : > { %8493 = vmatmul.mubr.msk.bf16.vlgmr.msra.gmra.mrb[4].mxu1 %vm527_vm3, %v10433_v33 }
 0x59f   : > { %8497 = vmatpush3.bf16.msra.mxu1 %v5163_v53  ;;  %8498 = vmatprep.mubr.msk.bf16.mxu1 %vm527_vm3, %v10288_v46  ;;  %v5221_v46 = vld [vmem:[%s10203_s23 + $0x2a] sm:$0xff] }
 0x5a0   : > { %9053 = vmatprep.subr.msk.bf16.mxu1 %vm534_vm0, %v7689_v41  ;;  %v10457_v14 = vpack.c.bf16 %v5221_v46, %v4871_v40  ;;  %v5863_v40 = vsel %vm534_vm0, %v7716_v26, 0  ;;  %v6164_v41 = vld [vmem:[%s10771_s9] sm:$0xf] }
 0x5aa   : > { %8499 = vmatmul.mubr.msk.bf16.vlgmr.msra.gmra.mrb[4].mxu1 %vm527_vm3, %v10445_v49 }
 0x5ab   : > { %8503 = vmatpush3.bf16.msra.mxu1 %v5233_v52  ;;  %8504 = vmatprep.mubr.msk.bf16.mxu1 %vm527_vm3, %v10331_v51  ;;  %v5361_v51 = vld [vmem:[%s10203_s23 + $0x2c] sm:$0xff] }
 0x5ac   : > { %9054 = vmatprep.subr.msk.bf16.mxu1 %vm534_vm0, %v7692_v11  ;;  %v10481_v30 = vpack.c.bf16 %v5361_v51, %v5011_v29  ;;  %v5713_v25 = vpack.c.bf16 %v5711_v43, %v5361_v51  ;;  %v5991_v29 = vld [vmem:[%s10203_s23 + $0x3b] sm:$0xff] }
 0x5b6   : > { %8505 = vmatmul.mubr.msk.bf16.vlgmr.msra.gmra.mrb[4].mxu1 %vm527_vm3, %v10457_v14 }
 0x5b7   : > { %8509 = vmatpush3.bf16.msra.mxu1 %v5303_v12  ;;  %8510 = vmatprep.mubr.msk.bf16.mxu1 %vm527_vm3, %v10344_v63  ;;  %v7704_v63 = vld [vmem:[%s10769_s7 + $0x44] sm:$0xf] }
 0x5b8   : > { %9055 = vmatprep.subr.msk.bf16.mxu1 %vm534_vm0, %v7695_v54  ;;  %v5583_v8 = vsel %vm534_vm0, %v7704_v63, 0 }
 0x5c2   : > { %8511 = vmatmul.mubr.msk.bf16.vlgmr.msra.gmra.mrb[4].mxu1 %vm527_vm3, %v10469_v18 }
 0x5c3   : > { %8515 = vmatpush3.bf16.msra.mxu1 %v5373_v47  ;;  %8516 = vmatprep.mubr.msk.bf16.mxu1 %vm527_vm3, %v10357_v57  ;;  %v5571_v57 = vld [vmem:[%s10203_s23 + $0x32] sm:$0xff]  ;;  %s9200_s23 = smov 32  }
 0x5c4   : > { %9056 = vmatprep.subr.msk.bf16.mxu1 %vm534_vm0, %v7698_v10  ;;  %v5573_v19 = vpack.c.bf16 %v5571_v57, %v5221_v46 }
 0x5ce   : > { %8517 = vmatmul.mubr.msk.bf16.vlgmr.msra.gmra.mrb[4].mxu1 %vm527_vm3, %v10481_v30 }
 0x5cf   : > { %8521 = vmatpush3.bf16.msra.mxu1 %v5443_v16  ;;  %8522 = vmatprep.mubr.msk.bf16.mxu1 %vm527_vm3, %v10369_v60  ;;  %v5643_v60 = vpack.c.bf16 %v5641_v42, %v5291_v32 }
 0x5d0   : > { %9057 = vmatprep.subr.msk.bf16.mxu1 %vm534_vm0, %v7701_v28 }
 0x5da   : > { %8523 = vmatmul.mubr.msk.bf16.vlgmr.msra.gmra.mrb[4].mxu1 %vm527_vm3, %v5433_v44  ;;  %v6165_v44 = vld [vmem:[#allocation2 + $0x1] sm:$0xff] }
 0x5db   : > { %8527 = vmatpush3.bf16.msra.mxu1 %v5513_v20  ;;  %8528 = vmatprep.mubr.msk.bf16.mxu1 %vm527_vm3, %v10383_v37  ;;  %v5793_v37 = vsel %vm534_vm0, %v7713_v3, 0 }
 0x5dc   : > { %9058 = vmatprep.subr.msk.bf16.mxu1 %vm534_vm0, %v7704_v63 }
 0x5e6   : > { %8529 = vmatmul.mubr.msk.bf16.vlgmr.msra.gmra.mrb[4].mxu1 %vm527_vm3, %v5503_v1 }
 0x5e7   : > { %8533 = vmatpush3.bf16.msra.mxu1 %v5583_v8  ;;  %8534 = vmatprep.mubr.msk.bf16.mxu1 %vm527_vm3, %v10394_v13  ;;  %v7719_v13 = vld [vmem:[%s10769_s7 + $0x58] sm:$0xf] }
 0x5e8   : > { %9059 = vmatprep.subr.msk.bf16.mxu1 %vm534_vm0, %v7707_v55  ;;  %v5933_v27 = vsel %vm534_vm0, %v7719_v13, 0 }
 0x5f2   : > { %8535 = vmatmul.mubr.msk.bf16.vlgmr.msra.gmra.mrb[4].mxu1 %vm527_vm3, %v5573_v19 }
 0x5f3   : > { %8539 = vmatpush3.bf16.msra.mxu1 %v5653_v62  ;;  %8540 = vmatprep.mubr.msk.bf16.mxu1 %vm527_vm3, %v10407_v31  ;;  %v5923_v31 = vpack.c.bf16 %v5921_v17, %v5571_v57 }
 0x5f4   : > { %9060 = vmatprep.subr.msk.bf16.mxu1 %vm534_vm0, %v7710_v58 }
 0x5fe   : > { %8541 = vmatmul.mubr.msk.bf16.vlgmr.msra.gmra.mrb[4].mxu1 %vm527_vm3, %v5643_v60  ;;  %v7737_v60 = vld [vmem:[%s10771_s9 + $0xc] sm:$0xf] }
 0x5ff   : > { %8545 = vmatpush3.bf16.msra.mxu1 %v5723_v21  ;;  %8546 = vmatprep.mubr.msk.bf16.mxu1 %vm527_vm3, %v10421_v2  ;;  %v5993_v2 = vpack.c.bf16 %v5991_v29, %v5641_v42  ;;  %v6374_v43 = vsel %vm534_vm0, %v7737_v60, 0  ;;  %v7749_v29 = vld [vmem:[%s10771_s9 + $0x1c] sm:$0xf] }
 0x600   : > { %9061 = vmatprep.subr.msk.bf16.mxu1 %vm534_vm0, %v7713_v3 }
 0x60a   : > { %8547 = vmatmul.mubr.msk.bf16.vlgmr.msra.gmra.mrb[4].mxu1 %vm527_vm3, %v5713_v25 }
 0x60b   : > { %8551 = vmatpush3.bf16.msra.mxu1 %v5793_v37  ;;  %8552 = vmatprep.mubr.msk.bf16.mxu1 %vm527_vm3, %v10433_v33  ;;  %v7729_v33 = vld [vmem:[%s10771_s9 + $0x4] sm:$0xf]  ;;  %v7741_v37 = vld [vmem:[%s10771_s9 + $0x14] sm:$0xf] }
 0x60c   : > { %9062 = vmatprep.subr.msk.bf16.mxu1 %vm534_vm0, %v7716_v26  ;;  %v6180_v53 = vsel %vm534_vm0, %v7729_v33, 0 }
 0x616   : > { %8553 = vmatmul.mubr.msk.bf16.vlgmr.msra.gmra.mrb[4].mxu1 %vm527_vm3, %v5783_v34 }
 0x617   : > { %8557 = vmatpush3.bf16.msra.mxu1 %v5863_v40  ;;  %8558 = vmatprep.mubr.msk.bf16.mxu1 %vm527_vm3, %v10445_v49  ;;  %v6446_v40 = vsel %vm534_vm0, %v7741_v37, 0 }
 0x618   : > { %9063 = vmatprep.subr.msk.bf16.mxu1 %vm534_vm0, %v7719_v13 }
 0x622   : > { %8559 = vmatmul.mubr.msk.bf16.vlgmr.msra.gmra.mrb[4].mxu1 %vm527_vm3, %v5853_v39  ;;  %v7740_v39 = vld [vmem:[%s10771_s9 + $0x10] sm:$0xf] }
 0x623   : > { %8563 = vmatpush3.bf16.msra.mxu1 %v5933_v27  ;;  %8564 = vmatprep.mubr.msk.bf16.mxu1 %vm527_vm3, %v10457_v14 }
 0x624   : > { %9064 = vmatprep.subr.msk.bf16.mxu1 %vm534_vm0, %v7722_v56 }
 0x62e   : > { %8565 = vmatmul.mubr.msk.bf16.vlgmr.msra.gmra.mrb[4].mxu1 %vm527_vm3, %v5923_v31  ;;  %v6498_v31 = vsel %vm534_vm0, %v7740_v39, 0 }
 0x62f   : > { %8569 = vmatpush3.bf16.msra.mxu1 %v6003_v38  ;;  %8570 = vmatprep.mubr.msk.bf16.mxu1 %vm527_vm3, %v10469_v18  ;;  %v7746_v38 = vld [vmem:[%s10771_s9 + $0x18] sm:$0xf] }
 0x630   : > { %9065 = vmatprep.subr.msk.bf16.mxu1 %vm534_vm0, %v7725_v50  ;;  %v6552_v50 = vsel %vm534_vm0, %v7746_v38, 0 }
 0x63a   : > { %8571 = vmatmul.mubr.msk.bf16.vlgmr.msra.gmra.mrb[4].mxu1 %vm527_vm3, %v5993_v2  ;;  %v6622_v2 = vsel %vm534_vm0, %v7749_v29, 0 }
 0x63b   : > { %8575 = vmatpush3.bf16.msra.mxu1 %v6073_v0  ;;  %8576 = vmatprep.mubr.msk.bf16.mxu1 %vm527_vm3, %v10481_v30 }
 0x63c   : > { %9066 = vmatprep.subr.msk.bf16.mxu1 %vm534_vm0, %v7729_v33 }
 0x646   : > { %8577 = vmatmul.mubr.msk.bf16.vlgmr.msra.gmra.mrb[4].mxu1 %vm527_vm3, %v6063_v22 }
 0x647   : > { %8581 = vmatpush3.bf16.msra.mxu1 %v6180_v53  ;;  %v6682_v53 = vsel %vm534_vm0, %v7753_v45, 0 }
 0x648   : > { %9067 = vmatprep.subr.msk.bf16.mxu1 %vm534_vm0, %v6164_v41 }
 0x719   : > { %v8578_v49 = vpop.f32.mrb[4].mxu1 }
 0x71a   : > { %v6137_v52 = vadd.f32 %v8578_v49, %v7728_v59  ;;  %v6109_v11 = vpop.f32.mrb[5].mxu1  ;;  %v7758_v49 = vld [vmem:[%s10771_s9 + $0x28] sm:$0xf] }
 0x71b   : > { %v6135_v46 = vadd.f32 %v7728_v59, %v6109_v11  ;;  %v8579_v14 = vpop.f32.mrb[6].mxu1  ;;  %v7761_v11 = vld [vmem:[%s10771_s9 + $0x2c] sm:$0xf] }
 0x71c   : > { %v6141_v12 = vmax.f32 %v6137_v52, 0.0  ;;  %v6138_v54 = vadd.f32 %v8579_v14, %v7728_v59  ;;  %v6112_v32 = vpop.f32.mrb[7].mxu1  ;;  %v6800_v52 = vsel %vm534_vm0, %v7758_v49, 0 }
 0x71d   : > { %v6139_v18 = vmax.f32 %v6135_v46, 0.0  ;;  %v6136_v47 = vadd.f32 %v7728_v59, %v6112_v32  ;;  %v6858_v32 = vld [vmem:[#allocation2 + $0x29] sm:$0xff] }
 0x71e   : > { %v6145_v10 = vmul.f32 %v6141_v12, %v10266_v61  ;;  %v6142_v51 = vmax.f32 %v6138_v54, 0.0  ;;  %v6158_v61 = vld [vmem:[#allocation2] sm:$0xff]  ;;  %v6870_v12 = vsel %vm534_vm0, %v7761_v11, 0  ;;  %v7765_v54 = vld [vmem:[%s10771_s9 + $0x34] sm:$0xf] }
 0x71f   : > { %v6143_v30 = vmul.f32 %v6139_v18, %v10245_v24  ;;  %v6140_v16 = vmax.f32 %v6136_v47, 0.0  ;;  %v6930_v47 = vsel %vm534_vm0, %v7765_v54, 0 }
 0x720   : > { %6156 = vst.msk [vmem:[#allocation2 + $0x19] sm:$0xff] %vm527_vm3, %v6145_v10  ;;  %v6146_v28 = vmul.f32 %v6142_v51, %v10304_v48  ;;  %v6238_v48 = vsel %vm534_vm0, %v6164_v41, 0  ;;  %v7752_v41 = vld [vmem:[%s10771_s9 + $0x20] sm:$0xf]  ;;  %v7764_v10 = vld [vmem:[%s10771_s9 + $0x30] sm:$0xf] }
 0x721   : > { %6154 = vst.msk [vmem:[#allocation2 + $0x9] sm:$0xff] %vm527_vm3, %v6143_v30  ;;  %v6144_v7 = vmul.f32 %v6140_v16, %v10233_v6  ;;  %v7734_v6 = vld [vmem:[%s10771_s9 + $0x8] sm:$0xf]  ;;  %v6734_v59 = vsel %vm534_vm0, %v7752_v41, 0  ;;  %v6982_v51 = vsel %vm534_vm0, %v7764_v10, 0 }
 0x722   : > { %6157 = vst.msk [vmem:[#allocation2 + $0x21] sm:$0xff] %vm527_vm3, %v6146_v28  ;;  %v6304_v58 = vsel %vm534_vm0, %v7734_v6, 0  ;;  %v7770_v30 = vld [vmem:[%s10771_s9 + $0x38] sm:$0xf]  ;;  %v7773_v28 = vld [vmem:[%s10771_s9 + $0x3c] sm:$0xf] }
 0x723   : > { %6155 = vst.msk [vmem:[#allocation2 + $0x11] sm:$0xff] %vm527_vm3, %v6144_v7  ;;  %v7036_v16 = vsel %vm534_vm0, %v7770_v30, 0  ;;  %v7106_v7 = vsel %vm534_vm0, %v7773_v28, 0 }
 0x727   : > { %v6168_v24 = vld [vmem:[#allocation2 + $0x19] sm:$0xff] }
 0x728   : > { %v6166_v20 = vld [vmem:[#allocation2 + $0x9] sm:$0xff] }
 0x729   : > { %v6169_v63 = vpack.c.bf16 %v6166_v20, %v6165_v44  ;;  %v6159_v23 = vld [vmem:[#allocation2 + $0x8] sm:$0xff]  ;;  %v10612_v21 = vld [vmem:[#allocation2 + $0x20] sm:$0xff] }
 0x72a   : > { %v6167_v1 = vld [vmem:[#allocation2 + $0x11] sm:$0xff]  ;;  %v6162_v55 = vpack.c.bf16 %v6159_v23, %v6158_v61  ;;  %v6362_v26 = vld [vmem:[#allocation2 + $0x21] sm:$0xff] }
 0x72b   : > { %8582 = vmatprep.mubr.msk.bf16.mxu1 %vm527_vm3, %v6169_v63  ;;  %v10592_v8 = vpack.c.bf16 %v6168_v24, %v6167_v1  ;;  %v6160_v57 = vld [vmem:[#allocation2 + $0x10] sm:$0xff]  ;;  %v6161_v19 = vld [vmem:[#allocation2 + $0x18] sm:$0xff]  ;;  %v10616_v25 = vpack.c.bf16 %v6167_v1, %v6166_v20  ;;  %v10625_v34 = vpack.c.bf16 %v6362_v26, %v6168_v24  ;;  %v6431_v13 = vld [vmem:[#allocation2 + $0x2] sm:$0xff]  ;;  %v6860_v18 = vpack.c.bf16 %v6858_v32, %v6362_v26 }
 0x72c   : > { %v10602_v62 = vpack.c.bf16 %v6161_v19, %v6160_v57  ;;  %v6293_v42 = vpack.c.bf16 %v6160_v57, %v6159_v23  ;;  %v6294_v3 = vpack.c.bf16 %v10612_v21, %v6161_v19  ;;  %v6432_v9 = vld [vmem:[#allocation2 + $0xa] sm:$0xff]  ;;  %v6433_v27 = vld [vmem:[#allocation2 + $0x12] sm:$0xff]  ;;  %v6434_v56 = vld [vmem:[#allocation2 + $0x1a] sm:$0xff] }
 0x72d   : > { %8583 = vmatmul.mubr.msk.bf16.vlgmr.msra.gmra.mrb[8].mxu1 %vm527_vm3, %v10592_v8  ;;  %v6435_v35 = vpack.c.bf16 %v6432_v9, %v6431_v13  ;;  %v10635_v17 = vpack.c.bf16 %v6434_v56, %v6433_v27  ;;  %v6611_v0 = vpack.c.bf16 %v6433_v27, %v6432_v9  ;;  %v6610_v22 = vld [vmem:[#allocation2 + $0x22] sm:$0xff]  ;;  %v7094_v44 = vld [vmem:[#allocation2 + $0x2a] sm:$0xff] }
 0x72e   : > { %8587 = vmatpush3.bf16.msra.mxu1 %v6238_v48  ;;  %8588 = vmatprep.mubr.msk.bf16.mxu1 %vm527_vm3, %v6162_v55  ;;  %v6612_v33 = vpack.c.bf16 %v6610_v22, %v6434_v56  ;;  %v6788_v46 = vld [vmem:[#allocation2 + $0x28] sm:$0xff]  ;;  %v7096_v20 = vpack.c.bf16 %v7094_v44, %v6610_v22 }
 0x72f   : > { %9068 = vmatprep.subr.msk.bf16.mxu1 %vm534_vm0, %v7734_v6  ;;  %v6790_v14 = vpack.c.bf16 %v6788_v46, %v10612_v21 }
 0x739   : > { %8589 = vmatmul.mubr.msk.bf16.vlgmr.msra.gmra.mrb[8].mxu1 %vm527_vm3, %v10602_v62 }
 0x73a   : > { %8593 = vmatpush3.bf16.msra.mxu1 %v6304_v58  ;;  %8594 = vmatprep.mubr.msk.bf16.mxu1 %vm527_vm3, %v6293_v42 }
 0x73b   : > { %9069 = vmatprep.subr.msk.bf16.mxu1 %vm534_vm0, %v7737_v60 }
 0x745   : > { %8595 = vmatmul.mubr.msk.bf16.vlgmr.msra.gmra.mrb[8].mxu1 %vm527_vm3, %v6294_v3 }
 0x746   : > { %8599 = vmatpush3.bf16.msra.mxu1 %v6374_v43  ;;  %8600 = vmatprep.mubr.msk.bf16.mxu1 %vm527_vm3, %v10616_v25 }
 0x747   : > { %9070 = vmatprep.subr.msk.bf16.mxu1 %vm534_vm0, %v7741_v37 }
 0x751   : > { %8601 = vmatmul.mubr.msk.bf16.vlgmr.msra.gmra.mrb[8].mxu1 %vm527_vm3, %v10625_v34 }
 0x752   : > { %8605 = vmatpush3.bf16.msra.mxu1 %v6446_v40  ;;  %8606 = vmatprep.mubr.msk.bf16.mxu1 %vm527_vm3, %v6435_v35 }
 0x753   : > { %9071 = vmatprep.subr.msk.bf16.mxu1 %vm534_vm0, %v7740_v39 }
 0x759   : > { %8607 = vmatmul.mubr.msk.bf16.vlgmr.msra.gmra.mrb[12].mxu1 %vm527_vm3, %v10635_v17 }
 0x75a   : > { %8611 = vmatpush3.bf16.msra.mxu1 %v6498_v31  ;;  %8612 = vmatprep.mubr.msk.bf16.mxu1 %vm527_vm3, %v6169_v63 }
 0x75b   : > { %9072 = vmatprep.subr.msk.bf16.mxu1 %vm534_vm0, %v7746_v38 }
 0x765   : > { %8613 = vmatmul.mubr.msk.bf16.vlgmr.msra.gmra.mrb[12].mxu1 %vm527_vm3, %v10592_v8 }
 0x766   : > { %8617 = vmatpush3.bf16.msra.mxu1 %v6552_v50  ;;  %8618 = vmatprep.mubr.msk.bf16.mxu1 %vm527_vm3, %v10616_v25 }
 0x767   : > { %9073 = vmatprep.subr.msk.bf16.mxu1 %vm534_vm0, %v7749_v29 }
 0x771   : > { %8619 = vmatmul.mubr.msk.bf16.vlgmr.msra.gmra.mrb[12].mxu1 %vm527_vm3, %v10625_v34 }
 0x772   : > { %8623 = vmatpush3.bf16.msra.mxu1 %v6622_v2  ;;  %8624 = vmatprep.mubr.msk.bf16.mxu1 %vm527_vm3, %v6611_v0 }
 0x773   : > { %9074 = vmatprep.subr.msk.bf16.mxu1 %vm534_vm0, %v7753_v45 }
 0x77d   : > { %8625 = vmatmul.mubr.msk.bf16.vlgmr.msra.gmra.mrb[12].mxu1 %vm527_vm3, %v6612_v33 }
 0x77e   : > { %8629 = vmatpush3.bf16.msra.mxu1 %v6682_v53  ;;  %8630 = vmatprep.mubr.msk.bf16.mxu1 %vm527_vm3, %v10616_v25 }
 0x77f   : > { %9075 = vmatprep.subr.msk.bf16.mxu1 %vm534_vm0, %v7752_v41 }
 0x785   : > { %8631 = vmatmul.mubr.msk.bf16.vlgmr.msra.gmra.mrb[16].mxu1 %vm527_vm3, %v10625_v34 }
 0x786   : > { %8635 = vmatpush3.bf16.msra.mxu1 %v6734_v59  ;;  %8636 = vmatprep.mubr.msk.bf16.mxu1 %vm527_vm3, %v6293_v42 }
 0x787   : > { %9076 = vmatprep.subr.msk.bf16.mxu1 %vm534_vm0, %v7758_v49 }
 0x791   : > { %8637 = vmatmul.mubr.msk.bf16.vlgmr.msra.gmra.mrb[16].mxu1 %vm527_vm3, %v6294_v3 }
 0x792   : > { %8641 = vmatpush3.bf16.msra.mxu1 %v6800_v52  ;;  %8642 = vmatprep.mubr.msk.bf16.mxu1 %vm527_vm3, %v10602_v62 }
 0x793   : > { %9077 = vmatprep.subr.msk.bf16.mxu1 %vm534_vm0, %v7761_v11 }
 0x79d   : > { %8643 = vmatmul.mubr.msk.bf16.vlgmr.msra.gmra.mrb[16].mxu1 %vm527_vm3, %v6790_v14 }
 0x79e   : > { %8647 = vmatpush3.bf16.msra.mxu1 %v6870_v12  ;;  %8648 = vmatprep.mubr.msk.bf16.mxu1 %vm527_vm3, %v10592_v8 }
 0x79f   : > { %9078 = vmatprep.subr.msk.bf16.mxu1 %vm534_vm0, %v7765_v54 }
 0x7a9   : > { %8649 = vmatmul.mubr.msk.bf16.vlgmr.msra.gmra.mrb[16].mxu1 %vm527_vm3, %v6860_v18 }
 0x7aa   : > { %8653 = vmatpush3.bf16.msra.mxu1 %v6930_v47  ;;  %8654 = vmatprep.mubr.msk.bf16.mxu1 %vm527_vm3, %v6611_v0 }
 0x7ab   : > { %9079 = vmatprep.subr.msk.bf16.mxu1 %vm534_vm0, %v7764_v10 }
 0x7b1   : > { %8655 = vmatmul.mubr.msk.bf16.vlgmr.msra.gmra.mrb[20].mxu1 %vm527_vm3, %v6612_v33 }
 0x7b2   : > { %8659 = vmatpush3.bf16.msra.mxu1 %v6982_v51  ;;  %8660 = vmatprep.mubr.msk.bf16.mxu1 %vm527_vm3, %v10616_v25 }
 0x7b3   : > { %9080 = vmatprep.subr.msk.bf16.mxu1 %vm534_vm0, %v7770_v30 }
 0x7bd   : > { %8661 = vmatmul.mubr.msk.bf16.vlgmr.msra.gmra.mrb[20].mxu1 %vm527_vm3, %v10625_v34 }
 0x7be   : > { %8665 = vmatpush3.bf16.msra.mxu1 %v7036_v16  ;;  %8666 = vmatprep.mubr.msk.bf16.mxu1 %vm527_vm3, %v10592_v8 }
 0x7bf   : > { %9081 = vmatprep.subr.msk.bf16.mxu1 %vm534_vm0, %v7773_v28 }
 0x7c9   : > { %8667 = vmatmul.mubr.msk.bf16.vlgmr.msra.gmra.mrb[20].mxu1 %vm527_vm3, %v6860_v18 }
 0x7ca   : > { %8671 = vmatpush3.bf16.msra.mxu1 %v7106_v7  ;;  %8672 = vmatprep.mubr.msk.bf16.mxu1 %vm527_vm3, %v10635_v17 }
 0x7d5   : > { %8673 = vmatmul.mubr.msk.bf16.vlgmr.msra.gmra.mrb[20].mxu1 %vm527_vm3, %v7096_v20 }
 0x824   : > { %v8602_v63 = vpop.f32.mrb[8].mxu1 }
 0x825   : > { %v6410_v61 = vpop.f32.mrb[9].mxu1 }
 0x826   : > { %v8603_v23 = vpop.f32.mrb[10].mxu1 }
 0x827   : > { %v6413_v1 = vpop.f32.mrb[11].mxu1 }
 0x850   : > { %v8626_v24 = vpop.f32.mrb[12].mxu1 }
 0x851   : > { %7169 = vrot.lane.b32.xlu1 %v8626_v24, %s9199_s24  ;;  %v6658_v8 = vpop.f32.mrb[13].mxu1 }
 0x852   : > { %v8627_v48 = vpop.f32.mrb[14].mxu1 }
 0x853   : > { %7171 = vrot.lane.b32.xlu0 %v8627_v48, %s9199_s24  ;;  %v6661_v55 = vpop.f32.mrb[15].mxu1 }
 0x855   : > { %7165 = vrot.lane.b32.xlu1 %v6658_v8, %s9199_s24 }
 0x857   : > { %7167 = vrot.lane.b32.xlu0 %v6661_v55, %s9199_s24 }
 0x87c   : > { %v8650_v6 = vpop.f32.mrb[16].mxu1 }
 0x87d   : > { %7185 = vrot.lane.b32.xlu1 %v8650_v6, %s9200_s23  ;;  %v6906_v57 = vpop.f32.mrb[17].mxu1 }
 0x87e   : > { %v8651_v19 = vpop.f32.mrb[18].mxu1 }
 0x87f   : > { %7187 = vrot.lane.b32.xlu0 %v8651_v19, %s9200_s23  ;;  %v6909_v62 = vpop.f32.mrb[19].mxu1 }
 0x881   : > { %7181 = vrot.lane.b32.xlu1 %v6906_v57, %s9200_s23 }
 0x883   : > { %7183 = vrot.lane.b32.xlu0 %v6909_v62, %s9200_s23 }
 0x8a8   : > { %v8674_v58 = vpop.f32.mrb[20].mxu1 }
 0x8a9   : > { %7201 = vrot.lane.b32.xlu1 %v8674_v58, %s9201_s27  ;;  %v7142_v42 = vpop.f32.mrb[21].mxu1 }
 0x8aa   : > { %v8675_v60 = vpop.f32.mrb[22].mxu1 }
 0x8ab   : > { %7203 = vrot.lane.b32.xlu0 %v8675_v60, %s9201_s27  ;;  %v7145_v21 = vpop.f32.mrb[23].mxu1 }
 0x8ad   : > { %7197 = vrot.lane.b32.xlu1 %v7142_v42, %s9201_s27 }
 0x8af   : > { %7199 = vrot.lane.b32.xlu0 %v7145_v21, %s9201_s27 }
 0x8b1   : > { %4318 = vrot.lane.b32.xlu1 %v10179_v5, %s9202_s28 }
 0x8b3   : > { %4320 = vrot.lane.b32.xlu0 %v10183_v36, %s9202_s28  ;;  %v7776_v36 = vld [vmem:[%s10772_s10] ss:$0 sm:$0xff] }
 0x8b5   : > { %4322 = vrot.lane.b32.xlu1 %v10187_v4, %s9202_s28 }
 0x8b7   : > { %4324 = vrot.lane.b32.xlu0 %v10257_v15, %s9202_s28 }
 0x8c3   : > { %v7170_v3 = vpop.permute.xlu1 %7169 }
 0x8c4   : > { %v7212_v5 = vsel %vm7209_vm5, %v8602_v63, %v7170_v3 }
 0x8c5   : > { %v7172_v43 = vpop.permute.xlu0 %7171 }
 0x8c6   : > { %v7213_v13 = vsel %vm7209_vm5, %v8603_v23, %v7172_v43 }
 0x8c7   : > { %v7166_v25 = vpop.permute.xlu1 %7165 }
 0x8c8   : > { %v7210_v17 = vsel %vm7209_vm5, %v6410_v61, %v7166_v25 }
 0x8c9   : > { %v7168_v37 = vpop.permute.xlu0 %7167 }
 0x8ca   : > { %v7211_v0 = vsel %vm7209_vm5, %v6413_v1, %v7168_v37 }
 0x8ef   : > { %v7186_v26 = vpop.permute.xlu1 %7185 }
 0x8f0   : > { %v7217_v4 = vsel %vm7214_vm6, %v7212_v5, %v7186_v26 }
 0x8f1   : > { %v7188_v9 = vpop.permute.xlu0 %7187 }
 0x8f2   : > { %v7218_v39 = vsel %vm7214_vm6, %v7213_v13, %v7188_v9 }
 0x8f3   : > { %v7182_v34 = vpop.permute.xlu1 %7181 }
 0x8f4   : > { %v7215_v38 = vsel %vm7214_vm6, %v7210_v17, %v7182_v34 }
 0x8f5   : > { %v7184_v40 = vpop.permute.xlu0 %7183 }
 0x8f6   : > { %v7216_v22 = vsel %vm7214_vm6, %v7211_v0, %v7184_v40 }
 0x91b   : > { %v7202_v15 = vpop.permute.xlu1 %7201 }
 0x91c   : > { %v7222_v35 = vsel %vm7219_vm7, %v7217_v4, %v7202_v15 }
 0x91d   : > { %v7233_v27 = vadd.f32 %v7776_v36, %v7222_v35  ;;  %v7204_v56 = vpop.permute.xlu0 %7203 }
 0x91e   : > { %v7223_v31 = vsel %vm7219_vm7, %v7218_v39, %v7204_v56 }
 0x91f   : > { %v7237_v50 = vmax.f32 %v7233_v27, 0.0  ;;  %v7234_v29 = vadd.f32 %v7776_v36, %v7223_v31  ;;  %v7198_v2 = vpop.permute.xlu1 %7197 }
 0x920   : > { %v7220_v45 = vsel %vm7219_vm7, %v7215_v38, %v7198_v2 }
 0x921   : > { %7242 = vst.msk [vmem:[%s505_s16 + $0x10] sm:$0xff] %vm7239_vm8, %v7237_v50  ;;  %v7238_v33 = vmax.f32 %v7234_v29, 0.0  ;;  %v7231_v53 = vadd.f32 %v7776_v36, %v7220_v45  ;;  %v7200_v41 = vpop.permute.xlu0 %7199 }
 0x922   : > { %v7221_v59 = vsel %vm7219_vm7, %v7216_v22, %v7200_v41 }
 0x923   : > { %7243 = vst.msk [vmem:[%s505_s16 + $0x18] sm:$0xff] %vm7239_vm8, %v7238_v33  ;;  %v7235_v49 = vmax.f32 %v7231_v53, 0.0  ;;  %v7232_v52 = vadd.f32 %v7776_v36, %v7221_v59  ;;  %v4319_v11 = vpop.permute.xlu1 %4318 }
 0x924   : > { %4330 = vst.msk [vmem:[%s500_s20] sm:$0xff] %vm527_vm3, %v4319_v11 }
 0x925   : > { %7240 = vst.msk [vmem:[%s505_s16] sm:$0xff] %vm7239_vm8, %v7235_v49  ;;  %v7236_v46 = vmax.f32 %v7232_v52, 0.0  ;;  %v4321_v14 = vpop.permute.xlu0 %4320 }
 0x926   : > { %4331 = vst.msk [vmem:[%s500_s20 + $0x8] sm:$0xff] %vm527_vm3, %v4321_v14 }
 0x927   : > { %7241 = vst.msk [vmem:[%s505_s16 + $0x8] sm:$0xff] %vm7239_vm8, %v7236_v46  ;;  %v4323_v12 = vpop.permute.xlu1 %4322 }
 0x928   : > { %4332 = vst.msk [vmem:[%s500_s20 + $0x10] sm:$0xff] %vm527_vm3, %v4323_v12 }
 0x929   : > { %v4325_v54 = vpop.permute.xlu0 %4324 }
 0x92a   : > { %4333 = vst.msk [vmem:[%s500_s20 + $0x18] sm:$0xff] %vm527_vm3, %v4325_v54 }
 0x92b PF: > { %s24_s25 = sadd.s32 1, %s9191_s25  }
 0x92c   : > { %p21_p4 = scmp.ge.s32.totalorder %s24_s25, 5  }
 0x92e   :  { %23 = sbr.rel (!%p21_p4) target bundleno = 1 (0x1), region = 211 }

</bundles_post_ra>
